<compile_context>
chip_gen: v6e
topology: v6e:2x2x1
jax: 0.10.0
libtpu: 0.0.40
codegen_flags: <defaults>
</compile_context>

<pallas_src>
import functools

import jax
import jax.numpy as jnp
from jax.experimental import pallas as pl
from jax.experimental.pallas import tpu as pltpu

LN_EPS = 1e-5
ROPE_THETA = 10000.0


def _layer_norm(x, g, b, eps=LN_EPS):
    mu = jnp.mean(x, axis=-1, keepdims=True)
    var = jnp.mean((x - mu) ** 2, axis=-1, keepdims=True)
    return (x - mu) * jax.lax.rsqrt(var + eps) * g + b


def _gelu(x):
    # TODO(synk): get_activation_fn / GluFFN(swiglu) bodies are not in the
    # provided source; experts use DenseFFN with tanh-approx GELU.
    return 0.5 * x * (1.0 + jnp.tanh(0.7978845608028654 * (x + 0.044715 * x * x * x)))


# --------------------------------------------------------------------------- #
# Kernel 1: LN1 + self-attention (+rotary) + residual + LN2 + router logits
# --------------------------------------------------------------------------- #
def _attn_block_kernel(x_ref, ln1_ref, w_in0_ref, b_in0_ref, cos_ref, sin_ref,
                       prot_ref, w_in2_ref, b_in2_ref, w_out_ref, b_out_ref,
                       ln2_ref, w_router_ref,
                       x1_ref, xln2_ref, logits_ref,
                       *, num_heads, head_dim):
    f32 = jnp.float32
    x = x_ref[0]                                           # (S, D)
    S, D = x.shape

    # ---- attn_layer_norm ----
    xn = _layer_norm(x, ln1_ref[0], ln1_ref[1])

    # ---- explicit _in_proj (q0, k0, v0) ----
    q0 = jnp.dot(xn, w_in0_ref[0], preferred_element_type=f32) + b_in0_ref[0]
    k0 = jnp.dot(xn, w_in0_ref[1], preferred_element_type=f32) + b_in0_ref[1]
    v0 = jnp.dot(xn, w_in0_ref[2], preferred_element_type=f32) + b_in0_ref[2]

    # ---- rotary positional embedding on q0/k0 ----
    # rotate_half is realized as a matmul with a block-diagonal sign/permute
    # matrix (prot), avoiding in-kernel lane slicing/reshape.
    cos = cos_ref[...]
    sin = sin_ref[...]
    prot = prot_ref[...]
    q0 = q0 * cos + jnp.dot(q0, prot, preferred_element_type=f32) * sin
    k0 = k0 * cos + jnp.dot(k0, prot, preferred_element_type=f32) * sin

    # ---- nn.MultiheadAttention: internal in_proj (applied AGAIN) + SDPA ----
    # TODO(synk): key_padding_mask / need_weights paths not implemented
    # (test path uses padding_mask=None, need_weights=False).
    scale = 1.0 / (head_dim ** 0.5)
    attn = jnp.zeros((S, D), f32)
    for h in range(num_heads):
        qh = jnp.dot(q0, w_in2_ref[h], preferred_element_type=f32) + b_in2_ref[h]
        kh = (jnp.dot(k0, w_in2_ref[num_heads + h], preferred_element_type=f32)
              + b_in2_ref[num_heads + h])
        vh = (jnp.dot(v0, w_in2_ref[2 * num_heads + h], preferred_element_type=f32)
              + b_in2_ref[2 * num_heads + h])
        s = jax.lax.dot_general(qh, kh, (((1,), (1,)), ((), ())),
                                preferred_element_type=f32) * scale
        s = s - jnp.max(s, axis=-1, keepdims=True)
        p = jnp.exp(s)
        p = p / jnp.sum(p, axis=-1, keepdims=True)
        ctx = jnp.dot(p, vh, preferred_element_type=f32)                 # (S, hd)
        # fold the out_proj per head -> avoids concatenating heads on lanes
        attn = attn + jnp.dot(ctx, w_out_ref[h], preferred_element_type=f32)
    attn = attn + b_out_ref[...]

    # ---- residual, ffn_layer_norm, router logits (fused to save dispatches) ----
    x1 = x + attn
    x1_ref[0] = x1
    xn2 = _layer_norm(x1, ln2_ref[0], ln2_ref[1])
    xln2_ref[0] = xn2
    logits_ref[0] = jnp.dot(xn2, w_router_ref[...], preferred_element_type=f32)


# --------------------------------------------------------------------------- #
# Kernel 2: MoE FFN (routed experts + shared experts) + residual adds
# --------------------------------------------------------------------------- #
def _moe_ffn_kernel(x1_ref, xln2_ref, gates_ref, wi_ref, bi_ref, wo_ref, bo_ref,
                    o_ref, *, num_total_experts):
    f32 = jnp.float32
    x1 = x1_ref[...]                 # residual   (TN, D)
    xn = xln2_ref[...]               # LN'd input (TN, D)
    acc = x1 + xn                    # residual + output = x_flat.clone()
    for e in range(num_total_experts):
        h = jnp.dot(xn, wi_ref[e], preferred_element_type=f32) + bi_ref[e]
        h = _gelu(h)
        y = jnp.dot(h, wo_ref[e], preferred_element_type=f32) + bo_ref[e]
        acc = acc + y * gates_ref[e]                       # (TN,1) gate broadcast
    o_ref[...] = acc


# --------------------------------------------------------------------------- #
# Router glue
# --------------------------------------------------------------------------- #
def _top1_gates(logits, capacity):
    """Top-1 routing with first-come-first-served expert capacity.

    # TODO(synk): TopKRouter/TopPRouter/ExpertChoiceRouter bodies are not in the
    # provided source; this implements standard Switch-style top-1 (k=1) routing.
    """
    n, e = logits.shape
    probs = jax.nn.softmax(logits.astype(jnp.float32), axis=-1)
    top_idx = jnp.argmax(probs, axis=-1)
    top_p = jnp.max(probs, axis=-1)
    onehot = jax.nn.one_hot(top_idx, e, dtype=jnp.float32)
    if capacity is not None and capacity >= 0:
        pos = jnp.cumsum(onehot, axis=0) * onehot          # 1-indexed arrival order
        keep = (pos <= capacity).astype(jnp.float32) * onehot
    else:
        keep = onehot
    gates = keep * top_p[:, None]                          # (N, E)
    return probs, gates


# --------------------------------------------------------------------------- #
# Wrapper
# --------------------------------------------------------------------------- #
def sparse_transformer_layer(x, params, *, num_heads, num_shared_experts,
                             expert_capacity):
    """x: (B, S, D) float32. Returns (out, (router_logits, router_probs, gates))."""
    B, S, D = x.shape
    hd = D // num_heads
    half = hd // 2
    f32 = jnp.float32

    # ----- parameter layout prep (pure layout plumbing, traced once per jit) -----
    W_in = params["attn_in_proj_w"]                        # (3D, D) torch layout
    b_in = params["attn_in_proj_b"]                        # (3D,)
    w_in0 = jnp.stack([W_in[0:D].T, W_in[D:2 * D].T, W_in[2 * D:].T])      # (3,D,D)
    b_in0 = jnp.stack([b_in[0:D], b_in[D:2 * D], b_in[2 * D:]]).reshape(3, 1, D)
    # per-head weights for MultiheadAttention's internal (second) projection
    w_in2 = jnp.concatenate([
        jnp.stack([W_in[j * D + h * hd: j * D + (h + 1) * hd, :].T
                   for h in range(num_heads)]) for j in range(3)], axis=0)  # (3H,D,hd)
    b_in2 = jnp.concatenate([
        jnp.stack([b_in[j * D + h * hd: j * D + (h + 1) * hd].reshape(1, hd)
                   for h in range(num_heads)]) for j in range(3)], axis=0)  # (3H,1,hd)
    W_o = params["attn_out_proj_w"]                        # (D, D)
    w_out_h = jnp.stack([W_o[:, h * hd:(h + 1) * hd].T for h in range(num_heads)])
    b_out = params["attn_out_proj_b"].reshape(1, D)
    ln1 = jnp.stack([params["ln1_g"].reshape(1, D), params["ln1_b"].reshape(1, D)])
    ln2 = jnp.stack([params["ln2_g"].reshape(1, D), params["ln2_b"].reshape(1, D)])
    w_router = params["router_w"].T                        # (D, E)
    E = w_router.shape[1]

    # rotary tables (rotate-half convention, theta=10000)
    # TODO(synk): RotaryPositionalEmbedding body not in provided source; standard
    # rotate-half RoPE assumed.
    inv_freq = 1.0 / (ROPE_THETA ** (jnp.arange(half, dtype=f32) * 2.0 / hd))
    pos = jnp.arange(S, dtype=f32)
    emb = jnp.concatenate([pos[:, None] * inv_freq[None, :]] * 2, axis=-1)  # (S,hd)
    cos = jnp.tile(jnp.cos(emb), (1, num_heads))           # (S, D)
    sin = jnp.tile(jnp.sin(emb), (1, num_heads))
    p_head = jnp.zeros((hd, hd), f32)
    p_head = p_head.at[jnp.arange(half) + half, jnp.arange(half)].set(-1.0)
    p_head = p_head.at[jnp.arange(half), jnp.arange(half) + half].set(1.0)
    p_rot = jnp.kron(jnp.eye(num_heads, dtype=f32), p_head)                # (D, D)

    # ----- kernel 1: attention block + LN2 + router logits -----
    x1, xln2, logits = pl.pallas_call(
        functools.partial(_attn_block_kernel, num_heads=num_heads, head_dim=hd),
        out_shape=(
            jax.ShapeDtypeStruct((B, S, D), f32),
            jax.ShapeDtypeStruct((B, S, D), f32),
            jax.ShapeDtypeStruct((B, S, E), f32),
        ),
        grid=(B,),
        in_specs=[
            pl.BlockSpec((1, S, D), lambda b: (b, 0, 0)),                  # x
            pl.BlockSpec((2, 1, D), lambda b: (0, 0, 0)),                  # ln1 g/b
            pl.BlockSpec((3, D, D), lambda b: (0, 0, 0)),                  # in_proj W
            pl.BlockSpec((3, 1, D), lambda b: (0, 0, 0)),                  # in_proj b
            pl.BlockSpec((S, D), lambda b: (0, 0)),                        # cos
            pl.BlockSpec((S, D), lambda b: (0, 0)),                        # sin
            pl.BlockSpec((D, D), lambda b: (0, 0)),                        # rotate-half
            pl.BlockSpec((3 * num_heads, D, hd), lambda b: (0, 0, 0)),     # 2nd proj W
            pl.BlockSpec((3 * num_heads, 1, hd), lambda b: (0, 0, 0)),     # 2nd proj b
            pl.BlockSpec((num_heads, hd, D), lambda b: (0, 0, 0)),         # out_proj W
            pl.BlockSpec((1, D), lambda b: (0, 0)),                        # out_proj b
            pl.BlockSpec((2, 1, D), lambda b: (0, 0, 0)),                  # ln2 g/b
            pl.BlockSpec((D, E), lambda b: (0, 0)),                        # router W
        ],
        out_specs=(
            pl.BlockSpec((1, S, D), lambda b: (b, 0, 0)),
            pl.BlockSpec((1, S, D), lambda b: (b, 0, 0)),
            pl.BlockSpec((1, S, E), lambda b: (b, 0, 0)),
        ),
        compiler_params=pltpu.CompilerParams(dimension_semantics=("parallel",)),
    )(x, ln1, w_in0, b_in0, cos, sin, p_rot, w_in2, b_in2, w_out_h, b_out, ln2,
      w_router)

    # ----- routing glue (softmax / top-1 / capacity) -----
    N = B * S
    x1_flat = x1.reshape(N, D)
    xln2_flat = xln2.reshape(N, D)
    logits_flat = logits.reshape(N, E)
    router_probs, gates = _top1_gates(logits_flat, expert_capacity)

    # stack routed + shared experts; shared experts get gate 1.0 for every token
    # TODO(synk): heterogeneous expert_ffn_dims would need separate refs; equal
    # ffn dims assumed so the experts stack on a leading axis.
    wi_all = jnp.stack([w.T for w in params["expert_wi"] + params["shared_wi"]])
    bi_all = jnp.stack([b.reshape(1, -1)
                        for b in params["expert_bi"] + params["shared_bi"]])
    wo_all = jnp.stack([w.T for w in params["expert_wo"] + params["shared_wo"]])
    bo_all = jnp.stack([b.reshape(1, -1)
                        for b in params["expert_bo"] + params["shared_bo"]])
    Et, _, F = wi_all.shape
    gates_all = jnp.concatenate(
        [gates.T[:, :, None], jnp.ones((num_shared_experts, N, 1), f32)], axis=0)

    # ----- kernel 2: fused MoE FFN + residuals -----
    TN = N  # one token tile at toy shapes; use >=128-row tiles for real configs
    y_flat = pl.pallas_call(
        functools.partial(_moe_ffn_kernel, num_total_experts=Et),
        out_shape=jax.ShapeDtypeStruct((N, D), f32),
        grid=(pl.cdiv(N, TN),),
        in_specs=[
            pl.BlockSpec((TN, D), lambda i: (i, 0)),
            pl.BlockSpec((TN, D), lambda i: (i, 0)),
            pl.BlockSpec((Et, TN, 1), lambda i: (0, i, 0)),
            pl.BlockSpec((Et, D, F), lambda i: (0, 0, 0)),
            pl.BlockSpec((Et, 1, F), lambda i: (0, 0, 0)),
            pl.BlockSpec((Et, F, D), lambda i: (0, 0, 0)),
            pl.BlockSpec((Et, 1, D), lambda i: (0, 0, 0)),
        ],
        out_specs=pl.BlockSpec((TN, D), lambda i: (i, 0)),
        compiler_params=pltpu.CompilerParams(dimension_semantics=("parallel",)),
    )(x1_flat, xln2_flat, gates_all, wi_all, bi_all, wo_all, bo_all)

    y = y_flat.reshape(B, S, D)
    return y, (logits_flat, router_probs, gates)


# --------------------------------------------------------------------------- #
# Pure-JAX reference (follows PyTorch semantics, incl. the double projection)
# --------------------------------------------------------------------------- #
def _reference(x, params, *, num_heads, num_shared_experts, expert_capacity):
    B, S, D = x.shape
    hd = D // num_heads
    half = hd // 2
    W_in, b_in = params["attn_in_proj_w"], params["attn_in_proj_b"]

    xn = _layer_norm(x, params["ln1_g"], params["ln1_b"])
    combined = xn @ W_in.T + b_in
    q0, k0, v0 = jnp.split(combined, 3, axis=-1)

    inv_freq = 1.0 / (ROPE_THETA ** (jnp.arange(half, dtype=jnp.float32) * 2.0 / hd))
    pos = jnp.arange(S, dtype=jnp.float32)
    emb = jnp.concatenate([pos[:, None] * inv_freq[None, :]] * 2, axis=-1)
    cos = jnp.cos(emb)[None, :, None, :]
    sin = jnp.sin(emb)[None, :, None, :]

    def rope(t):
        t = t.reshape(B, S, num_heads, hd)
        rot = jnp.concatenate([-t[..., half:], t[..., :half]], axis=-1)
        return (t * cos + rot * sin).reshape(B, S, D)

    q0, k0 = rope(q0), rope(k0)
    Wq, Wk, Wv = W_in[:D], W_in[D:2 * D], W_in[2 * D:]
    bq, bk, bv = b_in[:D], b_in[D:2 * D], b_in[2 * D:]
    q, k, v = q0 @ Wq.T + bq, k0 @ Wk.T + bk, v0 @ Wv.T + bv

    def heads(t):
        return t.reshape(B, S, num_heads, hd).transpose(0, 2, 1, 3)

    qh, kh, vh = heads(q), heads(k), heads(v)
    s = jnp.einsum("bhqd,bhkd->bhqk", qh, kh) / (hd ** 0.5)
    p = jax.nn.softmax(s, axis=-1)
    ctx = jnp.einsum("bhqk,bhkd->bhqd", p, vh).transpose(0, 2, 1, 3).reshape(B, S, D)
    x1 = x + ctx @ params["attn_out_proj_w"].T + params["attn_out_proj_b"]

    xn2 = _layer_norm(x1, params["ln2_g"], params["ln2_b"])
    flat, res = xn2.reshape(-1, D), x1.reshape(-1, D)
    logits = flat @ params["router_w"].T
    _, gates = _top1_gates(logits, expert_capacity)

    acc = flat
    for e in range(len(params["expert_wi"])):
        h = _gelu(flat @ params["expert_wi"][e].T + params["expert_bi"][e])
        acc = acc + gates[:, e:e + 1] * (h @ params["expert_wo"][e].T
                                         + params["expert_bo"][e])
    for sidx in range(num_shared_experts):
        h = _gelu(flat @ params["shared_wi"][sidx].T + params["shared_bi"][sidx])
        acc = acc + (h @ params["shared_wo"][sidx].T + params["shared_bo"][sidx])
    return (res + acc).reshape(B, S, D)


if __name__ == "__main__":
    jax.config.update("jax_default_matmul_precision", "highest")

    # Small config consistent with the module's forward.
    B, S, D = 2, 8, 32
    num_heads = 4
    num_experts, num_shared = 4, 1            # 3 routed experts + 1 shared
    E_routed = num_experts - num_shared
    ffn_dim = shared_ffn_dim = 64
    capacity = 8                              # absolute expert capacity

    keys = iter(jax.random.split(jax.random.PRNGKey(0), 64))

    def nrm(shape, scale=0.1):
        return scale * jax.random.normal(next(keys), shape, dtype=jnp.float32)

    params = {
        "ln1_g": 1.0 + nrm((D,)), "ln1_b": nrm((D,)),
        "attn_in_proj_w": nrm((3 * D, D)), "attn_in_proj_b": nrm((3 * D,)),
        "attn_out_proj_w": nrm((D, D)), "attn_out_proj_b": nrm((D,)),
        "ln2_g": 1.0 + nrm((D,)), "ln2_b": nrm((D,)),
        "router_w": nrm((E_routed, D), 0.5),
        "expert_wi": [nrm((ffn_dim, D)) for _ in range(E_routed)],
        "expert_bi": [nrm((ffn_dim,)) for _ in range(E_routed)],
        "expert_wo": [nrm((D, ffn_dim)) for _ in range(E_routed)],
        "expert_bo": [nrm((D,)) for _ in range(E_routed)],
        "shared_wi": [nrm((shared_ffn_dim, D)) for _ in range(num_shared)],
        "shared_bi": [nrm((shared_ffn_dim,)) for _ in range(num_shared)],
        "shared_wo": [nrm((D, shared_ffn_dim)) for _ in range(num_shared)],
        "shared_bo": [nrm((D,)) for _ in range(num_shared)],
    }
    x = jax.random.normal(next(keys), (B, S, D), dtype=jnp.float32)

    layer_fn = jax.jit(functools.partial(
        sparse_transformer_layer, num_heads=num_heads,
        num_shared_experts=num_shared, expert_capacity=capacity))

    (y, router_tuple) = layer_fn(x, params)
    y = jax.block_until_ready(y)

    y_ref = _reference(x, params, num_heads=num_heads,
                       num_shared_experts=num_shared, expert_capacity=capacity)

    assert y.shape == (B, S, D), y.shape
    assert jnp.allclose(y, y_ref, atol=2e-3, rtol=2e-3), \
        float(jnp.max(jnp.abs(y - y_ref)))

    print("KERNEL_OK")
</pallas_src>

<mosaic_0001>
module attributes {stable_mosaic.version = 11 : i64} {
  func.func @_attn_block_kernel(%arg0: i32, %arg1: memref<1x8x32xf32, #tpu.memory_space<vmem>>, %arg2: memref<2x1x32xf32, #tpu.memory_space<vmem>>, %arg3: memref<3x32x32xf32, #tpu.memory_space<vmem>>, %arg4: memref<3x1x32xf32, #tpu.memory_space<vmem>>, %arg5: memref<8x32xf32, #tpu.memory_space<vmem>>, %arg6: memref<8x32xf32, #tpu.memory_space<vmem>>, %arg7: memref<32x32xf32, #tpu.memory_space<vmem>>, %arg8: memref<12x32x8xf32, #tpu.memory_space<vmem>>, %arg9: memref<12x1x8xf32, #tpu.memory_space<vmem>>, %arg10: memref<4x8x32xf32, #tpu.memory_space<vmem>>, %arg11: memref<1x32xf32, #tpu.memory_space<vmem>>, %arg12: memref<2x1x32xf32, #tpu.memory_space<vmem>>, %arg13: memref<32x3xf32, #tpu.memory_space<vmem>>, %arg14: memref<1x8x32xf32, #tpu.memory_space<vmem>>, %arg15: memref<1x8x32xf32, #tpu.memory_space<vmem>>, %arg16: memref<1x8x3xf32, #tpu.memory_space<vmem>>) attributes {dimension_semantics = [#tpu.dimension_semantics<parallel>], iteration_bounds = array<i64: 2>, scalar_prefetch = 0 : i64, scratch_operands = 0 : i64, tpu.core_type = #tpu.core_type<tc>, window_params = [{transform_indices = @transform_0, window_bounds = array<i64: 1, 8, 32>}, {pipeline_mode = #tpu.pipeline_mode<synchronous>, transform_indices = @transform_1, window_bounds = array<i64: 2, 1, 32>}, {pipeline_mode = #tpu.pipeline_mode<synchronous>, transform_indices = @transform_2, window_bounds = array<i64: 3, 32, 32>}, {pipeline_mode = #tpu.pipeline_mode<synchronous>, transform_indices = @transform_3, window_bounds = array<i64: 3, 1, 32>}, {pipeline_mode = #tpu.pipeline_mode<synchronous>, transform_indices = @transform_4, window_bounds = array<i64: 8, 32>}, {pipeline_mode = #tpu.pipeline_mode<synchronous>, transform_indices = @transform_5, window_bounds = array<i64: 8, 32>}, {pipeline_mode = #tpu.pipeline_mode<synchronous>, transform_indices = @transform_6, window_bounds = array<i64: 32, 32>}, {pipeline_mode = #tpu.pipeline_mode<synchronous>, transform_indices = @transform_7, window_bounds = array<i64: 12, 32, 8>}, {pipeline_mode = #tpu.pipeline_mode<synchronous>, transform_indices = @transform_8, window_bounds = array<i64: 12, 1, 8>}, {pipeline_mode = #tpu.pipeline_mode<synchronous>, transform_indices = @transform_9, window_bounds = array<i64: 4, 8, 32>}, {pipeline_mode = #tpu.pipeline_mode<synchronous>, transform_indices = @transform_10, window_bounds = array<i64: 1, 32>}, {pipeline_mode = #tpu.pipeline_mode<synchronous>, transform_indices = @transform_11, window_bounds = array<i64: 2, 1, 32>}, {pipeline_mode = #tpu.pipeline_mode<synchronous>, transform_indices = @transform_12, window_bounds = array<i64: 32, 3>}, {transform_indices = @transform_13, window_bounds = array<i64: 1, 8, 32>}, {transform_indices = @transform_14, window_bounds = array<i64: 1, 8, 32>}, {transform_indices = @transform_15, window_bounds = array<i64: 1, 8, 3>}]} {
    %c0 = arith.constant 0 : index
    %c0_0 = arith.constant 0 : index
    %c0_1 = arith.constant 0 : index
    %0 = vector.load %arg1[%c0, %c0_0, %c0_1] : memref<1x8x32xf32, #tpu.memory_space<vmem>>, vector<1x8x32xf32>
    %1 = vector.shape_cast %0 : vector<1x8x32xf32> to vector<8x32xf32>
    %c0_2 = arith.constant 0 : index
    %c0_3 = arith.constant 0 : index
    %c0_4 = arith.constant 0 : index
    %2 = vector.load %arg2[%c0_2, %c0_3, %c0_4] : memref<2x1x32xf32, #tpu.memory_space<vmem>>, vector<1x1x32xf32>
    %3 = vector.shape_cast %2 : vector<1x1x32xf32> to vector<1x32xf32>
    %c1 = arith.constant 1 : index
    %c0_5 = arith.constant 0 : index
    %c0_6 = arith.constant 0 : index
    %4 = vector.load %arg2[%c1, %c0_5, %c0_6] : memref<2x1x32xf32, #tpu.memory_space<vmem>>, vector<1x1x32xf32>
    %5 = vector.shape_cast %4 : vector<1x1x32xf32> to vector<1x32xf32>
    %cst = arith.constant dense<0.000000e+00> : vector<8xf32>
    %6 = vector.multi_reduction <add>, %1, %cst [1] : vector<8x32xf32> to vector<8xf32>
    %7 = vector.shape_cast %6 : vector<8xf32> to vector<8x1xf32>
    %cst_7 = arith.constant 3.200000e+01 : f32
    %8 = vector.broadcast %cst_7 : f32 to vector<8x1xf32>
    %9 = arith.divf %7, %8 : vector<8x1xf32>
    %10 = vector.broadcast %9 : vector<8x1xf32> to vector<8x32xf32>
    %11 = arith.subf %1, %10 : vector<8x32xf32>
    %12 = arith.mulf %11, %11 : vector<8x32xf32>
    %cst_8 = arith.constant dense<0.000000e+00> : vector<8xf32>
    %13 = vector.multi_reduction <add>, %12, %cst_8 [1] : vector<8x32xf32> to vector<8xf32>
    %14 = vector.shape_cast %13 : vector<8xf32> to vector<8x1xf32>
    %cst_9 = arith.constant 3.200000e+01 : f32
    %15 = vector.broadcast %cst_9 : f32 to vector<8x1xf32>
    %16 = arith.divf %14, %15 : vector<8x1xf32>
    %17 = vector.broadcast %9 : vector<8x1xf32> to vector<8x32xf32>
    %18 = arith.subf %1, %17 : vector<8x32xf32>
    %cst_10 = arith.constant 9.99999974E-6 : f32
    %19 = vector.broadcast %cst_10 : f32 to vector<8x1xf32>
    %20 = arith.addf %16, %19 : vector<8x1xf32>
    %21 = math.rsqrt %20 : vector<8x1xf32>
    %22 = vector.broadcast %21 : vector<8x1xf32> to vector<8x32xf32>
    %23 = arith.mulf %18, %22 : vector<8x32xf32>
    %24 = vector.broadcast %3 : vector<1x32xf32> to vector<8x32xf32>
    %25 = arith.mulf %23, %24 : vector<8x32xf32>
    %26 = vector.broadcast %5 : vector<1x32xf32> to vector<8x32xf32>
    %27 = arith.addf %25, %26 : vector<8x32xf32>
    %c0_11 = arith.constant 0 : index
    %c0_12 = arith.constant 0 : index
    %c0_13 = arith.constant 0 : index
    %28 = vector.load %arg3[%c0_11, %c0_12, %c0_13] : memref<3x32x32xf32, #tpu.memory_space<vmem>>, vector<1x32x32xf32>
    %29 = vector.shape_cast %28 : vector<1x32x32xf32> to vector<32x32xf32>
    %cst_14 = arith.constant dense<0.000000e+00> : vector<8x32xf32>
    %30 = tpu.matmul %27, %29, %cst_14 {dimension_numbers = #tpu.dot_dimension_numbers<[1], [0], [0], [1], [0, 0, 1, 1], [], []>, precision = #tpu.contract_precision<fp32>} : vector<8x32xf32>, vector<32x32xf32>, vector<8x32xf32> -> vector<8x32xf32>
    %c0_15 = arith.constant 0 : index
    %c0_16 = arith.constant 0 : index
    %c0_17 = arith.constant 0 : index
    %31 = vector.load %arg4[%c0_15, %c0_16, %c0_17] : memref<3x1x32xf32, #tpu.memory_space<vmem>>, vector<1x1x32xf32>
    %32 = vector.shape_cast %31 : vector<1x1x32xf32> to vector<1x32xf32>
    %33 = vector.broadcast %32 : vector<1x32xf32> to vector<8x32xf32>
    %34 = arith.addf %30, %33 : vector<8x32xf32>
    %c1_18 = arith.constant 1 : index
    %c0_19 = arith.constant 0 : index
    %c0_20 = arith.constant 0 : index
    %35 = vector.load %arg3[%c1_18, %c0_19, %c0_20] : memref<3x32x32xf32, #tpu.memory_space<vmem>>, vector<1x32x32xf32>
    %36 = vector.shape_cast %35 : vector<1x32x32xf32> to vector<32x32xf32>
    %cst_21 = arith.constant dense<0.000000e+00> : vector<8x32xf32>
    %37 = tpu.matmul %27, %36, %cst_21 {dimension_numbers = #tpu.dot_dimension_numbers<[1], [0], [0], [1], [0, 0, 1, 1], [], []>, precision = #tpu.contract_precision<fp32>} : vector<8x32xf32>, vector<32x32xf32>, vector<8x32xf32> -> vector<8x32xf32>
    %c1_22 = arith.constant 1 : index
    %c0_23 = arith.constant 0 : index
    %c0_24 = arith.constant 0 : index
    %38 = vector.load %arg4[%c1_22, %c0_23, %c0_24] : memref<3x1x32xf32, #tpu.memory_space<vmem>>, vector<1x1x32xf32>
    %39 = vector.shape_cast %38 : vector<1x1x32xf32> to vector<1x32xf32>
    %40 = vector.broadcast %39 : vector<1x32xf32> to vector<8x32xf32>
    %41 = arith.addf %37, %40 : vector<8x32xf32>
    %c2 = arith.constant 2 : index
    %c0_25 = arith.constant 0 : index
    %c0_26 = arith.constant 0 : index
    %42 = vector.load %arg3[%c2, %c0_25, %c0_26] : memref<3x32x32xf32, #tpu.memory_space<vmem>>, vector<1x32x32xf32>
    %43 = vector.shape_cast %42 : vector<1x32x32xf32> to vector<32x32xf32>
    %cst_27 = arith.constant dense<0.000000e+00> : vector<8x32xf32>
    %44 = tpu.matmul %27, %43, %cst_27 {dimension_numbers = #tpu.dot_dimension_numbers<[1], [0], [0], [1], [0, 0, 1, 1], [], []>, precision = #tpu.contract_precision<fp32>} : vector<8x32xf32>, vector<32x32xf32>, vector<8x32xf32> -> vector<8x32xf32>
    %c2_28 = arith.constant 2 : index
    %c0_29 = arith.constant 0 : index
    %c0_30 = arith.constant 0 : index
    %45 = vector.load %arg4[%c2_28, %c0_29, %c0_30] : memref<3x1x32xf32, #tpu.memory_space<vmem>>, vector<1x1x32xf32>
    %46 = vector.shape_cast %45 : vector<1x1x32xf32> to vector<1x32xf32>
    %47 = vector.broadcast %46 : vector<1x32xf32> to vector<8x32xf32>
    %48 = arith.addf %44, %47 : vector<8x32xf32>
    %c0_31 = arith.constant 0 : index
    %c0_32 = arith.constant 0 : index
    %49 = vector.load %arg5[%c0_31, %c0_32] : memref<8x32xf32, #tpu.memory_space<vmem>>, vector<8x32xf32>
    %c0_33 = arith.constant 0 : index
    %c0_34 = arith.constant 0 : index
    %50 = vector.load %arg6[%c0_33, %c0_34] : memref<8x32xf32, #tpu.memory_space<vmem>>, vector<8x32xf32>
    %c0_35 = arith.constant 0 : index
    %c0_36 = arith.constant 0 : index
    %51 = vector.load %arg7[%c0_35, %c0_36] : memref<32x32xf32, #tpu.memory_space<vmem>>, vector<32x32xf32>
    %52 = arith.mulf %34, %49 : vector<8x32xf32>
    %cst_37 = arith.constant dense<0.000000e+00> : vector<8x32xf32>
    %53 = tpu.matmul %34, %51, %cst_37 {dimension_numbers = #tpu.dot_dimension_numbers<[1], [0], [0], [1], [0, 0, 1, 1], [], []>, precision = #tpu.contract_precision<fp32>} : vector<8x32xf32>, vector<32x32xf32>, vector<8x32xf32> -> vector<8x32xf32>
    %54 = arith.mulf %53, %50 : vector<8x32xf32>
    %55 = arith.addf %52, %54 : vector<8x32xf32>
    %56 = arith.mulf %41, %49 : vector<8x32xf32>
    %cst_38 = arith.constant dense<0.000000e+00> : vector<8x32xf32>
    %57 = tpu.matmul %41, %51, %cst_38 {dimension_numbers = #tpu.dot_dimension_numbers<[1], [0], [0], [1], [0, 0, 1, 1], [], []>, precision = #tpu.contract_precision<fp32>} : vector<8x32xf32>, vector<32x32xf32>, vector<8x32xf32> -> vector<8x32xf32>
    %58 = arith.mulf %57, %50 : vector<8x32xf32>
    %59 = arith.addf %56, %58 : vector<8x32xf32>
    %cst_39 = arith.constant 0.000000e+00 : f32
    %60 = vector.broadcast %cst_39 : f32 to vector<8x32xf32>
    %c0_40 = arith.constant 0 : index
    %c0_41 = arith.constant 0 : index
    %c0_42 = arith.constant 0 : index
    %61 = vector.load %arg8[%c0_40, %c0_41, %c0_42] : memref<12x32x8xf32, #tpu.memory_space<vmem>>, vector<1x32x8xf32>
    %62 = vector.shape_cast %61 : vector<1x32x8xf32> to vector<32x8xf32>
    %cst_43 = arith.constant dense<0.000000e+00> : vector<8x8xf32>
    %63 = tpu.matmul %55, %62, %cst_43 {dimension_numbers = #tpu.dot_dimension_numbers<[1], [0], [0], [1], [0, 0, 1, 1], [], []>, precision = #tpu.contract_precision<fp32>} : vector<8x32xf32>, vector<32x8xf32>, vector<8x8xf32> -> vector<8x8xf32>
    %c0_44 = arith.constant 0 : index
    %c0_45 = arith.constant 0 : index
    %c0_46 = arith.constant 0 : index
    %64 = vector.load %arg9[%c0_44, %c0_45, %c0_46] : memref<12x1x8xf32, #tpu.memory_space<vmem>>, vector<1x1x8xf32>
    %65 = vector.shape_cast %64 : vector<1x1x8xf32> to vector<1x8xf32>
    %66 = vector.broadcast %65 : vector<1x8xf32> to vector<8x8xf32>
    %67 = arith.addf %63, %66 : vector<8x8xf32>
    %c4 = arith.constant 4 : index
    %c0_47 = arith.constant 0 : index
    %c0_48 = arith.constant 0 : index
    %68 = vector.load %arg8[%c4, %c0_47, %c0_48] : memref<12x32x8xf32, #tpu.memory_space<vmem>>, vector<1x32x8xf32>
    %69 = vector.shape_cast %68 : vector<1x32x8xf32> to vector<32x8xf32>
    %cst_49 = arith.constant dense<0.000000e+00> : vector<8x8xf32>
    %70 = tpu.matmul %59, %69, %cst_49 {dimension_numbers = #tpu.dot_dimension_numbers<[1], [0], [0], [1], [0, 0, 1, 1], [], []>, precision = #tpu.contract_precision<fp32>} : vector<8x32xf32>, vector<32x8xf32>, vector<8x8xf32> -> vector<8x8xf32>
    %c4_50 = arith.constant 4 : index
    %c0_51 = arith.constant 0 : index
    %c0_52 = arith.constant 0 : index
    %71 = vector.load %arg9[%c4_50, %c0_51, %c0_52] : memref<12x1x8xf32, #tpu.memory_space<vmem>>, vector<1x1x8xf32>
    %72 = vector.shape_cast %71 : vector<1x1x8xf32> to vector<1x8xf32>
    %73 = vector.broadcast %72 : vector<1x8xf32> to vector<8x8xf32>
    %74 = arith.addf %70, %73 : vector<8x8xf32>
    %c8 = arith.constant 8 : index
    %c0_53 = arith.constant 0 : index
    %c0_54 = arith.constant 0 : index
    %75 = vector.load %arg8[%c8, %c0_53, %c0_54] : memref<12x32x8xf32, #tpu.memory_space<vmem>>, vector<1x32x8xf32>
    %76 = vector.shape_cast %75 : vector<1x32x8xf32> to vector<32x8xf32>
    %cst_55 = arith.constant dense<0.000000e+00> : vector<8x8xf32>
    %77 = tpu.matmul %48, %76, %cst_55 {dimension_numbers = #tpu.dot_dimension_numbers<[1], [0], [0], [1], [0, 0, 1, 1], [], []>, precision = #tpu.contract_precision<fp32>} : vector<8x32xf32>, vector<32x8xf32>, vector<8x8xf32> -> vector<8x8xf32>
    %c8_56 = arith.constant 8 : index
    %c0_57 = arith.constant 0 : index
    %c0_58 = arith.constant 0 : index
    %78 = vector.load %arg9[%c8_56, %c0_57, %c0_58] : memref<12x1x8xf32, #tpu.memory_space<vmem>>, vector<1x1x8xf32>
    %79 = vector.shape_cast %78 : vector<1x1x8xf32> to vector<1x8xf32>
    %80 = vector.broadcast %79 : vector<1x8xf32> to vector<8x8xf32>
    %81 = arith.addf %77, %80 : vector<8x8xf32>
    %cst_59 = arith.constant dense<0.000000e+00> : vector<8x8xf32>
    %82 = tpu.matmul %67, %74, %cst_59 {dimension_numbers = #tpu.dot_dimension_numbers<[1], [1], [0], [0], [0, 0, 1, 0], [], []>, precision = #tpu.contract_precision<fp32>} : vector<8x8xf32>, vector<8x8xf32>, vector<8x8xf32> -> vector<8x8xf32>
    %cst_60 = arith.constant 0.353553385 : f32
    %83 = vector.broadcast %cst_60 : f32 to vector<8x8xf32>
    %84 = arith.mulf %82, %83 : vector<8x8xf32>
    %cst_61 = arith.constant dense<0xFF800000> : vector<8xf32>
    %85 = vector.multi_reduction <maximumf>, %84, %cst_61 [1] : vector<8x8xf32> to vector<8xf32>
    %86 = vector.shape_cast %85 : vector<8xf32> to vector<8x1xf32>
    %87 = vector.broadcast %86 : vector<8x1xf32> to vector<8x8xf32>
    %88 = arith.subf %84, %87 : vector<8x8xf32>
    %89 = math.exp %88 : vector<8x8xf32>
    %cst_62 = arith.constant dense<0.000000e+00> : vector<8xf32>
    %90 = vector.multi_reduction <add>, %89, %cst_62 [1] : vector<8x8xf32> to vector<8xf32>
    %91 = vector.shape_cast %90 : vector<8xf32> to vector<8x1xf32>
    %92 = vector.broadcast %91 : vector<8x1xf32> to vector<8x8xf32>
    %93 = arith.divf %89, %92 : vector<8x8xf32>
    %cst_63 = arith.constant dense<0.000000e+00> : vector<8x8xf32>
    %94 = tpu.matmul %93, %81, %cst_63 {dimension_numbers = #tpu.dot_dimension_numbers<[1], [0], [0], [1], [0, 0, 1, 1], [], []>, precision = #tpu.contract_precision<fp32>} : vector<8x8xf32>, vector<8x8xf32>, vector<8x8xf32> -> vector<8x8xf32>
    %c0_64 = arith.constant 0 : index
    %c0_65 = arith.constant 0 : index
    %c0_66 = arith.constant 0 : index
    %95 = vector.load %arg10[%c0_64, %c0_65, %c0_66] : memref<4x8x32xf32, #tpu.memory_space<vmem>>, vector<1x8x32xf32>
    %96 = vector.shape_cast %95 : vector<1x8x32xf32> to vector<8x32xf32>
    %cst_67 = arith.constant dense<0.000000e+00> : vector<8x32xf32>
    %97 = tpu.matmul %94, %96, %cst_67 {dimension_numbers = #tpu.dot_dimension_numbers<[1], [0], [0], [1], [0, 0, 1, 1], [], []>, precision = #tpu.contract_precision<fp32>} : vector<8x8xf32>, vector<8x32xf32>, vector<8x32xf32> -> vector<8x32xf32>
    %98 = arith.addf %60, %97 : vector<8x32xf32>
    %c1_68 = arith.constant 1 : index
    %c0_69 = arith.constant 0 : index
    %c0_70 = arith.constant 0 : index
    %99 = vector.load %arg8[%c1_68, %c0_69, %c0_70] : memref<12x32x8xf32, #tpu.memory_space<vmem>>, vector<1x32x8xf32>
    %100 = vector.shape_cast %99 : vector<1x32x8xf32> to vector<32x8xf32>
    %cst_71 = arith.constant dense<0.000000e+00> : vector<8x8xf32>
    %101 = tpu.matmul %55, %100, %cst_71 {dimension_numbers = #tpu.dot_dimension_numbers<[1], [0], [0], [1], [0, 0, 1, 1], [], []>, precision = #tpu.contract_precision<fp32>} : vector<8x32xf32>, vector<32x8xf32>, vector<8x8xf32> -> vector<8x8xf32>
    %c1_72 = arith.constant 1 : index
    %c0_73 = arith.constant 0 : index
    %c0_74 = arith.constant 0 : index
    %102 = vector.load %arg9[%c1_72, %c0_73, %c0_74] : memref<12x1x8xf32, #tpu.memory_space<vmem>>, vector<1x1x8xf32>
    %103 = vector.shape_cast %102 : vector<1x1x8xf32> to vector<1x8xf32>
    %104 = vector.broadcast %103 : vector<1x8xf32> to vector<8x8xf32>
    %105 = arith.addf %101, %104 : vector<8x8xf32>
    %c5 = arith.constant 5 : index
    %c0_75 = arith.constant 0 : index
    %c0_76 = arith.constant 0 : index
    %106 = vector.load %arg8[%c5, %c0_75, %c0_76] : memref<12x32x8xf32, #tpu.memory_space<vmem>>, vector<1x32x8xf32>
    %107 = vector.shape_cast %106 : vector<1x32x8xf32> to vector<32x8xf32>
    %cst_77 = arith.constant dense<0.000000e+00> : vector<8x8xf32>
    %108 = tpu.matmul %59, %107, %cst_77 {dimension_numbers = #tpu.dot_dimension_numbers<[1], [0], [0], [1], [0, 0, 1, 1], [], []>, precision = #tpu.contract_precision<fp32>} : vector<8x32xf32>, vector<32x8xf32>, vector<8x8xf32> -> vector<8x8xf32>
    %c5_78 = arith.constant 5 : index
    %c0_79 = arith.constant 0 : index
    %c0_80 = arith.constant 0 : index
    %109 = vector.load %arg9[%c5_78, %c0_79, %c0_80] : memref<12x1x8xf32, #tpu.memory_space<vmem>>, vector<1x1x8xf32>
    %110 = vector.shape_cast %109 : vector<1x1x8xf32> to vector<1x8xf32>
    %111 = vector.broadcast %110 : vector<1x8xf32> to vector<8x8xf32>
    %112 = arith.addf %108, %111 : vector<8x8xf32>
    %c9 = arith.constant 9 : index
    %c0_81 = arith.constant 0 : index
    %c0_82 = arith.constant 0 : index
    %113 = vector.load %arg8[%c9, %c0_81, %c0_82] : memref<12x32x8xf32, #tpu.memory_space<vmem>>, vector<1x32x8xf32>
    %114 = vector.shape_cast %113 : vector<1x32x8xf32> to vector<32x8xf32>
    %cst_83 = arith.constant dense<0.000000e+00> : vector<8x8xf32>
    %115 = tpu.matmul %48, %114, %cst_83 {dimension_numbers = #tpu.dot_dimension_numbers<[1], [0], [0], [1], [0, 0, 1, 1], [], []>, precision = #tpu.contract_precision<fp32>} : vector<8x32xf32>, vector<32x8xf32>, vector<8x8xf32> -> vector<8x8xf32>
    %c9_84 = arith.constant 9 : index
    %c0_85 = arith.constant 0 : index
    %c0_86 = arith.constant 0 : index
    %116 = vector.load %arg9[%c9_84, %c0_85, %c0_86] : memref<12x1x8xf32, #tpu.memory_space<vmem>>, vector<1x1x8xf32>
    %117 = vector.shape_cast %116 : vector<1x1x8xf32> to vector<1x8xf32>
    %118 = vector.broadcast %117 : vector<1x8xf32> to vector<8x8xf32>
    %119 = arith.addf %115, %118 : vector<8x8xf32>
    %cst_87 = arith.constant dense<0.000000e+00> : vector<8x8xf32>
    %120 = tpu.matmul %105, %112, %cst_87 {dimension_numbers = #tpu.dot_dimension_numbers<[1], [1], [0], [0], [0, 0, 1, 0], [], []>, precision = #tpu.contract_precision<fp32>} : vector<8x8xf32>, vector<8x8xf32>, vector<8x8xf32> -> vector<8x8xf32>
    %cst_88 = arith.constant 0.353553385 : f32
    %121 = vector.broadcast %cst_88 : f32 to vector<8x8xf32>
    %122 = arith.mulf %120, %121 : vector<8x8xf32>
    %cst_89 = arith.constant dense<0xFF800000> : vector<8xf32>
    %123 = vector.multi_reduction <maximumf>, %122, %cst_89 [1] : vector<8x8xf32> to vector<8xf32>
    %124 = vector.shape_cast %123 : vector<8xf32> to vector<8x1xf32>
    %125 = vector.broadcast %124 : vector<8x1xf32> to vector<8x8xf32>
    %126 = arith.subf %122, %125 : vector<8x8xf32>
    %127 = math.exp %126 : vector<8x8xf32>
    %cst_90 = arith.constant dense<0.000000e+00> : vector<8xf32>
    %128 = vector.multi_reduction <add>, %127, %cst_90 [1] : vector<8x8xf32> to vector<8xf32>
    %129 = vector.shape_cast %128 : vector<8xf32> to vector<8x1xf32>
    %130 = vector.broadcast %129 : vector<8x1xf32> to vector<8x8xf32>
    %131 = arith.divf %127, %130 : vector<8x8xf32>
    %cst_91 = arith.constant dense<0.000000e+00> : vector<8x8xf32>
    %132 = tpu.matmul %131, %119, %cst_91 {dimension_numbers = #tpu.dot_dimension_numbers<[1], [0], [0], [1], [0, 0, 1, 1], [], []>, precision = #tpu.contract_precision<fp32>} : vector<8x8xf32>, vector<8x8xf32>, vector<8x8xf32> -> vector<8x8xf32>
    %c1_92 = arith.constant 1 : index
    %c0_93 = arith.constant 0 : index
    %c0_94 = arith.constant 0 : index
    %133 = vector.load %arg10[%c1_92, %c0_93, %c0_94] : memref<4x8x32xf32, #tpu.memory_space<vmem>>, vector<1x8x32xf32>
    %134 = vector.shape_cast %133 : vector<1x8x32xf32> to vector<8x32xf32>
    %cst_95 = arith.constant dense<0.000000e+00> : vector<8x32xf32>
    %135 = tpu.matmul %132, %134, %cst_95 {dimension_numbers = #tpu.dot_dimension_numbers<[1], [0], [0], [1], [0, 0, 1, 1], [], []>, precision = #tpu.contract_precision<fp32>} : vector<8x8xf32>, vector<8x32xf32>, vector<8x32xf32> -> vector<8x32xf32>
    %136 = arith.addf %98, %135 : vector<8x32xf32>
    %c2_96 = arith.constant 2 : index
    %c0_97 = arith.constant 0 : index
    %c0_98 = arith.constant 0 : index
    %137 = vector.load %arg8[%c2_96, %c0_97, %c0_98] : memref<12x32x8xf32, #tpu.memory_space<vmem>>, vector<1x32x8xf32>
    %138 = vector.shape_cast %137 : vector<1x32x8xf32> to vector<32x8xf32>
    %cst_99 = arith.constant dense<0.000000e+00> : vector<8x8xf32>
    %139 = tpu.matmul %55, %138, %cst_99 {dimension_numbers = #tpu.dot_dimension_numbers<[1], [0], [0], [1], [0, 0, 1, 1], [], []>, precision = #tpu.contract_precision<fp32>} : vector<8x32xf32>, vector<32x8xf32>, vector<8x8xf32> -> vector<8x8xf32>
    %c2_100 = arith.constant 2 : index
    %c0_101 = arith.constant 0 : index
    %c0_102 = arith.constant 0 : index
    %140 = vector.load %arg9[%c2_100, %c0_101, %c0_102] : memref<12x1x8xf32, #tpu.memory_space<vmem>>, vector<1x1x8xf32>
    %141 = vector.shape_cast %140 : vector<1x1x8xf32> to vector<1x8xf32>
    %142 = vector.broadcast %141 : vector<1x8xf32> to vector<8x8xf32>
    %143 = arith.addf %139, %142 : vector<8x8xf32>
    %c6 = arith.constant 6 : index
    %c0_103 = arith.constant 0 : index
    %c0_104 = arith.constant 0 : index
    %144 = vector.load %arg8[%c6, %c0_103, %c0_104] : memref<12x32x8xf32, #tpu.memory_space<vmem>>, vector<1x32x8xf32>
    %145 = vector.shape_cast %144 : vector<1x32x8xf32> to vector<32x8xf32>
    %cst_105 = arith.constant dense<0.000000e+00> : vector<8x8xf32>
    %146 = tpu.matmul %59, %145, %cst_105 {dimension_numbers = #tpu.dot_dimension_numbers<[1], [0], [0], [1], [0, 0, 1, 1], [], []>, precision = #tpu.contract_precision<fp32>} : vector<8x32xf32>, vector<32x8xf32>, vector<8x8xf32> -> vector<8x8xf32>
    %c6_106 = arith.constant 6 : index
    %c0_107 = arith.constant 0 : index
    %c0_108 = arith.constant 0 : index
    %147 = vector.load %arg9[%c6_106, %c0_107, %c0_108] : memref<12x1x8xf32, #tpu.memory_space<vmem>>, vector<1x1x8xf32>
    %148 = vector.shape_cast %147 : vector<1x1x8xf32> to vector<1x8xf32>
    %149 = vector.broadcast %148 : vector<1x8xf32> to vector<8x8xf32>
    %150 = arith.addf %146, %149 : vector<8x8xf32>
    %c10 = arith.constant 10 : index
    %c0_109 = arith.constant 0 : index
    %c0_110 = arith.constant 0 : index
    %151 = vector.load %arg8[%c10, %c0_109, %c0_110] : memref<12x32x8xf32, #tpu.memory_space<vmem>>, vector<1x32x8xf32>
    %152 = vector.shape_cast %151 : vector<1x32x8xf32> to vector<32x8xf32>
    %cst_111 = arith.constant dense<0.000000e+00> : vector<8x8xf32>
    %153 = tpu.matmul %48, %152, %cst_111 {dimension_numbers = #tpu.dot_dimension_numbers<[1], [0], [0], [1], [0, 0, 1, 1], [], []>, precision = #tpu.contract_precision<fp32>} : vector<8x32xf32>, vector<32x8xf32>, vector<8x8xf32> -> vector<8x8xf32>
    %c10_112 = arith.constant 10 : index
    %c0_113 = arith.constant 0 : index
    %c0_114 = arith.constant 0 : index
    %154 = vector.load %arg9[%c10_112, %c0_113, %c0_114] : memref<12x1x8xf32, #tpu.memory_space<vmem>>, vector<1x1x8xf32>
    %155 = vector.shape_cast %154 : vector<1x1x8xf32> to vector<1x8xf32>
    %156 = vector.broadcast %155 : vector<1x8xf32> to vector<8x8xf32>
    %157 = arith.addf %153, %156 : vector<8x8xf32>
    %cst_115 = arith.constant dense<0.000000e+00> : vector<8x8xf32>
    %158 = tpu.matmul %143, %150, %cst_115 {dimension_numbers = #tpu.dot_dimension_numbers<[1], [1], [0], [0], [0, 0, 1, 0], [], []>, precision = #tpu.contract_precision<fp32>} : vector<8x8xf32>, vector<8x8xf32>, vector<8x8xf32> -> vector<8x8xf32>
    %cst_116 = arith.constant 0.353553385 : f32
    %159 = vector.broadcast %cst_116 : f32 to vector<8x8xf32>
    %160 = arith.mulf %158, %159 : vector<8x8xf32>
    %cst_117 = arith.constant dense<0xFF800000> : vector<8xf32>
    %161 = vector.multi_reduction <maximumf>, %160, %cst_117 [1] : vector<8x8xf32> to vector<8xf32>
    %162 = vector.shape_cast %161 : vector<8xf32> to vector<8x1xf32>
    %163 = vector.broadcast %162 : vector<8x1xf32> to vector<8x8xf32>
    %164 = arith.subf %160, %163 : vector<8x8xf32>
    %165 = math.exp %164 : vector<8x8xf32>
    %cst_118 = arith.constant dense<0.000000e+00> : vector<8xf32>
    %166 = vector.multi_reduction <add>, %165, %cst_118 [1] : vector<8x8xf32> to vector<8xf32>
    %167 = vector.shape_cast %166 : vector<8xf32> to vector<8x1xf32>
    %168 = vector.broadcast %167 : vector<8x1xf32> to vector<8x8xf32>
    %169 = arith.divf %165, %168 : vector<8x8xf32>
    %cst_119 = arith.constant dense<0.000000e+00> : vector<8x8xf32>
    %170 = tpu.matmul %169, %157, %cst_119 {dimension_numbers = #tpu.dot_dimension_numbers<[1], [0], [0], [1], [0, 0, 1, 1], [], []>, precision = #tpu.contract_precision<fp32>} : vector<8x8xf32>, vector<8x8xf32>, vector<8x8xf32> -> vector<8x8xf32>
    %c2_120 = arith.constant 2 : index
    %c0_121 = arith.constant 0 : index
    %c0_122 = arith.constant 0 : index
    %171 = vector.load %arg10[%c2_120, %c0_121, %c0_122] : memref<4x8x32xf32, #tpu.memory_space<vmem>>, vector<1x8x32xf32>
    %172 = vector.shape_cast %171 : vector<1x8x32xf32> to vector<8x32xf32>
    %cst_123 = arith.constant dense<0.000000e+00> : vector<8x32xf32>
    %173 = tpu.matmul %170, %172, %cst_123 {dimension_numbers = #tpu.dot_dimension_numbers<[1], [0], [0], [1], [0, 0, 1, 1], [], []>, precision = #tpu.contract_precision<fp32>} : vector<8x8xf32>, vector<8x32xf32>, vector<8x32xf32> -> vector<8x32xf32>
    %174 = arith.addf %136, %173 : vector<8x32xf32>
    %c3 = arith.constant 3 : index
    %c0_124 = arith.constant 0 : index
    %c0_125 = arith.constant 0 : index
    %175 = vector.load %arg8[%c3, %c0_124, %c0_125] : memref<12x32x8xf32, #tpu.memory_space<vmem>>, vector<1x32x8xf32>
    %176 = vector.shape_cast %175 : vector<1x32x8xf32> to vector<32x8xf32>
    %cst_126 = arith.constant dense<0.000000e+00> : vector<8x8xf32>
    %177 = tpu.matmul %55, %176, %cst_126 {dimension_numbers = #tpu.dot_dimension_numbers<[1], [0], [0], [1], [0, 0, 1, 1], [], []>, precision = #tpu.contract_precision<fp32>} : vector<8x32xf32>, vector<32x8xf32>, vector<8x8xf32> -> vector<8x8xf32>
    %c3_127 = arith.constant 3 : index
    %c0_128 = arith.constant 0 : index
    %c0_129 = arith.constant 0 : index
    %178 = vector.load %arg9[%c3_127, %c0_128, %c0_129] : memref<12x1x8xf32, #tpu.memory_space<vmem>>, vector<1x1x8xf32>
    %179 = vector.shape_cast %178 : vector<1x1x8xf32> to vector<1x8xf32>
    %180 = vector.broadcast %179 : vector<1x8xf32> to vector<8x8xf32>
    %181 = arith.addf %177, %180 : vector<8x8xf32>
    %c7 = arith.constant 7 : index
    %c0_130 = arith.constant 0 : index
    %c0_131 = arith.constant 0 : index
    %182 = vector.load %arg8[%c7, %c0_130, %c0_131] : memref<12x32x8xf32, #tpu.memory_space<vmem>>, vector<1x32x8xf32>
    %183 = vector.shape_cast %182 : vector<1x32x8xf32> to vector<32x8xf32>
    %cst_132 = arith.constant dense<0.000000e+00> : vector<8x8xf32>
    %184 = tpu.matmul %59, %183, %cst_132 {dimension_numbers = #tpu.dot_dimension_numbers<[1], [0], [0], [1], [0, 0, 1, 1], [], []>, precision = #tpu.contract_precision<fp32>} : vector<8x32xf32>, vector<32x8xf32>, vector<8x8xf32> -> vector<8x8xf32>
    %c7_133 = arith.constant 7 : index
    %c0_134 = arith.constant 0 : index
    %c0_135 = arith.constant 0 : index
    %185 = vector.load %arg9[%c7_133, %c0_134, %c0_135] : memref<12x1x8xf32, #tpu.memory_space<vmem>>, vector<1x1x8xf32>
    %186 = vector.shape_cast %185 : vector<1x1x8xf32> to vector<1x8xf32>
    %187 = vector.broadcast %186 : vector<1x8xf32> to vector<8x8xf32>
    %188 = arith.addf %184, %187 : vector<8x8xf32>
    %c11 = arith.constant 11 : index
    %c0_136 = arith.constant 0 : index
    %c0_137 = arith.constant 0 : index
    %189 = vector.load %arg8[%c11, %c0_136, %c0_137] : memref<12x32x8xf32, #tpu.memory_space<vmem>>, vector<1x32x8xf32>
    %190 = vector.shape_cast %189 : vector<1x32x8xf32> to vector<32x8xf32>
    %cst_138 = arith.constant dense<0.000000e+00> : vector<8x8xf32>
    %191 = tpu.matmul %48, %190, %cst_138 {dimension_numbers = #tpu.dot_dimension_numbers<[1], [0], [0], [1], [0, 0, 1, 1], [], []>, precision = #tpu.contract_precision<fp32>} : vector<8x32xf32>, vector<32x8xf32>, vector<8x8xf32> -> vector<8x8xf32>
    %c11_139 = arith.constant 11 : index
    %c0_140 = arith.constant 0 : index
    %c0_141 = arith.constant 0 : index
    %192 = vector.load %arg9[%c11_139, %c0_140, %c0_141] : memref<12x1x8xf32, #tpu.memory_space<vmem>>, vector<1x1x8xf32>
    %193 = vector.shape_cast %192 : vector<1x1x8xf32> to vector<1x8xf32>
    %194 = vector.broadcast %193 : vector<1x8xf32> to vector<8x8xf32>
    %195 = arith.addf %191, %194 : vector<8x8xf32>
    %cst_142 = arith.constant dense<0.000000e+00> : vector<8x8xf32>
    %196 = tpu.matmul %181, %188, %cst_142 {dimension_numbers = #tpu.dot_dimension_numbers<[1], [1], [0], [0], [0, 0, 1, 0], [], []>, precision = #tpu.contract_precision<fp32>} : vector<8x8xf32>, vector<8x8xf32>, vector<8x8xf32> -> vector<8x8xf32>
    %cst_143 = arith.constant 0.353553385 : f32
    %197 = vector.broadcast %cst_143 : f32 to vector<8x8xf32>
    %198 = arith.mulf %196, %197 : vector<8x8xf32>
    %cst_144 = arith.constant dense<0xFF800000> : vector<8xf32>
    %199 = vector.multi_reduction <maximumf>, %198, %cst_144 [1] : vector<8x8xf32> to vector<8xf32>
    %200 = vector.shape_cast %199 : vector<8xf32> to vector<8x1xf32>
    %201 = vector.broadcast %200 : vector<8x1xf32> to vector<8x8xf32>
    %202 = arith.subf %198, %201 : vector<8x8xf32>
    %203 = math.exp %202 : vector<8x8xf32>
    %cst_145 = arith.constant dense<0.000000e+00> : vector<8xf32>
    %204 = vector.multi_reduction <add>, %203, %cst_145 [1] : vector<8x8xf32> to vector<8xf32>
    %205 = vector.shape_cast %204 : vector<8xf32> to vector<8x1xf32>
    %206 = vector.broadcast %205 : vector<8x1xf32> to vector<8x8xf32>
    %207 = arith.divf %203, %206 : vector<8x8xf32>
    %cst_146 = arith.constant dense<0.000000e+00> : vector<8x8xf32>
    %208 = tpu.matmul %207, %195, %cst_146 {dimension_numbers = #tpu.dot_dimension_numbers<[1], [0], [0], [1], [0, 0, 1, 1], [], []>, precision = #tpu.contract_precision<fp32>} : vector<8x8xf32>, vector<8x8xf32>, vector<8x8xf32> -> vector<8x8xf32>
    %c3_147 = arith.constant 3 : index
    %c0_148 = arith.constant 0 : index
    %c0_149 = arith.constant 0 : index
    %209 = vector.load %arg10[%c3_147, %c0_148, %c0_149] : memref<4x8x32xf32, #tpu.memory_space<vmem>>, vector<1x8x32xf32>
    %210 = vector.shape_cast %209 : vector<1x8x32xf32> to vector<8x32xf32>
    %cst_150 = arith.constant dense<0.000000e+00> : vector<8x32xf32>
    %211 = tpu.matmul %208, %210, %cst_150 {dimension_numbers = #tpu.dot_dimension_numbers<[1], [0], [0], [1], [0, 0, 1, 1], [], []>, precision = #tpu.contract_precision<fp32>} : vector<8x8xf32>, vector<8x32xf32>, vector<8x32xf32> -> vector<8x32xf32>
    %212 = arith.addf %174, %211 : vector<8x32xf32>
    %c0_151 = arith.constant 0 : index
    %c0_152 = arith.constant 0 : index
    %213 = vector.load %arg11[%c0_151, %c0_152] : memref<1x32xf32, #tpu.memory_space<vmem>>, vector<1x32xf32>
    %214 = vector.broadcast %213 : vector<1x32xf32> to vector<8x32xf32>
    %215 = arith.addf %212, %214 : vector<8x32xf32>
    %216 = arith.addf %1, %215 : vector<8x32xf32>
    %c0_153 = arith.constant 0 : index
    %c0_154 = arith.constant 0 : index
    %c0_155 = arith.constant 0 : index
    %217 = vector.load %arg14[%c0_153, %c0_154, %c0_155] : memref<1x8x32xf32, #tpu.memory_space<vmem>>, vector<1x8x32xf32>
    %218 = vector.shape_cast %217 : vector<1x8x32xf32> to vector<8x32xf32>
    %219 = vector.shape_cast %216 : vector<8x32xf32> to vector<1x8x32xf32>
    tpu.vector_store %arg14[%c0_153, %c0_154, %c0_155], %219 {strides = array<i32>} : memref<1x8x32xf32, #tpu.memory_space<vmem>>, vector<1x8x32xf32>,
    %c0_156 = arith.constant 0 : index
    %c0_157 = arith.constant 0 : index
    %c0_158 = arith.constant 0 : index
    %220 = vector.load %arg12[%c0_156, %c0_157, %c0_158] : memref<2x1x32xf32, #tpu.memory_space<vmem>>, vector<1x1x32xf32>
    %221 = vector.shape_cast %220 : vector<1x1x32xf32> to vector<1x32xf32>
    %c1_159 = arith.constant 1 : index
    %c0_160 = arith.constant 0 : index
    %c0_161 = arith.constant 0 : index
    %222 = vector.load %arg12[%c1_159, %c0_160, %c0_161] : memref<2x1x32xf32, #tpu.memory_space<vmem>>, vector<1x1x32xf32>
    %223 = vector.shape_cast %222 : vector<1x1x32xf32> to vector<1x32xf32>
    %cst_162 = arith.constant dense<0.000000e+00> : vector<8xf32>
    %224 = vector.multi_reduction <add>, %216, %cst_162 [1] : vector<8x32xf32> to vector<8xf32>
    %225 = vector.shape_cast %224 : vector<8xf32> to vector<8x1xf32>
    %cst_163 = arith.constant 3.200000e+01 : f32
    %226 = vector.broadcast %cst_163 : f32 to vector<8x1xf32>
    %227 = arith.divf %225, %226 : vector<8x1xf32>
    %228 = vector.broadcast %227 : vector<8x1xf32> to vector<8x32xf32>
    %229 = arith.subf %216, %228 : vector<8x32xf32>
    %230 = arith.mulf %229, %229 : vector<8x32xf32>
    %cst_164 = arith.constant dense<0.000000e+00> : vector<8xf32>
    %231 = vector.multi_reduction <add>, %230, %cst_164 [1] : vector<8x32xf32> to vector<8xf32>
    %232 = vector.shape_cast %231 : vector<8xf32> to vector<8x1xf32>
    %cst_165 = arith.constant 3.200000e+01 : f32
    %233 = vector.broadcast %cst_165 : f32 to vector<8x1xf32>
    %234 = arith.divf %232, %233 : vector<8x1xf32>
    %235 = vector.broadcast %227 : vector<8x1xf32> to vector<8x32xf32>
    %236 = arith.subf %216, %235 : vector<8x32xf32>
    %cst_166 = arith.constant 9.99999974E-6 : f32
    %237 = vector.broadcast %cst_166 : f32 to vector<8x1xf32>
    %238 = arith.addf %234, %237 : vector<8x1xf32>
    %239 = math.rsqrt %238 : vector<8x1xf32>
    %240 = vector.broadcast %239 : vector<8x1xf32> to vector<8x32xf32>
    %241 = arith.mulf %236, %240 : vector<8x32xf32>
    %242 = vector.broadcast %221 : vector<1x32xf32> to vector<8x32xf32>
    %243 = arith.mulf %241, %242 : vector<8x32xf32>
    %244 = vector.broadcast %223 : vector<1x32xf32> to vector<8x32xf32>
    %245 = arith.addf %243, %244 : vector<8x32xf32>
    %c0_167 = arith.constant 0 : index
    %c0_168 = arith.constant 0 : index
    %c0_169 = arith.constant 0 : index
    %246 = vector.load %arg15[%c0_167, %c0_168, %c0_169] : memref<1x8x32xf32, #tpu.memory_space<vmem>>, vector<1x8x32xf32>
    %247 = vector.shape_cast %246 : vector<1x8x32xf32> to vector<8x32xf32>
    %248 = vector.shape_cast %245 : vector<8x32xf32> to vector<1x8x32xf32>
    tpu.vector_store %arg15[%c0_167, %c0_168, %c0_169], %248 {strides = array<i32>} : memref<1x8x32xf32, #tpu.memory_space<vmem>>, vector<1x8x32xf32>,
    %c0_170 = arith.constant 0 : index
    %c0_171 = arith.constant 0 : index
    %249 = vector.load %arg13[%c0_170, %c0_171] : memref<32x3xf32, #tpu.memory_space<vmem>>, vector<32x3xf32>
    %cst_172 = arith.constant dense<0.000000e+00> : vector<8x3xf32>
    %250 = tpu.matmul %245, %249, %cst_172 {dimension_numbers = #tpu.dot_dimension_numbers<[1], [0], [0], [1], [0, 0, 1, 1], [], []>, precision = #tpu.contract_precision<fp32>} : vector<8x32xf32>, vector<32x3xf32>, vector<8x3xf32> -> vector<8x3xf32>
    %c0_173 = arith.constant 0 : index
    %c0_174 = arith.constant 0 : index
    %c0_175 = arith.constant 0 : index
    %251 = vector.load %arg16[%c0_173, %c0_174, %c0_175] : memref<1x8x3xf32, #tpu.memory_space<vmem>>, vector<1x8x3xf32>
    %252 = vector.shape_cast %251 : vector<1x8x3xf32> to vector<8x3xf32>
    %253 = vector.shape_cast %250 : vector<8x3xf32> to vector<1x8x3xf32>
    tpu.vector_store %arg16[%c0_173, %c0_174, %c0_175], %253 {strides = array<i32>} : memref<1x8x3xf32, #tpu.memory_space<vmem>>, vector<1x8x3xf32>,
    return
  }
  func.func @transform_0(%arg0: i32) -> (i32, i32, i32) {
    %c0_i32 = arith.constant 0 : i32
    %c0_i32_0 = arith.constant 0 : i32
    %c0_i32_1 = arith.constant 0 : i32
    return %arg0, %c0_i32, %c0_i32_0 : i32, i32, i32
  }
  func.func @transform_1(%arg0: i32) -> (i32, i32, i32) {
    %c0_i32 = arith.constant 0 : i32
    %c0_i32_0 = arith.constant 0 : i32
    %c0_i32_1 = arith.constant 0 : i32
    %c0_i32_2 = arith.constant 0 : i32
    return %c0_i32, %c0_i32_0, %c0_i32_1 : i32, i32, i32
  }
  func.func @transform_2(%arg0: i32) -> (i32, i32, i32) {
    %c0_i32 = arith.constant 0 : i32
    %c0_i32_0 = arith.constant 0 : i32
    %c0_i32_1 = arith.constant 0 : i32
    %c0_i32_2 = arith.constant 0 : i32
    return %c0_i32, %c0_i32_0, %c0_i32_1 : i32, i32, i32
  }
  func.func @transform_3(%arg0: i32) -> (i32, i32, i32) {
    %c0_i32 = arith.constant 0 : i32
    %c0_i32_0 = arith.constant 0 : i32
    %c0_i32_1 = arith.constant 0 : i32
    %c0_i32_2 = arith.constant 0 : i32
    return %c0_i32, %c0_i32_0, %c0_i32_1 : i32, i32, i32
  }
  func.func @transform_4(%arg0: i32) -> (i32, i32) {
    %c0_i32 = arith.constant 0 : i32
    %c0_i32_0 = arith.constant 0 : i32
    %c0_i32_1 = arith.constant 0 : i32
    return %c0_i32, %c0_i32_0 : i32, i32
  }
  func.func @transform_5(%arg0: i32) -> (i32, i32) {
    %c0_i32 = arith.constant 0 : i32
    %c0_i32_0 = arith.constant 0 : i32
    %c0_i32_1 = arith.constant 0 : i32
    return %c0_i32, %c0_i32_0 : i32, i32
  }
  func.func @transform_6(%arg0: i32) -> (i32, i32) {
    %c0_i32 = arith.constant 0 : i32
    %c0_i32_0 = arith.constant 0 : i32
    %c0_i32_1 = arith.constant 0 : i32
    return %c0_i32, %c0_i32_0 : i32, i32
  }
  func.func @transform_7(%arg0: i32) -> (i32, i32, i32) {
    %c0_i32 = arith.constant 0 : i32
    %c0_i32_0 = arith.constant 0 : i32
    %c0_i32_1 = arith.constant 0 : i32
    %c0_i32_2 = arith.constant 0 : i32
    return %c0_i32, %c0_i32_0, %c0_i32_1 : i32, i32, i32
  }
  func.func @transform_8(%arg0: i32) -> (i32, i32, i32) {
    %c0_i32 = arith.constant 0 : i32
    %c0_i32_0 = arith.constant 0 : i32
    %c0_i32_1 = arith.constant 0 : i32
    %c0_i32_2 = arith.constant 0 : i32
    return %c0_i32, %c0_i32_0, %c0_i32_1 : i32, i32, i32
  }
  func.func @transform_9(%arg0: i32) -> (i32, i32, i32) {
    %c0_i32 = arith.constant 0 : i32
    %c0_i32_0 = arith.constant 0 : i32
    %c0_i32_1 = arith.constant 0 : i32
    %c0_i32_2 = arith.constant 0 : i32
    return %c0_i32, %c0_i32_0, %c0_i32_1 : i32, i32, i32
  }
  func.func @transform_10(%arg0: i32) -> (i32, i32) {
    %c0_i32 = arith.constant 0 : i32
    %c0_i32_0 = arith.constant 0 : i32
    %c0_i32_1 = arith.constant 0 : i32
    return %c0_i32, %c0_i32_0 : i32, i32
  }
  func.func @transform_11(%arg0: i32) -> (i32, i32, i32) {
    %c0_i32 = arith.constant 0 : i32
    %c0_i32_0 = arith.constant 0 : i32
    %c0_i32_1 = arith.constant 0 : i32
    %c0_i32_2 = arith.constant 0 : i32
    return %c0_i32, %c0_i32_0, %c0_i32_1 : i32, i32, i32
  }
  func.func @transform_12(%arg0: i32) -> (i32, i32) {
    %c0_i32 = arith.constant 0 : i32
    %c0_i32_0 = arith.constant 0 : i32
    %c0_i32_1 = arith.constant 0 : i32
    return %c0_i32, %c0_i32_0 : i32, i32
  }
  func.func @transform_13(%arg0: i32) -> (i32, i32, i32) {
    %c0_i32 = arith.constant 0 : i32
    %c0_i32_0 = arith.constant 0 : i32
    %c0_i32_1 = arith.constant 0 : i32
    return %arg0, %c0_i32, %c0_i32_0 : i32, i32, i32
  }
  func.func @transform_14(%arg0: i32) -> (i32, i32, i32) {
    %c0_i32 = arith.constant 0 : i32
    %c0_i32_0 = arith.constant 0 : i32
    %c0_i32_1 = arith.constant 0 : i32
    return %arg0, %c0_i32, %c0_i32_0 : i32, i32, i32
  }
  func.func @transform_15(%arg0: i32) -> (i32, i32, i32) {
    %c0_i32 = arith.constant 0 : i32
    %c0_i32_0 = arith.constant 0 : i32
    %c0_i32_1 = arith.constant 0 : i32
    return %arg0, %c0_i32, %c0_i32_0 : i32, i32, i32
  }
}

module attributes {stable_mosaic.version = 11 : i64} {
  func.func @_moe_ffn_kernel(%arg0: i32, %arg1: memref<16x32xf32, #tpu.memory_space<vmem>>, %arg2: memref<16x32xf32, #tpu.memory_space<vmem>>, %arg3: memref<4x16x1xf32, #tpu.memory_space<vmem>>, %arg4: memref<4x32x64xf32, #tpu.memory_space<vmem>>, %arg5: memref<4x1x64xf32, #tpu.memory_space<vmem>>, %arg6: memref<4x64x32xf32, #tpu.memory_space<vmem>>, %arg7: memref<4x1x32xf32, #tpu.memory_space<vmem>>, %arg8: memref<16x32xf32, #tpu.memory_space<vmem>>) attributes {dimension_semantics = [#tpu.dimension_semantics<parallel>], iteration_bounds = array<i64: 1>, scalar_prefetch = 0 : i64, scratch_operands = 0 : i64, tpu.core_type = #tpu.core_type<tc>, window_params = [{transform_indices = @transform_0, window_bounds = array<i64: 16, 32>}, {transform_indices = @transform_1, window_bounds = array<i64: 16, 32>}, {transform_indices = @transform_2, window_bounds = array<i64: 4, 16, 1>}, {pipeline_mode = #tpu.pipeline_mode<synchronous>, transform_indices = @transform_3, window_bounds = array<i64: 4, 32, 64>}, {pipeline_mode = #tpu.pipeline_mode<synchronous>, transform_indices = @transform_4, window_bounds = array<i64: 4, 1, 64>}, {pipeline_mode = #tpu.pipeline_mode<synchronous>, transform_indices = @transform_5, window_bounds = array<i64: 4, 64, 32>}, {pipeline_mode = #tpu.pipeline_mode<synchronous>, transform_indices = @transform_6, window_bounds = array<i64: 4, 1, 32>}, {transform_indices = @transform_7, window_bounds = array<i64: 16, 32>}]} {
    %c0 = arith.constant 0 : index
    %c0_0 = arith.constant 0 : index
    %0 = vector.load %arg1[%c0, %c0_0] : memref<16x32xf32, #tpu.memory_space<vmem>>, vector<16x32xf32>
    %c0_1 = arith.constant 0 : index
    %c0_2 = arith.constant 0 : index
    %1 = vector.load %arg2[%c0_1, %c0_2] : memref<16x32xf32, #tpu.memory_space<vmem>>, vector<16x32xf32>
    %2 = arith.addf %0, %1 : vector<16x32xf32>
    %c0_3 = arith.constant 0 : index
    %c0_4 = arith.constant 0 : index
    %c0_5 = arith.constant 0 : index
    %3 = vector.load %arg4[%c0_3, %c0_4, %c0_5] : memref<4x32x64xf32, #tpu.memory_space<vmem>>, vector<1x32x64xf32>
    %4 = vector.shape_cast %3 : vector<1x32x64xf32> to vector<32x64xf32>
    %cst = arith.constant dense<0.000000e+00> : vector<16x64xf32>
    %5 = tpu.matmul %1, %4, %cst {dimension_numbers = #tpu.dot_dimension_numbers<[1], [0], [0], [1], [0, 0, 1, 1], [], []>, precision = #tpu.contract_precision<fp32>} : vector<16x32xf32>, vector<32x64xf32>, vector<16x64xf32> -> vector<16x64xf32>
    %c0_6 = arith.constant 0 : index
    %c0_7 = arith.constant 0 : index
    %c0_8 = arith.constant 0 : index
    %6 = vector.load %arg5[%c0_6, %c0_7, %c0_8] : memref<4x1x64xf32, #tpu.memory_space<vmem>>, vector<1x1x64xf32>
    %7 = vector.shape_cast %6 : vector<1x1x64xf32> to vector<1x64xf32>
    %8 = vector.broadcast %7 : vector<1x64xf32> to vector<16x64xf32>
    %9 = arith.addf %5, %8 : vector<16x64xf32>
    %cst_9 = arith.constant 5.000000e-01 : f32
    %10 = vector.broadcast %cst_9 : f32 to vector<16x64xf32>
    %11 = arith.mulf %10, %9 : vector<16x64xf32>
    %cst_10 = arith.constant 4.471500e-02 : f32
    %12 = vector.broadcast %cst_10 : f32 to vector<16x64xf32>
    %13 = arith.mulf %12, %9 : vector<16x64xf32>
    %14 = arith.mulf %13, %9 : vector<16x64xf32>
    %15 = arith.mulf %14, %9 : vector<16x64xf32>
    %16 = arith.addf %9, %15 : vector<16x64xf32>
    %cst_11 = arith.constant 0.797884583 : f32
    %17 = vector.broadcast %cst_11 : f32 to vector<16x64xf32>
    %18 = arith.mulf %17, %16 : vector<16x64xf32>
    %19 = math.tanh %18 : vector<16x64xf32>
    %cst_12 = arith.constant 1.000000e+00 : f32
    %20 = vector.broadcast %cst_12 : f32 to vector<16x64xf32>
    %21 = arith.addf %20, %19 : vector<16x64xf32>
    %22 = arith.mulf %11, %21 : vector<16x64xf32>
    %c0_13 = arith.constant 0 : index
    %c0_14 = arith.constant 0 : index
    %c0_15 = arith.constant 0 : index
    %23 = vector.load %arg6[%c0_13, %c0_14, %c0_15] : memref<4x64x32xf32, #tpu.memory_space<vmem>>, vector<1x64x32xf32>
    %24 = vector.shape_cast %23 : vector<1x64x32xf32> to vector<64x32xf32>
    %cst_16 = arith.constant dense<0.000000e+00> : vector<16x32xf32>
    %25 = tpu.matmul %22, %24, %cst_16 {dimension_numbers = #tpu.dot_dimension_numbers<[1], [0], [0], [1], [0, 0, 1, 1], [], []>, precision = #tpu.contract_precision<fp32>} : vector<16x64xf32>, vector<64x32xf32>, vector<16x32xf32> -> vector<16x32xf32>
    %c0_17 = arith.constant 0 : index
    %c0_18 = arith.constant 0 : index
    %c0_19 = arith.constant 0 : index
    %26 = vector.load %arg7[%c0_17, %c0_18, %c0_19] : memref<4x1x32xf32, #tpu.memory_space<vmem>>, vector<1x1x32xf32>
    %27 = vector.shape_cast %26 : vector<1x1x32xf32> to vector<1x32xf32>
    %28 = vector.broadcast %27 : vector<1x32xf32> to vector<16x32xf32>
    %29 = arith.addf %25, %28 : vector<16x32xf32>
    %c0_20 = arith.constant 0 : index
    %c0_21 = arith.constant 0 : index
    %c0_22 = arith.constant 0 : index
    %30 = vector.load %arg3[%c0_20, %c0_21, %c0_22] : memref<4x16x1xf32, #tpu.memory_space<vmem>>, vector<1x16x1xf32>
    %31 = vector.shape_cast %30 : vector<1x16x1xf32> to vector<16x1xf32>
    %32 = vector.broadcast %31 : vector<16x1xf32> to vector<16x32xf32>
    %33 = arith.mulf %29, %32 : vector<16x32xf32>
    %34 = arith.addf %2, %33 : vector<16x32xf32>
    %c1 = arith.constant 1 : index
    %c0_23 = arith.constant 0 : index
    %c0_24 = arith.constant 0 : index
    %35 = vector.load %arg4[%c1, %c0_23, %c0_24] : memref<4x32x64xf32, #tpu.memory_space<vmem>>, vector<1x32x64xf32>
    %36 = vector.shape_cast %35 : vector<1x32x64xf32> to vector<32x64xf32>
    %cst_25 = arith.constant dense<0.000000e+00> : vector<16x64xf32>
    %37 = tpu.matmul %1, %36, %cst_25 {dimension_numbers = #tpu.dot_dimension_numbers<[1], [0], [0], [1], [0, 0, 1, 1], [], []>, precision = #tpu.contract_precision<fp32>} : vector<16x32xf32>, vector<32x64xf32>, vector<16x64xf32> -> vector<16x64xf32>
    %c1_26 = arith.constant 1 : index
    %c0_27 = arith.constant 0 : index
    %c0_28 = arith.constant 0 : index
    %38 = vector.load %arg5[%c1_26, %c0_27, %c0_28] : memref<4x1x64xf32, #tpu.memory_space<vmem>>, vector<1x1x64xf32>
    %39 = vector.shape_cast %38 : vector<1x1x64xf32> to vector<1x64xf32>
    %40 = vector.broadcast %39 : vector<1x64xf32> to vector<16x64xf32>
    %41 = arith.addf %37, %40 : vector<16x64xf32>
    %cst_29 = arith.constant 5.000000e-01 : f32
    %42 = vector.broadcast %cst_29 : f32 to vector<16x64xf32>
    %43 = arith.mulf %42, %41 : vector<16x64xf32>
    %cst_30 = arith.constant 4.471500e-02 : f32
    %44 = vector.broadcast %cst_30 : f32 to vector<16x64xf32>
    %45 = arith.mulf %44, %41 : vector<16x64xf32>
    %46 = arith.mulf %45, %41 : vector<16x64xf32>
    %47 = arith.mulf %46, %41 : vector<16x64xf32>
    %48 = arith.addf %41, %47 : vector<16x64xf32>
    %cst_31 = arith.constant 0.797884583 : f32
    %49 = vector.broadcast %cst_31 : f32 to vector<16x64xf32>
    %50 = arith.mulf %49, %48 : vector<16x64xf32>
    %51 = math.tanh %50 : vector<16x64xf32>
    %cst_32 = arith.constant 1.000000e+00 : f32
    %52 = vector.broadcast %cst_32 : f32 to vector<16x64xf32>
    %53 = arith.addf %52, %51 : vector<16x64xf32>
    %54 = arith.mulf %43, %53 : vector<16x64xf32>
    %c1_33 = arith.constant 1 : index
    %c0_34 = arith.constant 0 : index
    %c0_35 = arith.constant 0 : index
    %55 = vector.load %arg6[%c1_33, %c0_34, %c0_35] : memref<4x64x32xf32, #tpu.memory_space<vmem>>, vector<1x64x32xf32>
    %56 = vector.shape_cast %55 : vector<1x64x32xf32> to vector<64x32xf32>
    %cst_36 = arith.constant dense<0.000000e+00> : vector<16x32xf32>
    %57 = tpu.matmul %54, %56, %cst_36 {dimension_numbers = #tpu.dot_dimension_numbers<[1], [0], [0], [1], [0, 0, 1, 1], [], []>, precision = #tpu.contract_precision<fp32>} : vector<16x64xf32>, vector<64x32xf32>, vector<16x32xf32> -> vector<16x32xf32>
    %c1_37 = arith.constant 1 : index
    %c0_38 = arith.constant 0 : index
    %c0_39 = arith.constant 0 : index
    %58 = vector.load %arg7[%c1_37, %c0_38, %c0_39] : memref<4x1x32xf32, #tpu.memory_space<vmem>>, vector<1x1x32xf32>
    %59 = vector.shape_cast %58 : vector<1x1x32xf32> to vector<1x32xf32>
    %60 = vector.broadcast %59 : vector<1x32xf32> to vector<16x32xf32>
    %61 = arith.addf %57, %60 : vector<16x32xf32>
    %c1_40 = arith.constant 1 : index
    %c0_41 = arith.constant 0 : index
    %c0_42 = arith.constant 0 : index
    %62 = vector.load %arg3[%c1_40, %c0_41, %c0_42] : memref<4x16x1xf32, #tpu.memory_space<vmem>>, vector<1x16x1xf32>
    %63 = vector.shape_cast %62 : vector<1x16x1xf32> to vector<16x1xf32>
    %64 = vector.broadcast %63 : vector<16x1xf32> to vector<16x32xf32>
    %65 = arith.mulf %61, %64 : vector<16x32xf32>
    %66 = arith.addf %34, %65 : vector<16x32xf32>
    %c2 = arith.constant 2 : index
    %c0_43 = arith.constant 0 : index
    %c0_44 = arith.constant 0 : index
    %67 = vector.load %arg4[%c2, %c0_43, %c0_44] : memref<4x32x64xf32, #tpu.memory_space<vmem>>, vector<1x32x64xf32>
    %68 = vector.shape_cast %67 : vector<1x32x64xf32> to vector<32x64xf32>
    %cst_45 = arith.constant dense<0.000000e+00> : vector<16x64xf32>
    %69 = tpu.matmul %1, %68, %cst_45 {dimension_numbers = #tpu.dot_dimension_numbers<[1], [0], [0], [1], [0, 0, 1, 1], [], []>, precision = #tpu.contract_precision<fp32>} : vector<16x32xf32>, vector<32x64xf32>, vector<16x64xf32> -> vector<16x64xf32>
    %c2_46 = arith.constant 2 : index
    %c0_47 = arith.constant 0 : index
    %c0_48 = arith.constant 0 : index
    %70 = vector.load %arg5[%c2_46, %c0_47, %c0_48] : memref<4x1x64xf32, #tpu.memory_space<vmem>>, vector<1x1x64xf32>
    %71 = vector.shape_cast %70 : vector<1x1x64xf32> to vector<1x64xf32>
    %72 = vector.broadcast %71 : vector<1x64xf32> to vector<16x64xf32>
    %73 = arith.addf %69, %72 : vector<16x64xf32>
    %cst_49 = arith.constant 5.000000e-01 : f32
    %74 = vector.broadcast %cst_49 : f32 to vector<16x64xf32>
    %75 = arith.mulf %74, %73 : vector<16x64xf32>
    %cst_50 = arith.constant 4.471500e-02 : f32
    %76 = vector.broadcast %cst_50 : f32 to vector<16x64xf32>
    %77 = arith.mulf %76, %73 : vector<16x64xf32>
    %78 = arith.mulf %77, %73 : vector<16x64xf32>
    %79 = arith.mulf %78, %73 : vector<16x64xf32>
    %80 = arith.addf %73, %79 : vector<16x64xf32>
    %cst_51 = arith.constant 0.797884583 : f32
    %81 = vector.broadcast %cst_51 : f32 to vector<16x64xf32>
    %82 = arith.mulf %81, %80 : vector<16x64xf32>
    %83 = math.tanh %82 : vector<16x64xf32>
    %cst_52 = arith.constant 1.000000e+00 : f32
    %84 = vector.broadcast %cst_52 : f32 to vector<16x64xf32>
    %85 = arith.addf %84, %83 : vector<16x64xf32>
    %86 = arith.mulf %75, %85 : vector<16x64xf32>
    %c2_53 = arith.constant 2 : index
    %c0_54 = arith.constant 0 : index
    %c0_55 = arith.constant 0 : index
    %87 = vector.load %arg6[%c2_53, %c0_54, %c0_55] : memref<4x64x32xf32, #tpu.memory_space<vmem>>, vector<1x64x32xf32>
    %88 = vector.shape_cast %87 : vector<1x64x32xf32> to vector<64x32xf32>
    %cst_56 = arith.constant dense<0.000000e+00> : vector<16x32xf32>
    %89 = tpu.matmul %86, %88, %cst_56 {dimension_numbers = #tpu.dot_dimension_numbers<[1], [0], [0], [1], [0, 0, 1, 1], [], []>, precision = #tpu.contract_precision<fp32>} : vector<16x64xf32>, vector<64x32xf32>, vector<16x32xf32> -> vector<16x32xf32>
    %c2_57 = arith.constant 2 : index
    %c0_58 = arith.constant 0 : index
    %c0_59 = arith.constant 0 : index
    %90 = vector.load %arg7[%c2_57, %c0_58, %c0_59] : memref<4x1x32xf32, #tpu.memory_space<vmem>>, vector<1x1x32xf32>
    %91 = vector.shape_cast %90 : vector<1x1x32xf32> to vector<1x32xf32>
    %92 = vector.broadcast %91 : vector<1x32xf32> to vector<16x32xf32>
    %93 = arith.addf %89, %92 : vector<16x32xf32>
    %c2_60 = arith.constant 2 : index
    %c0_61 = arith.constant 0 : index
    %c0_62 = arith.constant 0 : index
    %94 = vector.load %arg3[%c2_60, %c0_61, %c0_62] : memref<4x16x1xf32, #tpu.memory_space<vmem>>, vector<1x16x1xf32>
    %95 = vector.shape_cast %94 : vector<1x16x1xf32> to vector<16x1xf32>
    %96 = vector.broadcast %95 : vector<16x1xf32> to vector<16x32xf32>
    %97 = arith.mulf %93, %96 : vector<16x32xf32>
    %98 = arith.addf %66, %97 : vector<16x32xf32>
    %c3 = arith.constant 3 : index
    %c0_63 = arith.constant 0 : index
    %c0_64 = arith.constant 0 : index
    %99 = vector.load %arg4[%c3, %c0_63, %c0_64] : memref<4x32x64xf32, #tpu.memory_space<vmem>>, vector<1x32x64xf32>
    %100 = vector.shape_cast %99 : vector<1x32x64xf32> to vector<32x64xf32>
    %cst_65 = arith.constant dense<0.000000e+00> : vector<16x64xf32>
    %101 = tpu.matmul %1, %100, %cst_65 {dimension_numbers = #tpu.dot_dimension_numbers<[1], [0], [0], [1], [0, 0, 1, 1], [], []>, precision = #tpu.contract_precision<fp32>} : vector<16x32xf32>, vector<32x64xf32>, vector<16x64xf32> -> vector<16x64xf32>
    %c3_66 = arith.constant 3 : index
    %c0_67 = arith.constant 0 : index
    %c0_68 = arith.constant 0 : index
    %102 = vector.load %arg5[%c3_66, %c0_67, %c0_68] : memref<4x1x64xf32, #tpu.memory_space<vmem>>, vector<1x1x64xf32>
    %103 = vector.shape_cast %102 : vector<1x1x64xf32> to vector<1x64xf32>
    %104 = vector.broadcast %103 : vector<1x64xf32> to vector<16x64xf32>
    %105 = arith.addf %101, %104 : vector<16x64xf32>
    %cst_69 = arith.constant 5.000000e-01 : f32
    %106 = vector.broadcast %cst_69 : f32 to vector<16x64xf32>
    %107 = arith.mulf %106, %105 : vector<16x64xf32>
    %cst_70 = arith.constant 4.471500e-02 : f32
    %108 = vector.broadcast %cst_70 : f32 to vector<16x64xf32>
    %109 = arith.mulf %108, %105 : vector<16x64xf32>
    %110 = arith.mulf %109, %105 : vector<16x64xf32>
    %111 = arith.mulf %110, %105 : vector<16x64xf32>
    %112 = arith.addf %105, %111 : vector<16x64xf32>
    %cst_71 = arith.constant 0.797884583 : f32
    %113 = vector.broadcast %cst_71 : f32 to vector<16x64xf32>
    %114 = arith.mulf %113, %112 : vector<16x64xf32>
    %115 = math.tanh %114 : vector<16x64xf32>
    %cst_72 = arith.constant 1.000000e+00 : f32
    %116 = vector.broadcast %cst_72 : f32 to vector<16x64xf32>
    %117 = arith.addf %116, %115 : vector<16x64xf32>
    %118 = arith.mulf %107, %117 : vector<16x64xf32>
    %c3_73 = arith.constant 3 : index
    %c0_74 = arith.constant 0 : index
    %c0_75 = arith.constant 0 : index
    %119 = vector.load %arg6[%c3_73, %c0_74, %c0_75] : memref<4x64x32xf32, #tpu.memory_space<vmem>>, vector<1x64x32xf32>
    %120 = vector.shape_cast %119 : vector<1x64x32xf32> to vector<64x32xf32>
    %cst_76 = arith.constant dense<0.000000e+00> : vector<16x32xf32>
    %121 = tpu.matmul %118, %120, %cst_76 {dimension_numbers = #tpu.dot_dimension_numbers<[1], [0], [0], [1], [0, 0, 1, 1], [], []>, precision = #tpu.contract_precision<fp32>} : vector<16x64xf32>, vector<64x32xf32>, vector<16x32xf32> -> vector<16x32xf32>
    %c3_77 = arith.constant 3 : index
    %c0_78 = arith.constant 0 : index
    %c0_79 = arith.constant 0 : index
    %122 = vector.load %arg7[%c3_77, %c0_78, %c0_79] : memref<4x1x32xf32, #tpu.memory_space<vmem>>, vector<1x1x32xf32>
    %123 = vector.shape_cast %122 : vector<1x1x32xf32> to vector<1x32xf32>
    %124 = vector.broadcast %123 : vector<1x32xf32> to vector<16x32xf32>
    %125 = arith.addf %121, %124 : vector<16x32xf32>
    %c3_80 = arith.constant 3 : index
    %c0_81 = arith.constant 0 : index
    %c0_82 = arith.constant 0 : index
    %126 = vector.load %arg3[%c3_80, %c0_81, %c0_82] : memref<4x16x1xf32, #tpu.memory_space<vmem>>, vector<1x16x1xf32>
    %127 = vector.shape_cast %126 : vector<1x16x1xf32> to vector<16x1xf32>
    %128 = vector.broadcast %127 : vector<16x1xf32> to vector<16x32xf32>
    %129 = arith.mulf %125, %128 : vector<16x32xf32>
    %130 = arith.addf %98, %129 : vector<16x32xf32>
    %c0_83 = arith.constant 0 : index
    %c0_84 = arith.constant 0 : index
    %131 = vector.load %arg8[%c0_83, %c0_84] : memref<16x32xf32, #tpu.memory_space<vmem>>, vector<16x32xf32>
    tpu.vector_store %arg8[%c0_83, %c0_84], %130 {strides = array<i32>} : memref<16x32xf32, #tpu.memory_space<vmem>>, vector<16x32xf32>,
    return
  }
  func.func @transform_0(%arg0: i32) -> (i32, i32) {
    %c0_i32 = arith.constant 0 : i32
    %c0_i32_0 = arith.constant 0 : i32
    return %arg0, %c0_i32 : i32, i32
  }
  func.func @transform_1(%arg0: i32) -> (i32, i32) {
    %c0_i32 = arith.constant 0 : i32
    %c0_i32_0 = arith.constant 0 : i32
    return %arg0, %c0_i32 : i32, i32
  }
  func.func @transform_2(%arg0: i32) -> (i32, i32, i32) {
    %c0_i32 = arith.constant 0 : i32
    %c0_i32_0 = arith.constant 0 : i32
    %c0_i32_1 = arith.constant 0 : i32
    return %c0_i32, %arg0, %c0_i32_0 : i32, i32, i32
  }
  func.func @transform_3(%arg0: i32) -> (i32, i32, i32) {
    %c0_i32 = arith.constant 0 : i32
    %c0_i32_0 = arith.constant 0 : i32
    %c0_i32_1 = arith.constant 0 : i32
    %c0_i32_2 = arith.constant 0 : i32
    return %c0_i32, %c0_i32_0, %c0_i32_1 : i32, i32, i32
  }
  func.func @transform_4(%arg0: i32) -> (i32, i32, i32) {
    %c0_i32 = arith.constant 0 : i32
    %c0_i32_0 = arith.constant 0 : i32
    %c0_i32_1 = arith.constant 0 : i32
    %c0_i32_2 = arith.constant 0 : i32
    return %c0_i32, %c0_i32_0, %c0_i32_1 : i32, i32, i32
  }
  func.func @transform_5(%arg0: i32) -> (i32, i32, i32) {
    %c0_i32 = arith.constant 0 : i32
    %c0_i32_0 = arith.constant 0 : i32
    %c0_i32_1 = arith.constant 0 : i32
    %c0_i32_2 = arith.constant 0 : i32
    return %c0_i32, %c0_i32_0, %c0_i32_1 : i32, i32, i32
  }
  func.func @transform_6(%arg0: i32) -> (i32, i32, i32) {
    %c0_i32 = arith.constant 0 : i32
    %c0_i32_0 = arith.constant 0 : i32
    %c0_i32_1 = arith.constant 0 : i32
    %c0_i32_2 = arith.constant 0 : i32
    return %c0_i32, %c0_i32_0, %c0_i32_1 : i32, i32, i32
  }
  func.func @transform_7(%arg0: i32) -> (i32, i32) {
    %c0_i32 = arith.constant 0 : i32
    %c0_i32_0 = arith.constant 0 : i32
    return %arg0, %c0_i32 : i32, i32
  }
}

</mosaic_0001>

<bundles_post_ra>
// kernel: tile.14
= control target key start
LH: loop header
LB: loop body
LE: loop exit
PB: predicated region body
PF: predicated region fallthrough
CT: control target
= control target key end

     0   :  { %vm43_vm0 = vcmask 1047556   ;;  %vm45_vm1 = vcmask 64512   ;;  %s94_s22 = smov 8   ;;  %s95_s25 = smov 16   ;;  %vm55_vm2 = vcmask 261312   ;;  %vm65_vm3 = vcmask 195712   ;;  %s147_s0 = inlined_call_operand.vmem [shape: f32[8,4,8], index: 0, kind: input, shape index: {}]   ;;  %s148_s1 = inlined_call_operand.vmem [shape: f32[8,32], index: 1, kind: output, shape index: {}]  }
   0x1   :  { %v83_v0 = vld [vmem:[%s147_s0 + $0x1c] sm:$0xf]  ;;  %v84_v1 = vld [vmem:[%s147_s0 + $0x18] sm:$0xf]  ;;  %v85_v2 = vld [vmem:[%s147_s0 + $0x14] sm:$0xf] }
   0x2   :  { %9 = vst [vmem:[#allocation0 + $0x38] sm:$0xf] %v83_v0  ;;  %14 = vst [vmem:[#allocation0 + $0x30] sm:$0xf] %v84_v1  ;;  %v86_v3 = vld [vmem:[%s147_s0 + $0x10] sm:$0xf] }
   0x3   :  { %19 = vst [vmem:[#allocation0 + $0x28] sm:$0xf] %v85_v2  ;;  %v87_v4 = vld [vmem:[%s147_s0 + $0xc] sm:$0xf]  ;;  %v88_v5 = vld [vmem:[%s147_s0 + $0x8] sm:$0xf] }
   0x4   :  { %24 = vst [vmem:[#allocation0 + $0x20] sm:$0xf] %v86_v3  ;;  %29 = vst [vmem:[#allocation0 + $0x18] sm:$0xf] %v87_v4  ;;  %v89_v6 = vld [vmem:[%s147_s0 + $0x4] sm:$0xf] }
   0x5   :  { %34 = vst [vmem:[#allocation0 + $0x10] sm:$0xf] %v88_v5  ;;  %v39_v7 = vld [vmem:[%s147_s0] sm:$0xf]  ;;  %38 = vst [vmem:[#allocation0 + $0x8] sm:$0xf] %v89_v6 }
   0x6   :  { %40 = vst [vmem:[#allocation0] sm:$0xf] %v39_v7  ;;  %s93_s0 = smov 24   ;;  %vm75_vm4 = vcmask 130112  }
   0xb   :  { %v50_v8 = vld [vmem:[#allocation0 + $0x3] ss:$8 sm:$0xf0]   ;;  %v60_v9 = vld [vmem:[#allocation0 + $0x2] ss:$8 sm:$0xf0]  }
   0xc   :  { %v70_v14 = vld [vmem:[#allocation0 + $0x1] ss:$8 sm:$0xf0]   ;;  %v42_v17 = vld [vmem:[#allocation0] ss:$8 sm:$0xf0]  }
   0xd   :  { %v48_v10 = vld [vmem:[#allocation0 + $0x3] ss:$8 sm:$0xf]   ;;  %v58_v11 = vld [vmem:[#allocation0 + $0x2] ss:$8 sm:$0xf]  }
   0xe   :  { %v52_v12 = vsel %vm43_vm0, %v50_v8, %v48_v10  ;;  %v68_v13 = vld [vmem:[#allocation0 + $0x1] ss:$8 sm:$0xf]   ;;  %v41_v16 = vld [vmem:[#allocation0] ss:$8 sm:$0xf]   ;;  %v62_v18 = vsel %vm43_vm0, %v60_v9, %v58_v11 }
   0xf   :  { %53 = vrot.lane.b32.xlu0 %v52_v12, %s93_s0  ;;  %v72_v15 = vsel %vm43_vm0, %v70_v14, %v68_v13  ;;  %v44_v19 = vsel %vm43_vm0, %v42_v17, %v41_v16 }
  0x10   :  { %73 = vrot.lane.b32.xlu1 %v72_v15, %s94_s22  ;;  %46 = vst.msk [vmem:[%s148_s1] sm:$0xff] %vm45_vm1, %v44_v19  }
  0x13   :  { %63 = vrot.lane.b32.xlu0 %v62_v18, %s95_s25 }
  0x81   :  { %v54_v20 = vpop.permute.xlu0 %53  }
  0x82   :  { %56 = vst.msk [vmem:[%s148_s1] sm:$0xff] %vm55_vm2, %v54_v20   ;;  %v74_v21 = vpop.permute.xlu1 %73  }
  0x85   :  { %v64_v22 = vpop.permute.xlu0 %63  }
  0x86   :  { %66 = vst.msk [vmem:[%s148_s1] sm:$0xff] %vm65_vm3, %v64_v22  }
  0x87   :  { %76 = vst.msk [vmem:[%s148_s1] sm:$0xff] %vm75_vm4, %v74_v21  }

// kernel: div.9
= control target key start
LH: loop header
LB: loop body
LE: loop exit
PB: predicated region body
PF: predicated region fallthrough
CT: control target
= control target key end

     0   :  { %vm8_vm0 = vcmask 64512   ;;  %vm14_vm1 = vcmask 130112   ;;  %s42_s0 = inlined_call_operand.vmem [shape: f32[2,8], index: 0, kind: input, shape index: {}]   ;;  %s43_s1 = inlined_call_operand.vmem [shape: f32[16], index: 1, kind: output, shape index: {}]  }
   0x1   :  { %v5_v0 = vld [vmem:[%s42_s0] sm:$0x3]  ;;  %s25_s0 = smov 8  }
   0x2   :  { %6 = vst [vmem:[#allocation1] sm:$0x3] %v5_v0 }
   0x9   :  { %v11_v1 = vld [vmem:[#allocation1 + $0x1] sm:$0x1]   ;;  %v7_v2 = vld [vmem:[#allocation1] sm:$0x1]  }
   0xa   :  { %12 = vrot.lane.b32.xlu0 %v11_v1, %s25_s0  ;;  %9 = vst.msk [vmem:[#allocation0] sm:$0x1] %vm8_vm0, %v7_v2  }
  0x7c   :  { %v13_v3 = vpop.permute.xlu0 %12  }
  0x7d   :  { %15 = vst.msk [vmem:[#allocation0] sm:$0x1] %vm14_vm1, %v13_v3  }
  0x84   :  { %v20_v4 = vld [vmem:[#allocation0] sm:$0x1] }
  0x85   :  { %23 = vst [vmem:[%s43_s1] sm:$0x1] %v20_v4 }

// kernel: sparse_transformer_layer.3
= control target key start
LH: loop header
LB: loop body
LE: loop exit
PB: predicated region body
PF: predicated region fallthrough
CT: control target
= control target key end

     0   :  { %vm44_vm0 = vcmask 261120   ;;  %s7308_s0 = inlined_call_operand.vmem [shape: f32[16,32], index: 0, kind: input, shape index: {}]   ;;  %s7309_s1 = inlined_call_operand.vmem [shape: f32[16,32], index: 1, kind: input, shape index: {}]   ;;  %s7310_s2 = inlined_call_operand.vmem [shape: f32[4,16,1], index: 2, kind: input, shape index: {}]   ;;  %s7311_s3 = inlined_call_operand.vmem [shape: f32[4,32,64], index: 3, kind: input, shape index: {}]   ;;  %s7312_s4 = inlined_call_operand.vmem [shape: f32[4,1,64], index: 4, kind: input, shape index: {}]   ;;  %s7313_s5 = inlined_call_operand.vmem [shape: f32[4,64,32], index: 5, kind: input, shape index: {}]   ;;  %s7314_s6 = inlined_call_operand.vmem [shape: f32[4,1,32], index: 6, kind: input, shape index: {}]   ;;  %s7315_s7 = inlined_call_operand.hbm [shape: f32[16,32], index: 7, kind: output, shape index: {}]  }
   0x1   :  { %v36_v0 = vld [vmem:[%s7311_s3 + $0x18] sm:$0xff]  ;;  %v35_v1 = vld [vmem:[%s7311_s3 + $0x10] sm:$0xff]  ;;  %v34_v2 = vld [vmem:[%s7311_s3 + $0x8] sm:$0xff] }
   0x2   :  { %v6029_v3 = vand.u32 4294901760, %v36_v0  ;;  %v6031_v4 = vand.u32 4294901760, %v35_v1  ;;  %v6033_v5 = vand.u32 4294901760, %v34_v2  ;;  %v33_v6 = vld [vmem:[%s7311_s3] sm:$0xff]  ;;  %v30_v8 = vld [vmem:[%s7309_s1 + $0x8] sm:$0xff] }
   0x3   :  { %v29_v7 = vld [vmem:[%s7309_s1] sm:$0xff]  ;;  %v6044_v9 = vand.u32 4294901760, %v33_v6  ;;  %v49_v11 = vsel %vm44_vm0, %v30_v8, 0 }
   0x4   :  { %v46_v10 = vsel %vm44_vm0, %v29_v7, 0 }
   0x5   :  { %12 = vsyncpa [#allocation3], 0  ;;  %5210 = vmatprep.subr.mxu0 %v6029_v3  ;;  %v166_v12 = vsub.f32 %v36_v0, %v6029_v3  ;;  %v6050_v13 = vand.u32 4294901760, %v46_v10  ;;  %v173_v14 = vsub.f32 %v35_v1, %v6031_v4  ;;  %v6053_v15 = vand.u32 4294901760, %v49_v11  ;;  %v604_v38 = vld [vmem:[%s7313_s5 + $0x38] sm:$0xff]  ;;  %v603_v40 = vld [vmem:[%s7313_s5 + $0x30] sm:$0xff] }
   0x6   :  { %5211 = vmatpush3.msra.mxu0 %v6029_v3  ;;  %v180_v16 = vsub.f32 %v34_v2, %v6033_v5  ;;  %v187_v17 = vsub.f32 %v33_v6, %v6044_v9  ;;  %v6115_v39 = vand.u32 4294901760, %v604_v38  ;;  %v6123_v42 = vand.u32 4294901760, %v603_v40  ;;  %v602_v43 = vld [vmem:[%s7313_s5 + $0x28] sm:$0xff]  ;;  %v601_v47 = vld [vmem:[%s7313_s5 + $0x20] sm:$0xff]  ;;  %v600_v48 = vld [vmem:[%s7313_s5 + $0x18] sm:$0xff] }
   0x7   :  { %5212 = vmatprep.subr.mxu0 %v6031_v4  ;;  %v167_v18 = vand.u32 4294901760, %v166_v12  ;;  %v6060_v19 = vsub.f32 %v46_v10, %v6050_v13  ;;  %v174_v20 = vand.u32 4294901760, %v173_v14  ;;  %v6063_v21 = vsub.f32 %v49_v11, %v6053_v15  ;;  %5229 = vmatprep.mubr.f32.mxu1 %v6050_v13  ;;  %v599_v49 = vld [vmem:[%s7313_s5 + $0x10] sm:$0xff]  ;;  %v598_v54 = vld [vmem:[%s7313_s5 + $0x8] sm:$0xff]  ;;  %v597_v55 = vld [vmem:[%s7313_s5] sm:$0xff] }
   0x8   :  { %5213 = vmatpush3.msra.mxu0 %v6031_v4  ;;  %v181_v22 = vand.u32 4294901760, %v180_v16  ;;  %v188_v23 = vand.u32 4294901760, %v187_v17  ;;  %v6121_v41 = vsub.f32 %v604_v38, %v6115_v39  ;;  %v6134_v45 = vsub.f32 %v603_v40, %v6123_v42 }
   0x9   :  { %5214 = vmatprep.subr.mxu0 %v6033_v5  ;;  %v168_v24 = vsub.f32 %v166_v12, %v167_v18  ;;  %v6069_v25 = vand.u32 4294901760, %v6060_v19  ;;  %v175_v26 = vsub.f32 %v173_v14, %v174_v20  ;;  %v6072_v27 = vand.u32 4294901760, %v6063_v21 }
   0xa   :  { %5215 = vmatpush3.msra.mxu0 %v6033_v5  ;;  %v182_v28 = vsub.f32 %v180_v16, %v181_v22  ;;  %v189_v29 = vsub.f32 %v187_v17, %v188_v23  ;;  %v6131_v44 = vand.u32 4294901760, %v6121_v41  ;;  %v6136_v46 = vand.u32 4294901760, %v602_v43 }
   0xb   :  { %5216 = vmatprep.subr.mxu0 %v6044_v9  ;;  %v169_v30 = vand.u32 4294901760, %v168_v24  ;;  %v123_v31 = vsub.f32 %v6060_v19, %v6069_v25  ;;  %v176_v32 = vand.u32 4294901760, %v175_v26  ;;  %v133_v33 = vsub.f32 %v6063_v21, %v6072_v27 }
   0xc   :  { %5217 = vmatpush3.msra.mxu0 %v6044_v9  ;;  %v183_v36 = vand.u32 4294901760, %v182_v28  ;;  %v190_v37 = vand.u32 4294901760, %v189_v29  ;;  %v732_v50 = vsub.f32 %v6121_v41, %v6131_v44  ;;  %v6152_v51 = vand.u32 4294901760, %v6134_v45  ;;  %v1199_v28 = vld [vmem:[%s7310_s2] sm:$0xff] }
   0xd   :  { %5221 = vmatprep.subr.mxu1 %v169_v30  ;;  %v6081_v34 = vand.u32 4294901760, %v123_v31  ;;  %5232 = vmatprep.subr.mxu0 %v166_v12  ;;  %v6083_v35 = vand.u32 4294901760, %v133_v33  ;;  %v6155_v52 = vsub.f32 %v602_v43, %v6136_v46  ;;  %v6157_v53 = vand.u32 4294901760, %v601_v47  ;;  %v1200_v31 = vld [vmem:[%s7310_s2 + $0x8] sm:$0xff] }
   0xe   :  { %5222 = vmatpush3.msra.mxu1 %v169_v30  ;;  %v6166_v56 = vand.u32 4294901760, %v600_v48  ;;  %v6168_v57 = vand.u32 4294901760, %v599_v49  ;;  %v6170_v58 = vand.u32 4294901760, %v598_v54  ;;  %v6173_v59 = vand.u32 4294901760, %v597_v55 }
   0xf   :  { %5218 = vmatprep.mubr.f32.mxu0 %v6081_v34  ;;  %5223 = vmatprep.subr.mxu1 %v176_v32  ;;  %v733_v60 = vand.u32 4294901760, %v732_v50  ;;  %v739_v61 = vsub.f32 %v6134_v45, %v6152_v51  ;;  %v6178_v62 = vand.u32 4294901760, %v6155_v52  ;;  %v6181_v63 = vsub.f32 %v601_v47, %v6157_v53 }
  0x10   :  { %5219 = vmatmul.mubr.f32.vlgmr.msra.gmra.mxu0 %v6083_v35  ;;  %5224 = vmatpush3.msra.mxu1 %v176_v32  ;;  %v6185_v0 = vsub.f32 %v600_v48, %v6166_v56  ;;  %v6188_v1 = vsub.f32 %v599_v49, %v6168_v57  ;;  %v6191_v2 = vsub.f32 %v598_v54, %v6170_v58  ;;  %v5976_v29 = vmov 0   ;;  %v4770_v32 = vld [vmem:[%s7312_s4] ss:$0 sm:$0xff] }
  0x11   :  { %5233 = vmatpush3.msra.mxu0 %v166_v12  ;;  %5225 = vmatprep.subr.mxu1 %v183_v36  ;;  %v6200_v6 = vand.u32 4294901760, %v6181_v63  ;;  %vm612_vm1 = vcmask 523264  }
  0x12   :  { %5234 = vmatprep.subr.mxu0 %v173_v14  ;;  %5226 = vmatpush3.msra.mxu1 %v183_v36  ;;  %v6204_v7 = vand.u32 4294901760, %v6185_v0  ;;  %v6207_v8 = vand.u32 4294901760, %v6188_v1 }
  0x13   :  { %5235 = vmatpush3.msra.mxu0 %v173_v14  ;;  %5227 = vmatprep.subr.mxu1 %v190_v37  ;;  %v753_v11 = vsub.f32 %v6181_v63, %v6200_v6 }
  0x14   :  { %5236 = vmatprep.subr.mxu0 %v180_v16  ;;  %5228 = vmatpush3.msra.mxu1 %v190_v37  ;;  %v760_v14 = vsub.f32 %v6185_v0, %v6204_v7 }
  0x15   :  { %5237 = vmatpush3.msra.mxu0 %v180_v16  ;;  %5230 = vmatmul.mubr.f32.vlgmr.msra.gmra.mxu1 %v6053_v15  ;;  %v767_v16 = vsub.f32 %v6188_v1, %v6207_v8 }
  0x16   :  { %5238 = vmatprep.subr.mxu0 %v187_v17  ;;  %5243 = vmatprep.subr.mxu1 %v6029_v3 }
  0x17   :  { %5239 = vmatpush3.msra.mxu0 %v187_v17  ;;  %5240 = vmatprep.mubr.f32.mxu0 %v6060_v19  ;;  %v754_v17 = vand.u32 4294901760, %v753_v11 }
  0x18   :  { %5244 = vmatpush3.msra.mxu1 %v6029_v3  ;;  %5241 = vmatmul.mubr.f32.vlgmr.msra.gmra.mxu0 %v6063_v21 }
  0x19   :  { %5245 = vmatprep.subr.mxu1 %v6031_v4  ;;  %5254 = vmatprep.subr.mxu0 %v167_v18 }
  0x1a   :  { %5246 = vmatpush3.msra.mxu1 %v6031_v4  ;;  %5255 = vmatpush3.msra.mxu0 %v167_v18 }
  0x1b   :  { %5247 = vmatprep.subr.mxu1 %v6033_v5  ;;  %5256 = vmatprep.subr.mxu0 %v174_v20 }
  0x1c   :  { %5248 = vmatpush3.msra.mxu1 %v6033_v5  ;;  %5257 = vmatpush3.msra.mxu0 %v174_v20  ;;  %v761_v20 = vand.u32 4294901760, %v760_v14 }
  0x1d   :  { %5249 = vmatprep.subr.mxu1 %v6044_v9  ;;  %5258 = vmatprep.subr.mxu0 %v181_v22 }
  0x1e   :  { %5250 = vmatpush3.msra.mxu1 %v6044_v9  ;;  %5251 = vmatprep.mubr.f32.mxu1 %v6069_v25 }
  0x1f   :  { %5259 = vmatpush3.msra.mxu0 %v181_v22  ;;  %5252 = vmatmul.mubr.f32.vlgmr.msra.gmra.mxu1 %v6072_v27  ;;  %v768_v22 = vand.u32 4294901760, %v767_v16 }
  0x20   :  { %5260 = vmatprep.subr.mxu0 %v188_v23  ;;  %5265 = vmatprep.subr.mxu1 %v6029_v3 }
  0x21   :  { %5261 = vmatpush3.msra.mxu0 %v188_v23  ;;  %5262 = vmatprep.mubr.f32.mxu0 %v6050_v13 }
  0x22   :  { %5266 = vmatpush3.msra.mxu1 %v6029_v3  ;;  %5263 = vmatmul.mubr.f32.vlgmr.msra.gmra.mxu0 %v6053_v15  ;;  %v6194_v3 = vsub.f32 %v597_v55, %v6173_v59 }
  0x23   :  { %5267 = vmatprep.subr.mxu1 %v6031_v4  ;;  %5273 = vmatprep.mubr.f32.mxu1 %v6050_v13 }
  0x24   :  { %5268 = vmatpush3.msra.mxu1 %v6031_v4  ;;  %5276 = vmatprep.subr.mxu0 %v6115_v39  ;;  %v740_v4 = vand.u32 4294901760, %v739_v61  ;;  %v6216_v12 = vand.u32 4294901760, %v6194_v3 }
  0x25   :  { %5269 = vmatprep.subr.mxu1 %v6033_v5  ;;  %5277 = vmatpush3.msra.mxu0 %v6115_v39 }
  0x26   :  { %5270 = vmatpush3.msra.mxu1 %v6033_v5  ;;  %5278 = vmatprep.subr.mxu0 %v6123_v42  ;;  %v746_v5 = vsub.f32 %v6155_v52, %v6178_v62  ;;  %v781_v23 = vsub.f32 %v6194_v3, %v6216_v12 }
  0x27   :  { %5271 = vmatprep.subr.mxu1 %v6044_v9  ;;  %5279 = vmatpush3.msra.mxu0 %v6123_v42 }
  0x28   :  { %5272 = vmatpush3.msra.mxu1 %v6044_v9  ;;  %5280 = vmatprep.subr.mxu0 %v6136_v46  ;;  %v6210_v9 = vand.u32 4294901760, %v6191_v2  ;;  %v747_v10 = vand.u32 4294901760, %v746_v5  ;;  %v782_v26 = vand.u32 4294901760, %v781_v23 }
  0x29   :  { %5274 = vmatmul.mubr.f32.vlgmr.msra.gmra.mxu1 %v6053_v15  ;;  %5281 = vmatpush3.msra.mxu0 %v6136_v46 }
  0x2a   :  { %5282 = vmatprep.subr.mxu0 %v6157_v53  ;;  %5295 = vmatprep.subr.mxu1 %v733_v60  ;;  %v774_v18 = vsub.f32 %v6191_v2, %v6210_v9 }
  0x2b   :  { %5283 = vmatpush3.msra.mxu0 %v6157_v53  ;;  %5296 = vmatpush3.msra.mxu1 %v733_v60 }
  0x2c   :  { %5284 = vmatprep.subr.mxu0 %v6166_v56  ;;  %5297 = vmatprep.subr.mxu1 %v740_v4  ;;  %v775_v24 = vand.u32 4294901760, %v774_v18 }
  0x2d   :  { %5285 = vmatpush3.msra.mxu0 %v6166_v56  ;;  %5298 = vmatpush3.msra.mxu1 %v740_v4 }
  0x2e   :  { %5286 = vmatprep.subr.mxu0 %v6168_v57  ;;  %5299 = vmatprep.subr.mxu1 %v747_v10 }
  0x2f   :  { %5287 = vmatpush3.msra.mxu0 %v6168_v57  ;;  %5300 = vmatpush3.msra.mxu1 %v747_v10 }
  0x30   :  { %5288 = vmatprep.subr.mxu0 %v6170_v58  ;;  %5301 = vmatprep.subr.mxu1 %v754_v17 }
  0x31   :  { %5289 = vmatpush3.msra.mxu0 %v6170_v58  ;;  %5302 = vmatpush3.msra.mxu1 %v754_v17 }
  0x32   :  { %5290 = vmatprep.subr.mxu0 %v6173_v59  ;;  %5303 = vmatprep.subr.mxu1 %v761_v20 }
  0x33   :  { %5291 = vmatpush3.msra.mxu0 %v6173_v59  ;;  %5304 = vmatpush3.msra.mxu1 %v761_v20 }
  0x34   :  { %5314 = vmatprep.subr.mxu0 %v6121_v41  ;;  %5305 = vmatprep.subr.mxu1 %v768_v22 }
  0x35   :  { %5306 = vmatpush3.msra.mxu1 %v768_v22  ;;  %5934 = vset.pattern.permute.xlu0 %v5976_v29 }
  0x36   :  { %5307 = vmatprep.subr.mxu1 %v775_v24  ;;  %5935 = vset.pattern.permute.xlu1 %v5976_v29 }
  0x37   :  { %5308 = vmatpush3.msra.mxu1 %v775_v24  ;;  %1203 = vperm.xlu0 %5934, %v1199_v28  }
  0x38   :  { %5309 = vmatprep.subr.mxu1 %v782_v26 }
  0x39   :  { %5310 = vmatpush3.msra.mxu1 %v782_v26 }
  0x3a   :  { %5333 = vmatprep.subr.mxu1 %v6115_v39 }
  0x3b   :  { %1208 = vperm.xlu0 %5934, %v1200_v31  }
  0xd0   :  { %v5220_v30 = vpop.f32.mrf.mxu0 }
  0xd1   :  { %v137_v37 = vadd.f32 %v5220_v30, %v4770_v32 }
  0xd2   :  { %v126_v33 = vpop.f32.mrf.mxu0 }
  0xd3   :  { %v127_v38 = vadd.f32 %v4770_v32, %v126_v33 }
  0xd5   :  { %v5231_v36 = vpop.f32.mrf.mxu1 }
  0xd6   :  { %v234_v47 = vadd.f32 %v5231_v36, %v137_v37 }
  0xd7   :  { %v227_v40 = vpop.f32.mrf.mxu1 }
  0xd8   :  { %v5242_v43 = vpop.f32.mrf.mxu0  ;;  %v228_v49 = vadd.f32 %v227_v40, %v127_v38 }
  0xd9   :  { %v321_v54 = vadd.f32 %v5242_v43, %v234_v47 }
  0xda   :  { %v313_v50 = vpop.f32.mrf.mxu0 }
  0xdb   :  { %v314_v61 = vadd.f32 %v313_v50, %v228_v49 }
  0xdf   :  { %v5253_v48 = vpop.f32.mrf.mxu1 }
  0xe0   :  { %v406_v4 = vadd.f32 %v5253_v48, %v321_v54 }
  0xe1   :  { %v397_v55 = vpop.f32.mrf.mxu1 }
  0xe2   :  { %v5264_v60 = vpop.f32.mrf.mxu0  ;;  %v398_v5 = vadd.f32 %v397_v55, %v314_v61 }
  0xe3   :  { %v495_v11 = vadd.f32 %v5264_v60, %v406_v4 }
  0xe4   :  { %v488_v10 = vpop.f32.mrf.mxu0 }
  0xe5   :  { %v489_v16 = vadd.f32 %v488_v10, %v398_v5 }
  0xe9   :  { %v5275_v14 = vpop.f32.mrf.mxu1 }
  0xea   :  { %v576_v17 = vadd.f32 %v5275_v14, %v495_v11 }
  0xeb   :  { %v569_v18 = vpop.f32.mrf.mxu1 }
  0xec   :  { %v582_v20 = vmul.f32 0.044715, %v576_v17  ;;  %v570_v22 = vadd.f32 %v569_v18, %v489_v16  ;;  %v580_v37 = vmul.f32 0.5, %v576_v17  ;;  %v4773_v18 = vld [vmem:[%s7311_s3 + $0x28] sm:$0xff] }
  0xee   :  { %v584_v23 = vmul.f32 %v582_v20, %v576_v17  ;;  %v581_v24 = vmul.f32 0.044715, %v570_v22  ;;  %v579_v43 = vmul.f32 0.5, %v570_v22 }
  0xf0   :  { %v586_v26 = vmul.f32 %v584_v23, %v576_v17  ;;  %v583_v28 = vmul.f32 %v581_v24, %v570_v22 }
  0xf2   :  { %v588_v29 = vadd.f32 %v586_v26, %v576_v17  ;;  %v585_v30 = vmul.f32 %v583_v28, %v570_v22  ;;  %v4783_v26 = vld [vmem:[%s7313_s5 + $0x68] sm:$0xff] }
  0xf4   :  { %v590_v31 = vmul.f32 0.7978846, %v588_v29  ;;  %v587_v32 = vadd.f32 %v585_v30, %v570_v22  ;;  %v6303_v22 = vand.u32 4294901760, %v4773_v18  ;;  %v6452_v30 = vand.u32 4294901760, %v4783_v26 }
  0xf6   :  { %5936 = vtanh.f32 %v590_v31  ;;  %v589_v33 = vmul.f32 0.7978846, %v587_v32  ;;  %v6325_v23 = vsub.f32 %v4773_v18, %v6303_v22  ;;  %v4782_v31 = vld [vmem:[%s7313_s5 + $0x60] sm:$0xff]  ;;  %v4781_v32 = vld [vmem:[%s7313_s5 + $0x58] sm:$0xff] }
  0xf8   :  { %5938 = vtanh.f32 %v589_v33  ;;  %v4780_v33 = vld [vmem:[%s7313_s5 + $0x50] sm:$0xff] }
 0x103   :  { %v5937_v36 = vpop.eup %5936 }
 0x104   :  { %v594_v38 = vadd.f32 1.0, %v5937_v36  ;;  %v6464_v36 = vand.u32 4294901760, %v4782_v31 }
 0x105   :  { %v5939_v40 = vpop.eup %5938 }
 0x106   :  { %v593_v47 = vadd.f32 1.0, %v5939_v40  ;;  %v596_v48 = vmul.f32 %v594_v38, %v580_v37  ;;  %v6466_v37 = vand.u32 4294901760, %v4781_v32  ;;  %v6468_v38 = vand.u32 4294901760, %v4780_v33  ;;  %v4779_v40 = vld [vmem:[%s7313_s5 + $0x48] sm:$0xff] }
 0x108   :  { %v595_v49 = vmul.f32 %v593_v47, %v579_v43  ;;  %v617_v50 = vsel %vm612_vm1, %v596_v48, 0  ;;  %v4778_v43 = vld [vmem:[%s7313_s5 + $0x40] sm:$0xff] }
 0x109   :  { %v6244_v54 = vand.u32 4294901760, %v617_v50 }
 0x10a   :  { %v614_v55 = vsel %vm612_vm1, %v595_v49, 0  ;;  %v6483_v49 = vsub.f32 %v4783_v26, %v6452_v30 }
 0x10b   :  { %v6247_v60 = vand.u32 4294901760, %v614_v55  ;;  %v6250_v61 = vsub.f32 %v617_v50, %v6244_v54  ;;  %v6486_v50 = vand.u32 4294901760, %v4779_v40 }
 0x10d   :  { %5311 = vmatprep.mubr.f32.mxu1 %v6247_v60  ;;  %v693_v4 = vsub.f32 %v614_v55, %v6247_v60  ;;  %v704_v5 = vand.u32 4294901760, %v6250_v61  ;;  %v6492_v55 = vsub.f32 %v4781_v32, %v6466_v37 }
 0x10e   :  { %5312 = vmatmul.mubr.f32.vlgmr.msra.gmra.mxu1 %v6244_v54 }
 0x10f   :  { %5334 = vmatpush3.msra.mxu1 %v6115_v39  ;;  %v694_v10 = vand.u32 4294901760, %v693_v4  ;;  %v705_v11 = vsub.f32 %v6250_v61, %v704_v5 }
 0x110   :  { %5335 = vmatprep.subr.mxu1 %v6123_v42 }
 0x111   :  { %5336 = vmatpush3.msra.mxu1 %v6123_v42  ;;  %5349 = vmatprep.mubr.f32.mxu1 %v694_v10  ;;  %v695_v14 = vsub.f32 %v693_v4, %v694_v10  ;;  %v706_v17 = vand.u32 4294901760, %v705_v11  ;;  %v6503_v10 = vand.u32 4294901760, %v6483_v49  ;;  %v6506_v11 = vsub.f32 %v4779_v40, %v6486_v50 }
 0x112   :  { %5337 = vmatprep.subr.mxu1 %v6136_v46 }
 0x113   :  { %5338 = vmatpush3.msra.mxu1 %v6136_v46  ;;  %v696_v16 = vand.u32 4294901760, %v695_v14  ;;  %v6525_v18 = vand.u32 4294901760, %v6506_v11 }
 0x114   :  { %5339 = vmatprep.subr.mxu1 %v6157_v53 }
 0x115   :  { %5340 = vmatpush3.msra.mxu1 %v6157_v53  ;;  %5292 = vmatprep.mubr.f32.mxu0 %v696_v16  ;;  %v6513_v16 = vand.u32 4294901760, %v6492_v55 }
 0x116   :  { %5341 = vmatprep.subr.mxu1 %v6166_v56  ;;  %5293 = vmatmul.mubr.f32.vlgmr.msra.gmra.mxu0 %v706_v17 }
 0x117   :  { %5315 = vmatpush3.msra.mxu0 %v6121_v41  ;;  %5342 = vmatpush3.msra.mxu1 %v6166_v56  ;;  %v4775_v41 = vld [vmem:[%s7311_s3 + $0x38] sm:$0xff] }
 0x118   :  { %5316 = vmatprep.subr.mxu0 %v6134_v45  ;;  %5330 = vmatprep.mubr.f32.mxu0 %v693_v4 }
 0x119   :  { %5343 = vmatprep.subr.mxu1 %v6168_v57  ;;  %5317 = vmatpush3.msra.mxu0 %v6134_v45  ;;  %v4774_v45 = vld [vmem:[%s7311_s3 + $0x30] sm:$0xff] }
 0x11a   :  { %5344 = vmatpush3.msra.mxu1 %v6168_v57  ;;  %5318 = vmatprep.subr.mxu0 %v6155_v52 }
 0x11b   :  { %5345 = vmatprep.subr.mxu1 %v6170_v58  ;;  %5319 = vmatpush3.msra.mxu0 %v6155_v52  ;;  %v6286_v52 = vand.u32 4294901760, %v4775_v41 }
 0x11c   :  { %5346 = vmatpush3.msra.mxu1 %v6170_v58  ;;  %5320 = vmatprep.subr.mxu0 %v6181_v63 }
 0x11d   :  { %5347 = vmatprep.subr.mxu1 %v6173_v59  ;;  %5321 = vmatpush3.msra.mxu0 %v6181_v63  ;;  %v6294_v63 = vand.u32 4294901760, %v4774_v45  ;;  %v6301_v20 = vsub.f32 %v4775_v41, %v6286_v52 }
 0x11e   :  { %5348 = vmatpush3.msra.mxu1 %v6173_v59  ;;  %5322 = vmatprep.subr.mxu0 %v6185_v0 }
 0x11f   :  { %5350 = vmatmul.mubr.f32.vlgmr.msra.gmra.mxu1 %v704_v5  ;;  %5371 = vmatprep.subr.mxu1 %v6115_v39 }
 0x120   :  { %5323 = vmatpush3.msra.mxu0 %v6185_v0  ;;  %5372 = vmatpush3.msra.mxu1 %v6115_v39  ;;  %v4772_v0 = vld [vmem:[%s7311_s3 + $0x20] sm:$0xff]  ;;  %v6313_v39 = vsub.f32 %v4774_v45, %v6294_v63 }
 0x121   :  { %5387 = vmatprep.mubr.f32.mxu1 %v6247_v60  ;;  %5324 = vmatprep.subr.mxu0 %v6188_v1 }
 0x122   :  { %5373 = vmatprep.subr.mxu1 %v6123_v42  ;;  %5325 = vmatpush3.msra.mxu0 %v6188_v1  ;;  %v6317_v1 = vand.u32 4294901760, %v4772_v0 }
 0x123   :  { %5374 = vmatpush3.msra.mxu1 %v6123_v42  ;;  %5326 = vmatprep.subr.mxu0 %v6191_v2  ;;  %v6322_v42 = vand.u32 4294901760, %v6301_v20 }
 0x124   :  { %5375 = vmatprep.subr.mxu1 %v6136_v46  ;;  %5327 = vmatpush3.msra.mxu0 %v6191_v2  ;;  %v6337_v2 = vsub.f32 %v4772_v0, %v6317_v1 }
 0x125   :  { %5376 = vmatpush3.msra.mxu1 %v6136_v46  ;;  %5328 = vmatprep.subr.mxu0 %v6194_v3  ;;  %v6332_v46 = vand.u32 4294901760, %v6313_v39 }
 0x126   :  { %5377 = vmatprep.subr.mxu1 %v6157_v53  ;;  %5329 = vmatpush3.msra.mxu0 %v6194_v3  ;;  %v6344_v3 = vand.u32 4294901760, %v6325_v23 }
 0x127   :  { %5378 = vmatpush3.msra.mxu1 %v6157_v53  ;;  %5331 = vmatmul.mubr.f32.vlgmr.msra.gmra.mxu0 %v6250_v61  ;;  %v1345_v53 = vsub.f32 %v6301_v20, %v6322_v42  ;;  %v6498_v61 = vand.u32 4294901760, %v4778_v43 }
 0x128   :  { %5352 = vmatprep.subr.mxu0 %v6131_v44  ;;  %5379 = vmatprep.subr.mxu1 %v6166_v56 }
 0x129   :  { %5353 = vmatpush3.msra.mxu0 %v6131_v44  ;;  %5368 = vmatprep.mubr.f32.mxu0 %v6247_v60  ;;  %v1352_v44 = vsub.f32 %v6313_v39, %v6332_v46  ;;  %v1346_v24 = vand.u32 4294901760, %v1345_v53  ;;  %v6495_v60 = vsub.f32 %v4780_v33, %v6468_v38  ;;  %v6519_v41 = vsub.f32 %v4778_v43, %v6498_v61 }
 0x12a   :  { %5380 = vmatpush3.msra.mxu1 %v6166_v56  ;;  %5354 = vmatprep.subr.mxu0 %v6152_v51  ;;  %v6355_v56 = vand.u32 4294901760, %v6337_v2 }
 0x12b   :  { %5381 = vmatprep.subr.mxu1 %v6168_v57  ;;  %5355 = vmatpush3.msra.mxu0 %v6152_v51  ;;  %v1359_v51 = vsub.f32 %v6325_v23, %v6344_v3  ;;  %v6516_v17 = vand.u32 4294901760, %v6495_v60 }
 0x12c   :  { %5382 = vmatpush3.msra.mxu1 %v6168_v57  ;;  %5356 = vmatprep.subr.mxu0 %v6178_v62  ;;  %v1353_v57 = vand.u32 4294901760, %v1352_v44  ;;  %v4771_v44 = vld [vmem:[%s7314_s6] ss:$0 sm:$0xff] }
 0x12d   :  { %5383 = vmatprep.subr.mxu1 %v6170_v58  ;;  %5357 = vmatpush3.msra.mxu0 %v6178_v62  ;;  %v1360_v62 = vand.u32 4294901760, %v1359_v51  ;;  %v1945_v0 = vsub.f32 %v6495_v60, %v6516_v17 }
 0x12e   :  { %5384 = vmatpush3.msra.mxu1 %v6170_v58  ;;  %5358 = vmatprep.subr.mxu0 %v6200_v6  ;;  %v1366_v58 = vsub.f32 %v6337_v2, %v6355_v56 }
 0x12f   :  { %5385 = vmatprep.subr.mxu1 %v6173_v59  ;;  %5359 = vmatpush3.msra.mxu0 %v6200_v6  ;;  %v4785_v6 = vld [vmem:[%s7313_s5 + $0x78] sm:$0xff] }
 0x130   :  { %5386 = vmatpush3.msra.mxu1 %v6173_v59  ;;  %5360 = vmatprep.subr.mxu0 %v6204_v7  ;;  %v1367_v59 = vand.u32 4294901760, %v1366_v58 }
 0x131   :  { %5388 = vmatmul.mubr.f32.vlgmr.msra.gmra.mxu1 %v6244_v54  ;;  %5361 = vmatpush3.msra.mxu0 %v6204_v7  ;;  %v6431_v7 = vand.u32 4294901760, %v4785_v6 }
 0x132   :  { %5362 = vmatprep.subr.mxu0 %v6207_v8  ;;  %5401 = vmatprep.subr.mxu1 %v1346_v24 }
 0x133   :  { %5363 = vmatpush3.msra.mxu0 %v6207_v8  ;;  %5402 = vmatpush3.msra.mxu1 %v1346_v24  ;;  %v4784_v8 = vld [vmem:[%s7313_s5 + $0x70] sm:$0xff] }
 0x134   :  { %5364 = vmatprep.subr.mxu0 %v6210_v9  ;;  %5403 = vmatprep.subr.mxu1 %v1353_v57 }
 0x135   :  { %5365 = vmatpush3.msra.mxu0 %v6210_v9  ;;  %5404 = vmatpush3.msra.mxu1 %v1353_v57  ;;  %v6437_v9 = vsub.f32 %v4785_v6, %v6431_v7 }
 0x136   :  { %5366 = vmatprep.subr.mxu0 %v6216_v12  ;;  %5405 = vmatprep.subr.mxu1 %v1360_v62 }
 0x137   :  { %5367 = vmatpush3.msra.mxu0 %v6216_v12  ;;  %5406 = vmatpush3.msra.mxu1 %v1360_v62  ;;  %v6439_v12 = vand.u32 4294901760, %v4784_v8  ;;  %v6447_v28 = vand.u32 4294901760, %v6437_v9 }
 0x138   :  { %5369 = vmatmul.mubr.f32.vlgmr.msra.gmra.mxu0 %v6244_v54  ;;  %5390 = vmatprep.subr.mxu0 %v6286_v52  ;;  %v6489_v54 = vsub.f32 %v4782_v31, %v6464_v36 }
 0x139   :  { %5391 = vmatpush3.msra.mxu0 %v6286_v52  ;;  %5407 = vmatprep.subr.mxu1 %v1367_v59  ;;  %v6450_v29 = vsub.f32 %v4784_v8, %v6439_v12  ;;  %v1910_v47 = vsub.f32 %v6437_v9, %v6447_v28 }
 0x13a   :  { %5392 = vmatprep.subr.mxu0 %v6294_v63  ;;  %5398 = vmatprep.mubr.f32.mxu0 %v6081_v34  ;;  %v6510_v14 = vand.u32 4294901760, %v6489_v54 }
 0x13b   :  { %5393 = vmatpush3.msra.mxu0 %v6294_v63  ;;  %5408 = vmatpush3.msra.mxu1 %v1367_v59  ;;  %v6480_v48 = vand.u32 4294901760, %v6450_v29  ;;  %v1911_v4 = vand.u32 4294901760, %v1910_v47 }
 0x13c   :  { %5394 = vmatprep.subr.mxu0 %v6303_v22  ;;  %5409 = vmatprep.mubr.f32.mxu1 %v6050_v13 }
 0x13d   :  { %5395 = vmatpush3.msra.mxu0 %v6303_v22  ;;  %5423 = vmatprep.subr.mxu1 %v6286_v52  ;;  %v1917_v5 = vsub.f32 %v6450_v29, %v6480_v48 }
 0x13e   :  { %5396 = vmatprep.subr.mxu0 %v6317_v1  ;;  %5410 = vmatmul.mubr.f32.vlgmr.msra.gmra.mxu1 %v6053_v15 }
 0x13f   :  { %5397 = vmatpush3.msra.mxu0 %v6317_v1  ;;  %5424 = vmatpush3.msra.mxu1 %v6286_v52  ;;  %v1918_v45 = vand.u32 4294901760, %v1917_v5 }
 0x140   :  { %5399 = vmatmul.mubr.f32.vlgmr.msra.gmra.mxu0 %v6083_v35  ;;  %5412 = vmatprep.subr.mxu0 %v6301_v20 }
 0x141   :  { %5413 = vmatpush3.msra.mxu0 %v6301_v20  ;;  %5425 = vmatprep.subr.mxu1 %v6294_v63  ;;  %v1938_v20 = vsub.f32 %v6492_v55, %v6513_v16 }
 0x142   :  { %5414 = vmatprep.subr.mxu0 %v6313_v39  ;;  %5426 = vmatpush3.msra.mxu1 %v6294_v63 }
 0x143   :  { %5415 = vmatpush3.msra.mxu0 %v6313_v39  ;;  %5427 = vmatprep.subr.mxu1 %v6303_v22  ;;  %v6536_v39 = vand.u32 4294901760, %v6519_v41 }
 0x144   :  { %5416 = vmatprep.subr.mxu0 %v6325_v23  ;;  %5428 = vmatpush3.msra.mxu1 %v6303_v22 }
 0x145   :  { %5417 = vmatpush3.msra.mxu0 %v6325_v23  ;;  %5429 = vmatprep.subr.mxu1 %v6317_v1  ;;  %v1952_v23 = vsub.f32 %v6506_v11, %v6525_v18 }
 0x146   :  { %5418 = vmatprep.subr.mxu0 %v6337_v2  ;;  %5420 = vmatprep.mubr.f32.mxu0 %v6060_v19 }
 0x147   :  { %5419 = vmatpush3.msra.mxu0 %v6337_v2  ;;  %5430 = vmatpush3.msra.mxu1 %v6317_v1  ;;  %v1959_v2 = vsub.f32 %v6519_v41, %v6536_v39  ;;  %v1953_v53 = vand.u32 4294901760, %v1952_v23 }
 0x148   :  { %5421 = vmatmul.mubr.f32.vlgmr.msra.gmra.mxu0 %v6063_v21  ;;  %5431 = vmatprep.mubr.f32.mxu1 %v6069_v25 }
 0x149   :  { %5434 = vmatprep.subr.mxu0 %v6322_v42  ;;  %5445 = vmatprep.subr.mxu1 %v6286_v52 }
 0x14a   :  { %5432 = vmatmul.mubr.f32.vlgmr.msra.gmra.mxu1 %v6072_v27  ;;  %5435 = vmatpush3.msra.mxu0 %v6322_v42  ;;  %v1939_v42 = vand.u32 4294901760, %v1938_v20 }
 0x14b   :  { %5446 = vmatpush3.msra.mxu1 %v6286_v52  ;;  %5436 = vmatprep.subr.mxu0 %v6332_v46  ;;  %v1924_v52 = vsub.f32 %v6483_v49, %v6503_v10 }
 0x14c   :  { %5447 = vmatprep.subr.mxu1 %v6294_v63  ;;  %5437 = vmatpush3.msra.mxu0 %v6332_v46  ;;  %v1946_v46 = vand.u32 4294901760, %v1945_v0 }
 0x14d   :  { %5448 = vmatpush3.msra.mxu1 %v6294_v63  ;;  %5438 = vmatprep.subr.mxu0 %v6344_v3  ;;  %v1931_v63 = vsub.f32 %v6489_v54, %v6510_v14 }
 0x14e   :  { %5449 = vmatprep.subr.mxu1 %v6303_v22  ;;  %5439 = vmatpush3.msra.mxu0 %v6344_v3  ;;  %v1960_v3 = vand.u32 4294901760, %v1959_v2 }
 0x14f   :  { %5450 = vmatpush3.msra.mxu1 %v6303_v22  ;;  %5440 = vmatprep.subr.mxu0 %v6355_v56  ;;  %v1925_v22 = vand.u32 4294901760, %v1924_v52 }
 0x150   :  { %5451 = vmatprep.subr.mxu1 %v6317_v1  ;;  %5441 = vmatpush3.msra.mxu0 %v6355_v56 }
 0x151   :  { %5442 = vmatprep.mubr.f32.mxu0 %v6050_v13  ;;  %5452 = vmatpush3.msra.mxu1 %v6317_v1  ;;  %v1932_v1 = vand.u32 4294901760, %v1931_v63 }
 0x152   :  { %5453 = vmatprep.mubr.f32.mxu1 %v6050_v13  ;;  %5443 = vmatmul.mubr.f32.vlgmr.msra.gmra.mxu0 %v6053_v15 }
 0x153   :  { %5454 = vmatmul.mubr.f32.vlgmr.msra.gmra.mxu1 %v6053_v15  ;;  %5456 = vmatprep.subr.mxu0 %v6431_v7 }
 0x154   :  { %5457 = vmatpush3.msra.mxu0 %v6431_v7  ;;  %5475 = vmatprep.subr.mxu1 %v1911_v4 }
 0x155   :  { %5458 = vmatprep.subr.mxu0 %v6439_v12  ;;  %5476 = vmatpush3.msra.mxu1 %v1911_v4 }
 0x156   :  { %5459 = vmatpush3.msra.mxu0 %v6439_v12  ;;  %5477 = vmatprep.subr.mxu1 %v1918_v45 }
 0x157   :  { %5460 = vmatprep.subr.mxu0 %v6452_v30  ;;  %5478 = vmatpush3.msra.mxu1 %v1918_v45 }
 0x158   :  { %5461 = vmatpush3.msra.mxu0 %v6452_v30  ;;  %5479 = vmatprep.subr.mxu1 %v1925_v22 }
 0x159   :  { %5462 = vmatprep.subr.mxu0 %v6464_v36  ;;  %5480 = vmatpush3.msra.mxu1 %v1925_v22 }
 0x15a   :  { %5463 = vmatpush3.msra.mxu0 %v6464_v36  ;;  %5481 = vmatprep.subr.mxu1 %v1932_v1 }
 0x15b   :  { %5464 = vmatprep.subr.mxu0 %v6466_v37  ;;  %5482 = vmatpush3.msra.mxu1 %v1932_v1  ;;  %v4788_v1 = vld [vmem:[%s7310_s2 + $0x10] sm:$0xff] }
 0x15c   :  { %5465 = vmatpush3.msra.mxu0 %v6466_v37  ;;  %5483 = vmatprep.subr.mxu1 %v1939_v42 }
 0x15d   :  { %5466 = vmatprep.subr.mxu0 %v6468_v38  ;;  %5484 = vmatpush3.msra.mxu1 %v1939_v42  ;;  %v4789_v42 = vld [vmem:[%s7310_s2 + $0x18] sm:$0xff] }
 0x15e   :  { %5467 = vmatpush3.msra.mxu0 %v6468_v38  ;;  %5485 = vmatprep.subr.mxu1 %v1946_v46 }
 0x15f   :  { %5468 = vmatprep.subr.mxu0 %v6486_v50  ;;  %5486 = vmatpush3.msra.mxu1 %v1946_v46  ;;  %v4777_v46 = vld [vmem:[%s7312_s4 + $0x1] ss:$0 sm:$0xff] }
 0x160   :  { %5469 = vmatpush3.msra.mxu0 %v6486_v50  ;;  %5487 = vmatprep.subr.mxu1 %v1953_v53 }
 0x161   :  { %5470 = vmatprep.subr.mxu0 %v6498_v61  ;;  %5488 = vmatpush3.msra.mxu1 %v1953_v53 }
 0x162   :  { %5471 = vmatpush3.msra.mxu0 %v6498_v61  ;;  %5489 = vmatprep.subr.mxu1 %v1960_v3 }
 0x163   :  { %5494 = vmatprep.subr.mxu0 %v6437_v9  ;;  %5490 = vmatpush3.msra.mxu1 %v1960_v3 }
 0x164   :  { %5513 = vmatprep.subr.mxu1 %v6431_v7  ;;  %2382 = vperm.xlu1 %5935, %v4788_v1  }
 0x168   :  { %2387 = vperm.xlu1 %5935, %v4789_v42  }
 0x1ce   :  { %v5313_v56 = vpop.f32.mrf.mxu1 }
 0x1d0   :  { %v819_v59 = vpop.f32.mrf.mxu1 }
 0x1d6   :  { %v5294_v24 = vpop.f32.mrf.mxu0 }
 0x1d7   :  { %v709_v51 = vadd.f32 %v5294_v24, %v4771_v44 }
 0x1d8   :  { %v698_v57 = vpop.f32.mrf.mxu0 }
 0x1d9   :  { %v699_v58 = vadd.f32 %v4771_v44, %v698_v57  ;;  %v826_v62 = vadd.f32 %v5313_v56, %v709_v51 }
 0x1db   :  { %v820_v6 = vadd.f32 %v819_v59, %v699_v58 }
 0x1df   :  { %v5351_v8 = vpop.f32.mrf.mxu1 }
 0x1e1   :  { %v1001_v43 = vpop.f32.mrf.mxu1 }
 0x1e7   :  { %v5332_v26 = vpop.f32.mrf.mxu0 }
 0x1e8   :  { %v921_v31 = vadd.f32 %v5332_v26, %v826_v62 }
 0x1e9   :  { %v913_v32 = vpop.f32.mrf.mxu0 }
 0x1ea   :  { %v914_v33 = vadd.f32 %v913_v32, %v820_v6  ;;  %v1010_v40 = vadd.f32 %v5351_v8, %v921_v31 }
 0x1ec   :  { %v1002_v47 = vadd.f32 %v1001_v43, %v914_v33 }
 0x1f1   :  { %v5389_v4 = vpop.f32.mrf.mxu1 }
 0x1f3   :  { %v1189_v22 = vpop.f32.mrf.mxu1 }
 0x1f8   :  { %v5370_v5 = vpop.f32.mrf.mxu0 }
 0x1f9   :  { %v1111_v45 = vadd.f32 %v5370_v5, %v1010_v40 }
 0x1fa   :  { %v1104_v52 = vpop.f32.mrf.mxu0 }
 0x1fb   :  { %v1105_v63 = vadd.f32 %v1104_v52, %v1002_v47  ;;  %v6553_v20 = vadd.f32 %v5389_v4, %v1111_v45 }
 0x1fd   :  { %v6555_v0 = vadd.f32 %v1189_v22, %v1105_v63 }
 0x1fe   :  { %v5411_v2 = vpop.f32.mrf.mxu1 }
 0x200   :  { %v5400_v23 = vpop.f32.mrf.mxu0  ;;  %v1404_v24 = vpop.f32.mrf.mxu1 }
 0x201   :  { %v1314_v3 = vadd.f32 %v5400_v23, %v4777_v46 }
 0x202   :  { %v1303_v53 = vpop.f32.mrf.mxu0 }
 0x203   :  { %v1304_v56 = vadd.f32 %v4777_v46, %v1303_v53  ;;  %v1411_v51 = vadd.f32 %v5411_v2, %v1314_v3 }
 0x205   :  { %v1405_v62 = vadd.f32 %v1404_v24, %v1304_v56 }
 0x208   :  { %v5422_v44 = vpop.f32.mrf.mxu0 }
 0x209   :  { %v1498_v59 = vadd.f32 %v5422_v44, %v1411_v51 }
 0x20a   :  { %v5433_v57 = vpop.f32.mrf.mxu1  ;;  %v1490_v58 = vpop.f32.mrf.mxu0 }
 0x20b   :  { %v1491_v6 = vadd.f32 %v1490_v58, %v1405_v62  ;;  %v1583_v26 = vadd.f32 %v5433_v57, %v1498_v59 }
 0x20c   :  { %v1574_v8 = vpop.f32.mrf.mxu1 }
 0x20d   :  { %v1575_v32 = vadd.f32 %v1574_v8, %v1491_v6 }
 0x212   :  { %v5444_v31 = vpop.f32.mrf.mxu0 }
 0x213   :  { %v1672_v33 = vadd.f32 %v5444_v31, %v1583_v26  ;;  %v5455_v40 = vpop.f32.mrf.mxu1 }
 0x214   :  { %v1665_v43 = vpop.f32.mrf.mxu0 }
 0x215   :  { %v1753_v47 = vadd.f32 %v5455_v40, %v1672_v33  ;;  %v1666_v4 = vadd.f32 %v1665_v43, %v1575_v32  ;;  %v1746_v5 = vpop.f32.mrf.mxu1 }
 0x217   :  { %v1759_v45 = vmul.f32 0.044715, %v1753_v47  ;;  %v1747_v52 = vadd.f32 %v1746_v5, %v1666_v4  ;;  %v1757_v56 = vmul.f32 0.5, %v1753_v47 }
 0x219   :  { %v1761_v63 = vmul.f32 %v1759_v45, %v1753_v47  ;;  %v1758_v22 = vmul.f32 0.044715, %v1747_v52  ;;  %v1756_v57 = vmul.f32 0.5, %v1747_v52 }
 0x21b   :  { %v1763_v1 = vmul.f32 %v1761_v63, %v1753_v47  ;;  %v1760_v42 = vmul.f32 %v1758_v22, %v1747_v52 }
 0x21d   :  { %v1765_v23 = vadd.f32 %v1763_v1, %v1753_v47  ;;  %v1762_v46 = vmul.f32 %v1760_v42, %v1747_v52 }
 0x21f   :  { %v1767_v2 = vmul.f32 0.7978846, %v1765_v23  ;;  %v1764_v53 = vadd.f32 %v1762_v46, %v1747_v52  ;;  %v4791_v52 = vld [vmem:[%s7311_s3 + $0x48] sm:$0xff] }
 0x220   :  { %v6626_v22 = vand.u32 4294901760, %v4791_v52  ;;  %v4801_v23 = vld [vmem:[%s7313_s5 + $0xa8] sm:$0xff] }
 0x221   :  { %5940 = vtanh.f32 %v1767_v2  ;;  %v1766_v3 = vmul.f32 0.7978846, %v1764_v53  ;;  %v6775_v53 = vand.u32 4294901760, %v4801_v23 }
 0x222   :  { %v6648_v1 = vsub.f32 %v4791_v52, %v6626_v22 }
 0x223   :  { %5942 = vtanh.f32 %v1766_v3  ;;  %v4800_v3 = vld [vmem:[%s7313_s5 + $0xa0] sm:$0xff] }
 0x22e   :  { %v5941_v44 = vpop.eup %5940 }
 0x22f   :  { %v1771_v24 = vadd.f32 1.0, %v5941_v44  ;;  %v4799_v44 = vld [vmem:[%s7313_s5 + $0x98] sm:$0xff] }
 0x230   :  { %v5943_v51 = vpop.eup %5942 }
 0x231   :  { %v1770_v58 = vadd.f32 1.0, %v5943_v51  ;;  %v1773_v62 = vmul.f32 %v1771_v24, %v1757_v56  ;;  %v4798_v56 = vld [vmem:[%s7313_s5 + $0x90] sm:$0xff]  ;;  %v6787_v24 = vand.u32 4294901760, %v4800_v3  ;;  %v6789_v51 = vand.u32 4294901760, %v4799_v44 }
 0x233   :  { %v1772_v59 = vmul.f32 %v1770_v58, %v1756_v57  ;;  %v1795_v6 = vsel %vm612_vm1, %v1773_v62, 0  ;;  %v6791_v57 = vand.u32 4294901760, %v4798_v56  ;;  %v4797_v58 = vld [vmem:[%s7313_s5 + $0x88] sm:$0xff]  ;;  %v4796_v62 = vld [vmem:[%s7313_s5 + $0x80] sm:$0xff] }
 0x234   :  { %v6567_v8 = vand.u32 4294901760, %v1795_v6 }
 0x235   :  { %v1792_v26 = vsel %vm612_vm1, %v1772_v59, 0 }
 0x236   :  { %v6570_v31 = vand.u32 4294901760, %v1792_v26  ;;  %v6573_v32 = vsub.f32 %v1795_v6, %v6567_v8 }
 0x238   :  { %5491 = vmatprep.mubr.f32.mxu1 %v6570_v31  ;;  %v1871_v33 = vsub.f32 %v1792_v26, %v6570_v31  ;;  %v1882_v40 = vand.u32 4294901760, %v6573_v32  ;;  %v6809_v26 = vand.u32 4294901760, %v4797_v58 }
 0x239   :  { %5492 = vmatmul.mubr.f32.vlgmr.msra.gmra.mxu1 %v6567_v8 }
 0x23a   :  { %5514 = vmatpush3.msra.mxu1 %v6431_v7  ;;  %v1872_v43 = vand.u32 4294901760, %v1871_v33  ;;  %v1883_v47 = vsub.f32 %v6573_v32, %v1882_v40 }
 0x23b   :  { %5515 = vmatprep.subr.mxu1 %v6439_v12 }
 0x23c   :  { %5516 = vmatpush3.msra.mxu1 %v6439_v12  ;;  %5529 = vmatprep.mubr.f32.mxu1 %v1872_v43  ;;  %v1873_v4 = vsub.f32 %v1871_v33, %v1872_v43  ;;  %v1884_v45 = vand.u32 4294901760, %v1883_v47 }
 0x23d   :  { %5517 = vmatprep.subr.mxu1 %v6452_v30 }
 0x23e   :  { %5518 = vmatpush3.msra.mxu1 %v6452_v30  ;;  %v1874_v5 = vand.u32 4294901760, %v1873_v4 }
 0x23f   :  { %5519 = vmatprep.subr.mxu1 %v6464_v36 }
 0x240   :  { %5520 = vmatpush3.msra.mxu1 %v6464_v36  ;;  %5472 = vmatprep.mubr.f32.mxu0 %v1874_v5  ;;  %v6829_v5 = vsub.f32 %v4797_v58, %v6809_v26 }
 0x241   :  { %5521 = vmatprep.subr.mxu1 %v6466_v37  ;;  %5473 = vmatmul.mubr.f32.vlgmr.msra.gmra.mxu0 %v1884_v45 }
 0x242   :  { %5495 = vmatpush3.msra.mxu0 %v6437_v9  ;;  %5522 = vmatpush3.msra.mxu1 %v6466_v37  ;;  %v4793_v9 = vld [vmem:[%s7311_s3 + $0x58] sm:$0xff] }
 0x243   :  { %5496 = vmatprep.subr.mxu0 %v6450_v29  ;;  %5510 = vmatprep.mubr.f32.mxu0 %v1871_v33  ;;  %v6818_v33 = vsub.f32 %v4798_v56, %v6791_v57 }
 0x244   :  { %5523 = vmatprep.subr.mxu1 %v6468_v38  ;;  %5497 = vmatpush3.msra.mxu0 %v6450_v29  ;;  %v4792_v29 = vld [vmem:[%s7311_s3 + $0x50] sm:$0xff] }
 0x245   :  { %5524 = vmatpush3.msra.mxu1 %v6468_v38  ;;  %5498 = vmatprep.subr.mxu0 %v6483_v49 }
 0x246   :  { %5525 = vmatprep.subr.mxu1 %v6486_v50  ;;  %5499 = vmatpush3.msra.mxu0 %v6483_v49  ;;  %v6609_v49 = vand.u32 4294901760, %v4793_v9 }
 0x247   :  { %5526 = vmatpush3.msra.mxu1 %v6486_v50  ;;  %5500 = vmatprep.subr.mxu0 %v6489_v54 }
 0x248   :  { %5527 = vmatprep.subr.mxu1 %v6498_v61  ;;  %5501 = vmatpush3.msra.mxu0 %v6489_v54  ;;  %v6617_v54 = vand.u32 4294901760, %v4792_v29  ;;  %v6624_v63 = vsub.f32 %v4793_v9, %v6609_v49 }
 0x249   :  { %5528 = vmatpush3.msra.mxu1 %v6498_v61  ;;  %5502 = vmatprep.subr.mxu0 %v6492_v55 }
 0x24a   :  { %5530 = vmatmul.mubr.f32.vlgmr.msra.gmra.mxu1 %v1882_v40  ;;  %5551 = vmatprep.subr.mxu1 %v6431_v7  ;;  %v6821_v40 = vand.u32 4294901760, %v4796_v62 }
 0x24b   :  { %5503 = vmatpush3.msra.mxu0 %v6492_v55  ;;  %5552 = vmatpush3.msra.mxu1 %v6431_v7  ;;  %v4790_v55 = vld [vmem:[%s7311_s3 + $0x40] sm:$0xff]  ;;  %v6636_v7 = vsub.f32 %v4792_v29, %v6617_v54  ;;  %v6839_v29 = vand.u32 4294901760, %v6818_v33 }
 0x24c   :  { %5567 = vmatprep.mubr.f32.mxu1 %v6570_v31  ;;  %5504 = vmatprep.subr.mxu0 %v6495_v60 }
 0x24d   :  { %5553 = vmatprep.subr.mxu1 %v6439_v12  ;;  %5505 = vmatpush3.msra.mxu0 %v6495_v60  ;;  %v6640_v60 = vand.u32 4294901760, %v4790_v55 }
 0x24e   :  { %5554 = vmatpush3.msra.mxu1 %v6439_v12  ;;  %5506 = vmatprep.subr.mxu0 %v6506_v11  ;;  %v6645_v12 = vand.u32 4294901760, %v6624_v63 }
 0x24f   :  { %5555 = vmatprep.subr.mxu1 %v6452_v30  ;;  %5507 = vmatpush3.msra.mxu0 %v6506_v11  ;;  %v6660_v11 = vsub.f32 %v4790_v55, %v6640_v60 }
 0x250   :  { %5556 = vmatpush3.msra.mxu1 %v6452_v30  ;;  %5508 = vmatprep.subr.mxu0 %v6519_v41  ;;  %v6655_v30 = vand.u32 4294901760, %v6636_v7 }
 0x251   :  { %5557 = vmatprep.subr.mxu1 %v6464_v36  ;;  %5509 = vmatpush3.msra.mxu0 %v6519_v41  ;;  %v6667_v41 = vand.u32 4294901760, %v6648_v1 }
 0x252   :  { %5558 = vmatpush3.msra.mxu1 %v6464_v36  ;;  %5511 = vmatmul.mubr.f32.vlgmr.msra.gmra.mxu0 %v6573_v32  ;;  %v2524_v36 = vsub.f32 %v6624_v63, %v6645_v12  ;;  %v6815_v32 = vsub.f32 %v4799_v44, %v6789_v51 }
 0x253   :  { %5532 = vmatprep.subr.mxu0 %v6447_v28  ;;  %5559 = vmatprep.subr.mxu1 %v6466_v37 }
 0x254   :  { %5533 = vmatpush3.msra.mxu0 %v6447_v28  ;;  %5548 = vmatprep.mubr.f32.mxu0 %v6570_v31  ;;  %v2531_v28 = vsub.f32 %v6636_v7, %v6655_v30  ;;  %v2525_v42 = vand.u32 4294901760, %v2524_v36  ;;  %v6812_v31 = vsub.f32 %v4800_v3, %v6787_v24  ;;  %v6836_v9 = vand.u32 4294901760, %v6815_v32 }
 0x255   :  { %5560 = vmatpush3.msra.mxu1 %v6466_v37  ;;  %5534 = vmatprep.subr.mxu0 %v6480_v48  ;;  %v6678_v37 = vand.u32 4294901760, %v6660_v11 }
 0x256   :  { %5561 = vmatprep.subr.mxu1 %v6468_v38  ;;  %5535 = vmatpush3.msra.mxu0 %v6480_v48  ;;  %v2532_v48 = vand.u32 4294901760, %v2531_v28  ;;  %v6833_v45 = vand.u32 4294901760, %v6812_v31  ;;  %v3117_v55 = vsub.f32 %v6815_v32, %v6836_v9 }
 0x257   :  { %5562 = vmatpush3.msra.mxu1 %v6468_v38  ;;  %5536 = vmatprep.subr.mxu0 %v6503_v10  ;;  %v2538_v38 = vsub.f32 %v6648_v1, %v6667_v41 }
 0x258   :  { %5563 = vmatprep.subr.mxu1 %v6486_v50  ;;  %5537 = vmatpush3.msra.mxu0 %v6503_v10 }
 0x259   :  { %5564 = vmatpush3.msra.mxu1 %v6486_v50  ;;  %5538 = vmatprep.subr.mxu0 %v6510_v14  ;;  %v2545_v50 = vsub.f32 %v6660_v11, %v6678_v37  ;;  %v2539_v10 = vand.u32 4294901760, %v2538_v38 }
 0x25a   :  { %5565 = vmatprep.subr.mxu1 %v6498_v61  ;;  %5539 = vmatpush3.msra.mxu0 %v6510_v14  ;;  %v4803_v14 = vld [vmem:[%s7313_s5 + $0xb8] sm:$0xff] }
 0x25b   :  { %5566 = vmatpush3.msra.mxu1 %v6498_v61  ;;  %5540 = vmatprep.subr.mxu0 %v6513_v16  ;;  %v2546_v61 = vand.u32 4294901760, %v2545_v50 }
 0x25c   :  { %5568 = vmatmul.mubr.f32.vlgmr.msra.gmra.mxu1 %v6567_v8  ;;  %5541 = vmatpush3.msra.mxu0 %v6513_v16  ;;  %v6754_v16 = vand.u32 4294901760, %v4803_v14 }
 0x25d   :  { %5542 = vmatprep.subr.mxu0 %v6516_v17  ;;  %5581 = vmatprep.subr.mxu1 %v2525_v42 }
 0x25e   :  { %5543 = vmatpush3.msra.mxu0 %v6516_v17  ;;  %5582 = vmatpush3.msra.mxu1 %v2525_v42  ;;  %v4802_v17 = vld [vmem:[%s7313_s5 + $0xb0] sm:$0xff]  ;;  %v4787_v42 = vld [vmem:[%s7314_s6 + $0x1] ss:$0 sm:$0xff] }
 0x25f   :  { %5544 = vmatprep.subr.mxu0 %v6525_v18  ;;  %5583 = vmatprep.subr.mxu1 %v2532_v48 }
 0x260   :  { %5545 = vmatpush3.msra.mxu0 %v6525_v18  ;;  %5584 = vmatpush3.msra.mxu1 %v2532_v48  ;;  %v6760_v18 = vsub.f32 %v4803_v14, %v6754_v16 }
 0x261   :  { %5546 = vmatprep.subr.mxu0 %v6536_v39  ;;  %5585 = vmatprep.subr.mxu1 %v2539_v10 }
 0x262   :  { %5547 = vmatpush3.msra.mxu0 %v6536_v39  ;;  %5586 = vmatpush3.msra.mxu1 %v2539_v10  ;;  %v6762_v39 = vand.u32 4294901760, %v4802_v17  ;;  %v6770_v46 = vand.u32 4294901760, %v6760_v18 }
 0x263   :  { %5549 = vmatmul.mubr.f32.vlgmr.msra.gmra.mxu0 %v6567_v8  ;;  %5570 = vmatprep.subr.mxu0 %v6609_v49  ;;  %v6806_v8 = vsub.f32 %v4801_v23, %v6775_v53 }
 0x264   :  { %5571 = vmatpush3.msra.mxu0 %v6609_v49  ;;  %5587 = vmatprep.subr.mxu1 %v2546_v61  ;;  %v6773_v2 = vsub.f32 %v4802_v17, %v6762_v39  ;;  %v3089_v59 = vsub.f32 %v6760_v18, %v6770_v46 }
 0x265   :  { %5572 = vmatprep.subr.mxu0 %v6617_v54  ;;  %5578 = vmatprep.mubr.f32.mxu0 %v6081_v34  ;;  %v6826_v4 = vand.u32 4294901760, %v6806_v8 }
 0x266   :  { %5573 = vmatpush3.msra.mxu0 %v6617_v54  ;;  %5588 = vmatpush3.msra.mxu1 %v2546_v61  ;;  %v6803_v6 = vand.u32 4294901760, %v6773_v2  ;;  %v3090_v43 = vand.u32 4294901760, %v3089_v59 }
 0x267   :  { %5574 = vmatprep.subr.mxu0 %v6626_v22  ;;  %5589 = vmatprep.mubr.f32.mxu1 %v6050_v13 }
 0x268   :  { %5575 = vmatpush3.msra.mxu0 %v6626_v22  ;;  %5603 = vmatprep.subr.mxu1 %v6609_v49  ;;  %v3096_v47 = vsub.f32 %v6773_v2, %v6803_v6 }
 0x269   :  { %5576 = vmatprep.subr.mxu0 %v6640_v60  ;;  %5590 = vmatmul.mubr.f32.vlgmr.msra.gmra.mxu1 %v6053_v15 }
 0x26a   :  { %5577 = vmatpush3.msra.mxu0 %v6640_v60  ;;  %5604 = vmatpush3.msra.mxu1 %v6609_v49  ;;  %v3097_v52 = vand.u32 4294901760, %v3096_v47 }
 0x26b   :  { %5579 = vmatmul.mubr.f32.vlgmr.msra.gmra.mxu0 %v6083_v35  ;;  %5592 = vmatprep.subr.mxu0 %v6624_v63 }
 0x26c   :  { %5593 = vmatpush3.msra.mxu0 %v6624_v63  ;;  %5605 = vmatprep.subr.mxu1 %v6617_v54  ;;  %v6848_v63 = vand.u32 4294901760, %v6829_v5 }
 0x26d   :  { %5594 = vmatprep.subr.mxu0 %v6636_v7  ;;  %5606 = vmatpush3.msra.mxu1 %v6617_v54 }
 0x26e   :  { %5595 = vmatpush3.msra.mxu0 %v6636_v7  ;;  %5607 = vmatprep.subr.mxu1 %v6626_v22 }
 0x26f   :  { %5596 = vmatprep.subr.mxu0 %v6648_v1  ;;  %5608 = vmatpush3.msra.mxu1 %v6626_v22 }
 0x270   :  { %5597 = vmatpush3.msra.mxu0 %v6648_v1  ;;  %5609 = vmatprep.subr.mxu1 %v6640_v60 }
 0x271   :  { %5598 = vmatprep.subr.mxu0 %v6660_v11  ;;  %5600 = vmatprep.mubr.f32.mxu0 %v6060_v19 }
 0x272   :  { %5599 = vmatpush3.msra.mxu0 %v6660_v11  ;;  %5610 = vmatpush3.msra.mxu1 %v6640_v60  ;;  %v3131_v11 = vsub.f32 %v6829_v5, %v6848_v63 }
 0x273   :  { %5601 = vmatmul.mubr.f32.vlgmr.msra.gmra.mxu0 %v6063_v21  ;;  %5611 = vmatprep.mubr.f32.mxu1 %v6069_v25 }
 0x274   :  { %5614 = vmatprep.subr.mxu0 %v6645_v12  ;;  %5625 = vmatprep.subr.mxu1 %v6609_v49  ;;  %v3132_v28 = vand.u32 4294901760, %v3131_v11 }
 0x275   :  { %5612 = vmatmul.mubr.f32.vlgmr.msra.gmra.mxu1 %v6072_v27  ;;  %5615 = vmatpush3.msra.mxu0 %v6645_v12 }
 0x276   :  { %5626 = vmatpush3.msra.mxu1 %v6609_v49  ;;  %5616 = vmatprep.subr.mxu0 %v6655_v30  ;;  %v6842_v49 = vsub.f32 %v4796_v62, %v6821_v40 }
 0x277   :  { %5627 = vmatprep.subr.mxu1 %v6617_v54  ;;  %5617 = vmatpush3.msra.mxu0 %v6655_v30  ;;  %v3118_v30 = vand.u32 4294901760, %v3117_v55  ;;  %v28_v55 = vld [vmem:[%s7308_s0 + $0x8] sm:$0xff] }
 0x278   :  { %5628 = vmatpush3.msra.mxu1 %v6617_v54  ;;  %5618 = vmatprep.subr.mxu0 %v6667_v41  ;;  %v3103_v54 = vsub.f32 %v6806_v8, %v6826_v4  ;;  %v6859_v12 = vand.u32 4294901760, %v6842_v49 }
 0x279   :  { %5629 = vmatprep.subr.mxu1 %v6626_v22  ;;  %5619 = vmatpush3.msra.mxu0 %v6667_v41 }
 0x27a   :  { %5630 = vmatpush3.msra.mxu1 %v6626_v22  ;;  %5620 = vmatprep.subr.mxu0 %v6678_v37  ;;  %v3110_v22 = vsub.f32 %v6812_v31, %v6833_v45  ;;  %v3104_v7 = vand.u32 4294901760, %v3103_v54  ;;  %v3138_v41 = vsub.f32 %v6842_v49, %v6859_v12  ;;  %v2383_v54 = vpop.permute.xlu1 %2382 }
 0x27b   :  { %5631 = vmatprep.subr.mxu1 %v6640_v60  ;;  %5621 = vmatpush3.msra.mxu0 %v6678_v37 }
 0x27c   :  { %5622 = vmatprep.mubr.f32.mxu0 %v6050_v13  ;;  %5632 = vmatpush3.msra.mxu1 %v6640_v60  ;;  %v3124_v60 = vsub.f32 %v6818_v33, %v6839_v29  ;;  %v3111_v1 = vand.u32 4294901760, %v3110_v22  ;;  %v3139_v37 = vand.u32 4294901760, %v3138_v41 }
 0x27d   :  { %5633 = vmatprep.mubr.f32.mxu1 %v6050_v13  ;;  %5623 = vmatmul.mubr.f32.vlgmr.msra.gmra.mxu0 %v6053_v15 }
 0x27e   :  { %5634 = vmatmul.mubr.f32.vlgmr.msra.gmra.mxu1 %v6053_v15  ;;  %5636 = vmatprep.subr.mxu0 %v6754_v16  ;;  %v3125_v36 = vand.u32 4294901760, %v3124_v60 }
 0x27f   :  { %5637 = vmatpush3.msra.mxu0 %v6754_v16  ;;  %5655 = vmatprep.subr.mxu1 %v3090_v43 }
 0x280   :  { %5638 = vmatprep.subr.mxu0 %v6762_v39  ;;  %5656 = vmatpush3.msra.mxu1 %v3090_v43 }
 0x281   :  { %5639 = vmatpush3.msra.mxu0 %v6762_v39  ;;  %5657 = vmatprep.subr.mxu1 %v3097_v52 }
 0x282   :  { %5640 = vmatprep.subr.mxu0 %v6775_v53  ;;  %5658 = vmatpush3.msra.mxu1 %v3097_v52  ;;  %v1204_v52 = vpop.permute.xlu0 %1203 }
 0x283   :  { %5641 = vmatpush3.msra.mxu0 %v6775_v53  ;;  %5659 = vmatprep.subr.mxu1 %v3104_v7 }
 0x284   :  { %5642 = vmatprep.subr.mxu0 %v6787_v24  ;;  %5660 = vmatpush3.msra.mxu1 %v3104_v7 }
 0x285   :  { %5643 = vmatpush3.msra.mxu0 %v6787_v24  ;;  %5661 = vmatprep.subr.mxu1 %v3111_v1 }
 0x286   :  { %5644 = vmatprep.subr.mxu0 %v6789_v51  ;;  %5662 = vmatpush3.msra.mxu1 %v3111_v1  ;;  %v1209_v22 = vpop.permute.xlu0 %1208  ;;  %v27_v1 = vld [vmem:[%s7308_s0] sm:$0xff] }
 0x287   :  { %5645 = vmatpush3.msra.mxu0 %v6789_v51  ;;  %5663 = vmatprep.subr.mxu1 %v3118_v30 }
 0x288   :  { %5646 = vmatprep.subr.mxu0 %v6791_v57  ;;  %5664 = vmatpush3.msra.mxu1 %v3118_v30  ;;  %v5952_v30 = vld [vmem:[%s7309_s1 + $0x8] sm:$0xff] }
 0x289   :  { %5647 = vmatpush3.msra.mxu0 %v6791_v57  ;;  %5665 = vmatprep.subr.mxu1 %v3125_v36  ;;  %v32_v11 = vadd.f32 %v5952_v30, %v28_v55 }
 0x28a   :  { %5648 = vmatprep.subr.mxu0 %v6809_v26  ;;  %5666 = vmatpush3.msra.mxu1 %v3125_v36  ;;  %v1212_v36 = vmul.f32 %v1209_v22, %v6553_v20  ;;  %v4807_v20 = vld [vmem:[%s7310_s2 + $0x28] sm:$0xff] }
 0x28b   :  { %5649 = vmatpush3.msra.mxu0 %v6809_v26  ;;  %5667 = vmatprep.subr.mxu1 %v3132_v28 }
 0x28c   :  { %5650 = vmatprep.subr.mxu0 %v6821_v40  ;;  %5668 = vmatpush3.msra.mxu1 %v3132_v28 }
 0x28d   :  { %5651 = vmatpush3.msra.mxu0 %v6821_v40  ;;  %5669 = vmatprep.subr.mxu1 %v3139_v37 }
 0x28e   :  { %5674 = vmatprep.subr.mxu0 %v6760_v18  ;;  %5670 = vmatpush3.msra.mxu1 %v3139_v37  ;;  %v2388_v37 = vpop.permute.xlu1 %2387 }
 0x28f   :  { %5693 = vmatprep.subr.mxu1 %v6754_v16  ;;  %3566 = vperm.xlu1 %5935, %v4807_v20  }
 0x2f9   :  { %v5493_v38 = vpop.f32.mrf.mxu1 }
 0x2fb   :  { %v1997_v17 = vpop.f32.mrf.mxu1 }
 0x301   :  { %v5474_v48 = vpop.f32.mrf.mxu0 }
 0x302   :  { %v1887_v50 = vadd.f32 %v5474_v48, %v4787_v42 }
 0x303   :  { %v1876_v10 = vpop.f32.mrf.mxu0 }
 0x304   :  { %v1877_v61 = vadd.f32 %v4787_v42, %v1876_v10  ;;  %v2004_v14 = vadd.f32 %v5493_v38, %v1887_v50  ;;  %v1211_v42 = vmul.f32 %v1204_v52, %v6555_v0  ;;  %v5953_v50 = vld [vmem:[%s7309_s1] sm:$0xff] }
 0x305   :  { %v31_v10 = vadd.f32 %v5953_v50, %v27_v1 }
 0x306   :  { %v1998_v23 = vadd.f32 %v1997_v17, %v1877_v61 }
 0x30a   :  { %v5531_v3 = vpop.f32.mrf.mxu1 }
 0x30c   :  { %v2179_v43 = vpop.f32.mrf.mxu1 }
 0x312   :  { %v5512_v44 = vpop.f32.mrf.mxu0 }
 0x313   :  { %v2099_v56 = vadd.f32 %v5512_v44, %v2004_v14  ;;  %v1214_v14 = vadd.f32 %v1212_v36, %v32_v11 }
 0x314   :  { %v2091_v58 = vpop.f32.mrf.mxu0 }
 0x315   :  { %v2092_v62 = vadd.f32 %v2091_v58, %v1998_v23  ;;  %v2188_v59 = vadd.f32 %v5531_v3, %v2099_v56  ;;  %v4806_v3 = vld [vmem:[%s7310_s2 + $0x20] sm:$0xff]  ;;  %v1213_v56 = vadd.f32 %v1211_v42, %v31_v10 }
 0x316   :  { %3561 = vperm.xlu0 %5934, %v4806_v3  }
 0x317   :  { %v2180_v47 = vadd.f32 %v2179_v43, %v2092_v62 }
 0x31c   :  { %v5569_v7 = vpop.f32.mrf.mxu1 }
 0x31e   :  { %v2367_v61 = vpop.f32.mrf.mxu1 }
 0x323   :  { %v5550_v60 = vpop.f32.mrf.mxu0 }
 0x324   :  { %v2289_v41 = vadd.f32 %v5550_v60, %v2188_v59  ;;  %v4795_v59 = vld [vmem:[%s7312_s4 + $0x2] ss:$0 sm:$0xff] }
 0x325   :  { %v2282_v28 = vpop.f32.mrf.mxu0 }
 0x326   :  { %v2283_v38 = vadd.f32 %v2282_v28, %v2180_v47  ;;  %v2374_v48 = vadd.f32 %v5569_v7, %v2289_v41 }
 0x328   :  { %v2368_v17 = vadd.f32 %v2367_v61, %v2283_v38  ;;  %v2391_v23 = vmul.f32 %v2388_v37, %v2374_v48 }
 0x329   :  { %v5591_v43 = vpop.f32.mrf.mxu1 }
 0x32a   :  { %v2390_v0 = vmul.f32 %v2383_v54, %v2368_v17  ;;  %v6896_v44 = vadd.f32 %v2391_v23, %v1214_v14 }
 0x32b   :  { %v5580_v62 = vpop.f32.mrf.mxu0  ;;  %v2583_v7 = vpop.f32.mrf.mxu1 }
 0x32c   :  { %v6898_v58 = vadd.f32 %v2390_v0, %v1213_v56  ;;  %v2493_v52 = vadd.f32 %v5580_v62, %v4795_v59 }
 0x32d   :  { %v2482_v47 = vpop.f32.mrf.mxu0 }
 0x32e   :  { %v2483_v55 = vadd.f32 %v4795_v59, %v2482_v47  ;;  %v2590_v60 = vadd.f32 %v5591_v43, %v2493_v52 }
 0x330   :  { %v2584_v30 = vadd.f32 %v2583_v7, %v2483_v55 }
 0x333   :  { %v5602_v22 = vpop.f32.mrf.mxu0 }
 0x334   :  { %v2677_v11 = vadd.f32 %v5602_v22, %v2590_v60 }
 0x335   :  { %v5613_v54 = vpop.f32.mrf.mxu1  ;;  %v2669_v1 = vpop.f32.mrf.mxu0 }
 0x336   :  { %v2670_v36 = vadd.f32 %v2669_v1, %v2584_v30  ;;  %v2762_v28 = vadd.f32 %v5613_v54, %v2677_v11 }
 0x337   :  { %v2753_v41 = vpop.f32.mrf.mxu1 }
 0x338   :  { %v2754_v42 = vadd.f32 %v2753_v41, %v2670_v36 }
 0x33d   :  { %v5624_v37 = vpop.f32.mrf.mxu0 }
 0x33e   :  { %v2851_v38 = vadd.f32 %v5624_v37, %v2762_v28  ;;  %v5635_v48 = vpop.f32.mrf.mxu1 }
 0x33f   :  { %v2844_v50 = vpop.f32.mrf.mxu0 }
 0x340   :  { %v2932_v10 = vadd.f32 %v5635_v48, %v2851_v38  ;;  %v2845_v61 = vadd.f32 %v2844_v50, %v2754_v42  ;;  %v2925_v14 = vpop.f32.mrf.mxu1 }
 0x342   :  { %v2938_v17 = vmul.f32 0.044715, %v2932_v10  ;;  %v2926_v23 = vadd.f32 %v2925_v14, %v2845_v61  ;;  %v2936_v55 = vmul.f32 0.5, %v2932_v10 }
 0x344   :  { %v2940_v20 = vmul.f32 %v2938_v17, %v2932_v10  ;;  %v2937_v3 = vmul.f32 0.044715, %v2926_v23  ;;  %v2935_v54 = vmul.f32 0.5, %v2926_v23 }
 0x346   :  { %v2942_v0 = vmul.f32 %v2940_v20, %v2932_v10  ;;  %v2939_v56 = vmul.f32 %v2937_v3, %v2926_v23 }
 0x348   :  { %v2944_v62 = vadd.f32 %v2942_v0, %v2932_v10  ;;  %v2941_v59 = vmul.f32 %v2939_v56, %v2926_v23 }
 0x34a   :  { %v2946_v43 = vmul.f32 0.7978846, %v2944_v62  ;;  %v2943_v47 = vadd.f32 %v2941_v59, %v2926_v23  ;;  %v4809_v23 = vld [vmem:[%s7311_s3 + $0x68] sm:$0xff] }
 0x34b   :  { %v6963_v3 = vand.u32 4294901760, %v4809_v23 }
 0x34c   :  { %5944 = vtanh.f32 %v2946_v43  ;;  %v2945_v52 = vmul.f32 0.7978846, %v2943_v47  ;;  %v4815_v43 = vld [vmem:[%s7313_s5 + $0xc8] sm:$0xff]  ;;  %v4814_v47 = vld [vmem:[%s7313_s5 + $0xc0] sm:$0xff] }
 0x34d   :  { %v6985_v0 = vsub.f32 %v4809_v23, %v6963_v3 }
 0x34e   :  { %5946 = vtanh.f32 %v2945_v52 }
 0x359   :  { %v5945_v22 = vpop.eup %5944 }
 0x35a   :  { %v2950_v7 = vadd.f32 1.0, %v5945_v22 }
 0x35b   :  { %v5947_v60 = vpop.eup %5946 }
 0x35c   :  { %v2949_v1 = vadd.f32 1.0, %v5947_v60  ;;  %v2952_v30 = vmul.f32 %v2950_v7, %v2936_v55  ;;  %v7146_v7 = vand.u32 4294901760, %v4815_v43 }
 0x35e   :  { %v2951_v11 = vmul.f32 %v2949_v1, %v2935_v54  ;;  %v2974_v36 = vsel %vm612_vm1, %v2952_v30, 0  ;;  %v7158_v30 = vand.u32 4294901760, %v4814_v47 }
 0x35f   :  { %v6904_v41 = vand.u32 4294901760, %v2974_v36 }
 0x360   :  { %v2971_v28 = vsel %vm612_vm1, %v2951_v11, 0 }
 0x361   :  { %v6907_v37 = vand.u32 4294901760, %v2971_v28  ;;  %v6910_v42 = vsub.f32 %v2974_v36, %v6904_v41 }
 0x363   :  { %5671 = vmatprep.mubr.f32.mxu1 %v6907_v37  ;;  %v3050_v38 = vsub.f32 %v2971_v28, %v6907_v37  ;;  %v3061_v48 = vand.u32 4294901760, %v6910_v42  ;;  %v7166_v28 = vsub.f32 %v4815_v43, %v7146_v7 }
 0x364   :  { %5672 = vmatmul.mubr.f32.vlgmr.msra.gmra.mxu1 %v6904_v41 }
 0x365   :  { %5694 = vmatpush3.msra.mxu1 %v6754_v16  ;;  %v3051_v50 = vand.u32 4294901760, %v3050_v38  ;;  %v3062_v10 = vsub.f32 %v6910_v42, %v3061_v48 }
 0x366   :  { %5695 = vmatprep.subr.mxu1 %v6762_v39 }
 0x367   :  { %5696 = vmatpush3.msra.mxu1 %v6762_v39  ;;  %5709 = vmatprep.mubr.f32.mxu1 %v3051_v50  ;;  %v3052_v61 = vsub.f32 %v3050_v38, %v3051_v50  ;;  %v3063_v17 = vand.u32 4294901760, %v3062_v10 }
 0x368   :  { %5697 = vmatprep.subr.mxu1 %v6775_v53 }
 0x369   :  { %5698 = vmatpush3.msra.mxu1 %v6775_v53  ;;  %v3053_v14 = vand.u32 4294901760, %v3052_v61  ;;  %v7185_v61 = vand.u32 4294901760, %v7166_v28 }
 0x36a   :  { %5699 = vmatprep.subr.mxu1 %v6787_v24 }
 0x36b   :  { %5700 = vmatpush3.msra.mxu1 %v6787_v24  ;;  %5652 = vmatprep.mubr.f32.mxu0 %v3053_v14 }
 0x36c   :  { %5701 = vmatprep.subr.mxu1 %v6789_v51  ;;  %5653 = vmatmul.mubr.f32.vlgmr.msra.gmra.mxu0 %v3063_v17 }
 0x36d   :  { %5675 = vmatpush3.msra.mxu0 %v6760_v18  ;;  %5702 = vmatpush3.msra.mxu1 %v6789_v51  ;;  %v4811_v18 = vld [vmem:[%s7311_s3 + $0x78] sm:$0xff] }
 0x36e   :  { %5676 = vmatprep.subr.mxu0 %v6773_v2  ;;  %5690 = vmatprep.mubr.f32.mxu0 %v3050_v38 }
 0x36f   :  { %5703 = vmatprep.subr.mxu1 %v6791_v57  ;;  %5677 = vmatpush3.msra.mxu0 %v6773_v2  ;;  %v4810_v2 = vld [vmem:[%s7311_s3 + $0x70] sm:$0xff] }
 0x370   :  { %5704 = vmatpush3.msra.mxu1 %v6791_v57  ;;  %5678 = vmatprep.subr.mxu0 %v6806_v8 }
 0x371   :  { %5705 = vmatprep.subr.mxu1 %v6809_v26  ;;  %5679 = vmatpush3.msra.mxu0 %v6806_v8  ;;  %v6946_v8 = vand.u32 4294901760, %v4811_v18 }
 0x372   :  { %5706 = vmatpush3.msra.mxu1 %v6809_v26  ;;  %5680 = vmatprep.subr.mxu0 %v6812_v31 }
 0x373   :  { %5707 = vmatprep.subr.mxu1 %v6821_v40  ;;  %5681 = vmatpush3.msra.mxu0 %v6812_v31  ;;  %v6954_v31 = vand.u32 4294901760, %v4810_v2  ;;  %v6961_v20 = vsub.f32 %v4811_v18, %v6946_v8 }
 0x374   :  { %5708 = vmatpush3.msra.mxu1 %v6821_v40  ;;  %5682 = vmatprep.subr.mxu0 %v6815_v32 }
 0x375   :  { %5710 = vmatmul.mubr.f32.vlgmr.msra.gmra.mxu1 %v3061_v48  ;;  %5731 = vmatprep.subr.mxu1 %v6754_v16  ;;  %v7179_v48 = vsub.f32 %v4814_v47, %v7158_v30 }
 0x376   :  { %5683 = vmatpush3.msra.mxu0 %v6815_v32  ;;  %5732 = vmatpush3.msra.mxu1 %v6754_v16  ;;  %v4808_v32 = vld [vmem:[%s7311_s3 + $0x60] sm:$0xff]  ;;  %v6973_v16 = vsub.f32 %v4810_v2, %v6954_v31 }
 0x377   :  { %5747 = vmatprep.mubr.f32.mxu1 %v6907_v37  ;;  %5684 = vmatprep.subr.mxu0 %v6818_v33 }
 0x378   :  { %5733 = vmatprep.subr.mxu1 %v6762_v39  ;;  %5685 = vmatpush3.msra.mxu0 %v6818_v33  ;;  %v6977_v33 = vand.u32 4294901760, %v4808_v32 }
 0x379   :  { %5734 = vmatpush3.msra.mxu1 %v6762_v39  ;;  %5686 = vmatprep.subr.mxu0 %v6829_v5  ;;  %v6982_v39 = vand.u32 4294901760, %v6961_v20 }
 0x37a   :  { %5735 = vmatprep.subr.mxu1 %v6775_v53  ;;  %5687 = vmatpush3.msra.mxu0 %v6829_v5  ;;  %v6997_v5 = vsub.f32 %v4808_v32, %v6977_v33 }
 0x37b   :  { %5736 = vmatpush3.msra.mxu1 %v6775_v53  ;;  %5688 = vmatprep.subr.mxu0 %v6842_v49  ;;  %v6992_v53 = vand.u32 4294901760, %v6973_v16 }
 0x37c   :  { %5737 = vmatprep.subr.mxu1 %v6787_v24  ;;  %5689 = vmatpush3.msra.mxu0 %v6842_v49  ;;  %v7004_v49 = vand.u32 4294901760, %v6985_v0 }
 0x37d   :  { %5738 = vmatpush3.msra.mxu1 %v6787_v24  ;;  %5691 = vmatmul.mubr.f32.vlgmr.msra.gmra.mxu0 %v6910_v42  ;;  %v3703_v24 = vsub.f32 %v6961_v20, %v6982_v39 }
 0x37e   :  { %5712 = vmatprep.subr.mxu0 %v6770_v46  ;;  %5739 = vmatprep.subr.mxu1 %v6789_v51 }
 0x37f   :  { %5713 = vmatpush3.msra.mxu0 %v6770_v46  ;;  %5728 = vmatprep.mubr.f32.mxu0 %v6907_v37  ;;  %v3710_v46 = vsub.f32 %v6973_v16, %v6992_v53  ;;  %v3704_v56 = vand.u32 4294901760, %v3703_v24 }
 0x380   :  { %5740 = vmatpush3.msra.mxu1 %v6789_v51  ;;  %5714 = vmatprep.subr.mxu0 %v6803_v6  ;;  %v7015_v51 = vand.u32 4294901760, %v6997_v5 }
 0x381   :  { %5741 = vmatprep.subr.mxu1 %v6791_v57  ;;  %5715 = vmatpush3.msra.mxu0 %v6803_v6  ;;  %v3711_v6 = vand.u32 4294901760, %v3710_v46 }
 0x382   :  { %5742 = vmatpush3.msra.mxu1 %v6791_v57  ;;  %5716 = vmatprep.subr.mxu0 %v6826_v4  ;;  %v3717_v57 = vsub.f32 %v6985_v0, %v7004_v49 }
 0x383   :  { %5743 = vmatprep.subr.mxu1 %v6809_v26  ;;  %5717 = vmatpush3.msra.mxu0 %v6826_v4 }
 0x384   :  { %5744 = vmatpush3.msra.mxu1 %v6809_v26  ;;  %5718 = vmatprep.subr.mxu0 %v6833_v45  ;;  %v3724_v26 = vsub.f32 %v6997_v5, %v7015_v51  ;;  %v3718_v4 = vand.u32 4294901760, %v3717_v57  ;;  %v4825_v57 = vld [vmem:[%s7310_s2 + $0x38] sm:$0xff] }
 0x385   :  { %5745 = vmatprep.subr.mxu1 %v6821_v40  ;;  %5719 = vmatpush3.msra.mxu0 %v6833_v45 }
 0x386   :  { %5746 = vmatpush3.msra.mxu1 %v6821_v40  ;;  %5720 = vmatprep.subr.mxu0 %v6836_v9  ;;  %v3725_v40 = vand.u32 4294901760, %v3724_v26 }
 0x387   :  { %5748 = vmatmul.mubr.f32.vlgmr.msra.gmra.mxu1 %v6904_v41  ;;  %5721 = vmatpush3.msra.mxu0 %v6836_v9  ;;  %v4818_v9 = vld [vmem:[%s7313_s5 + $0xe0] sm:$0xff] }
 0x388   :  { %5722 = vmatprep.subr.mxu0 %v6839_v29  ;;  %5761 = vmatprep.subr.mxu1 %v3704_v56 }
 0x389   :  { %5723 = vmatpush3.msra.mxu0 %v6839_v29  ;;  %5762 = vmatpush3.msra.mxu1 %v3704_v56  ;;  %v4817_v29 = vld [vmem:[%s7313_s5 + $0xd8] sm:$0xff] }
 0x38a   :  { %5724 = vmatprep.subr.mxu0 %v6848_v63  ;;  %5763 = vmatprep.subr.mxu1 %v3711_v6  ;;  %v7126_v62 = vand.u32 4294901760, %v4817_v29 }
 0x38b   :  { %5725 = vmatpush3.msra.mxu0 %v6848_v63  ;;  %5764 = vmatpush3.msra.mxu1 %v3711_v6  ;;  %v4816_v63 = vld [vmem:[%s7313_s5 + $0xd0] sm:$0xff] }
 0x38c   :  { %5726 = vmatprep.subr.mxu0 %v6859_v12  ;;  %5765 = vmatprep.subr.mxu1 %v3718_v4  ;;  %v7128_v59 = vand.u32 4294901760, %v4816_v63  ;;  %v7152_v54 = vsub.f32 %v4817_v29, %v7126_v62  ;;  %v4824_v6 = vld [vmem:[%s7310_s2 + $0x30] sm:$0xff] }
 0x38d   :  { %5727 = vmatpush3.msra.mxu0 %v6859_v12  ;;  %5766 = vmatpush3.msra.mxu1 %v3718_v4  ;;  %v7124_v12 = vand.u32 4294901760, %v4818_v9 }
 0x38e   :  { %5729 = vmatmul.mubr.f32.vlgmr.msra.gmra.mxu0 %v6904_v41  ;;  %5750 = vmatprep.subr.mxu0 %v6946_v8  ;;  %v7155_v1 = vsub.f32 %v4816_v63, %v7128_v59  ;;  %v7173_v42 = vand.u32 4294901760, %v7152_v54 }
 0x38f   :  { %5751 = vmatpush3.msra.mxu0 %v6946_v8  ;;  %5767 = vmatprep.subr.mxu1 %v3725_v40  ;;  %v7149_v60 = vsub.f32 %v4818_v9, %v7124_v12 }
 0x390   :  { %5752 = vmatprep.subr.mxu0 %v6954_v31  ;;  %5758 = vmatprep.mubr.f32.mxu0 %v6081_v34  ;;  %v7176_v38 = vand.u32 4294901760, %v7155_v1  ;;  %v4296_v17 = vsub.f32 %v7152_v54, %v7173_v42 }
 0x391   :  { %5753 = vmatpush3.msra.mxu0 %v6954_v31  ;;  %5768 = vmatpush3.msra.mxu1 %v3725_v40  ;;  %v7170_v37 = vand.u32 4294901760, %v7149_v60 }
 0x392   :  { %5754 = vmatprep.subr.mxu0 %v6963_v3  ;;  %5769 = vmatprep.mubr.f32.mxu1 %v6050_v13  ;;  %v4303_v2 = vsub.f32 %v7155_v1, %v7176_v38 }
 0x393   :  { %5755 = vmatpush3.msra.mxu0 %v6963_v3  ;;  %5783 = vmatprep.subr.mxu1 %v6946_v8  ;;  %v4289_v14 = vsub.f32 %v7149_v60, %v7170_v37 }
 0x394   :  { %5756 = vmatprep.subr.mxu0 %v6977_v33  ;;  %5770 = vmatmul.mubr.f32.vlgmr.msra.gmra.mxu1 %v6053_v15 }
 0x395   :  { %5757 = vmatpush3.msra.mxu0 %v6977_v33  ;;  %5784 = vmatpush3.msra.mxu1 %v6946_v8  ;;  %v4290_v23 = vand.u32 4294901760, %v4289_v14  ;;  %v3562_v14 = vpop.permute.xlu0 %3561 }
 0x396   :  { %5759 = vmatmul.mubr.f32.vlgmr.msra.gmra.mxu0 %v6083_v35  ;;  %5772 = vmatprep.subr.mxu0 %v6961_v20 }
 0x397   :  { %5773 = vmatpush3.msra.mxu0 %v6961_v20  ;;  %5785 = vmatprep.subr.mxu1 %v6954_v31  ;;  %v4310_v20 = vsub.f32 %v7166_v28, %v7185_v61 }
 0x398   :  { %5774 = vmatprep.subr.mxu0 %v6973_v16  ;;  %5786 = vmatpush3.msra.mxu1 %v6954_v31 }
 0x399   :  { %5775 = vmatpush3.msra.mxu0 %v6973_v16  ;;  %5787 = vmatprep.subr.mxu1 %v6963_v3  ;;  %v4311_v16 = vand.u32 4294901760, %v4310_v20 }
 0x39a   :  { %5776 = vmatprep.subr.mxu0 %v6985_v0  ;;  %5788 = vmatpush3.msra.mxu1 %v6963_v3 }
 0x39b   :  { %5777 = vmatpush3.msra.mxu0 %v6985_v0  ;;  %5789 = vmatprep.subr.mxu1 %v6977_v33 }
 0x39c   :  { %5778 = vmatprep.subr.mxu0 %v6997_v5  ;;  %5780 = vmatprep.mubr.f32.mxu0 %v6060_v19  ;;  %v4821_v19 = vld [vmem:[%s7313_s5 + $0xf8] sm:$0xff] }
 0x39d   :  { %5779 = vmatpush3.msra.mxu0 %v6997_v5  ;;  %5790 = vmatpush3.msra.mxu1 %v6977_v33 }
 0x39e   :  { %5781 = vmatmul.mubr.f32.vlgmr.msra.gmra.mxu0 %v6063_v21  ;;  %5791 = vmatprep.mubr.f32.mxu1 %v6069_v25  ;;  %v7091_v21 = vand.u32 4294901760, %v4821_v19  ;;  %v4820_v25 = vld [vmem:[%s7313_s5 + $0xf0] sm:$0xff] }
 0x39f   :  { %5794 = vmatprep.subr.mxu0 %v6982_v39  ;;  %5805 = vmatprep.subr.mxu1 %v6946_v8  ;;  %v7099_v34 = vand.u32 4294901760, %v4820_v25 }
 0x3a0   :  { %5792 = vmatmul.mubr.f32.vlgmr.msra.gmra.mxu1 %v6072_v27  ;;  %5795 = vmatpush3.msra.mxu0 %v6982_v39  ;;  %v7097_v27 = vsub.f32 %v4821_v19, %v7091_v21  ;;  %v4805_v39 = vld [vmem:[%s7314_s6 + $0x2] ss:$0 sm:$0xff] }
 0x3a1   :  { %5806 = vmatpush3.msra.mxu1 %v6946_v8  ;;  %5796 = vmatprep.subr.mxu0 %v6992_v53  ;;  %v7110_v35 = vsub.f32 %v4820_v25, %v7099_v34  ;;  %v7196_v8 = vand.u32 4294901760, %v7179_v48 }
 0x3a2   :  { %5807 = vmatprep.subr.mxu1 %v6954_v31  ;;  %5797 = vmatpush3.msra.mxu0 %v6992_v53 }
 0x3a3   :  { %5808 = vmatpush3.msra.mxu1 %v6954_v31  ;;  %5798 = vmatprep.subr.mxu0 %v7004_v49  ;;  %v7140_v22 = vand.u32 4294901760, %v7110_v35  ;;  %v4297_v31 = vand.u32 4294901760, %v4296_v17  ;;  %v4317_v32 = vsub.f32 %v7179_v48, %v7196_v8 }
 0x3a4   :  { %5809 = vmatprep.subr.mxu1 %v6963_v3  ;;  %5799 = vmatpush3.msra.mxu0 %v7004_v49 }
 0x3a5   :  { %5810 = vmatpush3.msra.mxu1 %v6963_v3  ;;  %5800 = vmatprep.subr.mxu0 %v7015_v51  ;;  %v4275_v36 = vsub.f32 %v7110_v35, %v7140_v22  ;;  %v4304_v3 = vand.u32 4294901760, %v4303_v2 }
 0x3a6   :  { %5811 = vmatprep.subr.mxu1 %v6977_v33  ;;  %5801 = vmatpush3.msra.mxu0 %v7015_v51 }
 0x3a7   :  { %5802 = vmatprep.mubr.f32.mxu0 %v6050_v13  ;;  %5812 = vmatpush3.msra.mxu1 %v6977_v33  ;;  %v4276_v50 = vand.u32 4294901760, %v4275_v36  ;;  %v4318_v33 = vand.u32 4294901760, %v4317_v32 }
 0x3a8   :  { %5813 = vmatprep.mubr.f32.mxu1 %v6050_v13  ;;  %5803 = vmatmul.mubr.f32.vlgmr.msra.gmra.mxu0 %v6053_v15  ;;  %v4819_v13 = vld [vmem:[%s7313_s5 + $0xe8] sm:$0xff] }
 0x3a9   :  { %5814 = vmatmul.mubr.f32.vlgmr.msra.gmra.mxu1 %v6053_v15  ;;  %5816 = vmatprep.subr.mxu0 %v7091_v21  ;;  %v7107_v15 = vand.u32 4294901760, %v7097_v27  ;;  %v7112_v45 = vand.u32 4294901760, %v4819_v13 }
 0x3aa   :  { %5817 = vmatpush3.msra.mxu0 %v7091_v21  ;;  %4745 = vperm.xlu1 %5935, %v4825_v57  }
 0x3ab   :  { %5818 = vmatprep.subr.mxu0 %v7099_v34  ;;  %v4268_v52 = vsub.f32 %v7097_v27, %v7107_v15  ;;  %v7143_v55 = vsub.f32 %v4819_v13, %v7112_v45  ;;  %4740 = vperm.xlu0 %5934, %v4824_v6  }
 0x3ac   :  { %5819 = vmatpush3.msra.mxu0 %v7099_v34 }
 0x3ad   :  { %5820 = vmatprep.subr.mxu0 %v7112_v45  ;;  %v4269_v11 = vand.u32 4294901760, %v4268_v52  ;;  %v7163_v41 = vand.u32 4294901760, %v7143_v55 }
 0x3ae   :  { %5821 = vmatpush3.msra.mxu0 %v7112_v45 }
 0x3af   :  { %5822 = vmatprep.subr.mxu0 %v7124_v12  ;;  %5835 = vmatprep.subr.mxu1 %v4269_v11  ;;  %v4282_v10 = vsub.f32 %v7143_v55, %v7163_v41 }
 0x3b0   :  { %5823 = vmatpush3.msra.mxu0 %v7124_v12  ;;  %5836 = vmatpush3.msra.mxu1 %v4269_v11  ;;  %v3567_v11 = vpop.permute.xlu1 %3566 }
 0x3b1   :  { %5824 = vmatprep.subr.mxu0 %v7126_v62  ;;  %5837 = vmatprep.subr.mxu1 %v4276_v50  ;;  %v4283_v18 = vand.u32 4294901760, %v4282_v10 }
 0x3b2   :  { %5825 = vmatpush3.msra.mxu0 %v7126_v62  ;;  %5838 = vmatpush3.msra.mxu1 %v4276_v50 }
 0x3b3   :  { %5826 = vmatprep.subr.mxu0 %v7128_v59  ;;  %5839 = vmatprep.subr.mxu1 %v4283_v18 }
 0x3b4   :  { %5827 = vmatpush3.msra.mxu0 %v7128_v59  ;;  %5840 = vmatpush3.msra.mxu1 %v4283_v18 }
 0x3b5   :  { %5828 = vmatprep.subr.mxu0 %v7146_v7  ;;  %5841 = vmatprep.subr.mxu1 %v4290_v23 }
 0x3b6   :  { %5829 = vmatpush3.msra.mxu0 %v7146_v7  ;;  %5842 = vmatpush3.msra.mxu1 %v4290_v23 }
 0x3b7   :  { %5830 = vmatprep.subr.mxu0 %v7158_v30  ;;  %5843 = vmatprep.subr.mxu1 %v4297_v31 }
 0x3b8   :  { %5831 = vmatpush3.msra.mxu0 %v7158_v30  ;;  %5844 = vmatpush3.msra.mxu1 %v4297_v31 }
 0x3b9   :  { %5854 = vmatprep.subr.mxu0 %v7097_v27  ;;  %5845 = vmatprep.subr.mxu1 %v4304_v3 }
 0x3ba   :  { %5846 = vmatpush3.msra.mxu1 %v4304_v3  ;;  %v4813_v3 = vld [vmem:[%s7312_s4 + $0x3] ss:$0 sm:$0xff] }
 0x3bb   :  { %5847 = vmatprep.subr.mxu1 %v4311_v16 }
 0x3bc   :  { %5848 = vmatpush3.msra.mxu1 %v4311_v16 }
 0x3bd   :  { %5849 = vmatprep.subr.mxu1 %v4318_v33 }
 0x3be   :  { %5850 = vmatpush3.msra.mxu1 %v4318_v33 }
 0x3bf   :  { %5873 = vmatprep.subr.mxu1 %v7091_v21 }
 0x424   :  { %v5673_v0 = vpop.f32.mrf.mxu1 }
 0x426   :  { %v3176_v51 = vpop.f32.mrf.mxu1 }
 0x42c   :  { %v5654_v53 = vpop.f32.mrf.mxu0 }
 0x42d   :  { %v3066_v5 = vadd.f32 %v5654_v53, %v4805_v39 }
 0x42e   :  { %v3055_v24 = vpop.f32.mrf.mxu0 }
 0x42f   :  { %v3056_v49 = vadd.f32 %v4805_v39, %v3055_v24  ;;  %v3183_v46 = vadd.f32 %v5673_v0, %v3066_v5 }
 0x431   :  { %v3177_v56 = vadd.f32 %v3176_v51, %v3056_v49 }
 0x435   :  { %v5711_v26 = vpop.f32.mrf.mxu1 }
 0x437   :  { %v3358_v9 = vpop.f32.mrf.mxu1 }
 0x43d   :  { %v5692_v4 = vpop.f32.mrf.mxu0 }
 0x43e   :  { %v3278_v40 = vadd.f32 %v5692_v4, %v3183_v46 }
 0x43f   :  { %v3270_v19 = vpop.f32.mrf.mxu0 }
 0x440   :  { %v3271_v25 = vadd.f32 %v3270_v19, %v3177_v56  ;;  %v3367_v13 = vadd.f32 %v5711_v26, %v3278_v40 }
 0x442   :  { %v3359_v29 = vadd.f32 %v3358_v9, %v3271_v25 }
 0x447   :  { %v5749_v63 = vpop.f32.mrf.mxu1 }
 0x449   :  { %v3546_v10 = vpop.f32.mrf.mxu1 }
 0x44e   :  { %v5730_v43 = vpop.f32.mrf.mxu0 }
 0x44f   :  { %v3468_v47 = vadd.f32 %v5730_v43, %v3367_v13 }
 0x450   :  { %v3461_v52 = vpop.f32.mrf.mxu0 }
 0x451   :  { %v3462_v36 = vadd.f32 %v3461_v52, %v3359_v29  ;;  %v3553_v50 = vadd.f32 %v5749_v63, %v3468_v47 }
 0x453   :  { %v3570_v17 = vmul.f32 %v3567_v11, %v3553_v50  ;;  %v3547_v18 = vadd.f32 %v3546_v10, %v3462_v36 }
 0x454   :  { %v5771_v32 = vpop.f32.mrf.mxu1 }
 0x455   :  { %v7220_v2 = vadd.f32 %v3570_v17, %v6896_v44  ;;  %v3569_v23 = vmul.f32 %v3562_v14, %v3547_v18 }
 0x456   :  { %v5760_v20 = vpop.f32.mrf.mxu0  ;;  %v3762_v53 = vpop.f32.mrf.mxu1 }
 0x457   :  { %v7223_v31 = vadd.f32 %v3569_v23, %v6898_v58  ;;  %v3672_v33 = vadd.f32 %v5760_v20, %v4813_v3 }
 0x458   :  { %v3661_v16 = vpop.f32.mrf.mxu0 }
 0x459   :  { %v3662_v0 = vadd.f32 %v4813_v3, %v3661_v16  ;;  %v3769_v5 = vadd.f32 %v5771_v32, %v3672_v33 }
 0x45b   :  { %v3763_v44 = vadd.f32 %v3762_v53, %v3662_v0 }
 0x45e   :  { %v5782_v39 = vpop.f32.mrf.mxu0 }
 0x45f   :  { %v3856_v46 = vadd.f32 %v5782_v39, %v3769_v5 }
 0x460   :  { %v5793_v24 = vpop.f32.mrf.mxu1  ;;  %v3848_v49 = vpop.f32.mrf.mxu0 }
 0x461   :  { %v3849_v51 = vadd.f32 %v3848_v49, %v3763_v44  ;;  %v3941_v58 = vadd.f32 %v5793_v24, %v3856_v46 }
 0x462   :  { %v3932_v56 = vpop.f32.mrf.mxu1 }
 0x463   :  { %v3933_v6 = vadd.f32 %v3932_v56, %v3849_v51 }
 0x468   :  { %v5804_v57 = vpop.f32.mrf.mxu0 }
 0x469   :  { %v4030_v26 = vadd.f32 %v5804_v57, %v3941_v58  ;;  %v5815_v4 = vpop.f32.mrf.mxu1 }
 0x46a   :  { %v4023_v40 = vpop.f32.mrf.mxu0 }
 0x46b   :  { %v4111_v19 = vadd.f32 %v5815_v4, %v4030_v26  ;;  %v4024_v25 = vadd.f32 %v4023_v40, %v3933_v6  ;;  %v4104_v13 = vpop.f32.mrf.mxu1  ;;  %v4741_v40 = vpop.permute.xlu0 %4740 }
 0x46d   :  { %v4117_v9 = vmul.f32 0.044715, %v4111_v19  ;;  %v4105_v29 = vadd.f32 %v4104_v13, %v4024_v25  ;;  %v4115_v18 = vmul.f32 0.5, %v4111_v19 }
 0x46f   :  { %v4119_v63 = vmul.f32 %v4117_v9, %v4111_v19  ;;  %v4116_v43 = vmul.f32 0.044715, %v4105_v29  ;;  %v4114_v3 = vmul.f32 0.5, %v4105_v29 }
 0x471   :  { %v4121_v47 = vmul.f32 %v4119_v63, %v4111_v19  ;;  %v4118_v52 = vmul.f32 %v4116_v43, %v4105_v29 }
 0x473   :  { %v4123_v11 = vadd.f32 %v4121_v47, %v4111_v19  ;;  %v4120_v36 = vmul.f32 %v4118_v52, %v4105_v29 }
 0x475   :  { %v4125_v50 = vmul.f32 0.7978846, %v4123_v11  ;;  %v4122_v10 = vadd.f32 %v4120_v36, %v4105_v29 }
 0x477   :  { %5948 = vtanh.f32 %v4125_v50  ;;  %v4124_v14 = vmul.f32 0.7978846, %v4122_v10 }
 0x479   :  { %5950 = vtanh.f32 %v4124_v14 }
 0x484   :  { %v5949_v17 = vpop.eup %5948 }
 0x485   :  { %v4129_v23 = vadd.f32 1.0, %v5949_v17 }
 0x486   :  { %v5951_v20 = vpop.eup %5950 }
 0x487   :  { %v4128_v32 = vadd.f32 1.0, %v5951_v20  ;;  %v4131_v16 = vmul.f32 %v4129_v23, %v4115_v18 }
 0x489   :  { %v4130_v33 = vmul.f32 %v4128_v32, %v4114_v3  ;;  %v4153_v39 = vsel %vm612_vm1, %v4131_v16, 0 }
 0x48a   :  { %v7229_v0 = vand.u32 4294901760, %v4153_v39 }
 0x48b   :  { %v4150_v53 = vsel %vm612_vm1, %v4130_v33, 0 }
 0x48c   :  { %v4228_v5 = vand.u32 4294901760, %v4150_v53  ;;  %v4239_v24 = vsub.f32 %v4153_v39, %v7229_v0 }
 0x48e   :  { %5851 = vmatprep.mubr.f32.mxu1 %v4228_v5  ;;  %v4229_v49 = vsub.f32 %v4150_v53, %v4228_v5  ;;  %v4240_v44 = vand.u32 4294901760, %v4239_v24 }
 0x48f   :  { %5852 = vmatmul.mubr.f32.vlgmr.msra.gmra.mxu1 %v7229_v0 }
 0x490   :  { %5874 = vmatpush3.msra.mxu1 %v7091_v21  ;;  %v4230_v46 = vand.u32 4294901760, %v4229_v49  ;;  %v4241_v51 = vsub.f32 %v4239_v24, %v4240_v44 }
 0x491   :  { %5875 = vmatprep.subr.mxu1 %v7099_v34 }
 0x492   :  { %5876 = vmatpush3.msra.mxu1 %v7099_v34  ;;  %5889 = vmatprep.mubr.f32.mxu1 %v4230_v46  ;;  %v4231_v56 = vsub.f32 %v4229_v49, %v4230_v46  ;;  %v4242_v57 = vand.u32 4294901760, %v4241_v51 }
 0x493   :  { %5877 = vmatprep.subr.mxu1 %v7112_v45 }
 0x494   :  { %5878 = vmatpush3.msra.mxu1 %v7112_v45  ;;  %v4232_v58 = vand.u32 4294901760, %v4231_v56 }
 0x495   :  { %5879 = vmatprep.subr.mxu1 %v7124_v12 }
 0x496   :  { %5880 = vmatpush3.msra.mxu1 %v7124_v12  ;;  %5832 = vmatprep.mubr.f32.mxu0 %v4232_v58 }
 0x497   :  { %5881 = vmatprep.subr.mxu1 %v7126_v62  ;;  %5833 = vmatmul.mubr.f32.vlgmr.msra.gmra.mxu0 %v4242_v57 }
 0x498   :  { %5855 = vmatpush3.msra.mxu0 %v7097_v27  ;;  %5882 = vmatpush3.msra.mxu1 %v7126_v62  ;;  %v4823_v27 = vld [vmem:[%s7314_s6 + $0x3] ss:$0 sm:$0xff]  ;;  %s5977_s6 = smov [#allocation2]  }
 0x499   :  { %5856 = vmatprep.subr.mxu0 %v7110_v35  ;;  %5870 = vmatprep.mubr.f32.mxu0 %v4229_v49  ;;  %s4759_s18 = sshll.u32 %s5977_s6, 4  ;;  %s4760_s18 = int_to_ptr.vmem [resolvable:$true] %s4759_s18 }
 0x49a   :  { %5883 = vmatprep.subr.mxu1 %v7128_v59  ;;  %5857 = vmatpush3.msra.mxu0 %v7110_v35  ;;  %s5954_s19 = scalar_lea.vmem %s4760_s18, 256  ;;  %p5959_p1 = scmp.lt.s32.totalorder %s4760_s18, %s4760_s18 }
 0x49b   :  { %5884 = vmatpush3.msra.mxu1 %v7128_v59  ;;  %5858 = vmatprep.subr.mxu0 %v7143_v55  ;;  %p5955_p0 = scmp.ne.s32.totalorder %s4760_s18, %s5954_s19  ;;  %p5960_p2 = scmp.lt.s32.totalorder %s5954_s19, %s5954_s19 }
 0x49c   :  { %5885 = vmatprep.subr.mxu1 %v7146_v7  ;;  %5859 = vmatpush3.msra.mxu0 %v7143_v55 }
 0x49d   :  { %5886 = vmatpush3.msra.mxu1 %v7146_v7  ;;  %5860 = vmatprep.subr.mxu0 %v7149_v60  ;;  %p5961_p3 = por %p5960_p2, %p5959_p1 }
 0x49e   :  { %5887 = vmatprep.subr.mxu1 %v7158_v30  ;;  %5861 = vmatpush3.msra.mxu0 %v7149_v60 }
 0x49f   :  { %5888 = vmatpush3.msra.mxu1 %v7158_v30  ;;  %5862 = vmatprep.subr.mxu0 %v7152_v54  ;;  %p5962_p4 = pnand %p5961_p3, %p5955_p0 }
 0x4a0   :  { %5890 = vmatmul.mubr.f32.vlgmr.msra.gmra.mxu1 %v4240_v44  ;;  %5911 = vmatprep.subr.mxu1 %v7091_v21 }
 0x4a1   :  { %5863 = vmatpush3.msra.mxu0 %v7152_v54  ;;  %5912 = vmatpush3.msra.mxu1 %v7091_v21 }
 0x4a2   :  { %5927 = vmatprep.mubr.f32.mxu1 %v4228_v5  ;;  %5864 = vmatprep.subr.mxu0 %v7155_v1 }
 0x4a3   :  { %5913 = vmatprep.subr.mxu1 %v7099_v34  ;;  %5865 = vmatpush3.msra.mxu0 %v7155_v1 }
 0x4a4   :  { %5914 = vmatpush3.msra.mxu1 %v7099_v34  ;;  %5866 = vmatprep.subr.mxu0 %v7166_v28 }
 0x4a5   :  { %5915 = vmatprep.subr.mxu1 %v7112_v45  ;;  %5867 = vmatpush3.msra.mxu0 %v7166_v28 }
 0x4a6   :  { %5916 = vmatpush3.msra.mxu1 %v7112_v45  ;;  %5868 = vmatprep.subr.mxu0 %v7179_v48 }
 0x4a7   :  { %5917 = vmatprep.subr.mxu1 %v7124_v12  ;;  %5869 = vmatpush3.msra.mxu0 %v7179_v48 }
 0x4a8   :  { %5918 = vmatpush3.msra.mxu1 %v7124_v12  ;;  %5871 = vmatmul.mubr.f32.vlgmr.msra.gmra.mxu0 %v4239_v24 }
 0x4a9   :  { %5892 = vmatprep.subr.mxu0 %v7107_v15  ;;  %5919 = vmatprep.subr.mxu1 %v7126_v62 }
 0x4aa   :  { %5893 = vmatpush3.msra.mxu0 %v7107_v15  ;;  %5908 = vmatprep.mubr.f32.mxu0 %v4228_v5 }
 0x4ab   :  { %5920 = vmatpush3.msra.mxu1 %v7126_v62  ;;  %5894 = vmatprep.subr.mxu0 %v7140_v22 }
 0x4ac   :  { %5921 = vmatprep.subr.mxu1 %v7128_v59  ;;  %5895 = vmatpush3.msra.mxu0 %v7140_v22 }
 0x4ad   :  { %5922 = vmatpush3.msra.mxu1 %v7128_v59  ;;  %5896 = vmatprep.subr.mxu0 %v7163_v41 }
 0x4ae   :  { %5923 = vmatprep.subr.mxu1 %v7146_v7  ;;  %5897 = vmatpush3.msra.mxu0 %v7163_v41 }
 0x4af   :  { %5924 = vmatpush3.msra.mxu1 %v7146_v7  ;;  %5898 = vmatprep.subr.mxu0 %v7170_v37 }
 0x4b0   :  { %5925 = vmatprep.subr.mxu1 %v7158_v30  ;;  %5899 = vmatpush3.msra.mxu0 %v7170_v37 }
 0x4b1   :  { %5926 = vmatpush3.msra.mxu1 %v7158_v30  ;;  %5900 = vmatprep.subr.mxu0 %v7173_v42 }
 0x4b2   :  { %5928 = vmatmul.mubr.f32.vlgmr.msra.gmra.mxu1 %v7229_v0  ;;  %5901 = vmatpush3.msra.mxu0 %v7173_v42 }
 0x4b3   :  { %5902 = vmatprep.subr.mxu0 %v7176_v38 }
 0x4b4   :  { %5903 = vmatpush3.msra.mxu0 %v7176_v38 }
 0x4b5   :  { %5904 = vmatprep.subr.mxu0 %v7185_v61 }
 0x4b6   :  { %5905 = vmatpush3.msra.mxu0 %v7185_v61 }
 0x4b7   :  { %5906 = vmatprep.subr.mxu0 %v7196_v8 }
 0x4b8   :  { %5907 = vmatpush3.msra.mxu0 %v7196_v8  ;;  %v4746_v8 = vpop.permute.xlu1 %4745 }
 0x4b9   :  { %5909 = vmatmul.mubr.f32.vlgmr.msra.gmra.mxu0 %v7229_v0 }
 0x54f   :  { %v5853_v34 = vpop.f32.mrf.mxu1 }
 0x551   :  { %v4355_v62 = vpop.f32.mrf.mxu1 }
 0x557   :  { %v5834_v21 = vpop.f32.mrf.mxu0 }
 0x558   :  { %v4245_v35 = vadd.f32 %v5834_v21, %v4823_v27 }
 0x559   :  { %v4234_v15 = vpop.f32.mrf.mxu0 }
 0x55a   :  { %v4235_v12 = vadd.f32 %v4823_v27, %v4234_v15  ;;  %v4362_v59 = vadd.f32 %v5853_v34, %v4245_v35 }
 0x55c   :  { %v4356_v60 = vadd.f32 %v4355_v62, %v4235_v12 }
 0x560   :  { %v5891_v22 = vpop.f32.mrf.mxu1 }
 0x562   :  { %v4537_v1 = vpop.f32.mrf.mxu1 }
 0x568   :  { %v5872_v45 = vpop.f32.mrf.mxu0 }
 0x569   :  { %v4457_v7 = vadd.f32 %v5872_v45, %v4362_v59 }
 0x56a   :  { %v4449_v55 = vpop.f32.mrf.mxu0 }
 0x56b   :  { %v4450_v54 = vadd.f32 %v4449_v55, %v4356_v60  ;;  %v4546_v30 = vadd.f32 %v5891_v22, %v4457_v7 }
 0x56d   :  { %v4538_v42 = vadd.f32 %v4537_v1, %v4450_v54 }
 0x572   :  { %v5929_v41 = vpop.f32.mrf.mxu1 }
 0x574   :  { %v4725_v6 = vpop.f32.mrf.mxu1 }
 0x579   :  { %v5910_v28 = vpop.f32.mrf.mxu0 }
 0x57a   :  { %v4647_v37 = vadd.f32 %v5910_v28, %v4546_v30 }
 0x57b   :  { %v4640_v38 = vpop.f32.mrf.mxu0 }
 0x57c   :  { %v4732_v48 = vadd.f32 %v5929_v41, %v4647_v37  ;;  %v4641_v61 = vadd.f32 %v4640_v38, %v4538_v42 }
 0x57e   :  { %v4749_v26 = vmul.f32 %v4746_v8, %v4732_v48  ;;  %v4726_v4 = vadd.f32 %v4725_v6, %v4641_v61 }
 0x580   :  { %v4751_v19 = vadd.f32 %v4749_v26, %v7220_v2  ;;  %v4748_v25 = vmul.f32 %v4741_v40, %v4726_v4 }
 0x582   :  { %4753 = vst.msk [vmem:[#allocation2 + $0x8] sm:$0xff] %vm44_vm0, %v4751_v19  ;;  %v4750_v13 = vadd.f32 %v4748_v25, %v7223_v31 }
 0x584   :  { %4752 = vst.msk [vmem:[#allocation2] sm:$0xff] %vm44_vm0, %v4750_v13 }
 0x585   :  { %5965 = shalt.err (!%p5962_p4)
}
 0x586   :  { %s5978_s20 = smov 128   ;;  %s5979_s3 = smov 8  }
 0x587   :  { %4765 = dma.vmem_to_hbm [thread:$0]  %s4760_s18, 256, %s7315_s7, [#allocation3], %s5978_s20, %s5978_s20, %s5979_s3  }
 0x588   :  { %5974 = dma.done.wait [#allocation3], 256  }
 0x589   :  { %5975 = vsyncadd [#allocation3], 4294967040 }
 0x58a   :  { %4769 = vsyncpa [#allocation3], 1 }

// kernel: sparse_transformer_layer.2
= control target key start
LH: loop header
LB: loop body
LE: loop exit
PB: predicated region body
PF: predicated region fallthrough
CT: control target
= control target key end

     0   :  { %s17572_s18 = smov 0   ;;  %s20076_s0 = inlined_call_operand.vmem [shape: f32[2,8,32], index: 0, kind: input, shape index: {}]   ;;  %s20077_s1 = inlined_call_operand.vmem [shape: f32[2,1,32], index: 1, kind: input, shape index: {}]   ;;  %s20078_s2 = inlined_call_operand.vmem [shape: f32[3,32,32], index: 2, kind: input, shape index: {}]   ;;  %s20079_s3 = inlined_call_operand.vmem [shape: f32[3,1,32], index: 3, kind: input, shape index: {}]   ;;  %s20080_s4 = inlined_call_operand.vmem [shape: f32[8,32], index: 4, kind: input, shape index: {}]   ;;  %s20081_s5 = inlined_call_operand.vmem [shape: f32[8,32], index: 5, kind: input, shape index: {}]   ;;  %s20082_s6 = inlined_call_operand.vmem [shape: f32[32,32], index: 6, kind: input, shape index: {}]   ;;  %s20083_s7 = inlined_call_operand.vmem [shape: f32[12,32,8], index: 7, kind: input, shape index: {}]   ;;  %s20084_s8 = inlined_call_operand.vmem [shape: f32[12,1,8], index: 8, kind: input, shape index: {}]   ;;  %s20085_s9 = inlined_call_operand.vmem [shape: f32[4,8,32], index: 9, kind: input, shape index: {}]   ;;  %s20086_s10 = inlined_call_operand.vmem [shape: f32[1,32], index: 10, kind: input, shape index: {}]   ;;  %s20087_s11 = inlined_call_operand.vmem [shape: f32[2,1,32], index: 11, kind: input, shape index: {}]   ;;  %s20088_s12 = inlined_call_operand.vmem [shape: f32[32,3], index: 12, kind: input, shape index: {}]   ;;  %s20089_s13 = inlined_call_operand.vmem [shape: f32[2,8,32], index: 13, kind: output, shape index: {0}]   ;;  %s20090_s14 = inlined_call_operand.vmem [shape: f32[2,8,32], index: 14, kind: output, shape index: {1}]   ;;  %s20091_s15 = inlined_call_operand.vmem [shape: f32[2,8,3], index: 15, kind: output, shape index: {2}]  }
   0x1 LB: > { %s15118_s19 = sadd.s32 4294967295, %s17488_s18   ;;  %p15122_p0 = scmp.ge.s32.totalorder %s17488_s18, 1  ;;  %s17488_s18 = sphi %s17572_s18, %s26_s18  }
   0x2   : > { %p441_p1 = scmp.lt.s32.totalorder %s17488_s18, 3 }
   0x4   : > { %p442_p2 = pnand %p15122_p0, %p441_p1 }
   0x5   : > { %p495_p3 = scmp.lt.s32.totalorder (!%p442_p2), %s15118_s19, 1 }
   0x6   : > { %445 = sbr.rel (%p442_p2) target bundleno = 5407 (0x151f), region = 72 }
   0xb   : > { %s20093_s19 = smov (!%p495_p3, %s15118_s19), 1  ;;  %vm515_vm0 = vcmask 261120   ;;  %v547_v7 = vld [vmem:[%s20078_s2 + $0x18] sm:$0xff]  ;;  %v546_v9 = vld [vmem:[%s20078_s2 + $0x10] sm:$0xff]  ;;  %v545_v12 = vld [vmem:[%s20078_s2 + $0x8] sm:$0xff]  ;;  %v17490_v24 = vmov 0.0  }
   0xc   : > { %s17580_s20 = sshll.u32 %s20093_s19, 3  ;;  %v17594_v8 = vand.u32 4294901760, %v547_v7  ;;  %v17602_v11 = vand.u32 4294901760, %v546_v9  ;;  %v17611_v15 = vand.u32 4294901760, %v545_v12  ;;  %v544_v16 = vld [vmem:[%s20078_s2] sm:$0xff]  ;;  %15914 = vmatprep.subr.mxu1 %v17490_v24  ;;  %15903 = vmatprep.subr.mxu0 %v17490_v24  ;;  %vm17491_vm1 = vmmov 0  }
   0xd   : > { %s17586_s23 = scalar_lea.vmem %s20076_s0, %s17580_s20  ;;  %v17623_v20 = vand.u32 4294901760, %v544_v16  ;;  %15922 = vmatprep.mubr.msk.f32.mxu1 %vm17491_vm1, %v17490_v24  ;;  %15911 = vmatprep.mubr.msk.f32.mxu0 %vm17491_vm1, %v17490_v24  ;;  %v15128_v36 = vld [vmem:[%s20077_s1] ss:$0 sm:$0xff]  ;;  %v15129_v38 = vld [vmem:[%s20077_s1 + $0x1] ss:$0 sm:$0xff]  ;;  %v15134_v42 = vld [vmem:[%s20078_s2 + $0x38] sm:$0xff]  ;;  %s502_s21 = scalar_lea.vmem %s20089_s13, %s17580_s20 }
   0xe   : > { %v511_v0 = vld [vmem:[%s17586_s23] sm:$0xff]  ;;  %v17600_v10 = vsub.f32 %v547_v7, %v17594_v8  ;;  %v17609_v14 = vsub.f32 %v546_v9, %v17602_v11  ;;  %v17621_v19 = vsub.f32 %v545_v12, %v17611_v15  ;;  %15904 = vmatpush3.msra.mxu0 %v17594_v8  ;;  %v15133_v44 = vld [vmem:[%s20078_s2 + $0x30] sm:$0xff]  ;;  %v17676_v46 = vand.u32 4294901760, %v15134_v42  ;;  %v15132_v47 = vld [vmem:[%s20078_s2 + $0x28] sm:$0xff]  ;;  %s506_s24 = scalar_lea.vmem %s20090_s14, %s17580_s20  ;;  %s510_s26 = scalar_lea.vmem %s20091_s15, %s17580_s20 }
   0xf   : > { %v516_v1 = vsel %vm515_vm0, %v511_v0, 0.0  ;;  %v17631_v25 = vsub.f32 %v544_v16, %v17623_v20  ;;  %15905 = vmatprep.subr.mxu0 %v17490_v24  ;;  %v17688_v49 = vand.u32 4294901760, %v15133_v44  ;;  %v15131_v50 = vld [vmem:[%s20078_s2 + $0x20] sm:$0xff]  ;;  %v17700_v53 = vand.u32 4294901760, %v15132_v47  ;;  %v15140_v7 = vld [vmem:[%s20078_s2 + $0x58] sm:$0xff] }
  0x10   : > { %517 = vadd.xlane.f32.xlu0 %v516_v1  ;;  %v664_v13 = vand.u32 4294901760, %v17600_v10  ;;  %v671_v18 = vand.u32 4294901760, %v17609_v14  ;;  %v678_v23 = vand.u32 4294901760, %v17621_v19  ;;  %15906 = vmatpush3.msra.mxu0 %v17602_v11  ;;  %v17698_v52 = vsub.f32 %v15134_v42, %v17676_v46  ;;  %v15137_v12 = vld [vmem:[%s20078_s2 + $0x40] sm:$0xff] }
  0x11   : > { %v685_v28 = vand.u32 4294901760, %v17631_v25  ;;  %15907 = vmatprep.subr.mxu0 %v17490_v24  ;;  %v17707_v55 = vsub.f32 %v15133_v44, %v17688_v49  ;;  %v17709_v56 = vand.u32 4294901760, %v15131_v50  ;;  %v17716_v58 = vsub.f32 %v15132_v47, %v17700_v53 }
  0x12   : > { %v665_v17 = vsub.f32 %v17600_v10, %v664_v13  ;;  %v672_v22 = vsub.f32 %v17609_v14, %v671_v18  ;;  %v679_v27 = vsub.f32 %v17621_v19, %v678_v23  ;;  %15908 = vmatpush3.msra.mxu0 %v17611_v15  ;;  %v1162_v57 = vand.u32 4294901760, %v17698_v52 }
  0x13   : > { %v686_v30 = vsub.f32 %v17631_v25, %v685_v28  ;;  %15909 = vmatprep.subr.mxu0 %v17490_v24  ;;  %v1169_v59 = vand.u32 4294901760, %v17707_v55  ;;  %v17724_v60 = vsub.f32 %v15131_v50, %v17709_v56  ;;  %v1176_v62 = vand.u32 4294901760, %v17716_v58 }
  0x14   : > { %v666_v21 = vand.u32 4294901760, %v665_v17  ;;  %v673_v26 = vand.u32 4294901760, %v672_v22  ;;  %v680_v29 = vand.u32 4294901760, %v679_v27  ;;  %15910 = vmatpush3.msra.mxu0 %v17623_v20  ;;  %v1163_v61 = vsub.f32 %v17698_v52, %v1162_v57 }
  0x15   : > { %v687_v31 = vand.u32 4294901760, %v686_v30  ;;  %15925 = vmatprep.subr.mxu0 %v17490_v24  ;;  %v1170_v63 = vsub.f32 %v17707_v55, %v1169_v59  ;;  %v17790_v9 = vand.u32 4294901760, %v15140_v7  ;;  %v17821_v16 = vand.u32 4294901760, %v15137_v12 }
  0x16   : > { %15915 = vmatpush3.msra.mxu1 %v666_v21  ;;  %v1164_v1 = vand.u32 4294901760, %v1163_v61  ;;  %vm4528_vm2 = vcmask 64512   ;;  %vm15001_vm3 = vcmask 23552  }
  0x17   : > { %15916 = vmatprep.subr.mxu1 %v17490_v24 }
  0x18   : > { %15917 = vmatpush3.msra.mxu1 %v673_v26 }
  0x19   : > { %15918 = vmatprep.subr.mxu1 %v17490_v24 }
  0x1a   : > { %15919 = vmatpush3.msra.mxu1 %v680_v29 }
  0x1b   : > { %15920 = vmatprep.subr.mxu1 %v17490_v24 }
  0x1c   : > { %15921 = vmatpush3.msra.mxu1 %v687_v31 }
  0x1d   : > { %15936 = vmatprep.subr.mxu1 %v17490_v24 }
  0x99   : > { %v518_v2 = vpop.xlane.xlu0 %517 }
  0x9a   : > { %v520_v3 = vmul.f32 0.03125, %v518_v2  ;;  %v1177_v2 = vsub.f32 %v17716_v58, %v1176_v62 }
  0x9c   : > { %v521_v4 = vsub.f32 %v511_v0, %v520_v3  ;;  %v1183_v0 = vand.u32 4294901760, %v17724_v60  ;;  %v1171_v3 = vand.u32 4294901760, %v1170_v63 }
  0x9e   : > { %v522_v5 = vmul.f32 %v521_v4, %v521_v4 }
  0xa0   : > { %v523_v6 = vsel %vm515_vm0, %v522_v5, 0.0  ;;  %v1178_v5 = vand.u32 4294901760, %v1177_v2 }
  0xa1   : > { %524 = vadd.xlane.f32.xlu0 %v523_v6 }
 0x12a   : > { %v525_v32 = vpop.xlane.xlu0 %524 }
 0x12b   : > { %v526_v33 = vmul.f32 0.03125, %v525_v32  ;;  %v2044_v32 = vld [vmem:[%s20082_s6 + $0x18] sm:$0xff] }
 0x12d   : > { %v527_v34 = vadd.f32 1e-05, %v526_v33  ;;  %v17961_v33 = vand.u32 4294901760, %v2044_v32 }
 0x12f   : > { %17461 = vrsqrt.f32 %v527_v34  ;;  %v2043_v34 = vld [vmem:[%s20082_s6 + $0x10] sm:$0xff] }
 0x13c   : > { %v17462_v35 = vpop.eup %17461 }
 0x13d   : > { %v529_v37 = vmul.f32 %v17462_v35, %v521_v4  ;;  %v1184_v4 = vsub.f32 %v17724_v60, %v1183_v0  ;;  %v17967_v35 = vsub.f32 %v2044_v32, %v17961_v33 }
 0x13f   : > { %v536_v39 = vmul.f32 %v15128_v36, %v529_v37  ;;  %v1185_v6 = vand.u32 4294901760, %v1184_v4  ;;  %v17969_v36 = vand.u32 4294901760, %v2043_v34  ;;  %v2042_v37 = vld [vmem:[%s20082_s6 + $0x8] sm:$0xff] }
 0x141   : > { %v543_v40 = vadd.f32 %v15129_v38, %v536_v39  ;;  %v17977_v38 = vand.u32 4294901760, %v17967_v35  ;;  %v17980_v39 = vsub.f32 %v2043_v34, %v17969_v36 }
 0x143   : > { %v556_v41 = vsel %vm515_vm0, %v543_v40, 0  ;;  %v17982_v40 = vand.u32 4294901760, %v2042_v37  ;;  %v2156_v42 = vsub.f32 %v17967_v35, %v17977_v38 }
 0x144   : > { %v17667_v43 = vand.u32 4294901760, %v556_v41 }
 0x145   : > { %v17995_v44 = vsub.f32 %v2042_v37, %v17982_v40 }
 0x146   : > { %15923 = vmatmul.mubr.f32.vlgmr.msra.gmra.mxu1 %v17667_v43  ;;  %v17674_v45 = vsub.f32 %v556_v41, %v17667_v43  ;;  %v2041_v41 = vld [vmem:[%s20082_s6] sm:$0xff] }
 0x147   : > { %15937 = vmatpush3.msra.mxu1 %v17594_v8  ;;  %15944 = vmatprep.mubr.msk.f32.mxu1 %vm17491_vm1, %v17490_v24 }
 0x148   : > { %15938 = vmatprep.subr.mxu1 %v17490_v24  ;;  %v17686_v48 = vand.u32 4294901760, %v17674_v45 }
 0x149   : > { %15939 = vmatpush3.msra.mxu1 %v17602_v11 }
 0x14a   : > { %15940 = vmatprep.subr.mxu1 %v17490_v24  ;;  %v630_v51 = vsub.f32 %v17674_v45, %v17686_v48 }
 0x14b   : > { %15941 = vmatpush3.msra.mxu1 %v17611_v15 }
 0x14c   : > { %15942 = vmatprep.subr.mxu1 %v17490_v24  ;;  %v17704_v54 = vand.u32 4294901760, %v630_v51 }
 0x14d   : > { %15943 = vmatpush3.msra.mxu1 %v17623_v20 }
 0x14e   : > { %15945 = vmatmul.mubr.f32.vlgmr.msra.gmra.mxu1 %v17686_v48  ;;  %15958 = vmatprep.subr.mxu1 %v17490_v24 }
 0x14f   : > { %15912 = vmatmul.mubr.f32.vlgmr.msra.gmra.mxu0 %v17704_v54  ;;  %15959 = vmatpush3.msra.mxu1 %v17594_v8  ;;  %v15139_v8 = vld [vmem:[%s20078_s2 + $0x50] sm:$0xff] }
 0x150   : > { %15926 = vmatpush3.msra.mxu0 %v17600_v10  ;;  %15960 = vmatprep.subr.mxu1 %v17490_v24  ;;  %v15138_v10 = vld [vmem:[%s20078_s2 + $0x48] sm:$0xff] }
 0x151   : > { %15927 = vmatprep.subr.mxu0 %v17490_v24  ;;  %15961 = vmatpush3.msra.mxu1 %v17602_v11  ;;  %v17799_v11 = vand.u32 4294901760, %v15139_v8 }
 0x152   : > { %15928 = vmatpush3.msra.mxu0 %v17609_v14  ;;  %15962 = vmatprep.subr.mxu1 %v17490_v24  ;;  %v17811_v14 = vand.u32 4294901760, %v15138_v10 }
 0x153   : > { %15929 = vmatprep.subr.mxu0 %v17490_v24  ;;  %15963 = vmatpush3.msra.mxu1 %v17611_v15  ;;  %v17819_v15 = vsub.f32 %v15139_v8, %v17799_v11 }
 0x154   : > { %15930 = vmatpush3.msra.mxu0 %v17621_v19  ;;  %15964 = vmatprep.subr.mxu1 %v17490_v24 }
 0x155   : > { %15931 = vmatprep.subr.mxu0 %v17490_v24  ;;  %15933 = vmatprep.mubr.msk.f32.mxu0 %vm17491_vm1, %v17490_v24  ;;  %v1667_v19 = vand.u32 4294901760, %v17819_v15 }
 0x156   : > { %15932 = vmatpush3.msra.mxu0 %v17631_v25  ;;  %15965 = vmatpush3.msra.mxu1 %v17623_v20  ;;  %v17838_v20 = vsub.f32 %v15137_v12, %v17821_v16 }
 0x157   : > { %15966 = vmatprep.mubr.msk.f32.mxu1 %vm17491_vm1, %v17490_v24  ;;  %15934 = vmatmul.mubr.f32.vlgmr.msra.gmra.mxu0 %v17674_v45 }
 0x158   : > { %15947 = vmatprep.subr.mxu0 %v17490_v24  ;;  %15967 = vmatmul.mubr.f32.vlgmr.msra.gmra.mxu1 %v17667_v43  ;;  %v1681_v25 = vand.u32 4294901760, %v17838_v20 }
 0x159   : > { %15980 = vmatprep.subr.mxu1 %v17490_v24  ;;  %15948 = vmatpush3.msra.mxu0 %v664_v13  ;;  %v17809_v13 = vsub.f32 %v15140_v7, %v17790_v9 }
 0x15a   : > { %15981 = vmatpush3.msra.mxu1 %v1164_v1  ;;  %15949 = vmatprep.subr.mxu0 %v17490_v24  ;;  %v1682_v29 = vsub.f32 %v17838_v20, %v1681_v25 }
 0x15b   : > { %15982 = vmatprep.subr.mxu1 %v17490_v24  ;;  %15950 = vmatpush3.msra.mxu0 %v671_v18  ;;  %v1660_v17 = vand.u32 4294901760, %v17809_v13  ;;  %v17830_v18 = vsub.f32 %v15138_v10, %v17811_v14 }
 0x15c   : > { %15983 = vmatpush3.msra.mxu1 %v1171_v3  ;;  %15951 = vmatprep.subr.mxu0 %v17490_v24  ;;  %v1683_v31 = vand.u32 4294901760, %v1682_v29 }
 0x15d   : > { %15984 = vmatprep.subr.mxu1 %v17490_v24  ;;  %15952 = vmatpush3.msra.mxu0 %v678_v23  ;;  %v1661_v21 = vsub.f32 %v17809_v13, %v1660_v17  ;;  %v1674_v22 = vand.u32 4294901760, %v17830_v18  ;;  %v1668_v23 = vsub.f32 %v17819_v15, %v1667_v19 }
 0x15e   : > { %15985 = vmatpush3.msra.mxu1 %v1178_v5  ;;  %15953 = vmatprep.subr.mxu0 %v17490_v24 }
 0x15f   : > { %15986 = vmatprep.subr.mxu1 %v17490_v24  ;;  %15954 = vmatpush3.msra.mxu0 %v685_v28  ;;  %v1662_v26 = vand.u32 4294901760, %v1661_v21  ;;  %v1675_v27 = vsub.f32 %v17830_v18, %v1674_v22  ;;  %v1669_v28 = vand.u32 4294901760, %v1668_v23  ;;  %v15136_v23 = vld [vmem:[%s20079_s3 + $0x1] ss:$0 sm:$0xff] }
 0x160   : > { %15955 = vmatprep.mubr.msk.f32.mxu0 %vm17491_vm1, %v17490_v24  ;;  %15987 = vmatpush3.msra.mxu1 %v1185_v6 }
 0x161   : > { %15988 = vmatprep.mubr.msk.f32.mxu1 %vm17491_vm1, %v17490_v24  ;;  %15956 = vmatmul.mubr.f32.vlgmr.msra.gmra.mxu0 %v17667_v43  ;;  %v1676_v30 = vand.u32 4294901760, %v1675_v27 }
 0x162   : > { %15969 = vmatprep.subr.mxu0 %v17490_v24  ;;  %15989 = vmatmul.mubr.f32.vlgmr.msra.gmra.mxu1 %v17667_v43 }
 0x163   : > { %16002 = vmatprep.subr.mxu1 %v17490_v24  ;;  %15970 = vmatpush3.msra.mxu0 %v17676_v46 }
 0x164   : > { %16003 = vmatpush3.msra.mxu1 %v17676_v46  ;;  %15971 = vmatprep.subr.mxu0 %v17490_v24 }
 0x165   : > { %16004 = vmatprep.subr.mxu1 %v17490_v24  ;;  %15972 = vmatpush3.msra.mxu0 %v17688_v49 }
 0x166   : > { %16005 = vmatpush3.msra.mxu1 %v17688_v49  ;;  %15973 = vmatprep.subr.mxu0 %v17490_v24 }
 0x167   : > { %16006 = vmatprep.subr.mxu1 %v17490_v24  ;;  %15974 = vmatpush3.msra.mxu0 %v17700_v53 }
 0x168   : > { %16007 = vmatpush3.msra.mxu1 %v17700_v53  ;;  %15975 = vmatprep.subr.mxu0 %v17490_v24 }
 0x169   : > { %16008 = vmatprep.subr.mxu1 %v17490_v24  ;;  %15976 = vmatpush3.msra.mxu0 %v17709_v56 }
 0x16a   : > { %15977 = vmatprep.mubr.msk.f32.mxu0 %vm17491_vm1, %v17490_v24  ;;  %16009 = vmatpush3.msra.mxu1 %v17709_v56 }
 0x16b   : > { %16010 = vmatprep.mubr.msk.f32.mxu1 %vm17491_vm1, %v17490_v24  ;;  %15978 = vmatmul.mubr.f32.vlgmr.msra.gmra.mxu0 %v17704_v54 }
 0x16c   : > { %15991 = vmatprep.subr.mxu0 %v17490_v24  ;;  %16011 = vmatmul.mubr.f32.vlgmr.msra.gmra.mxu1 %v17686_v48 }
 0x16d   : > { %16024 = vmatprep.subr.mxu1 %v17490_v24  ;;  %15992 = vmatpush3.msra.mxu0 %v17698_v52 }
 0x16e   : > { %16025 = vmatpush3.msra.mxu1 %v17676_v46  ;;  %15993 = vmatprep.subr.mxu0 %v17490_v24  ;;  %v18001_v46 = vand.u32 4294901760, %v2156_v42 }
 0x16f   : > { %16026 = vmatprep.subr.mxu1 %v17490_v24  ;;  %15994 = vmatpush3.msra.mxu0 %v17707_v55 }
 0x170   : > { %16027 = vmatpush3.msra.mxu1 %v17688_v49  ;;  %15995 = vmatprep.subr.mxu0 %v17490_v24 }
 0x171   : > { %16028 = vmatprep.subr.mxu1 %v17490_v24  ;;  %15996 = vmatpush3.msra.mxu0 %v17716_v58 }
 0x172   : > { %16029 = vmatpush3.msra.mxu1 %v17700_v53  ;;  %15997 = vmatprep.subr.mxu0 %v17490_v24 }
 0x173   : > { %16030 = vmatprep.subr.mxu1 %v17490_v24  ;;  %15998 = vmatpush3.msra.mxu0 %v17724_v60 }
 0x174   : > { %15999 = vmatprep.mubr.msk.f32.mxu0 %vm17491_vm1, %v17490_v24  ;;  %16031 = vmatpush3.msra.mxu1 %v17709_v56 }
 0x175   : > { %16032 = vmatprep.mubr.msk.f32.mxu1 %vm17491_vm1, %v17490_v24  ;;  %16000 = vmatmul.mubr.f32.vlgmr.msra.gmra.mxu0 %v17674_v45 }
 0x176   : > { %16013 = vmatprep.subr.mxu0 %v17490_v24  ;;  %16033 = vmatmul.mubr.f32.vlgmr.msra.gmra.mxu1 %v17667_v43 }
 0x177   : > { %16046 = vmatprep.subr.mxu1 %v17490_v24  ;;  %16014 = vmatpush3.msra.mxu0 %v1162_v57 }
 0x178   : > { %16047 = vmatpush3.msra.mxu1 %v1662_v26  ;;  %16015 = vmatprep.subr.mxu0 %v17490_v24 }
 0x179   : > { %16048 = vmatprep.subr.mxu1 %v17490_v24  ;;  %16016 = vmatpush3.msra.mxu0 %v1169_v59 }
 0x17a   : > { %16049 = vmatpush3.msra.mxu1 %v1669_v28  ;;  %16017 = vmatprep.subr.mxu0 %v17490_v24 }
 0x17b   : > { %16050 = vmatprep.subr.mxu1 %v17490_v24  ;;  %16018 = vmatpush3.msra.mxu0 %v1176_v62  ;;  %v15130_v62 = vld [vmem:[%s20079_s3] ss:$0 sm:$0xff] }
 0x17c   : > { %16051 = vmatpush3.msra.mxu1 %v1676_v30  ;;  %16019 = vmatprep.subr.mxu0 %v17490_v24 }
 0x17d   : > { %16052 = vmatprep.subr.mxu1 %v17490_v24  ;;  %16020 = vmatpush3.msra.mxu0 %v1183_v0 }
 0x17e   : > { %16021 = vmatprep.mubr.msk.f32.mxu0 %vm17491_vm1, %v17490_v24  ;;  %16053 = vmatpush3.msra.mxu1 %v1683_v31 }
 0x17f   : > { %16054 = vmatprep.mubr.msk.f32.mxu1 %vm17491_vm1, %v17490_v24  ;;  %16022 = vmatmul.mubr.f32.vlgmr.msra.gmra.mxu0 %v17667_v43 }
 0x180   : > { %16035 = vmatprep.subr.mxu0 %v17490_v24  ;;  %16055 = vmatmul.mubr.f32.vlgmr.msra.gmra.mxu1 %v17667_v43 }
 0x181   : > { %16068 = vmatprep.subr.mxu1 %v17490_v24  ;;  %16036 = vmatpush3.msra.mxu0 %v17790_v9 }
 0x182   : > { %16069 = vmatpush3.msra.mxu1 %v17790_v9  ;;  %16037 = vmatprep.subr.mxu0 %v17490_v24 }
 0x183   : > { %16070 = vmatprep.subr.mxu1 %v17490_v24  ;;  %16038 = vmatpush3.msra.mxu0 %v17799_v11 }
 0x184   : > { %16071 = vmatpush3.msra.mxu1 %v17799_v11  ;;  %16039 = vmatprep.subr.mxu0 %v17490_v24 }
 0x185   : > { %16072 = vmatprep.subr.mxu1 %v17490_v24  ;;  %16040 = vmatpush3.msra.mxu0 %v17811_v14 }
 0x186   : > { %16073 = vmatpush3.msra.mxu1 %v17811_v14  ;;  %16041 = vmatprep.subr.mxu0 %v17490_v24 }
 0x187   : > { %16074 = vmatprep.subr.mxu1 %v17490_v24  ;;  %16042 = vmatpush3.msra.mxu0 %v17821_v16 }
 0x188   : > { %16043 = vmatprep.mubr.msk.f32.mxu0 %vm17491_vm1, %v17490_v24  ;;  %16075 = vmatpush3.msra.mxu1 %v17821_v16 }
 0x189   : > { %16076 = vmatprep.mubr.msk.f32.mxu1 %vm17491_vm1, %v17490_v24  ;;  %16044 = vmatmul.mubr.f32.vlgmr.msra.gmra.mxu0 %v17704_v54 }
 0x18a   : > { %16057 = vmatprep.subr.mxu0 %v17490_v24  ;;  %16077 = vmatmul.mubr.f32.vlgmr.msra.gmra.mxu1 %v17686_v48  ;;  %v18006_v48 = vand.u32 4294901760, %v17995_v44 }
 0x18b   : > { %16090 = vmatprep.subr.mxu1 %v17490_v24  ;;  %16058 = vmatpush3.msra.mxu0 %v17809_v13 }
 0x18c   : > { %16091 = vmatpush3.msra.mxu1 %v17790_v9  ;;  %16059 = vmatprep.subr.mxu0 %v17490_v24  ;;  %v2170_v51 = vsub.f32 %v17995_v44, %v18006_v48 }
 0x18d   : > { %16092 = vmatprep.subr.mxu1 %v17490_v24  ;;  %16060 = vmatpush3.msra.mxu0 %v17819_v15 }
 0x18e   : > { %16093 = vmatpush3.msra.mxu1 %v17799_v11  ;;  %16061 = vmatprep.subr.mxu0 %v17490_v24  ;;  %v18023_v53 = vand.u32 4294901760, %v2170_v51 }
 0x18f   : > { %16094 = vmatprep.subr.mxu1 %v17490_v24  ;;  %16062 = vmatpush3.msra.mxu0 %v17830_v18 }
 0x190   : > { %16095 = vmatpush3.msra.mxu1 %v17811_v14  ;;  %16063 = vmatprep.subr.mxu0 %v17490_v24 }
 0x191   : > { %16096 = vmatprep.subr.mxu1 %v17490_v24  ;;  %16064 = vmatpush3.msra.mxu0 %v17838_v20 }
 0x192   : > { %16065 = vmatprep.mubr.msk.f32.mxu0 %vm17491_vm1, %v17490_v24  ;;  %16097 = vmatpush3.msra.mxu1 %v17821_v16 }
 0x193   : > { %16098 = vmatprep.mubr.msk.f32.mxu1 %vm17491_vm1, %v17490_v24  ;;  %16066 = vmatmul.mubr.f32.vlgmr.msra.gmra.mxu0 %v17674_v45  ;;  %v17997_v45 = vand.u32 4294901760, %v2041_v41 }
 0x194   : > { %16079 = vmatprep.subr.mxu0 %v17490_v24  ;;  %16099 = vmatmul.mubr.f32.vlgmr.msra.gmra.mxu1 %v17667_v43 }
 0x195   : > { %16080 = vmatpush3.msra.mxu0 %v1660_v17  ;;  %16087 = vmatprep.mubr.msk.f32.mxu0 %vm17491_vm1, %v17490_v24  ;;  %v18009_v49 = vsub.f32 %v2041_v41, %v17997_v45 }
 0x196   : > { %16081 = vmatprep.subr.mxu0 %v17490_v24  ;;  %16112 = vmatprep.subr.mxu1 %v17490_v24 }
 0x197   : > { %16082 = vmatpush3.msra.mxu0 %v1667_v19  ;;  %16120 = vmatprep.mubr.msk.f32.mxu1 %vm17491_vm1, %v17490_v24  ;;  %v18019_v52 = vand.u32 4294901760, %v18009_v49 }
 0x198   : > { %16083 = vmatprep.subr.mxu0 %v17490_v24  ;;  %16113 = vmatpush3.msra.mxu1 %v18001_v46 }
 0x199   : > { %16084 = vmatpush3.msra.mxu0 %v1674_v22  ;;  %16114 = vmatprep.subr.mxu1 %v17490_v24  ;;  %v2177_v54 = vsub.f32 %v18009_v49, %v18019_v52 }
 0x19a   : > { %16085 = vmatprep.subr.mxu0 %v17490_v24 }
 0x19b   : > { %16086 = vmatpush3.msra.mxu0 %v1681_v25  ;;  %v18029_v55 = vand.u32 4294901760, %v2177_v54  ;;  %v15142_v54 = vld [vmem:[%s20079_s3 + $0x2] ss:$0 sm:$0xff] }
 0x19c   : > { %16088 = vmatmul.mubr.f32.vlgmr.msra.gmra.mxu0 %v17667_v43  ;;  %16101 = vmatprep.subr.mxu0 %v17490_v24  ;;  %v17992_v43 = vand.u32 4294901760, %v17980_v39 }
 0x19d   : > { %16109 = vmatprep.mubr.msk.f32.mxu0 %vm17491_vm1, %v17490_v24  ;;  %16102 = vmatpush3.msra.mxu0 %v17961_v33 }
 0x19e   : > { %16103 = vmatprep.subr.mxu0 %v17490_v24  ;;  %v2163_v47 = vsub.f32 %v17980_v39, %v17992_v43 }
 0x19f   : > { %16104 = vmatpush3.msra.mxu0 %v17969_v36 }
 0x1a0   : > { %16105 = vmatprep.subr.mxu0 %v17490_v24  ;;  %v18014_v50 = vand.u32 4294901760, %v2163_v47 }
 0x1a1   : > { %16106 = vmatpush3.msra.mxu0 %v17982_v40 }
 0x1a2   : > { %16107 = vmatprep.subr.mxu0 %v17490_v24  ;;  %16115 = vmatpush3.msra.mxu1 %v18014_v50 }
 0x1a3   : > { %16108 = vmatpush3.msra.mxu0 %v17997_v45  ;;  %16116 = vmatprep.subr.mxu1 %v17490_v24 }
 0x1a4   : > { %16123 = vmatprep.subr.mxu0 %v17490_v24  ;;  %16117 = vmatpush3.msra.mxu1 %v18023_v53 }
 0x1a5   : > { %16118 = vmatprep.subr.mxu1 %v17490_v24 }
 0x1a6   : > { %16119 = vmatpush3.msra.mxu1 %v18029_v55 }
 0x1a7   : > { %16134 = vmatprep.subr.mxu1 %v17490_v24 }
 0x206   : > { %v724_v56 = vpop.f32.mrf.mxu1 }
 0x208   : > { %v15924_v57 = vpop.f32.mrf.mxu1 }
 0x20e   : > { %v881_v58 = vpop.f32.mrf.mxu1 }
 0x20f   : > { %v633_v59 = vpop.f32.mrf.mxu0 }
 0x210   : > { %v15946_v60 = vpop.f32.mrf.mxu1  ;;  %v634_v63 = vadd.f32 %v15130_v62, %v633_v59 }
 0x211   : > { %v15913_v61 = vpop.f32.mrf.mxu0 }
 0x212   : > { %v725_v3 = vadd.f32 %v724_v56, %v634_v63 }
 0x217   : > { %v804_v0 = vpop.f32.mrf.mxu0 }
 0x218   : > { %v1039_v1 = vpop.f32.mrf.mxu1  ;;  %v805_v5 = vadd.f32 %v804_v0, %v725_v3  ;;  %v3028_v3 = vld [vmem:[%s20083_s7 + $0x8] sm:$0xff] }
 0x219   : > { %v15935_v2 = vpop.f32.mrf.mxu0 }
 0x21a   : > { %v15968_v4 = vpop.f32.mrf.mxu1  ;;  %v882_v6 = vadd.f32 %v881_v58, %v805_v5 }
 0x221   : > { %v964_v7 = vpop.f32.mrf.mxu0 }
 0x222   : > { %v965_v8 = vadd.f32 %v964_v7, %v882_v6  ;;  %v1222_v9 = vpop.f32.mrf.mxu1  ;;  %v18191_v6 = vand.u32 4294901760, %v3028_v3  ;;  %v3027_v7 = vld [vmem:[%s20083_s7] sm:$0xff] }
 0x223   : > { %v15957_v10 = vpop.f32.mrf.mxu0 }
 0x224   : > { %v18037_v11 = vadd.f32 %v1039_v1, %v965_v8  ;;  %v15990_v12 = vpop.f32.mrf.mxu1  ;;  %v18203_v10 = vsub.f32 %v3028_v3, %v18191_v6 }
 0x225   : > { %v18205_v12 = vand.u32 4294901760, %v3027_v7 }
 0x226   : > { %v2047_v13 = vsel %vm515_vm0, %v18037_v11, 0 }
 0x227   : > { %v18041_v14 = vand.u32 4294901760, %v2047_v13 }
 0x229   : > { %v2119_v15 = vsub.f32 %v2047_v13, %v18041_v14  ;;  %16121 = vmatmul.mubr.f32.vlgmr.msra.gmra.mxu1 %v18041_v14 }
 0x22a   : > { %16135 = vmatpush3.msra.mxu1 %v17961_v33  ;;  %16142 = vmatprep.mubr.msk.f32.mxu1 %vm17491_vm1, %v17490_v24 }
 0x22b   : > { %v1131_v16 = vpop.f32.mrf.mxu0  ;;  %16136 = vmatprep.subr.mxu1 %v17490_v24  ;;  %v2120_v17 = vand.u32 4294901760, %v2119_v15 }
 0x22c   : > { %v1379_v18 = vpop.f32.mrf.mxu1  ;;  %16137 = vmatpush3.msra.mxu1 %v17969_v36  ;;  %v1132_v25 = vadd.f32 %v15136_v23, %v1131_v16  ;;  %v18214_v16 = vsub.f32 %v3027_v7, %v18205_v12 }
 0x22d   : > { %v15979_v19 = vpop.f32.mrf.mxu0  ;;  %16138 = vmatprep.subr.mxu1 %v17490_v24  ;;  %v2121_v20 = vsub.f32 %v2119_v15, %v2120_v17 }
 0x22e   : > { %v16012_v21 = vpop.f32.mrf.mxu1  ;;  %16139 = vmatpush3.msra.mxu1 %v17982_v40  ;;  %v1223_v29 = vadd.f32 %v1222_v9, %v1132_v25  ;;  %v3168_v19 = vand.u32 4294901760, %v18214_v16 }
 0x22f   : > { %16140 = vmatprep.subr.mxu1 %v17490_v24  ;;  %v2122_v22 = vand.u32 4294901760, %v2121_v20 }
 0x230   : > { %16141 = vmatpush3.msra.mxu1 %v17997_v45  ;;  %v3169_v21 = vsub.f32 %v18214_v16, %v3168_v19 }
 0x231   : > { %16143 = vmatmul.mubr.f32.vlgmr.msra.gmra.mxu1 %v2120_v17  ;;  %16156 = vmatprep.subr.mxu1 %v17490_v24 }
 0x232   : > { %16110 = vmatmul.mubr.f32.vlgmr.msra.gmra.mxu0 %v2122_v22  ;;  %16157 = vmatpush3.msra.mxu1 %v17961_v33  ;;  %v3170_v22 = vand.u32 4294901760, %v3169_v21 }
 0x233   : > { %16124 = vmatpush3.msra.mxu0 %v17967_v35  ;;  %16158 = vmatprep.subr.mxu1 %v17490_v24 }
 0x234   : > { %16125 = vmatprep.subr.mxu0 %v17490_v24  ;;  %16159 = vmatpush3.msra.mxu1 %v17969_v36 }
 0x235   : > { %v1302_v26 = vpop.f32.mrf.mxu0  ;;  %16126 = vmatpush3.msra.mxu0 %v17980_v39  ;;  %16160 = vmatprep.subr.mxu1 %v17490_v24 }
 0x236   : > { %v1537_v27 = vpop.f32.mrf.mxu1  ;;  %16127 = vmatprep.subr.mxu0 %v17490_v24  ;;  %16161 = vmatpush3.msra.mxu1 %v17982_v40  ;;  %v1303_v31 = vadd.f32 %v1302_v26, %v1223_v29 }
 0x237   : > { %v16001_v28 = vpop.f32.mrf.mxu0  ;;  %16128 = vmatpush3.msra.mxu0 %v17995_v44  ;;  %16162 = vmatprep.subr.mxu1 %v17490_v24 }
 0x238   : > { %v16034_v30 = vpop.f32.mrf.mxu1  ;;  %16129 = vmatprep.subr.mxu0 %v17490_v24  ;;  %16131 = vmatprep.mubr.msk.f32.mxu0 %vm17491_vm1, %v17490_v24  ;;  %v1380_v32 = vadd.f32 %v1379_v18, %v1303_v31 }
 0x239   : > { %16130 = vmatpush3.msra.mxu0 %v18009_v49  ;;  %16163 = vmatpush3.msra.mxu1 %v17997_v45 }
 0x23a   : > { %16164 = vmatprep.mubr.msk.f32.mxu1 %vm17491_vm1, %v17490_v24  ;;  %16132 = vmatmul.mubr.f32.vlgmr.msra.gmra.mxu0 %v2119_v15  ;;  %v3161_v15 = vand.u32 4294901760, %v18203_v10 }
 0x23b   : > { %16145 = vmatprep.subr.mxu0 %v17490_v24  ;;  %16165 = vmatmul.mubr.f32.vlgmr.msra.gmra.mxu1 %v18041_v14 }
 0x23c   : > { %16178 = vmatprep.subr.mxu1 %v17490_v24  ;;  %16146 = vmatpush3.msra.mxu0 %v17977_v38  ;;  %v3162_v18 = vsub.f32 %v18203_v10, %v3161_v15 }
 0x23d   : > { %16179 = vmatpush3.msra.mxu1 %v18001_v46  ;;  %16147 = vmatprep.subr.mxu0 %v17490_v24 }
 0x23e   : > { %16180 = vmatprep.subr.mxu1 %v17490_v24  ;;  %16148 = vmatpush3.msra.mxu0 %v17992_v43  ;;  %v3163_v20 = vand.u32 4294901760, %v3162_v18 }
 0x23f   : > { %v1462_v34 = vpop.f32.mrf.mxu0  ;;  %16181 = vmatpush3.msra.mxu1 %v18014_v50  ;;  %16149 = vmatprep.subr.mxu0 %v17490_v24 }
 0x240   : > { %v1463_v37 = vadd.f32 %v1462_v34, %v1380_v32  ;;  %v1720_v41 = vpop.f32.mrf.mxu1  ;;  %16182 = vmatprep.subr.mxu1 %v17490_v24  ;;  %16150 = vmatpush3.msra.mxu0 %v18006_v48 }
 0x241   : > { %v16023_v42 = vpop.f32.mrf.mxu0  ;;  %16183 = vmatpush3.msra.mxu1 %v18023_v53  ;;  %16151 = vmatprep.subr.mxu0 %v17490_v24 }
 0x242   : > { %v18090_v46 = vadd.f32 %v1537_v27, %v1463_v37  ;;  %v16056_v47 = vpop.f32.mrf.mxu1  ;;  %16184 = vmatprep.subr.mxu1 %v17490_v24  ;;  %16152 = vmatpush3.msra.mxu0 %v18019_v52 }
 0x243   : > { %16153 = vmatprep.mubr.msk.f32.mxu0 %vm17491_vm1, %v17490_v24  ;;  %16185 = vmatpush3.msra.mxu1 %v18029_v55 }
 0x244   : > { %v2538_v50 = vsel %vm515_vm0, %v18090_v46, 0  ;;  %16154 = vmatmul.mubr.f32.vlgmr.msra.gmra.mxu0 %v18041_v14  ;;  %16167 = vmatprep.subr.mxu0 %v17490_v24 }
 0x245   : > { %v18101_v51 = vand.u32 4294901760, %v2538_v50  ;;  %16186 = vmatprep.mubr.msk.f32.mxu1 %vm17491_vm1, %v17490_v24  ;;  %16200 = vmatprep.subr.mxu1 %v17490_v24 }
 0x246   : > { %16168 = vmatpush3.msra.mxu0 %v17961_v33  ;;  %16175 = vmatprep.mubr.msk.f32.mxu0 %vm17491_vm1, %v17490_v24 }
 0x247   : > { %v2610_v53 = vsub.f32 %v2538_v50, %v18101_v51  ;;  %16187 = vmatmul.mubr.f32.vlgmr.msra.gmra.mxu1 %v18101_v51  ;;  %16169 = vmatprep.subr.mxu0 %v17490_v24 }
 0x248   : > { %16201 = vmatpush3.msra.mxu1 %v17961_v33  ;;  %16170 = vmatpush3.msra.mxu0 %v17969_v36 }
 0x249   : > { %v1629_v55 = vpop.f32.mrf.mxu0  ;;  %16202 = vmatprep.subr.mxu1 %v17490_v24  ;;  %16171 = vmatprep.subr.mxu0 %v17490_v24  ;;  %v2611_v56 = vand.u32 4294901760, %v2610_v53 }
 0x24a   : > { %v1630_v57 = vadd.f32 %v15142_v54, %v1629_v55  ;;  %v1877_v58 = vpop.f32.mrf.mxu1  ;;  %16203 = vmatpush3.msra.mxu1 %v17969_v36  ;;  %16172 = vmatpush3.msra.mxu0 %v17982_v40 }
 0x24b   : > { %v16045_v59 = vpop.f32.mrf.mxu0  ;;  %16204 = vmatprep.subr.mxu1 %v17490_v24  ;;  %16173 = vmatprep.subr.mxu0 %v17490_v24  ;;  %v2612_v60 = vsub.f32 %v2610_v53, %v2611_v56 }
 0x24c   : > { %v16078_v61 = vpop.f32.mrf.mxu1  ;;  %16205 = vmatpush3.msra.mxu1 %v17982_v40  ;;  %16174 = vmatpush3.msra.mxu0 %v17997_v45  ;;  %v1721_v62 = vadd.f32 %v1720_v41, %v1630_v57 }
 0x24d   : > { %16206 = vmatprep.subr.mxu1 %v17490_v24  ;;  %16208 = vmatprep.mubr.msk.f32.mxu1 %vm17491_vm1, %v17490_v24  ;;  %v2613_v63 = vand.u32 4294901760, %v2612_v60 }
 0x24e   : > { %16207 = vmatpush3.msra.mxu1 %v17997_v45  ;;  %16189 = vmatprep.subr.mxu0 %v17490_v24 }
 0x24f   : > { %16209 = vmatmul.mubr.f32.vlgmr.msra.gmra.mxu1 %v2611_v56  ;;  %16222 = vmatprep.subr.mxu1 %v17490_v24 }
 0x250   : > { %16176 = vmatmul.mubr.f32.vlgmr.msra.gmra.mxu0 %v2613_v63  ;;  %16223 = vmatpush3.msra.mxu1 %v17961_v33 }
 0x251   : > { %16190 = vmatpush3.msra.mxu0 %v17967_v35  ;;  %16224 = vmatprep.subr.mxu1 %v17490_v24 }
 0x252   : > { %16191 = vmatprep.subr.mxu0 %v17490_v24  ;;  %16225 = vmatpush3.msra.mxu1 %v17969_v36 }
 0x253   : > { %v1800_v0 = vpop.f32.mrf.mxu0  ;;  %16192 = vmatpush3.msra.mxu0 %v17980_v39  ;;  %16226 = vmatprep.subr.mxu1 %v17490_v24 }
 0x254   : > { %v1801_v1 = vadd.f32 %v1800_v0, %v1721_v62  ;;  %v2035_v2 = vpop.f32.mrf.mxu1  ;;  %16193 = vmatprep.subr.mxu0 %v17490_v24  ;;  %16227 = vmatpush3.msra.mxu1 %v17982_v40  ;;  %v15147_v62 = vld [vmem:[%s20083_s7 + $0x98] sm:$0xff] }
 0x255   : > { %v16067_v33 = vpop.f32.mrf.mxu0  ;;  %16194 = vmatpush3.msra.mxu0 %v17995_v44  ;;  %16228 = vmatprep.subr.mxu1 %v17490_v24 }
 0x256   : > { %v16100_v35 = vpop.f32.mrf.mxu1  ;;  %16195 = vmatprep.subr.mxu0 %v17490_v24  ;;  %16197 = vmatprep.mubr.msk.f32.mxu0 %vm17491_vm1, %v17490_v24  ;;  %v1878_v36 = vadd.f32 %v1877_v58, %v1801_v1  ;;  %v15146_v1 = vld [vmem:[%s20083_s7 + $0x90] sm:$0xff]  ;;  %v18255_v33 = vand.u32 4294901760, %v15147_v62 }
 0x257   : > { %16196 = vmatpush3.msra.mxu0 %v18009_v49  ;;  %16229 = vmatpush3.msra.mxu1 %v17997_v45 }
 0x258   : > { %16230 = vmatprep.mubr.msk.f32.mxu1 %vm17491_vm1, %v17490_v24  ;;  %16198 = vmatmul.mubr.f32.vlgmr.msra.gmra.mxu0 %v2610_v53  ;;  %v18237_v53 = vld [vmem:[%s20081_s5] sm:$0xff]  ;;  %v18277_v3 = vsub.f32 %v15147_v62, %v18255_v33 }
 0x259   : > { %16211 = vmatprep.subr.mxu0 %v17490_v24  ;;  %16231 = vmatmul.mubr.f32.vlgmr.msra.gmra.mxu1 %v18101_v51 }
 0x25a   : > { %16212 = vmatpush3.msra.mxu0 %v17977_v38  ;;  %16219 = vmatprep.mubr.msk.f32.mxu0 %vm17491_vm1, %v17490_v24  ;;  %v3648_v18 = vand.u32 4294901760, %v18277_v3 }
 0x25b   : > { %16213 = vmatprep.subr.mxu0 %v17490_v24  ;;  %16244 = vmatprep.subr.mxu1 %v17490_v24 }
 0x25c   : > { %v1960_v39 = vpop.f32.mrf.mxu0  ;;  %16214 = vmatpush3.msra.mxu0 %v17992_v43  ;;  %16252 = vmatprep.mubr.msk.f32.mxu1 %vm17491_vm1, %v17490_v24  ;;  %v3030_v43 = vld [vmem:[%s20083_s7 + $0x18] sm:$0xff] }
 0x25d   : > { %v1961_v40 = vadd.f32 %v1960_v39, %v1878_v36  ;;  %16215 = vmatprep.subr.mxu0 %v17490_v24  ;;  %v18172_v45 = vand.u32 4294901760, %v3030_v43  ;;  %v15145_v36 = vld [vmem:[%s20083_s7 + $0x88] sm:$0xff] }
 0x25e   : > { %v16089_v44 = vpop.f32.mrf.mxu0  ;;  %16216 = vmatpush3.msra.mxu0 %v18006_v48  ;;  %v3029_v48 = vld [vmem:[%s20083_s7 + $0x10] sm:$0xff]  ;;  %v18279_v7 = vand.u32 4294901760, %v15145_v36 }
 0x25f   : > { %v18161_v38 = vadd.f32 %v2035_v2, %v1961_v40  ;;  %16217 = vmatprep.subr.mxu0 %v17490_v24  ;;  %v18178_v49 = vsub.f32 %v3030_v43, %v18172_v45  ;;  %v18267_v44 = vand.u32 4294901760, %v15146_v1  ;;  %v15144_v43 = vld [vmem:[%s20083_s7 + $0x80] sm:$0xff] }
 0x260   : > { %16218 = vmatpush3.msra.mxu0 %v18019_v52  ;;  %v18180_v52 = vand.u32 4294901760, %v3029_v48 }
 0x261   : > { %16220 = vmatmul.mubr.f32.vlgmr.msra.gmra.mxu0 %v18101_v51  ;;  %16233 = vmatprep.subr.mxu0 %v17490_v24  ;;  %v3147_v4 = vand.u32 4294901760, %v18178_v49  ;;  %v18232_v51 = vld [vmem:[%s20080_s4] sm:$0xff] }
 0x262   : > { %16241 = vmatprep.mubr.msk.f32.mxu0 %vm17491_vm1, %v17490_v24  ;;  %16234 = vmatpush3.msra.mxu0 %v18172_v45  ;;  %v18189_v5 = vsub.f32 %v3029_v48, %v18180_v52  ;;  %v2045_v57 = vmul.f32 %v18232_v51, %v18037_v11 }
 0x263   : > { %16235 = vmatprep.subr.mxu0 %v17490_v24  ;;  %v3148_v8 = vsub.f32 %v18178_v49, %v3147_v4 }
 0x264   : > { %16236 = vmatpush3.msra.mxu0 %v18180_v52  ;;  %v3154_v9 = vand.u32 4294901760, %v18189_v5 }
 0x265   : > { %16237 = vmatprep.subr.mxu0 %v17490_v24  ;;  %v3149_v13 = vand.u32 4294901760, %v3148_v8 }
 0x266   : > { %16238 = vmatpush3.msra.mxu0 %v18191_v6  ;;  %v3155_v14 = vsub.f32 %v18189_v5, %v3154_v9 }
 0x267   : > { %16239 = vmatprep.subr.mxu0 %v17490_v24  ;;  %16245 = vmatpush3.msra.mxu1 %v3149_v13  ;;  %v18286_v13 = vsub.f32 %v15146_v1, %v18267_v44 }
 0x268   : > { %16240 = vmatpush3.msra.mxu0 %v18205_v12  ;;  %v3156_v17 = vand.u32 4294901760, %v3155_v14  ;;  %16246 = vmatprep.subr.mxu1 %v17490_v24  ;;  %v18288_v14 = vand.u32 4294901760, %v15144_v43 }
 0x269   : > { %16255 = vmatprep.subr.mxu0 %v17490_v24 }
 0x26a   : > { %16247 = vmatpush3.msra.mxu1 %v3156_v17 }
 0x26b   : > { %16248 = vmatprep.subr.mxu1 %v17490_v24 }
 0x26c   : > { %16249 = vmatpush3.msra.mxu1 %v3163_v20  ;;  %v18295_v20 = vsub.f32 %v15145_v36, %v18279_v7 }
 0x26d   : > { %16250 = vmatprep.subr.mxu1 %v17490_v24 }
 0x26e   : > { %16251 = vmatpush3.msra.mxu1 %v3170_v22 }
 0x26f   : > { %16266 = vmatprep.subr.mxu1 %v17490_v24 }
 0x2e9   : > { %v2215_v23 = vpop.f32.mrf.mxu1 }
 0x2eb   : > { %v16122_v25 = vpop.f32.mrf.mxu1 }
 0x2ec   : > { %v3655_v25 = vand.u32 4294901760, %v18286_v13 }
 0x2f1   : > { %v2372_v26 = vpop.f32.mrf.mxu1 }
 0x2f2   : > { %v2124_v27 = vpop.f32.mrf.mxu0 }
 0x2f3   : > { %v16144_v28 = vpop.f32.mrf.mxu1  ;;  %v2216_v34 = vadd.f32 %v2215_v23, %v2124_v27 }
 0x2f4   : > { %v16111_v29 = vpop.f32.mrf.mxu0 }
 0x2f5   : > { %v3662_v29 = vand.u32 4294901760, %v18295_v20 }
 0x2fa   : > { %v2295_v30 = vpop.f32.mrf.mxu0 }
 0x2fb   : > { %v2530_v31 = vpop.f32.mrf.mxu1  ;;  %v2296_v41 = vadd.f32 %v2295_v30, %v2216_v34 }
 0x2fc   : > { %v16133_v32 = vpop.f32.mrf.mxu0 }
 0x2fd   : > { %v16166_v37 = vpop.f32.mrf.mxu1  ;;  %v2373_v42 = vadd.f32 %v2372_v26, %v2296_v41  ;;  %v18303_v26 = vsub.f32 %v15144_v43, %v18288_v14  ;;  %v3663_v32 = vsub.f32 %v18295_v20, %v3662_v29  ;;  %v4041_v43 = vsel %vm515_vm0, %v18161_v38, 0 }
 0x2ff   : > { %v3669_v30 = vand.u32 4294901760, %v18303_v26 }
 0x304   : > { %v2455_v47 = vpop.f32.mrf.mxu0 }
 0x305   : > { %v2456_v50 = vadd.f32 %v2455_v47, %v2373_v42 }
 0x306   : > { %v16155_v54 = vpop.f32.mrf.mxu0 }
 0x307   : > { %v2531_v55 = vadd.f32 %v2530_v31, %v2456_v50  ;;  %v2706_v56 = vpop.f32.mrf.mxu1  ;;  %v3664_v50 = vand.u32 4294901760, %v3663_v32  ;;  %v2536_v54 = vmul.f32 %v18232_v51, %v18090_v46  ;;  %v15151_v51 = vld [vmem:[%s20083_s7 + $0x108] sm:$0xff] }
 0x309   : > { %v2534_v58 = vmul.f32 %v2531_v55, %v18237_v53  ;;  %v16188_v59 = vpop.f32.mrf.mxu1 }
 0x30a   : > { %v18404_v59 = vand.u32 4294901760, %v15151_v51 }
 0x30b   : > { %v2535_v60 = vadd.f32 %v2534_v58, %v2045_v57  ;;  %v15150_v57 = vld [vmem:[%s20083_s7 + $0x100] sm:$0xff] }
 0x30c   : > { %v18416_v62 = vand.u32 4294901760, %v15150_v57  ;;  %v18425_v1 = vsub.f32 %v15151_v51, %v18404_v59 }
 0x30d   : > { %v3039_v61 = vsel %vm515_vm0, %v2535_v60, 0 }
 0x30e   : > { %v18246_v63 = vand.u32 4294901760, %v3039_v61  ;;  %v4163_v36 = vand.u32 4294901760, %v18425_v1 }
 0x30f   : > { %v2863_v0 = vpop.f32.mrf.mxu1 }
 0x310   : > { %v18252_v2 = vsub.f32 %v3039_v61, %v18246_v63  ;;  %v2615_v11 = vpop.f32.mrf.mxu0  ;;  %16253 = vmatmul.mubr.f32.vlgmr.msra.gmra.mxu1 %v18246_v63 }
 0x311   : > { %v16210_v35 = vpop.f32.mrf.mxu1  ;;  %16267 = vmatpush3.msra.mxu1 %v18172_v45  ;;  %16274 = vmatprep.mubr.msk.f32.mxu1 %vm17491_vm1, %v17490_v24  ;;  %v2707_v22 = vadd.f32 %v2706_v56, %v2615_v11 }
 0x312   : > { %v16177_v39 = vpop.f32.mrf.mxu0  ;;  %16268 = vmatprep.subr.mxu1 %v17490_v24  ;;  %v18265_v40 = vand.u32 4294901760, %v18252_v2  ;;  %v18433_v35 = vsub.f32 %v15150_v57, %v18416_v62 }
 0x313   : > { %16269 = vmatpush3.msra.mxu1 %v18180_v52 }
 0x314   : > { %16270 = vmatprep.subr.mxu1 %v17490_v24  ;;  %v3113_v48 = vsub.f32 %v18252_v2, %v18265_v40 }
 0x315   : > { %16271 = vmatpush3.msra.mxu1 %v18191_v6 }
 0x316   : > { %16272 = vmatprep.subr.mxu1 %v17490_v24  ;;  %v18283_v8 = vand.u32 4294901760, %v3113_v48 }
 0x317   : > { %16273 = vmatpush3.msra.mxu1 %v18205_v12 }
 0x318   : > { %v2786_v17 = vpop.f32.mrf.mxu0  ;;  %16275 = vmatmul.mubr.f32.vlgmr.msra.gmra.mxu1 %v18265_v40  ;;  %16288 = vmatprep.subr.mxu1 %v17490_v24 }
 0x319   : > { %v3021_v21 = vpop.f32.mrf.mxu1  ;;  %16242 = vmatmul.mubr.f32.vlgmr.msra.gmra.mxu0 %v18283_v8  ;;  %16289 = vmatpush3.msra.mxu1 %v18172_v45  ;;  %v2787_v28 = vadd.f32 %v2786_v17, %v2707_v22  ;;  %v3649_v45 = vsub.f32 %v18277_v3, %v3648_v18 }
 0x31a   : > { %v16199_v23 = vpop.f32.mrf.mxu0  ;;  %16256 = vmatpush3.msra.mxu0 %v18178_v49  ;;  %16290 = vmatprep.subr.mxu1 %v17490_v24 }
 0x31b   : > { %v16232_v27 = vpop.f32.mrf.mxu1  ;;  %16257 = vmatprep.subr.mxu0 %v17490_v24  ;;  %16291 = vmatpush3.msra.mxu1 %v18180_v52  ;;  %v3656_v52 = vsub.f32 %v18286_v13, %v3655_v25  ;;  %v2864_v31 = vadd.f32 %v2863_v0, %v2787_v28 }
 0x31c   : > { %16258 = vmatpush3.msra.mxu0 %v18189_v5  ;;  %16292 = vmatprep.subr.mxu1 %v17490_v24 }
 0x31d   : > { %16259 = vmatprep.subr.mxu0 %v17490_v24  ;;  %16293 = vmatpush3.msra.mxu1 %v18191_v6  ;;  %v3650_v6 = vand.u32 4294901760, %v3649_v45  ;;  %v3657_v41 = vand.u32 4294901760, %v3656_v52 }
 0x31e   : > { %16260 = vmatpush3.msra.mxu0 %v18203_v10  ;;  %16294 = vmatprep.subr.mxu1 %v17490_v24 }
 0x31f   : > { %16261 = vmatprep.subr.mxu0 %v17490_v24  ;;  %16263 = vmatprep.mubr.msk.f32.mxu0 %vm17491_vm1, %v17490_v24 }
 0x320   : > { %16262 = vmatpush3.msra.mxu0 %v18214_v16  ;;  %16295 = vmatpush3.msra.mxu1 %v18205_v12  ;;  %v3670_v12 = vsub.f32 %v18303_v26, %v3669_v30 }
 0x321   : > { %v2946_v34 = vpop.f32.mrf.mxu0  ;;  %16296 = vmatprep.mubr.msk.f32.mxu1 %vm17491_vm1, %v17490_v24  ;;  %16264 = vmatmul.mubr.f32.vlgmr.msra.gmra.mxu0 %v18252_v2 }
 0x322   : > { %v2947_v37 = vadd.f32 %v2946_v34, %v2864_v31  ;;  %16277 = vmatprep.subr.mxu0 %v17490_v24  ;;  %16297 = vmatmul.mubr.f32.vlgmr.msra.gmra.mxu1 %v18246_v63  ;;  %v3671_v49 = vand.u32 4294901760, %v3670_v12 }
 0x323   : > { %v16221_v42 = vpop.f32.mrf.mxu0  ;;  %16310 = vmatprep.subr.mxu1 %v17490_v24  ;;  %16278 = vmatpush3.msra.mxu0 %v3147_v4 }
 0x324   : > { %v3022_v47 = vadd.f32 %v3021_v21, %v2947_v37  ;;  %16311 = vmatpush3.msra.mxu1 %v3650_v6  ;;  %16279 = vmatprep.subr.mxu0 %v17490_v24  ;;  %v15143_v6 = vld [vmem:[%s20084_s8] ss:$0 sm:$0xff] }
 0x325   : > { %16312 = vmatprep.subr.mxu1 %v17490_v24  ;;  %16280 = vmatpush3.msra.mxu0 %v3154_v9  ;;  %v15153_v9 = vld [vmem:[%s20083_s7 + $0x118] sm:$0xff] }
 0x326   : > { %v3025_v55 = vmul.f32 %v3022_v47, %v18237_v53  ;;  %16313 = vmatpush3.msra.mxu1 %v3657_v41  ;;  %16281 = vmatprep.subr.mxu0 %v17490_v24  ;;  %v18378_v16 = vand.u32 4294901760, %v15153_v9 }
 0x327   : > { %16314 = vmatprep.subr.mxu1 %v17490_v24  ;;  %16282 = vmatpush3.msra.mxu0 %v3161_v15  ;;  %v15152_v15 = vld [vmem:[%s20083_s7 + $0x110] sm:$0xff] }
 0x328   : > { %v3026_v4 = vadd.f32 %v3025_v55, %v2536_v54  ;;  %16315 = vmatpush3.msra.mxu1 %v3664_v50  ;;  %16283 = vmatprep.subr.mxu0 %v17490_v24  ;;  %v18390_v53 = vand.u32 4294901760, %v15152_v15  ;;  %v18402_v58 = vsub.f32 %v15153_v9, %v18378_v16 }
 0x329   : > { %16316 = vmatprep.subr.mxu1 %v17490_v24  ;;  %16284 = vmatpush3.msra.mxu0 %v3168_v19 }
 0x32a   : > { %v3540_v46 = vsel %vm515_vm0, %v3026_v4, 0  ;;  %16285 = vmatprep.mubr.msk.f32.mxu0 %vm17491_vm1, %v17490_v24  ;;  %16317 = vmatpush3.msra.mxu1 %v3671_v49  ;;  %v18414_v61 = vsub.f32 %v15152_v15, %v18390_v53  ;;  %v4149_v0 = vand.u32 4294901760, %v18402_v58  ;;  %v15149_v15 = vld [vmem:[%s20084_s8 + $0x4] ss:$0 sm:$0xff] }
 0x32b   : > { %v18358_v5 = vand.u32 4294901760, %v3540_v46  ;;  %16286 = vmatmul.mubr.f32.vlgmr.msra.gmra.mxu0 %v18246_v63  ;;  %16299 = vmatprep.subr.mxu0 %v17490_v24 }
 0x32c   : > { %16318 = vmatprep.mubr.msk.f32.mxu1 %vm17491_vm1, %v17490_v24  ;;  %16332 = vmatprep.subr.mxu1 %v17490_v24  ;;  %v4156_v11 = vand.u32 4294901760, %v18414_v61 }
 0x32d   : > { %v18369_v10 = vsub.f32 %v3540_v46, %v18358_v5  ;;  %16300 = vmatpush3.msra.mxu0 %v18255_v33  ;;  %16319 = vmatmul.mubr.f32.vlgmr.msra.gmra.mxu1 %v18358_v5 }
 0x32e   : > { %16333 = vmatpush3.msra.mxu1 %v18255_v33  ;;  %16301 = vmatprep.subr.mxu0 %v17490_v24  ;;  %v4157_v39 = vsub.f32 %v18414_v61, %v4156_v11 }
 0x32f   : > { %16334 = vmatprep.subr.mxu1 %v17490_v24  ;;  %16302 = vmatpush3.msra.mxu0 %v18267_v44  ;;  %v18383_v19 = vand.u32 4294901760, %v18369_v10 }
 0x330   : > { %16335 = vmatpush3.msra.mxu1 %v18267_v44  ;;  %16303 = vmatprep.subr.mxu0 %v17490_v24  ;;  %v4158_v17 = vand.u32 4294901760, %v4157_v39 }
 0x331   : > { %16336 = vmatprep.subr.mxu1 %v17490_v24  ;;  %16304 = vmatpush3.msra.mxu0 %v18279_v7  ;;  %v3614_v56 = vsub.f32 %v18369_v10, %v18383_v19 }
 0x332   : > { %16337 = vmatpush3.msra.mxu1 %v18279_v7  ;;  %16305 = vmatprep.subr.mxu0 %v17490_v24 }
 0x333   : > { %16338 = vmatprep.subr.mxu1 %v17490_v24  ;;  %16306 = vmatpush3.msra.mxu0 %v18288_v14  ;;  %v18408_v60 = vand.u32 4294901760, %v3614_v56 }
 0x334   : > { %16339 = vmatpush3.msra.mxu1 %v18288_v14  ;;  %16340 = vmatprep.mubr.msk.f32.mxu1 %vm17491_vm1, %v17490_v24 }
 0x335   : > { %16307 = vmatprep.mubr.msk.f32.mxu0 %vm17491_vm1, %v17490_v24  ;;  %16321 = vmatprep.subr.mxu0 %v17490_v24 }
 0x336   : > { %16341 = vmatmul.mubr.f32.vlgmr.msra.gmra.mxu1 %v18383_v19  ;;  %16354 = vmatprep.subr.mxu1 %v17490_v24 }
 0x337   : > { %16308 = vmatmul.mubr.f32.vlgmr.msra.gmra.mxu0 %v18408_v60  ;;  %16355 = vmatpush3.msra.mxu1 %v18255_v33  ;;  %v4150_v33 = vsub.f32 %v18402_v58, %v4149_v0 }
 0x338   : > { %16322 = vmatpush3.msra.mxu0 %v18277_v3  ;;  %16356 = vmatprep.subr.mxu1 %v17490_v24 }
 0x339   : > { %16323 = vmatprep.subr.mxu0 %v17490_v24  ;;  %16357 = vmatpush3.msra.mxu1 %v18267_v44  ;;  %v4170_v44 = vand.u32 4294901760, %v18433_v35  ;;  %v4151_v48 = vand.u32 4294901760, %v4150_v33 }
 0x33a   : > { %16324 = vmatpush3.msra.mxu0 %v18286_v13  ;;  %16358 = vmatprep.subr.mxu1 %v17490_v24 }
 0x33b   : > { %16325 = vmatprep.subr.mxu0 %v17490_v24  ;;  %16359 = vmatpush3.msra.mxu1 %v18279_v7  ;;  %v4164_v7 = vsub.f32 %v18425_v1, %v4163_v36  ;;  %v4171_v38 = vsub.f32 %v18433_v35, %v4170_v44 }
 0x33c   : > { %16326 = vmatpush3.msra.mxu0 %v18295_v20  ;;  %16360 = vmatprep.subr.mxu1 %v17490_v24 }
 0x33d   : > { %16327 = vmatprep.subr.mxu0 %v17490_v24  ;;  %16329 = vmatprep.mubr.msk.f32.mxu0 %vm17491_vm1, %v17490_v24  ;;  %v4165_v21 = vand.u32 4294901760, %v4164_v7  ;;  %v4172_v22 = vand.u32 4294901760, %v4171_v38 }
 0x33e   : > { %16328 = vmatpush3.msra.mxu0 %v18303_v26  ;;  %16361 = vmatpush3.msra.mxu1 %v18288_v14  ;;  %v18469_v14 = vand.u32 4294901760, %v4041_v43 }
 0x33f   : > { %16362 = vmatprep.mubr.msk.f32.mxu1 %vm17491_vm1, %v17490_v24  ;;  %16330 = vmatmul.mubr.f32.vlgmr.msra.gmra.mxu0 %v18369_v10 }
 0x340   : > { %16343 = vmatprep.subr.mxu0 %v17490_v24  ;;  %16363 = vmatmul.mubr.f32.vlgmr.msra.gmra.mxu1 %v18358_v5  ;;  %v18480_v23 = vsub.f32 %v4041_v43, %v18469_v14 }
 0x341   : > { %16376 = vmatprep.subr.mxu1 %v17490_v24  ;;  %16344 = vmatpush3.msra.mxu0 %v3648_v18 }
 0x342   : > { %16377 = vmatpush3.msra.mxu1 %v4151_v48  ;;  %16345 = vmatprep.subr.mxu0 %v17490_v24  ;;  %v18495_v3 = vand.u32 4294901760, %v18480_v23 }
 0x343   : > { %16378 = vmatprep.subr.mxu1 %v17490_v24  ;;  %16346 = vmatpush3.msra.mxu0 %v3655_v25 }
 0x344   : > { %16379 = vmatpush3.msra.mxu1 %v4158_v17  ;;  %16347 = vmatprep.subr.mxu0 %v17490_v24  ;;  %v4115_v13 = vsub.f32 %v18480_v23, %v18495_v3 }
 0x345   : > { %16380 = vmatprep.subr.mxu1 %v17490_v24  ;;  %16348 = vmatpush3.msra.mxu0 %v3662_v29 }
 0x346   : > { %16381 = vmatpush3.msra.mxu1 %v4165_v21  ;;  %16349 = vmatprep.subr.mxu0 %v17490_v24  ;;  %v18515_v18 = vand.u32 4294901760, %v4115_v13 }
 0x347   : > { %16382 = vmatprep.subr.mxu1 %v17490_v24  ;;  %16350 = vmatpush3.msra.mxu0 %v3669_v30 }
 0x348   : > { %16351 = vmatprep.mubr.msk.f32.mxu0 %vm17491_vm1, %v17490_v24  ;;  %16383 = vmatpush3.msra.mxu1 %v4172_v22 }
 0x349   : > { %16384 = vmatprep.mubr.msk.f32.mxu1 %vm17491_vm1, %v17490_v24  ;;  %16352 = vmatmul.mubr.f32.vlgmr.msra.gmra.mxu0 %v18358_v5 }
 0x34a   : > { %16365 = vmatprep.subr.mxu0 %v17490_v24  ;;  %16385 = vmatmul.mubr.f32.vlgmr.msra.gmra.mxu1 %v18469_v14 }
 0x34b   : > { %16398 = vmatprep.subr.mxu1 %v17490_v24  ;;  %16366 = vmatpush3.msra.mxu0 %v18378_v16 }
 0x34c   : > { %16399 = vmatpush3.msra.mxu1 %v18378_v16  ;;  %16367 = vmatprep.subr.mxu0 %v17490_v24 }
 0x34d   : > { %16400 = vmatprep.subr.mxu1 %v17490_v24  ;;  %16368 = vmatpush3.msra.mxu0 %v18390_v53 }
 0x34e   : > { %16401 = vmatpush3.msra.mxu1 %v18390_v53  ;;  %16369 = vmatprep.subr.mxu0 %v17490_v24 }
 0x34f   : > { %16402 = vmatprep.subr.mxu1 %v17490_v24  ;;  %16370 = vmatpush3.msra.mxu0 %v18404_v59 }
 0x350   : > { %16403 = vmatpush3.msra.mxu1 %v18404_v59  ;;  %16371 = vmatprep.subr.mxu0 %v17490_v24 }
 0x351   : > { %16404 = vmatprep.subr.mxu1 %v17490_v24  ;;  %16372 = vmatpush3.msra.mxu0 %v18416_v62 }
 0x352   : > { %16373 = vmatprep.mubr.msk.f32.mxu0 %vm17491_vm1, %v17490_v24  ;;  %16405 = vmatpush3.msra.mxu1 %v18416_v62 }
 0x353   : > { %16406 = vmatprep.mubr.msk.f32.mxu1 %vm17491_vm1, %v17490_v24  ;;  %16374 = vmatmul.mubr.f32.vlgmr.msra.gmra.mxu0 %v18515_v18 }
 0x354   : > { %16387 = vmatprep.subr.mxu0 %v17490_v24  ;;  %16407 = vmatmul.mubr.f32.vlgmr.msra.gmra.mxu1 %v18495_v3 }
 0x355   : > { %16420 = vmatprep.subr.mxu1 %v17490_v24  ;;  %16388 = vmatpush3.msra.mxu0 %v18402_v58 }
 0x356   : > { %16421 = vmatpush3.msra.mxu1 %v18378_v16  ;;  %16389 = vmatprep.subr.mxu0 %v17490_v24 }
 0x357   : > { %16422 = vmatprep.subr.mxu1 %v17490_v24  ;;  %16390 = vmatpush3.msra.mxu0 %v18414_v61 }
 0x358   : > { %16423 = vmatpush3.msra.mxu1 %v18390_v53  ;;  %16391 = vmatprep.subr.mxu0 %v17490_v24 }
 0x359   : > { %16424 = vmatprep.subr.mxu1 %v17490_v24  ;;  %16392 = vmatpush3.msra.mxu0 %v18425_v1 }
 0x35a   : > { %16425 = vmatpush3.msra.mxu1 %v18404_v59  ;;  %16393 = vmatprep.subr.mxu0 %v17490_v24 }
 0x35b   : > { %16426 = vmatprep.subr.mxu1 %v17490_v24  ;;  %16394 = vmatpush3.msra.mxu0 %v18433_v35 }
 0x35c   : > { %16395 = vmatprep.mubr.msk.f32.mxu0 %vm17491_vm1, %v17490_v24  ;;  %16427 = vmatpush3.msra.mxu1 %v18416_v62 }
 0x35d   : > { %16428 = vmatprep.mubr.msk.f32.mxu1 %vm17491_vm1, %v17490_v24  ;;  %16396 = vmatmul.mubr.f32.vlgmr.msra.gmra.mxu0 %v18480_v23 }
 0x35e   : > { %16409 = vmatprep.subr.mxu0 %v17490_v24  ;;  %16429 = vmatmul.mubr.f32.vlgmr.msra.gmra.mxu1 %v18469_v14 }
 0x35f   : > { %16410 = vmatpush3.msra.mxu0 %v4149_v0  ;;  %16417 = vmatprep.mubr.msk.f32.mxu0 %vm17491_vm1, %v17490_v24 }
 0x360   : > { %16411 = vmatprep.subr.mxu0 %v17490_v24  ;;  %16436 = vmatprep.subr.mxu1 %v17490_v24 }
 0x361   : > { %16412 = vmatpush3.msra.mxu0 %v4156_v11  ;;  %16438 = vmatprep.mubr.msk.f32.mxu1 %vm17491_vm1, %v17490_v24 }
 0x362   : > { %16413 = vmatprep.subr.mxu0 %v17490_v24 }
 0x363   : > { %16414 = vmatpush3.msra.mxu0 %v4163_v36 }
 0x364   : > { %16415 = vmatprep.subr.mxu0 %v17490_v24 }
 0x365   : > { %16416 = vmatpush3.msra.mxu0 %v4170_v44 }
 0x366   : > { %16418 = vmatmul.mubr.f32.vlgmr.msra.gmra.mxu0 %v18469_v14  ;;  %16431 = vmatprep.subr.mxu0 %v17490_v24 }
 0x367   : > { %16433 = vmatprep.mubr.msk.f32.mxu0 %vm17491_vm1, %v17490_v24 }
 0x3d0   : > { %v3207_v20 = vpop.f32.mrf.mxu1 }
 0x3d2   : > { %v16254_v25 = vpop.f32.mrf.mxu1 }
 0x3d8   : > { %v3364_v26 = vpop.f32.mrf.mxu1 }
 0x3d9   : > { %v3116_v27 = vpop.f32.mrf.mxu0 }
 0x3da   : > { %v16276_v28 = vpop.f32.mrf.mxu1  ;;  %v3117_v32 = vadd.f32 %v15143_v6, %v3116_v27 }
 0x3db   : > { %v16243_v45 = vpop.f32.mrf.mxu0 }
 0x3dc   : > { %v3208_v12 = vadd.f32 %v3207_v20, %v3117_v32  ;;  %v15155_v45 = vld [vmem:[%s20084_s8 + $0x8] ss:$0 sm:$0xff] }
 0x3e1   : > { %v3287_v29 = vpop.f32.mrf.mxu0 }
 0x3e2   : > { %v3522_v52 = vpop.f32.mrf.mxu1  ;;  %v3288_v47 = vadd.f32 %v3287_v29, %v3208_v12 }
 0x3e3   : > { %v16265_v30 = vpop.f32.mrf.mxu0 }
 0x3e4   : > { %v16298_v31 = vpop.f32.mrf.mxu1  ;;  %v3365_v50 = vadd.f32 %v3364_v26, %v3288_v47 }
 0x3eb   : > { %v3447_v34 = vpop.f32.mrf.mxu0 }
 0x3ec   : > { %v3448_v55 = vadd.f32 %v3447_v34, %v3365_v50 }
 0x3ed   : > { %v3708_v37 = vpop.f32.mrf.mxu1  ;;  %v16287_v41 = vpop.f32.mrf.mxu0 }
 0x3ee   : > { %v3523_v9 = vadd.f32 %v3522_v52, %v3448_v55 }
 0x3ef   : > { %v16320_v42 = vpop.f32.mrf.mxu1 }
 0x3f0   : > { %v4530_v51 = vsel %vm4528_vm2, %v3523_v9, 0 }
 0x3f1   : > { %v4601_v58 = vand.u32 4294901760, %v4530_v51 }
 0x3f3   : > { %v4602_v0 = vsub.f32 %v4530_v51, %v4601_v58 }
 0x3f5   : > { %v4603_v36 = vand.u32 4294901760, %v4602_v0 }
 0x3f6   : > { %v3865_v54 = vpop.f32.mrf.mxu1 }
 0x3f7   : > { %v3617_v49 = vpop.f32.mrf.mxu0  ;;  %v4604_v7 = vsub.f32 %v4602_v0, %v4603_v36 }
 0x3f8   : > { %v16342_v4 = vpop.f32.mrf.mxu1  ;;  %v3618_v16 = vadd.f32 %v15149_v15, %v3617_v49 }
 0x3f9   : > { %v16309_v46 = vpop.f32.mrf.mxu0  ;;  %v4605_v21 = vand.u32 4294901760, %v4604_v7 }
 0x3fa   : > { %v3709_v59 = vadd.f32 %v3708_v37, %v3618_v16 }
 0x3ff   : > { %v3788_v53 = vpop.f32.mrf.mxu0 }
 0x400   : > { %v4023_v56 = vpop.f32.mrf.mxu1  ;;  %v3789_v62 = vadd.f32 %v3788_v53, %v3709_v59 }
 0x401   : > { %v16331_v57 = vpop.f32.mrf.mxu0 }
 0x402   : > { %v16364_v61 = vpop.f32.mrf.mxu1  ;;  %v3866_v1 = vadd.f32 %v3865_v54, %v3789_v62 }
 0x409   : > { %v3948_v11 = vpop.f32.mrf.mxu0 }
 0x40a   : > { %v3949_v35 = vadd.f32 %v3948_v11, %v3866_v1  ;;  %v4209_v33 = vpop.f32.mrf.mxu1 }
 0x40b   : > { %v16353_v39 = vpop.f32.mrf.mxu0 }
 0x40c   : > { %v4024_v44 = vadd.f32 %v4023_v56, %v3949_v35  ;;  %v16386_v43 = vpop.f32.mrf.mxu1 }
 0x40e   : > { %v4533_v48 = vsel %vm4528_vm2, %v4024_v44, 0 }
 0x40f   : > { %v4566_v17 = vand.u32 4294901760, %v4533_v48 }
 0x411   : > { %v4643_v38 = vsub.f32 %v4533_v48, %v4566_v17  ;;  %16432 = vmatpush3.xpose.msra.mxu0 %v4566_v17 }
 0x412   : > { %16441 = vmatprep.subr.mxu0 %v17490_v24 }
 0x413   : > { %v4118_v22 = vpop.f32.mrf.mxu0  ;;  %v4644_v13 = vand.u32 4294901760, %v4643_v38 }
 0x414   : > { %v4366_v20 = vpop.f32.mrf.mxu1  ;;  %16434 = vmatmul.mubr.f32.vlgmr.msra.gmra.mxu0 %v4605_v21  ;;  %v4119_v29 = vadd.f32 %v15155_v45, %v4118_v22  ;;  %v15159_v21 = vld [vmem:[%s20083_s7 + $0x38] sm:$0xff]  ;;  %v15158_v22 = vld [vmem:[%s20083_s7 + $0x30] sm:$0xff] }
 0x415   : > { %v16375_v25 = vpop.f32.mrf.mxu0  ;;  %16442 = vmatpush3.xpose.msra.mxu0 %v4643_v38  ;;  %16443 = vmatprep.mubr.msk.f32.mxu0 %vm17491_vm1, %v17490_v24  ;;  %v4645_v26 = vsub.f32 %v4643_v38, %v4644_v13 }
 0x416   : > { %v16408_v27 = vpop.f32.mrf.mxu1  ;;  %16451 = vmatprep.subr.mxu0 %v17490_v24  ;;  %v4210_v31 = vadd.f32 %v4209_v33, %v4119_v29  ;;  %v18621_v25 = vand.u32 4294901760, %v15158_v22 }
 0x417   : > { %v4646_v28 = vand.u32 4294901760, %v4645_v26  ;;  %v15156_v26 = vld [vmem:[%s20083_s7 + $0x20] sm:$0xff] }
 0x418   : > { %16444 = vmatmul.mubr.f32.vlgmr.msra.gmra.mxu0 %v4602_v0 }
 0x419   : > { %16437 = vmatpush3.xpose.msra.mxu1 %v4646_v28  ;;  %16452 = vmatpush3.xpose.msra.mxu0 %v4644_v13  ;;  %v18616_v13 = vand.u32 4294901760, %v15159_v21 }
 0x41a   : > { %16453 = vmatprep.mubr.msk.f32.mxu0 %vm17491_vm1, %v17490_v24  ;;  %16446 = vmatprep.subr.mxu1 %v17490_v24 }
 0x41b   : > { %16461 = vmatprep.subr.mxu0 %v17490_v24  ;;  %v18627_v27 = vsub.f32 %v15159_v21, %v18616_v13 }
 0x41c   : > { %16439 = vmatmul.mubr.f32.vlgmr.msra.gmra.mxu1 %v4601_v58  ;;  %16454 = vmatmul.mubr.f32.vlgmr.msra.gmra.mxu0 %v4601_v58 }
 0x41d   : > { %v4289_v52 = vpop.f32.mrf.mxu0  ;;  %16447 = vmatpush3.xpose.msra.mxu1 %v4566_v17  ;;  %16448 = vmatprep.mubr.msk.f32.mxu1 %vm17491_vm1, %v17490_v24 }
 0x41e   : > { %v4524_v30 = vpop.f32.mrf.mxu1  ;;  %16456 = vmatprep.subr.mxu1 %v17490_v24  ;;  %16463 = vmatprep.mubr.msk.f32.mxu0 %vm17491_vm1, %v17490_v24  ;;  %v4290_v34 = vadd.f32 %v4289_v52, %v4210_v31  ;;  %v18632_v52 = vsub.f32 %v15158_v22, %v18621_v25 }
 0x41f   : > { %v16397_v6 = vpop.f32.mrf.mxu0 }
 0x420   : > { %v16430_v32 = vpop.f32.mrf.mxu1  ;;  %16449 = vmatmul.mubr.f32.vlgmr.msra.gmra.mxu1 %v4603_v36  ;;  %v4367_v37 = vadd.f32 %v4366_v20, %v4290_v34  ;;  %v15157_v20 = vld [vmem:[%s20083_s7 + $0x28] sm:$0xff]  ;;  %v5562_v6 = vand.u32 4294901760, %v18627_v27 }
 0x421   : > { %16457 = vmatpush3.xpose.msra.mxu1 %v4566_v17  ;;  %16458 = vmatprep.mubr.msk.f32.mxu1 %vm17491_vm1, %v17490_v24  ;;  %v18629_v28 = vand.u32 4294901760, %v15157_v20 }
 0x422   : > { %16466 = vmatprep.subr.mxu1 %v17490_v24 }
 0x423   : > { %v18639_v32 = vsub.f32 %v15157_v20, %v18629_v28 }
 0x424   : > { %16459 = vmatmul.mubr.f32.vlgmr.msra.gmra.mxu1 %v4601_v58 }
 0x425   : > { %16468 = vmatprep.mubr.msk.f32.mxu1 %vm17491_vm1, %v17490_v24 }
 0x426   : > { %v4449_v41 = vpop.f32.mrf.mxu0 }
 0x427   : > { %v4450_v12 = vadd.f32 %v4449_v41, %v4367_v37  ;;  %v5569_v37 = vand.u32 4294901760, %v18632_v52 }
 0x428   : > { %v16419_v42 = vpop.f32.mrf.mxu0 }
 0x429   : > { %v4525_v47 = vadd.f32 %v4524_v30, %v4450_v12  ;;  %v18634_v30 = vand.u32 4294901760, %v15156_v26  ;;  %v5563_v42 = vsub.f32 %v18627_v27, %v5562_v6 }
 0x42b   : > { %v18596_v50 = vand.u32 4294901760, %v4525_v47  ;;  %v18643_v41 = vsub.f32 %v15156_v26, %v18634_v30  ;;  %v15171_v26 = vld [vmem:[%s20083_s7 + $0x138] sm:$0xff] }
 0x42d   : > { %v18599_v54 = vsub.f32 %v4525_v47, %v18596_v50  ;;  %16462 = vmatpush3.msra.mxu0 %v18596_v50  ;;  %v5576_v47 = vand.u32 4294901760, %v18639_v32 }
 0x42e   : > { %16471 = vmatprep.subr.mxu0 %v17490_v24 }
 0x42f   : > { %v5105_v55 = vand.u32 4294901760, %v18599_v54 }
 0x431   : > { %v5106_v49 = vsub.f32 %v18599_v54, %v5105_v55 }
 0x433   : > { %v5107_v4 = vand.u32 4294901760, %v5106_v49 }
 0x435   : > { %16467 = vmatpush3.msra.mxu1 %v5107_v4  ;;  %v5570_v4 = vsub.f32 %v18632_v52, %v5569_v37 }
 0x436   : > { %16476 = vmatprep.subr.mxu1 %v17490_v24 }
 0x4d4   : > { %v4607_v46 = vpop.f32.mrf.mxu0 }
 0x4d6   : > { %v16435_v9 = vpop.f32.mrf.mxu0 }
 0x4d8   : > { %v4757_v15 = vpop.f32.mrf.mxu0 }
 0x4da   : > { %v16445_v16 = vpop.f32.mrf.mxu0 }
 0x4db   : > { %v5577_v16 = vsub.f32 %v18639_v32, %v5576_v47 }
 0x4dc   : > { %v4683_v51 = vpop.f32.mrf.mxu1  ;;  %v4905_v53 = vpop.f32.mrf.mxu0 }
 0x4dd   : > { %v4684_v56 = vadd.f32 %v4683_v51, %v4607_v46  ;;  %v5583_v46 = vand.u32 4294901760, %v18643_v41 }
 0x4de   : > { %v16440_v57 = vpop.f32.mrf.mxu1  ;;  %v16455_v58 = vpop.f32.mrf.mxu0 }
 0x4df   : > { %v4758_v59 = vadd.f32 %v4757_v15, %v4684_v56  ;;  %v5564_v15 = vand.u32 4294901760, %v5563_v42  ;;  %v5584_v56 = vsub.f32 %v18643_v41, %v5583_v46  ;;  %v15165_v58 = vld [vmem:[%s20083_s7 + $0xb8] sm:$0xff] }
 0x4e0   : > { %v4831_v61 = vpop.f32.mrf.mxu1 }
 0x4e1   : > { %v4832_v62 = vadd.f32 %v4831_v61, %v4758_v59  ;;  %v5585_v57 = vand.u32 4294901760, %v5584_v56  ;;  %v15163_v59 = vld [vmem:[%s20083_s7 + $0xa8] sm:$0xff] }
 0x4e2   : > { %v16450_v0 = vpop.f32.mrf.mxu1 }
 0x4e3   : > { %v4906_v1 = vadd.f32 %v4905_v53, %v4832_v62  ;;  %v5571_v53 = vand.u32 4294901760, %v5570_v4  ;;  %v18709_v0 = vand.u32 4294901760, %v15163_v59 }
 0x4e4   : > { %v4977_v11 = vpop.f32.mrf.mxu1 }
 0x4e5   : > { %v4978_v35 = vadd.f32 %v4977_v11, %v4906_v1  ;;  %v15162_v1 = vld [vmem:[%s20083_s7 + $0xa0] sm:$0xff] }
 0x4e6   : > { %v16460_v33 = vpop.f32.mrf.mxu1 }
 0x4e7   : > { %v4981_v36 = vmul.f32 0.35355338, %v4978_v35  ;;  %v18725_v35 = vand.u32 4294901760, %v15162_v1 }
 0x4e9   : > { %v4982_v39 = vsel %vm4528_vm2, %v4981_v36, -inf }
 0x4ea   : > { %4983 = vmax.xlane.f32.xlu1 %v4982_v39 }
 0x573   : > { %v4984_v44 = vpop.xlane.xlu1 %4983 }
 0x574   : > { %v4985_v43 = vsub.f32 %v4981_v36, %v4984_v44  ;;  %v18731_v36 = vsub.f32 %v15163_v59, %v18709_v0  ;;  %v18741_v44 = vsub.f32 %v15162_v1, %v18725_v35 }
 0x576   : > { %v4986_v48 = vmul.f32 1.442695, %v4985_v43 }
 0x578   : > { %17463 = vpow2.f32 %v4986_v48  ;;  %v6074_v48 = vand.u32 4294901760, %v18731_v36 }
 0x57a   : > { %v6075_v21 = vsub.f32 %v18731_v36, %v6074_v48 }
 0x57c   : > { %v6076_v20 = vand.u32 4294901760, %v6075_v21 }
 0x585   : > { %v17464_v7 = vpop.eup %17463 }
 0x586   : > { %v4988_v17 = vsel %vm4528_vm2, %v17464_v7, 0.0 }
 0x587   : > { %4989 = vadd.xlane.f32.xlu1 %v4988_v17  ;;  %v6081_v17 = vand.u32 4294901760, %v18741_v44 }
 0x610   : > { %v4990_v38 = vpop.xlane.xlu1 %4989 }
 0x611   : > { %17465 = vrcp.f32 %v4990_v38 }
 0x61e   : > { %v17466_v45 = vpop.eup %17465 }
 0x61f   : > { %v4992_v29 = vmul.f32 %v17466_v45, %v17464_v7  ;;  %v15169_v45 = vld [vmem:[%s20083_s7 + $0x128] sm:$0xff] }
 0x621   : > { %v4994_v31 = vsel %vm4528_vm2, %v4992_v29, 0 }
 0x622   : > { %v5062_v34 = vand.u32 4294901760, %v4994_v31 }
 0x624   : > { %v5063_v12 = vsub.f32 %v4994_v31, %v5062_v34  ;;  %16469 = vmatmul.mubr.f32.vlgmr.msra.gmra.mxu1 %v5062_v34  ;;  %v15168_v31 = vld [vmem:[%s20083_s7 + $0x120] sm:$0xff] }
 0x625   : > { %16477 = vmatpush3.msra.mxu1 %v18596_v50  ;;  %16478 = vmatprep.mubr.msk.f32.mxu1 %vm17491_vm1, %v17490_v24 }
 0x626   : > { %16486 = vmatprep.subr.mxu1 %v17490_v24  ;;  %v5064_v49 = vand.u32 4294901760, %v5063_v12 }
 0x628   : > { %16479 = vmatmul.mubr.f32.vlgmr.msra.gmra.mxu1 %v5064_v49  ;;  %v5065_v9 = vsub.f32 %v5063_v12, %v5064_v49 }
 0x629   : > { %16487 = vmatpush3.msra.mxu1 %v18596_v50  ;;  %16488 = vmatprep.mubr.msk.f32.mxu1 %vm17491_vm1, %v17490_v24  ;;  %v5578_v50 = vand.u32 4294901760, %v5577_v16 }
 0x62a   : > { %16502 = vmatprep.subr.mxu1 %v17490_v24  ;;  %v5066_v51 = vand.u32 4294901760, %v5065_v9 }
 0x62c   : > { %16464 = vmatmul.mubr.f32.vlgmr.msra.gmra.mxu0 %v5066_v51  ;;  %16489 = vmatmul.mubr.f32.vlgmr.msra.gmra.mxu1 %v5062_v34 }
 0x62d   : > { %16472 = vmatpush3.msra.mxu0 %v18599_v54  ;;  %16503 = vmatpush3.msra.mxu1 %v5564_v15  ;;  %v15164_v54 = vld [vmem:[%s20083_s7 + $0xb0] sm:$0xff] }
 0x62e   : > { %16504 = vmatprep.subr.mxu1 %v17490_v24  ;;  %16473 = vmatprep.mubr.msk.f32.mxu0 %vm17491_vm1, %v17490_v24  ;;  %v18700_v61 = vand.u32 4294901760, %v15164_v54 }
 0x62f   : > { %16505 = vmatpush3.msra.mxu1 %v5571_v53  ;;  %16481 = vmatprep.subr.mxu0 %v17490_v24 }
 0x630   : > { %16506 = vmatprep.subr.mxu1 %v17490_v24  ;;  %16474 = vmatmul.mubr.f32.vlgmr.msra.gmra.mxu0 %v5063_v12  ;;  %v18720_v11 = vsub.f32 %v15164_v54, %v18700_v61 }
 0x631   : > { %16482 = vmatpush3.msra.mxu0 %v5105_v55  ;;  %16507 = vmatpush3.msra.mxu1 %v5578_v50  ;;  %v18691_v55 = vand.u32 4294901760, %v15165_v58 }
 0x632   : > { %16508 = vmatprep.subr.mxu1 %v17490_v24  ;;  %16510 = vmatprep.mubr.msk.f32.mxu1 %vm17491_vm1, %v17490_v24  ;;  %v6067_v39 = vand.u32 4294901760, %v18720_v11 }
 0x633   : > { %16509 = vmatpush3.msra.mxu1 %v5585_v57  ;;  %16483 = vmatprep.mubr.msk.f32.mxu0 %vm17491_vm1, %v17490_v24  ;;  %v18707_v62 = vsub.f32 %v15165_v58, %v18691_v55 }
 0x634   : > { %16491 = vmatprep.subr.mxu0 %v17490_v24  ;;  %16511 = vmatmul.mubr.f32.vlgmr.msra.gmra.mxu1 %v18246_v63  ;;  %v6068_v7 = vsub.f32 %v18720_v11, %v6067_v39 }
 0x635   : > { %16524 = vmatprep.subr.mxu1 %v17490_v24  ;;  %16484 = vmatmul.mubr.f32.vlgmr.msra.gmra.mxu0 %v5062_v34  ;;  %v6060_v33 = vand.u32 4294901760, %v18707_v62 }
 0x636   : > { %16492 = vmatpush3.msra.mxu0 %v18616_v13  ;;  %16525 = vmatpush3.msra.mxu1 %v18616_v13  ;;  %v6069_v22 = vand.u32 4294901760, %v6068_v7 }
 0x637   : > { %16493 = vmatprep.subr.mxu0 %v17490_v24  ;;  %16526 = vmatprep.subr.mxu1 %v17490_v24  ;;  %v6061_v43 = vsub.f32 %v18707_v62, %v6060_v33 }
 0x638   : > { %16494 = vmatpush3.msra.mxu0 %v18621_v25  ;;  %16527 = vmatpush3.msra.mxu1 %v18621_v25 }
 0x639   : > { %16495 = vmatprep.subr.mxu0 %v17490_v24  ;;  %16528 = vmatprep.subr.mxu1 %v17490_v24  ;;  %v6062_v38 = vand.u32 4294901760, %v6061_v43 }
 0x63a   : > { %16496 = vmatpush3.msra.mxu0 %v18629_v28  ;;  %16529 = vmatpush3.msra.mxu1 %v18629_v28 }
 0x63b   : > { %16497 = vmatprep.subr.mxu0 %v17490_v24  ;;  %16530 = vmatprep.subr.mxu1 %v17490_v24 }
 0x63c   : > { %16498 = vmatpush3.msra.mxu0 %v18634_v30  ;;  %16499 = vmatprep.mubr.msk.f32.mxu0 %vm17491_vm1, %v17490_v24 }
 0x63d   : > { %16531 = vmatpush3.msra.mxu1 %v18634_v30  ;;  %16532 = vmatprep.mubr.msk.f32.mxu1 %vm17491_vm1, %v17490_v24 }
 0x63e   : > { %16500 = vmatmul.mubr.f32.vlgmr.msra.gmra.mxu0 %v18283_v8  ;;  %16513 = vmatprep.subr.mxu0 %v17490_v24 }
 0x63f   : > { %16533 = vmatmul.mubr.f32.vlgmr.msra.gmra.mxu1 %v18265_v40  ;;  %16546 = vmatprep.subr.mxu1 %v17490_v24 }
 0x640   : > { %16514 = vmatpush3.msra.mxu0 %v18627_v27  ;;  %16547 = vmatpush3.msra.mxu1 %v18616_v13  ;;  %v6082_v13 = vsub.f32 %v18741_v44, %v6081_v17  ;;  %v15170_v27 = vld [vmem:[%s20083_s7 + $0x130] sm:$0xff] }
 0x641   : > { %16515 = vmatprep.subr.mxu0 %v17490_v24  ;;  %16548 = vmatprep.subr.mxu1 %v17490_v24  ;;  %v18814_v29 = vand.u32 4294901760, %v15170_v27 }
 0x642   : > { %16516 = vmatpush3.msra.mxu0 %v18632_v52  ;;  %16549 = vmatpush3.msra.mxu1 %v18621_v25  ;;  %v6083_v25 = vand.u32 4294901760, %v6082_v13 }
 0x643   : > { %16517 = vmatprep.subr.mxu0 %v17490_v24  ;;  %16550 = vmatprep.subr.mxu1 %v17490_v24 }
 0x644   : > { %16518 = vmatpush3.msra.mxu0 %v18639_v32  ;;  %16551 = vmatpush3.msra.mxu1 %v18629_v28  ;;  %v18805_v28 = vand.u32 4294901760, %v15171_v26  ;;  %v18839_v32 = vand.u32 4294901760, %v15168_v31 }
 0x645   : > { %16519 = vmatprep.subr.mxu0 %v17490_v24  ;;  %16552 = vmatprep.subr.mxu1 %v17490_v24 }
 0x646   : > { %16520 = vmatpush3.msra.mxu0 %v18643_v41  ;;  %16521 = vmatprep.mubr.msk.f32.mxu0 %vm17491_vm1, %v17490_v24  ;;  %v18821_v52 = vsub.f32 %v15171_v26, %v18805_v28  ;;  %v18855_v12 = vsub.f32 %v15168_v31, %v18839_v32  ;;  %v15161_v26 = vld [vmem:[%s20084_s8 + $0x1] ss:$0 sm:$0xff] }
 0x647   : > { %16553 = vmatpush3.msra.mxu1 %v18634_v30  ;;  %16554 = vmatprep.mubr.msk.f32.mxu1 %vm17491_vm1, %v17490_v24  ;;  %v18823_v30 = vand.u32 4294901760, %v15169_v45 }
 0x648   : > { %16522 = vmatmul.mubr.f32.vlgmr.msra.gmra.mxu0 %v18252_v2  ;;  %16535 = vmatprep.subr.mxu0 %v17490_v24  ;;  %v6558_v34 = vand.u32 4294901760, %v18821_v52  ;;  %v6579_v4 = vand.u32 4294901760, %v18855_v12 }
 0x649   : > { %16555 = vmatmul.mubr.f32.vlgmr.msra.gmra.mxu1 %v18246_v63  ;;  %16568 = vmatprep.subr.mxu1 %v17490_v24 }
 0x64a   : > { %16536 = vmatpush3.msra.mxu0 %v5562_v6  ;;  %16569 = vmatpush3.msra.mxu1 %v6062_v38  ;;  %v18834_v6 = vsub.f32 %v15170_v27, %v18814_v29  ;;  %v6559_v42 = vsub.f32 %v18821_v52, %v6558_v34  ;;  %v6580_v16 = vsub.f32 %v18855_v12, %v6579_v4 }
 0x64b   : > { %16537 = vmatprep.subr.mxu0 %v17490_v24  ;;  %16570 = vmatprep.subr.mxu1 %v17490_v24 }
 0x64c   : > { %16538 = vmatpush3.msra.mxu0 %v5569_v37  ;;  %16571 = vmatpush3.msra.mxu1 %v6069_v22  ;;  %v18845_v37 = vsub.f32 %v15169_v45, %v18823_v30  ;;  %v6565_v41 = vand.u32 4294901760, %v18834_v6  ;;  %v6581_v53 = vand.u32 4294901760, %v6580_v16 }
 0x64d   : > { %16539 = vmatprep.subr.mxu0 %v17490_v24  ;;  %16572 = vmatprep.subr.mxu1 %v17490_v24 }
 0x64e   : > { %16540 = vmatpush3.msra.mxu0 %v5576_v47  ;;  %16573 = vmatpush3.msra.mxu1 %v6076_v20  ;;  %v6572_v47 = vand.u32 4294901760, %v18845_v37  ;;  %v6566_v49 = vsub.f32 %v18834_v6, %v6565_v41 }
 0x64f   : > { %16541 = vmatprep.subr.mxu0 %v17490_v24  ;;  %16574 = vmatprep.subr.mxu1 %v17490_v24 }
 0x650   : > { %16542 = vmatpush3.msra.mxu0 %v5583_v46  ;;  %16543 = vmatprep.mubr.msk.f32.mxu0 %vm17491_vm1, %v17490_v24  ;;  %v6560_v46 = vand.u32 4294901760, %v6559_v42  ;;  %v6573_v9 = vsub.f32 %v18845_v37, %v6572_v47  ;;  %v6567_v15 = vand.u32 4294901760, %v6566_v49 }
 0x651   : > { %16575 = vmatpush3.msra.mxu1 %v6083_v25  ;;  %16576 = vmatprep.mubr.msk.f32.mxu1 %vm17491_vm1, %v17490_v24 }
 0x652   : > { %16544 = vmatmul.mubr.f32.vlgmr.msra.gmra.mxu0 %v18246_v63  ;;  %16557 = vmatprep.subr.mxu0 %v17490_v24  ;;  %v6574_v51 = vand.u32 4294901760, %v6573_v9 }
 0x653   : > { %16577 = vmatmul.mubr.f32.vlgmr.msra.gmra.mxu1 %v18358_v5  ;;  %16590 = vmatprep.subr.mxu1 %v17490_v24 }
 0x654   : > { %16558 = vmatpush3.msra.mxu0 %v18691_v55  ;;  %16591 = vmatpush3.msra.mxu1 %v18691_v55 }
 0x655   : > { %16559 = vmatprep.subr.mxu0 %v17490_v24  ;;  %16592 = vmatprep.subr.mxu1 %v17490_v24 }
 0x656   : > { %16560 = vmatpush3.msra.mxu0 %v18700_v61  ;;  %16593 = vmatpush3.msra.mxu1 %v18700_v61 }
 0x657   : > { %16561 = vmatprep.subr.mxu0 %v17490_v24  ;;  %16594 = vmatprep.subr.mxu1 %v17490_v24 }
 0x658   : > { %16562 = vmatpush3.msra.mxu0 %v18709_v0  ;;  %16595 = vmatpush3.msra.mxu1 %v18709_v0 }
 0x659   : > { %16563 = vmatprep.subr.mxu0 %v17490_v24  ;;  %16596 = vmatprep.subr.mxu1 %v17490_v24 }
 0x65a   : > { %16564 = vmatpush3.msra.mxu0 %v18725_v35  ;;  %16565 = vmatprep.mubr.msk.f32.mxu0 %vm17491_vm1, %v17490_v24 }
 0x65b   : > { %16597 = vmatpush3.msra.mxu1 %v18725_v35  ;;  %16598 = vmatprep.mubr.msk.f32.mxu1 %vm17491_vm1, %v17490_v24 }
 0x65c   : > { %16566 = vmatmul.mubr.f32.vlgmr.msra.gmra.mxu0 %v18408_v60  ;;  %16579 = vmatprep.subr.mxu0 %v17490_v24 }
 0x65d   : > { %16599 = vmatmul.mubr.f32.vlgmr.msra.gmra.mxu1 %v18383_v19  ;;  %16612 = vmatprep.subr.mxu1 %v17490_v24 }
 0x65e   : > { %16580 = vmatpush3.msra.mxu0 %v18707_v62  ;;  %16613 = vmatpush3.msra.mxu1 %v18691_v55 }
 0x65f   : > { %16581 = vmatprep.subr.mxu0 %v17490_v24  ;;  %16614 = vmatprep.subr.mxu1 %v17490_v24 }
 0x660   : > { %16582 = vmatpush3.msra.mxu0 %v18720_v11  ;;  %16615 = vmatpush3.msra.mxu1 %v18700_v61 }
 0x661   : > { %16583 = vmatprep.subr.mxu0 %v17490_v24  ;;  %16616 = vmatprep.subr.mxu1 %v17490_v24 }
 0x662   : > { %16584 = vmatpush3.msra.mxu0 %v18731_v36  ;;  %16617 = vmatpush3.msra.mxu1 %v18709_v0 }
 0x663   : > { %16585 = vmatprep.subr.mxu0 %v17490_v24  ;;  %16618 = vmatprep.subr.mxu1 %v17490_v24 }
 0x664   : > { %16586 = vmatpush3.msra.mxu0 %v18741_v44  ;;  %16587 = vmatprep.mubr.msk.f32.mxu0 %vm17491_vm1, %v17490_v24 }
 0x665   : > { %16619 = vmatpush3.msra.mxu1 %v18725_v35  ;;  %16620 = vmatprep.mubr.msk.f32.mxu1 %vm17491_vm1, %v17490_v24 }
 0x666   : > { %16588 = vmatmul.mubr.f32.vlgmr.msra.gmra.mxu0 %v18369_v10  ;;  %16601 = vmatprep.subr.mxu0 %v17490_v24 }
 0x667   : > { %16621 = vmatmul.mubr.f32.vlgmr.msra.gmra.mxu1 %v18358_v5  ;;  %16634 = vmatprep.subr.mxu1 %v17490_v24 }
 0x668   : > { %16602 = vmatpush3.msra.mxu0 %v6060_v33  ;;  %16635 = vmatpush3.msra.mxu1 %v6560_v46 }
 0x669   : > { %16603 = vmatprep.subr.mxu0 %v17490_v24  ;;  %16636 = vmatprep.subr.mxu1 %v17490_v24 }
 0x66a   : > { %16604 = vmatpush3.msra.mxu0 %v6067_v39  ;;  %16637 = vmatpush3.msra.mxu1 %v6567_v15 }
 0x66b   : > { %16605 = vmatprep.subr.mxu0 %v17490_v24  ;;  %16638 = vmatprep.subr.mxu1 %v17490_v24 }
 0x66c   : > { %16606 = vmatpush3.msra.mxu0 %v6074_v48  ;;  %16639 = vmatpush3.msra.mxu1 %v6574_v51 }
 0x66d   : > { %16607 = vmatprep.subr.mxu0 %v17490_v24  ;;  %16640 = vmatprep.subr.mxu1 %v17490_v24 }
 0x66e   : > { %16608 = vmatpush3.msra.mxu0 %v6081_v17  ;;  %16609 = vmatprep.mubr.msk.f32.mxu0 %vm17491_vm1, %v17490_v24 }
 0x66f   : > { %16641 = vmatpush3.msra.mxu1 %v6581_v53  ;;  %16642 = vmatprep.mubr.msk.f32.mxu1 %vm17491_vm1, %v17490_v24 }
 0x670   : > { %16610 = vmatmul.mubr.f32.vlgmr.msra.gmra.mxu0 %v18358_v5  ;;  %16623 = vmatprep.subr.mxu0 %v17490_v24 }
 0x671   : > { %16643 = vmatmul.mubr.f32.vlgmr.msra.gmra.mxu1 %v18469_v14  ;;  %16656 = vmatprep.subr.mxu1 %v17490_v24 }
 0x672   : > { %16624 = vmatpush3.msra.mxu0 %v18805_v28  ;;  %16657 = vmatpush3.msra.mxu1 %v18805_v28 }
 0x673   : > { %16625 = vmatprep.subr.mxu0 %v17490_v24  ;;  %16658 = vmatprep.subr.mxu1 %v17490_v24 }
 0x674   : > { %16626 = vmatpush3.msra.mxu0 %v18814_v29  ;;  %16659 = vmatpush3.msra.mxu1 %v18814_v29 }
 0x675   : > { %16627 = vmatprep.subr.mxu0 %v17490_v24  ;;  %16660 = vmatprep.subr.mxu1 %v17490_v24 }
 0x676   : > { %16628 = vmatpush3.msra.mxu0 %v18823_v30  ;;  %16661 = vmatpush3.msra.mxu1 %v18823_v30 }
 0x677   : > { %16629 = vmatprep.subr.mxu0 %v17490_v24  ;;  %16662 = vmatprep.subr.mxu1 %v17490_v24 }
 0x678   : > { %16630 = vmatpush3.msra.mxu0 %v18839_v32  ;;  %16631 = vmatprep.mubr.msk.f32.mxu0 %vm17491_vm1, %v17490_v24 }
 0x679   : > { %16663 = vmatpush3.msra.mxu1 %v18839_v32  ;;  %16664 = vmatprep.mubr.msk.f32.mxu1 %vm17491_vm1, %v17490_v24 }
 0x67a   : > { %16632 = vmatmul.mubr.f32.vlgmr.msra.gmra.mxu0 %v18515_v18  ;;  %16645 = vmatprep.subr.mxu0 %v17490_v24 }
 0x67b   : > { %16665 = vmatmul.mubr.f32.vlgmr.msra.gmra.mxu1 %v18495_v3  ;;  %16678 = vmatprep.subr.mxu1 %v17490_v24 }
 0x67c   : > { %16646 = vmatpush3.msra.mxu0 %v18821_v52  ;;  %16679 = vmatpush3.msra.mxu1 %v18805_v28 }
 0x67d   : > { %16647 = vmatprep.subr.mxu0 %v17490_v24  ;;  %16680 = vmatprep.subr.mxu1 %v17490_v24 }
 0x67e   : > { %16648 = vmatpush3.msra.mxu0 %v18834_v6  ;;  %16681 = vmatpush3.msra.mxu1 %v18814_v29 }
 0x67f   : > { %16649 = vmatprep.subr.mxu0 %v17490_v24  ;;  %16682 = vmatprep.subr.mxu1 %v17490_v24 }
 0x680   : > { %16650 = vmatpush3.msra.mxu0 %v18845_v37  ;;  %16683 = vmatpush3.msra.mxu1 %v18823_v30 }
 0x681   : > { %16651 = vmatprep.subr.mxu0 %v17490_v24  ;;  %16684 = vmatprep.subr.mxu1 %v17490_v24 }
 0x682   : > { %16652 = vmatpush3.msra.mxu0 %v18855_v12  ;;  %16653 = vmatprep.mubr.msk.f32.mxu0 %vm17491_vm1, %v17490_v24 }
 0x683   : > { %16685 = vmatpush3.msra.mxu1 %v18839_v32  ;;  %16686 = vmatprep.mubr.msk.f32.mxu1 %vm17491_vm1, %v17490_v24 }
 0x684   : > { %16654 = vmatmul.mubr.f32.vlgmr.msra.gmra.mxu0 %v18480_v23  ;;  %16667 = vmatprep.subr.mxu0 %v17490_v24 }
 0x685   : > { %16687 = vmatmul.mubr.f32.vlgmr.msra.gmra.mxu1 %v18469_v14  ;;  %16668 = vmatpush3.msra.mxu0 %v6558_v34 }
 0x686   : > { %16669 = vmatprep.subr.mxu0 %v17490_v24  ;;  %16675 = vmatprep.mubr.msk.f32.mxu0 %vm17491_vm1, %v17490_v24 }
 0x687   : > { %16670 = vmatpush3.msra.mxu0 %v6565_v41  ;;  %16694 = vmatprep.subr.mxu1 %v17490_v24 }
 0x688   : > { %16671 = vmatprep.subr.mxu0 %v17490_v24  ;;  %16696 = vmatprep.mubr.msk.f32.mxu1 %vm17491_vm1, %v17490_v24 }
 0x689   : > { %16672 = vmatpush3.msra.mxu0 %v6572_v47  ;;  %v15167_v47 = vld [vmem:[%s20084_s8 + $0x5] ss:$0 sm:$0xff] }
 0x68a   : > { %16673 = vmatprep.subr.mxu0 %v17490_v24 }
 0x68b   : > { %16674 = vmatpush3.msra.mxu0 %v6579_v4 }
 0x68c   : > { %16676 = vmatmul.mubr.f32.vlgmr.msra.gmra.mxu0 %v18469_v14  ;;  %16689 = vmatprep.subr.mxu0 %v17490_v24 }
 0x68d   : > { %16691 = vmatprep.mubr.msk.f32.mxu0 %vm17491_vm1, %v17490_v24 }
 0x6e4   : > { %v5144_v56 = vpop.f32.mrf.mxu1 }
 0x6e6   : > { %v16470_v50 = vpop.f32.mrf.mxu1 }
 0x6e8   : > { %v5292_v57 = vpop.f32.mrf.mxu1 }
 0x6ea   : > { %v16480_v58 = vpop.f32.mrf.mxu1 }
 0x6ec   : > { %v5068_v54 = vpop.f32.mrf.mxu0  ;;  %v5438_v55 = vpop.f32.mrf.mxu1 }
 0x6ed   : > { %v5145_v59 = vadd.f32 %v5144_v56, %v5068_v54 }
 0x6ee   : > { %v16465_v61 = vpop.f32.mrf.mxu0  ;;  %v16490_v62 = vpop.f32.mrf.mxu1 }
 0x6f0   : > { %v5218_v0 = vpop.f32.mrf.mxu0 }
 0x6f1   : > { %v5219_v1 = vadd.f32 %v5218_v0, %v5145_v59 }
 0x6f2   : > { %v16475_v11 = vpop.f32.mrf.mxu0 }
 0x6f3   : > { %v5293_v35 = vadd.f32 %v5292_v57, %v5219_v1 }
 0x6f4   : > { %v5622_v33 = vpop.f32.mrf.mxu1 }
 0x6f5   : > { %v5366_v36 = vpop.f32.mrf.mxu0 }
 0x6f6   : > { %v5367_v39 = vadd.f32 %v5366_v36, %v5293_v35  ;;  %v16512_v44 = vpop.f32.mrf.mxu1 }
 0x6f7   : > { %v16485_v43 = vpop.f32.mrf.mxu0 }
 0x6f8   : > { %v18974_v48 = vadd.f32 %v5438_v55, %v5367_v39 }
 0x6fe   : > { %v5531_v7 = vpop.f32.mrf.mxu0 }
 0x6ff   : > { %v5779_v17 = vpop.f32.mrf.mxu1  ;;  %v5532_v27 = vadd.f32 %v15161_v26, %v5531_v7 }
 0x700   : > { %v16501_v38 = vpop.f32.mrf.mxu0 }
 0x701   : > { %v16534_v21 = vpop.f32.mrf.mxu1  ;;  %v5623_v30 = vadd.f32 %v5622_v33, %v5532_v27 }
 0x702   : > { %v15173_v21 = vld [vmem:[%s20084_s8 + $0x9] ss:$0 sm:$0xff] }
 0x708   : > { %v5702_v22 = vpop.f32.mrf.mxu0 }
 0x709   : > { %v5937_v13 = vpop.f32.mrf.mxu1  ;;  %v5703_v31 = vadd.f32 %v5702_v22, %v5623_v30 }
 0x70a   : > { %v16523_v20 = vpop.f32.mrf.mxu0 }
 0x70b   : > { %v16556_v25 = vpop.f32.mrf.mxu1  ;;  %v5780_v6 = vadd.f32 %v5779_v17, %v5703_v31 }
 0x712   : > { %v5862_v28 = vpop.f32.mrf.mxu0 }
 0x713   : > { %v6120_v45 = vpop.f32.mrf.mxu1  ;;  %v5863_v37 = vadd.f32 %v5862_v28, %v5780_v6 }
 0x714   : > { %v16545_v29 = vpop.f32.mrf.mxu0 }
 0x715   : > { %v16578_v52 = vpop.f32.mrf.mxu1  ;;  %v5938_v42 = vadd.f32 %v5937_v13, %v5863_v37 }
 0x717   : > { %v6938_v4 = vsel %vm4528_vm2, %v5938_v42, 0 }
 0x718   : > { %v7009_v16 = vand.u32 4294901760, %v6938_v4 }
 0x71a   : > { %v7010_v50 = vsub.f32 %v6938_v4, %v7009_v16 }
 0x71c   : > { %v6029_v32 = vpop.f32.mrf.mxu0  ;;  %v7011_v59 = vand.u32 4294901760, %v7010_v50 }
 0x71d   : > { %v6277_v34 = vpop.f32.mrf.mxu1  ;;  %v6030_v49 = vadd.f32 %v15167_v47, %v6029_v32 }
 0x71e   : > { %v16567_v41 = vpop.f32.mrf.mxu0  ;;  %v7012_v11 = vsub.f32 %v7010_v50, %v7011_v59 }
 0x71f   : > { %v16600_v12 = vpop.f32.mrf.mxu1  ;;  %v6121_v51 = vadd.f32 %v6120_v45, %v6030_v49 }
 0x720   : > { %v7013_v36 = vand.u32 4294901760, %v7012_v11 }
 0x726   : > { %v6200_v46 = vpop.f32.mrf.mxu0 }
 0x727   : > { %v6435_v9 = vpop.f32.mrf.mxu1  ;;  %v6201_v56 = vadd.f32 %v6200_v46, %v6121_v51 }
 0x728   : > { %v16589_v15 = vpop.f32.mrf.mxu0 }
 0x729   : > { %v16622_v53 = vpop.f32.mrf.mxu1  ;;  %v6278_v57 = vadd.f32 %v6277_v34, %v6201_v56 }
 0x730   : > { %v6360_v58 = vpop.f32.mrf.mxu0 }
 0x731   : > { %v6361_v54 = vadd.f32 %v6360_v58, %v6278_v57  ;;  %v6618_v55 = vpop.f32.mrf.mxu1 }
 0x732   : > { %v16611_v61 = vpop.f32.mrf.mxu0 }
 0x733   : > { %v6436_v62 = vadd.f32 %v6435_v9, %v6361_v54  ;;  %v16644_v0 = vpop.f32.mrf.mxu1 }
 0x735   : > { %v6941_v1 = vsel %vm4528_vm2, %v6436_v62, 0 }
 0x736   : > { %v6974_v35 = vand.u32 4294901760, %v6941_v1 }
 0x738   : > { %v7051_v33 = vsub.f32 %v6941_v1, %v6974_v35  ;;  %16690 = vmatpush3.xpose.msra.mxu0 %v6974_v35 }
 0x739   : > { %16699 = vmatprep.subr.mxu0 %v17490_v24 }
 0x73a   : > { %v6527_v39 = vpop.f32.mrf.mxu0  ;;  %v7052_v44 = vand.u32 4294901760, %v7051_v33 }
 0x73b   : > { %v6775_v43 = vpop.f32.mrf.mxu1  ;;  %16692 = vmatmul.mubr.f32.vlgmr.msra.gmra.mxu0 %v7013_v36  ;;  %v6528_v13 = vadd.f32 %v15173_v21, %v6527_v39 }
 0x73c   : > { %v16633_v7 = vpop.f32.mrf.mxu0  ;;  %16700 = vmatpush3.xpose.msra.mxu0 %v7051_v33  ;;  %16701 = vmatprep.mubr.msk.f32.mxu0 %vm17491_vm1, %v17490_v24  ;;  %v7053_v17 = vsub.f32 %v7051_v33, %v7052_v44 }
 0x73d   : > { %v16666_v38 = vpop.f32.mrf.mxu1  ;;  %16709 = vmatprep.subr.mxu0 %v17490_v24  ;;  %v6619_v25 = vadd.f32 %v6618_v55, %v6528_v13  ;;  %v15174_v13 = vld [vmem:[%s20085_s9 + $0x8] sm:$0xff] }
 0x73e   : > { %v7054_v22 = vand.u32 4294901760, %v7053_v17 }
 0x73f   : > { %16702 = vmatmul.mubr.f32.vlgmr.msra.gmra.mxu0 %v7010_v50 }
 0x740   : > { %16695 = vmatpush3.xpose.msra.mxu1 %v7054_v22  ;;  %16710 = vmatpush3.xpose.msra.mxu0 %v7052_v44 }
 0x741   : > { %16711 = vmatprep.mubr.msk.f32.mxu0 %vm17491_vm1, %v17490_v24  ;;  %16704 = vmatprep.subr.mxu1 %v17490_v24 }
 0x742   : > { %16719 = vmatprep.subr.mxu0 %v17490_v24 }
 0x743   : > { %16697 = vmatmul.mubr.f32.vlgmr.msra.gmra.mxu1 %v7009_v16  ;;  %16712 = vmatmul.mubr.f32.vlgmr.msra.gmra.mxu0 %v7009_v16 }
 0x744   : > { %v6698_v20 = vpop.f32.mrf.mxu0  ;;  %16705 = vmatpush3.xpose.msra.mxu1 %v6974_v35  ;;  %16706 = vmatprep.mubr.msk.f32.mxu1 %vm17491_vm1, %v17490_v24 }
 0x745   : > { %v6933_v26 = vpop.f32.mrf.mxu1  ;;  %16714 = vmatprep.subr.mxu1 %v17490_v24  ;;  %16721 = vmatprep.mubr.msk.f32.mxu0 %vm17491_vm1, %v17490_v24  ;;  %v6699_v28 = vadd.f32 %v6698_v20, %v6619_v25  ;;  %v7886_v20 = vand.u32 4294901760, %v15174_v13 }
 0x746   : > { %v16655_v27 = vpop.f32.mrf.mxu0 }
 0x747   : > { %v16688_v45 = vpop.f32.mrf.mxu1  ;;  %16707 = vmatmul.mubr.f32.vlgmr.msra.gmra.mxu1 %v7011_v59  ;;  %v6776_v29 = vadd.f32 %v6775_v43, %v6699_v28  ;;  %v19029_v25 = vsub.f32 %v15174_v13, %v7886_v20 }
 0x748   : > { %16715 = vmatpush3.xpose.msra.mxu1 %v6974_v35  ;;  %16716 = vmatprep.mubr.msk.f32.mxu1 %vm17491_vm1, %v17490_v24 }
 0x749   : > { %16724 = vmatprep.subr.mxu1 %v17490_v24 }
 0x74b   : > { %16717 = vmatmul.mubr.f32.vlgmr.msra.gmra.mxu1 %v7009_v16 }
 0x74c   : > { %v6858_v52 = vpop.f32.mrf.mxu0  ;;  %16726 = vmatprep.mubr.msk.f32.mxu1 %vm17491_vm1, %v17490_v24 }
 0x74d   : > { %v6859_v30 = vadd.f32 %v6858_v52, %v6776_v29 }
 0x74e   : > { %v16677_v31 = vpop.f32.mrf.mxu0 }
 0x74f   : > { %v6934_v6 = vadd.f32 %v6933_v26, %v6859_v30  ;;  %v7964_v26 = vand.u32 4294901760, %v19029_v25 }
 0x751   : > { %v7435_v32 = vand.u32 4294901760, %v6934_v6  ;;  %v7965_v27 = vsub.f32 %v19029_v25, %v7964_v26 }
 0x753   : > { %v7512_v34 = vsub.f32 %v6934_v6, %v7435_v32  ;;  %16720 = vmatpush3.msra.mxu0 %v7435_v32  ;;  %v7966_v28 = vand.u32 4294901760, %v7965_v27 }
 0x754   : > { %16729 = vmatprep.subr.mxu0 %v17490_v24 }
 0x755   : > { %v7513_v37 = vand.u32 4294901760, %v7512_v34 }
 0x757   : > { %v7514_v41 = vsub.f32 %v7512_v34, %v7513_v37 }
 0x759   : > { %v7515_v12 = vand.u32 4294901760, %v7514_v41  ;;  %v5442_v41 = vld [vmem:[%s20085_s9] sm:$0xff] }
 0x75b   : > { %16725 = vmatpush3.msra.mxu1 %v7515_v12 }
 0x75c   : > { %16734 = vmatprep.subr.mxu1 %v17490_v24 }
 0x7fb   : > { %v7015_v42 = vpop.f32.mrf.mxu0 }
 0x7fd   : > { %v16693_v47 = vpop.f32.mrf.mxu0 }
 0x7ff   : > { %v7165_v49 = vpop.f32.mrf.mxu0 }
 0x801   : > { %v16703_v4 = vpop.f32.mrf.mxu0 }
 0x803   : > { %v7091_v46 = vpop.f32.mrf.mxu1  ;;  %v7313_v9 = vpop.f32.mrf.mxu0 }
 0x804   : > { %v7092_v15 = vadd.f32 %v7091_v46, %v7015_v42 }
 0x805   : > { %v16698_v16 = vpop.f32.mrf.mxu1  ;;  %v16713_v51 = vpop.f32.mrf.mxu0 }
 0x806   : > { %v7166_v53 = vadd.f32 %v7165_v49, %v7092_v15  ;;  %v19040_v49 = vand.u32 4294901760, %v5442_v41 }
 0x807   : > { %v7239_v56 = vpop.f32.mrf.mxu1 }
 0x808   : > { %v7240_v50 = vadd.f32 %v7239_v56, %v7166_v53  ;;  %v19043_v16 = vsub.f32 %v5442_v41, %v19040_v49  ;;  %v15183_v41 = vld [vmem:[%s20083_s7 + $0xd0] sm:$0xff] }
 0x809   : > { %v16708_v57 = vpop.f32.mrf.mxu1 }
 0x80a   : > { %v7314_v58 = vadd.f32 %v7313_v9, %v7240_v50  ;;  %v8413_v50 = vand.u32 4294901760, %v19043_v16  ;;  %v15178_v57 = vld [vmem:[%s20083_s7 + $0x58] sm:$0xff] }
 0x80b   : > { %v7385_v54 = vpop.f32.mrf.mxu1 }
 0x80c   : > { %v7386_v55 = vadd.f32 %v7385_v54, %v7314_v58  ;;  %v8302_v58 = vsel %vm4528_vm2, %v18974_v48, 0  ;;  %v8414_v48 = vsub.f32 %v19043_v16, %v8413_v50 }
 0x80d   : > { %v16718_v59 = vpop.f32.mrf.mxu1 }
 0x80e   : > { %v7389_v61 = vmul.f32 0.35355338, %v7386_v55  ;;  %v15177_v55 = vld [vmem:[%s20083_s7 + $0x50] sm:$0xff]  ;;  %v19057_v59 = vand.u32 4294901760, %v15178_v57 }
 0x810   : > { %v7390_v62 = vsel %vm4528_vm2, %v7389_v61, -inf }
 0x811   : > { %7391 = vmax.xlane.f32.xlu0 %v7390_v62 }
 0x89a   : > { %v7392_v0 = vpop.xlane.xlu0 %7391 }
 0x89b   : > { %v7393_v1 = vsub.f32 %v7389_v61, %v7392_v0  ;;  %v19059_v61 = vand.u32 4294901760, %v8302_v58  ;;  %v15176_v0 = vld [vmem:[%s20083_s7 + $0x48] sm:$0xff] }
 0x89d   : > { %v7394_v11 = vmul.f32 1.442695, %v7393_v1  ;;  %v19068_v1 = vand.u32 4294901760, %v15177_v55 }
 0x89f   : > { %17467 = vpow2.f32 %v7394_v11 }
 0x8ac   : > { %v17468_v35 = vpop.eup %17467 }
 0x8ad   : > { %v7396_v33 = vsel %vm4528_vm2, %v17468_v35, 0.0 }
 0x8ae   : > { %7397 = vadd.xlane.f32.xlu1 %v7396_v33  ;;  %v19076_v33 = vsub.f32 %v15178_v57, %v19057_v59 }
 0x937   : > { %v7398_v36 = vpop.xlane.xlu1 %7397 }
 0x938   : > { %17469 = vrcp.f32 %v7398_v36  ;;  %v19078_v36 = vand.u32 4294901760, %v15176_v0 }
 0x945   : > { %v17470_v39 = vpop.eup %17469 }
 0x946   : > { %v7400_v44 = vmul.f32 %v17470_v39, %v17468_v35  ;;  %v15175_v35 = vld [vmem:[%s20083_s7 + $0x40] sm:$0xff]  ;;  %v8371_v39 = vsub.f32 %v8302_v58, %v19059_v61 }
 0x948   : > { %v7402_v43 = vsel %vm4528_vm2, %v7400_v44, 0 }
 0x949   : > { %v7470_v7 = vand.u32 4294901760, %v7402_v43 }
 0x94b   : > { %v7471_v17 = vsub.f32 %v7402_v43, %v7470_v7  ;;  %16727 = vmatmul.mubr.f32.vlgmr.msra.gmra.mxu1 %v7470_v7  ;;  %v8415_v43 = vand.u32 4294901760, %v8414_v48 }
 0x94c   : > { %16735 = vmatpush3.msra.mxu1 %v7435_v32  ;;  %16736 = vmatprep.mubr.msk.f32.mxu1 %vm17491_vm1, %v17490_v24 }
 0x94d   : > { %16744 = vmatprep.subr.mxu1 %v17490_v24  ;;  %v7472_v38 = vand.u32 4294901760, %v7471_v17 }
 0x94f   : > { %16737 = vmatmul.mubr.f32.vlgmr.msra.gmra.mxu1 %v7472_v38  ;;  %v7473_v21 = vsub.f32 %v7471_v17, %v7472_v38  ;;  %v8869_v38 = vand.u32 4294901760, %v19076_v33 }
 0x950   : > { %16745 = vmatpush3.msra.mxu1 %v7435_v32  ;;  %16746 = vmatprep.mubr.msk.f32.mxu1 %vm17491_vm1, %v17490_v24 }
 0x951   : > { %v7474_v22 = vand.u32 4294901760, %v7473_v21  ;;  %16754 = vmatprep.subr.mxu1 %v17490_v24  ;;  %v19092_v21 = vsub.f32 %v15176_v0, %v19078_v36  ;;  %v8870_v27 = vsub.f32 %v19076_v33, %v8869_v38 }
 0x953   : > { %16722 = vmatmul.mubr.f32.vlgmr.msra.gmra.mxu0 %v7474_v22  ;;  %16747 = vmatmul.mubr.f32.vlgmr.msra.gmra.mxu1 %v7470_v7  ;;  %v8372_v22 = vand.u32 4294901760, %v8371_v39 }
 0x954   : > { %16730 = vmatpush3.msra.mxu0 %v7512_v34  ;;  %16731 = vmatprep.mubr.msk.f32.mxu0 %vm17491_vm1, %v17490_v24 }
 0x955   : > { %16739 = vmatprep.subr.mxu0 %v17490_v24  ;;  %16756 = vmatprep.mubr.msk.f32.mxu1 %vm17491_vm1, %v17490_v24 }
 0x956   : > { %16755 = vmatpush3.msra.mxu1 %v7966_v28  ;;  %v8883_v28 = vand.u32 4294901760, %v19092_v21 }
 0x957   : > { %16732 = vmatmul.mubr.f32.vlgmr.msra.gmra.mxu0 %v7471_v17  ;;  %16764 = vmatprep.subr.mxu1 %v17490_v24  ;;  %v19085_v17 = vand.u32 4294901760, %v15175_v35 }
 0x958   : > { %16740 = vmatpush3.msra.mxu0 %v7513_v37  ;;  %16741 = vmatprep.mubr.msk.f32.mxu0 %vm17491_vm1, %v17490_v24 }
 0x959   : > { %16749 = vmatprep.subr.mxu0 %v17490_v24 }
 0x95b   : > { %16742 = vmatmul.mubr.f32.vlgmr.msra.gmra.mxu0 %v7470_v7  ;;  %v19083_v7 = vsub.f32 %v15177_v55, %v19068_v1 }
 0x95c   : > { %16751 = vmatprep.mubr.msk.f32.mxu0 %vm17491_vm1, %v17490_v24  ;;  %16750 = vmatpush3.msra.mxu0 %v7886_v20 }
 0x95d   : > { %16759 = vmatprep.subr.mxu0 %v17490_v24  ;;  %v8876_v13 = vand.u32 4294901760, %v19083_v7 }
 0xa0b   : > { %v7552_v45 = vpop.f32.mrf.mxu1 }
 0xa0d   : > { %v16728_v29 = vpop.f32.mrf.mxu1 }
 0xa0e   : > { %v8871_v29 = vand.u32 4294901760, %v8870_v27 }
 0xa0f   : > { %v7700_v52 = vpop.f32.mrf.mxu1 }
 0xa11   : > { %v16738_v30 = vpop.f32.mrf.mxu1 }
 0xa13   : > { %v7476_v31 = vpop.f32.mrf.mxu0  ;;  %v7846_v6 = vpop.f32.mrf.mxu1 }
 0xa14   : > { %v7553_v37 = vadd.f32 %v7552_v45, %v7476_v31  ;;  %v8373_v45 = vsub.f32 %v8371_v39, %v8372_v22 }
 0xa15   : > { %v16723_v32 = vpop.f32.mrf.mxu0  ;;  %v16748_v34 = vpop.f32.mrf.mxu1 }
 0xa16   : > { %v8374_v30 = vand.u32 4294901760, %v8373_v45 }
 0xa17   : > { %v7626_v12 = vpop.f32.mrf.mxu0 }
 0xa18   : > { %v7627_v42 = vadd.f32 %v7626_v12, %v7553_v37  ;;  %v15184_v37 = vld [vmem:[%s20083_s7 + $0xd8] sm:$0xff] }
 0xa19   : > { %v16733_v47 = vpop.f32.mrf.mxu0  ;;  %v19160_v12 = vand.u32 4294901760, %v15184_v37 }
 0xa1a   : > { %v7701_v4 = vadd.f32 %v7700_v52, %v7627_v42  ;;  %v8884_v52 = vsub.f32 %v19092_v21, %v8883_v28  ;;  %v15182_v42 = vld [vmem:[%s20083_s7 + $0xc8] sm:$0xff]  ;;  %v19169_v47 = vand.u32 4294901760, %v15183_v41 }
 0xa1b   : > { %v7774_v46 = vpop.f32.mrf.mxu0 }
 0xa1c   : > { %v7775_v9 = vadd.f32 %v7774_v46, %v7701_v4  ;;  %v8885_v32 = vand.u32 4294901760, %v8884_v52  ;;  %v19178_v4 = vand.u32 4294901760, %v15182_v42  ;;  %v15181_v46 = vld [vmem:[%s20083_s7 + $0xc0] sm:$0xff] }
 0xa1d   : > { %v16743_v15 = vpop.f32.mrf.mxu0 }
 0xa1e   : > { %v7847_v51 = vadd.f32 %v7846_v6, %v7775_v9  ;;  %v19189_v9 = vsub.f32 %v15183_v41, %v19169_v47  ;;  %v19194_v15 = vand.u32 4294901760, %v15181_v46 }
 0xa20   : > { %v7853_v53 = vsel %vm4528_vm2, %v7847_v51, 0  ;;  %v19200_v51 = vsub.f32 %v15182_v42, %v19178_v4 }
 0xa21   : > { %v7921_v56 = vand.u32 4294901760, %v7853_v53 }
 0xa22   : > { %v9381_v57 = vand.u32 4294901760, %v19200_v51 }
 0xa23   : > { %v7922_v54 = vsub.f32 %v7853_v53, %v7921_v56  ;;  %16757 = vmatmul.mubr.f32.vlgmr.msra.gmra.mxu1 %v7921_v56  ;;  %v9374_v53 = vand.u32 4294901760, %v19189_v9 }
 0xa24   : > { %16765 = vmatpush3.msra.mxu1 %v7886_v20  ;;  %16766 = vmatprep.mubr.msk.f32.mxu1 %vm17491_vm1, %v17490_v24 }
 0xa25   : > { %v7923_v62 = vand.u32 4294901760, %v7922_v54  ;;  %16774 = vmatprep.subr.mxu1 %v17490_v24  ;;  %v9375_v58 = vsub.f32 %v19189_v9, %v9374_v53 }
 0xa27   : > { %16767 = vmatmul.mubr.f32.vlgmr.msra.gmra.mxu1 %v7923_v62  ;;  %v7924_v11 = vsub.f32 %v7922_v54, %v7923_v62 }
 0xa28   : > { %16775 = vmatpush3.msra.mxu1 %v7886_v20  ;;  %16776 = vmatprep.mubr.msk.f32.mxu1 %vm17491_vm1, %v17490_v24  ;;  %v19100_v20 = vsub.f32 %v15175_v35, %v19085_v17 }
 0xa29   : > { %v7925_v44 = vand.u32 4294901760, %v7924_v11  ;;  %16784 = vmatprep.subr.mxu1 %v17490_v24  ;;  %v15189_v11 = vld [vmem:[%s20083_s7 + $0x150] sm:$0xff] }
 0xa2b   : > { %16752 = vmatmul.mubr.f32.vlgmr.msra.gmra.mxu0 %v7925_v44  ;;  %16777 = vmatmul.mubr.f32.vlgmr.msra.gmra.mxu1 %v7921_v56 }
 0xa2c   : > { %16760 = vmatpush3.msra.mxu0 %v19029_v25  ;;  %16761 = vmatprep.mubr.msk.f32.mxu0 %vm17491_vm1, %v17490_v24  ;;  %v8877_v25 = vsub.f32 %v19083_v7, %v8876_v13 }
 0xa2d   : > { %16785 = vmatpush3.msra.mxu1 %v8415_v43  ;;  %16786 = vmatprep.mubr.msk.f32.mxu1 %vm17491_vm1, %v17490_v24  ;;  %v15187_v43 = vld [vmem:[%s20083_s7 + $0x140] sm:$0xff] }
 0xa2e   : > { %16769 = vmatprep.subr.mxu0 %v17490_v24  ;;  %16794 = vmatprep.subr.mxu1 %v17490_v24  ;;  %v8878_v31 = vand.u32 4294901760, %v8877_v25 }
 0xa2f   : > { %16762 = vmatmul.mubr.f32.vlgmr.msra.gmra.mxu0 %v7922_v54  ;;  %16787 = vmatmul.mubr.f32.vlgmr.msra.gmra.mxu1 %v19059_v61 }
 0xa30   : > { %16770 = vmatpush3.msra.mxu0 %v7964_v26  ;;  %16771 = vmatprep.mubr.msk.f32.mxu0 %vm17491_vm1, %v17490_v24  ;;  %v8890_v26 = vand.u32 4294901760, %v19100_v20 }
 0xa31   : > { %16795 = vmatpush3.msra.mxu1 %v19040_v49  ;;  %16796 = vmatprep.mubr.msk.f32.mxu1 %vm17491_vm1, %v17490_v24 }
 0xa32   : > { %16779 = vmatprep.subr.mxu0 %v17490_v24  ;;  %16804 = vmatprep.subr.mxu1 %v17490_v24  ;;  %v8891_v6 = vsub.f32 %v19100_v20, %v8890_v26 }
 0xa33   : > { %16772 = vmatmul.mubr.f32.vlgmr.msra.gmra.mxu0 %v7921_v56  ;;  %16797 = vmatmul.mubr.f32.vlgmr.msra.gmra.mxu1 %v8372_v22  ;;  %v19210_v56 = vsub.f32 %v15181_v46, %v19194_v15 }
 0xa34   : > { %16780 = vmatpush3.msra.mxu0 %v19040_v49  ;;  %16805 = vmatpush3.msra.mxu1 %v19040_v49  ;;  %v8892_v34 = vand.u32 4294901760, %v8891_v6  ;;  %v19176_v49 = vsub.f32 %v15184_v37, %v19160_v12 }
 0xa35   : > { %16781 = vmatprep.mubr.msk.f32.mxu0 %vm17491_vm1, %v17490_v24  ;;  %16806 = vmatprep.mubr.msk.f32.mxu1 %vm17491_vm1, %v17490_v24  ;;  %v9388_v54 = vand.u32 4294901760, %v19210_v56 }
 0xa36   : > { %16820 = vmatprep.subr.mxu1 %v17490_v24  ;;  %16789 = vmatprep.subr.mxu0 %v17490_v24 }
 0xa37   : > { %16782 = vmatmul.mubr.f32.vlgmr.msra.gmra.mxu0 %v8374_v30  ;;  %16807 = vmatmul.mubr.f32.vlgmr.msra.gmra.mxu1 %v19059_v61  ;;  %v9389_v62 = vsub.f32 %v19210_v56, %v9388_v54 }
 0xa38   : > { %16821 = vmatpush3.msra.mxu1 %v8871_v29  ;;  %16790 = vmatpush3.msra.mxu0 %v19043_v16  ;;  %v9367_v16 = vand.u32 4294901760, %v19176_v49 }
 0xa39   : > { %16822 = vmatprep.subr.mxu1 %v17490_v24  ;;  %16791 = vmatprep.mubr.msk.f32.mxu0 %vm17491_vm1, %v17490_v24  ;;  %v9390_v0 = vand.u32 4294901760, %v9389_v62 }
 0xa3a   : > { %16823 = vmatpush3.msra.mxu1 %v8878_v31  ;;  %16799 = vmatprep.subr.mxu0 %v17490_v24 }
 0xa3b   : > { %16824 = vmatprep.subr.mxu1 %v17490_v24  ;;  %16792 = vmatmul.mubr.f32.vlgmr.msra.gmra.mxu0 %v8371_v39 }
 0xa3c   : > { %16825 = vmatpush3.msra.mxu1 %v8885_v32  ;;  %16800 = vmatpush3.msra.mxu0 %v8413_v50  ;;  %v9368_v50 = vsub.f32 %v19176_v49, %v9367_v16 }
 0xa3d   : > { %16826 = vmatprep.subr.mxu1 %v17490_v24  ;;  %16828 = vmatprep.mubr.msk.f32.mxu1 %vm17491_vm1, %v17490_v24 }
 0xa3e   : > { %16827 = vmatpush3.msra.mxu1 %v8892_v34  ;;  %16801 = vmatprep.mubr.msk.f32.mxu0 %vm17491_vm1, %v17490_v24  ;;  %v9369_v55 = vand.u32 4294901760, %v9368_v50 }
 0xa3f   : > { %16809 = vmatprep.subr.mxu0 %v17490_v24  ;;  %16829 = vmatmul.mubr.f32.vlgmr.msra.gmra.mxu1 %v18246_v63 }
 0xa40   : > { %16842 = vmatprep.subr.mxu1 %v17490_v24  ;;  %16802 = vmatmul.mubr.f32.vlgmr.msra.gmra.mxu0 %v19059_v61  ;;  %v9376_v61 = vand.u32 4294901760, %v9375_v58 }
 0xa41   : > { %16810 = vmatpush3.msra.mxu0 %v19057_v59  ;;  %16843 = vmatpush3.msra.mxu1 %v19057_v59 }
 0xa42   : > { %16811 = vmatprep.subr.mxu0 %v17490_v24  ;;  %16844 = vmatprep.subr.mxu1 %v17490_v24 }
 0xa43   : > { %16812 = vmatpush3.msra.mxu0 %v19068_v1  ;;  %16845 = vmatpush3.msra.mxu1 %v19068_v1 }
 0xa44   : > { %16813 = vmatprep.subr.mxu0 %v17490_v24  ;;  %16846 = vmatprep.subr.mxu1 %v17490_v24 }
 0xa45   : > { %16814 = vmatpush3.msra.mxu0 %v19078_v36  ;;  %16847 = vmatpush3.msra.mxu1 %v19078_v36 }
 0xa46   : > { %16815 = vmatprep.subr.mxu0 %v17490_v24  ;;  %16848 = vmatprep.subr.mxu1 %v17490_v24 }
 0xa47   : > { %16816 = vmatpush3.msra.mxu0 %v19085_v17  ;;  %16817 = vmatprep.mubr.msk.f32.mxu0 %vm17491_vm1, %v17490_v24 }
 0xa48   : > { %16849 = vmatpush3.msra.mxu1 %v19085_v17  ;;  %16850 = vmatprep.mubr.msk.f32.mxu1 %vm17491_vm1, %v17490_v24 }
 0xa49   : > { %16818 = vmatmul.mubr.f32.vlgmr.msra.gmra.mxu0 %v18283_v8  ;;  %16831 = vmatprep.subr.mxu0 %v17490_v24 }
 0xa4a   : > { %16851 = vmatmul.mubr.f32.vlgmr.msra.gmra.mxu1 %v18265_v40  ;;  %16864 = vmatprep.subr.mxu1 %v17490_v24 }
 0xa4b   : > { %16832 = vmatpush3.msra.mxu0 %v19076_v33  ;;  %16865 = vmatpush3.msra.mxu1 %v19057_v59  ;;  %v9382_v59 = vsub.f32 %v19200_v51, %v9381_v57  ;;  %v15188_v33 = vld [vmem:[%s20083_s7 + $0x148] sm:$0xff] }
 0xa4c   : > { %16833 = vmatprep.subr.mxu0 %v17490_v24  ;;  %16866 = vmatprep.subr.mxu1 %v17490_v24  ;;  %v19292_v44 = vand.u32 4294901760, %v15188_v33 }
 0xa4d   : > { %16834 = vmatpush3.msra.mxu0 %v19083_v7  ;;  %16867 = vmatpush3.msra.mxu1 %v19068_v1  ;;  %v9383_v48 = vand.u32 4294901760, %v9382_v59  ;;  %v15190_v1 = vld [vmem:[%s20083_s7 + $0x158] sm:$0xff] }
 0xa4e   : > { %16835 = vmatprep.subr.mxu0 %v17490_v24  ;;  %16868 = vmatprep.subr.mxu1 %v17490_v24  ;;  %v19274_v35 = vand.u32 4294901760, %v15190_v1 }
 0xa4f   : > { %16836 = vmatpush3.msra.mxu0 %v19092_v21  ;;  %16869 = vmatpush3.msra.mxu1 %v19078_v36  ;;  %v19283_v36 = vand.u32 4294901760, %v15189_v11  ;;  %v19314_v21 = vsub.f32 %v15188_v33, %v19292_v44 }
 0xa50   : > { %16837 = vmatprep.subr.mxu0 %v17490_v24  ;;  %16870 = vmatprep.subr.mxu1 %v17490_v24  ;;  %v19290_v39 = vsub.f32 %v15190_v1, %v19274_v35 }
 0xa51   : > { %16838 = vmatpush3.msra.mxu0 %v19100_v20  ;;  %16839 = vmatprep.mubr.msk.f32.mxu0 %vm17491_vm1, %v17490_v24  ;;  %v19303_v7 = vsub.f32 %v15189_v11, %v19283_v36  ;;  %v9879_v27 = vand.u32 4294901760, %v19314_v21 }
 0xa52   : > { %16871 = vmatpush3.msra.mxu1 %v19085_v17  ;;  %16872 = vmatprep.mubr.msk.f32.mxu1 %vm17491_vm1, %v17490_v24  ;;  %v19308_v17 = vand.u32 4294901760, %v15187_v43 }
 0xa53   : > { %16840 = vmatmul.mubr.f32.vlgmr.msra.gmra.mxu0 %v18252_v2  ;;  %16853 = vmatprep.subr.mxu0 %v17490_v24  ;;  %v9872_v22 = vand.u32 4294901760, %v19303_v7 }
 0xa54   : > { %16873 = vmatmul.mubr.f32.vlgmr.msra.gmra.mxu1 %v18246_v63  ;;  %16886 = vmatprep.subr.mxu1 %v17490_v24 }
 0xa55   : > { %16854 = vmatpush3.msra.mxu0 %v8869_v38  ;;  %16887 = vmatpush3.msra.mxu1 %v9369_v55  ;;  %v9865_v38 = vand.u32 4294901760, %v19290_v39 }
 0xa56   : > { %16855 = vmatprep.subr.mxu0 %v17490_v24  ;;  %16888 = vmatprep.subr.mxu1 %v17490_v24 }
 0xa57   : > { %16856 = vmatpush3.msra.mxu0 %v8876_v13  ;;  %16889 = vmatpush3.msra.mxu1 %v9376_v61  ;;  %v19324_v13 = vsub.f32 %v15187_v43, %v19308_v17  ;;  %v9866_v20 = vsub.f32 %v19290_v39, %v9865_v38 }
 0xa58   : > { %16857 = vmatprep.subr.mxu0 %v17490_v24  ;;  %16890 = vmatprep.subr.mxu1 %v17490_v24 }
 0xa59   : > { %16858 = vmatpush3.msra.mxu0 %v8883_v28  ;;  %16891 = vmatpush3.msra.mxu1 %v9383_v48  ;;  %v9873_v28 = vsub.f32 %v19303_v7, %v9872_v22  ;;  %v9886_v45 = vand.u32 4294901760, %v19324_v13  ;;  %v9867_v25 = vand.u32 4294901760, %v9866_v20 }
 0xa5a   : > { %16859 = vmatprep.subr.mxu0 %v17490_v24  ;;  %16892 = vmatprep.subr.mxu1 %v17490_v24 }
 0xa5b   : > { %16860 = vmatpush3.msra.mxu0 %v8890_v26  ;;  %16861 = vmatprep.mubr.msk.f32.mxu0 %vm17491_vm1, %v17490_v24  ;;  %v9880_v26 = vsub.f32 %v19314_v21, %v9879_v27  ;;  %v9874_v29 = vand.u32 4294901760, %v9873_v28  ;;  %v9887_v52 = vsub.f32 %v19324_v13, %v9886_v45 }
 0xa5c   : > { %16893 = vmatpush3.msra.mxu1 %v9390_v0  ;;  %16894 = vmatprep.mubr.msk.f32.mxu1 %vm17491_vm1, %v17490_v24 }
 0xa5d   : > { %16862 = vmatmul.mubr.f32.vlgmr.msra.gmra.mxu0 %v18246_v63  ;;  %16875 = vmatprep.subr.mxu0 %v17490_v24  ;;  %v9881_v30 = vand.u32 4294901760, %v9880_v26  ;;  %v9888_v31 = vand.u32 4294901760, %v9887_v52 }
 0xa5e   : > { %16895 = vmatmul.mubr.f32.vlgmr.msra.gmra.mxu1 %v18358_v5  ;;  %16908 = vmatprep.subr.mxu1 %v17490_v24 }
 0xa5f   : > { %16876 = vmatpush3.msra.mxu0 %v19160_v12  ;;  %16909 = vmatpush3.msra.mxu1 %v19160_v12 }
 0xa60   : > { %16877 = vmatprep.subr.mxu0 %v17490_v24  ;;  %16910 = vmatprep.subr.mxu1 %v17490_v24 }
 0xa61   : > { %16878 = vmatpush3.msra.mxu0 %v19169_v47  ;;  %16911 = vmatpush3.msra.mxu1 %v19169_v47 }
 0xa62   : > { %16879 = vmatprep.subr.mxu0 %v17490_v24  ;;  %16912 = vmatprep.subr.mxu1 %v17490_v24 }
 0xa63   : > { %16880 = vmatpush3.msra.mxu0 %v19178_v4  ;;  %16913 = vmatpush3.msra.mxu1 %v19178_v4 }
 0xa64   : > { %16881 = vmatprep.subr.mxu0 %v17490_v24  ;;  %16914 = vmatprep.subr.mxu1 %v17490_v24 }
 0xa65   : > { %16882 = vmatpush3.msra.mxu0 %v19194_v15  ;;  %16883 = vmatprep.mubr.msk.f32.mxu0 %vm17491_vm1, %v17490_v24 }
 0xa66   : > { %16915 = vmatpush3.msra.mxu1 %v19194_v15  ;;  %16916 = vmatprep.mubr.msk.f32.mxu1 %vm17491_vm1, %v17490_v24 }
 0xa67   : > { %16884 = vmatmul.mubr.f32.vlgmr.msra.gmra.mxu0 %v18408_v60  ;;  %16897 = vmatprep.subr.mxu0 %v17490_v24 }
 0xa68   : > { %16917 = vmatmul.mubr.f32.vlgmr.msra.gmra.mxu1 %v18383_v19  ;;  %16930 = vmatprep.subr.mxu1 %v17490_v24 }
 0xa69   : > { %16898 = vmatpush3.msra.mxu0 %v19176_v49  ;;  %16931 = vmatpush3.msra.mxu1 %v19160_v12 }
 0xa6a   : > { %16899 = vmatprep.subr.mxu0 %v17490_v24  ;;  %16932 = vmatprep.subr.mxu1 %v17490_v24 }
 0xa6b   : > { %16900 = vmatpush3.msra.mxu0 %v19189_v9  ;;  %16933 = vmatpush3.msra.mxu1 %v19169_v47 }
 0xa6c   : > { %16901 = vmatprep.subr.mxu0 %v17490_v24  ;;  %16934 = vmatprep.subr.mxu1 %v17490_v24 }
 0xa6d   : > { %16902 = vmatpush3.msra.mxu0 %v19200_v51  ;;  %16935 = vmatpush3.msra.mxu1 %v19178_v4 }
 0xa6e   : > { %16903 = vmatprep.subr.mxu0 %v17490_v24  ;;  %16936 = vmatprep.subr.mxu1 %v17490_v24 }
 0xa6f   : > { %16904 = vmatpush3.msra.mxu0 %v19210_v56  ;;  %16905 = vmatprep.mubr.msk.f32.mxu0 %vm17491_vm1, %v17490_v24 }
 0xa70   : > { %16937 = vmatpush3.msra.mxu1 %v19194_v15  ;;  %16938 = vmatprep.mubr.msk.f32.mxu1 %vm17491_vm1, %v17490_v24 }
 0xa71   : > { %16906 = vmatmul.mubr.f32.vlgmr.msra.gmra.mxu0 %v18369_v10  ;;  %16919 = vmatprep.subr.mxu0 %v17490_v24 }
 0xa72   : > { %16939 = vmatmul.mubr.f32.vlgmr.msra.gmra.mxu1 %v18358_v5  ;;  %16952 = vmatprep.subr.mxu1 %v17490_v24 }
 0xa73   : > { %16920 = vmatpush3.msra.mxu0 %v9367_v16  ;;  %16953 = vmatpush3.msra.mxu1 %v9867_v25  ;;  %v15180_v25 = vld [vmem:[%s20084_s8 + $0x2] ss:$0 sm:$0xff] }
 0xa74   : > { %16921 = vmatprep.subr.mxu0 %v17490_v24  ;;  %16954 = vmatprep.subr.mxu1 %v17490_v24 }
 0xa75   : > { %16922 = vmatpush3.msra.mxu0 %v9374_v53  ;;  %16955 = vmatpush3.msra.mxu1 %v9874_v29 }
 0xa76   : > { %16923 = vmatprep.subr.mxu0 %v17490_v24  ;;  %16956 = vmatprep.subr.mxu1 %v17490_v24 }
 0xa77   : > { %16924 = vmatpush3.msra.mxu0 %v9381_v57  ;;  %16957 = vmatpush3.msra.mxu1 %v9881_v30 }
 0xa78   : > { %16925 = vmatprep.subr.mxu0 %v17490_v24  ;;  %16958 = vmatprep.subr.mxu1 %v17490_v24 }
 0xa79   : > { %16926 = vmatpush3.msra.mxu0 %v9388_v54  ;;  %16927 = vmatprep.mubr.msk.f32.mxu0 %vm17491_vm1, %v17490_v24 }
 0xa7a   : > { %16959 = vmatpush3.msra.mxu1 %v9888_v31  ;;  %16960 = vmatprep.mubr.msk.f32.mxu1 %vm17491_vm1, %v17490_v24 }
 0xa7b   : > { %16928 = vmatmul.mubr.f32.vlgmr.msra.gmra.mxu0 %v18358_v5  ;;  %16941 = vmatprep.subr.mxu0 %v17490_v24 }
 0xa7c   : > { %16961 = vmatmul.mubr.f32.vlgmr.msra.gmra.mxu1 %v18469_v14  ;;  %16974 = vmatprep.subr.mxu1 %v17490_v24 }
 0xa7d   : > { %16942 = vmatpush3.msra.mxu0 %v19274_v35  ;;  %16975 = vmatpush3.msra.mxu1 %v19274_v35 }
 0xa7e   : > { %16943 = vmatprep.subr.mxu0 %v17490_v24  ;;  %16976 = vmatprep.subr.mxu1 %v17490_v24 }
 0xa7f   : > { %16944 = vmatpush3.msra.mxu0 %v19283_v36  ;;  %16977 = vmatpush3.msra.mxu1 %v19283_v36 }
 0xa80   : > { %16945 = vmatprep.subr.mxu0 %v17490_v24  ;;  %16978 = vmatprep.subr.mxu1 %v17490_v24 }
 0xa81   : > { %16946 = vmatpush3.msra.mxu0 %v19292_v44  ;;  %16979 = vmatpush3.msra.mxu1 %v19292_v44 }
 0xa82   : > { %16947 = vmatprep.subr.mxu0 %v17490_v24  ;;  %16980 = vmatprep.subr.mxu1 %v17490_v24 }
 0xa83   : > { %16948 = vmatpush3.msra.mxu0 %v19308_v17  ;;  %16949 = vmatprep.mubr.msk.f32.mxu0 %vm17491_vm1, %v17490_v24 }
 0xa84   : > { %16981 = vmatpush3.msra.mxu1 %v19308_v17  ;;  %16982 = vmatprep.mubr.msk.f32.mxu1 %vm17491_vm1, %v17490_v24 }
 0xa85   : > { %16950 = vmatmul.mubr.f32.vlgmr.msra.gmra.mxu0 %v18515_v18  ;;  %16963 = vmatprep.subr.mxu0 %v17490_v24 }
 0xa86   : > { %16983 = vmatmul.mubr.f32.vlgmr.msra.gmra.mxu1 %v18495_v3  ;;  %16996 = vmatprep.subr.mxu1 %v17490_v24 }
 0xa87   : > { %16964 = vmatpush3.msra.mxu0 %v19290_v39  ;;  %16997 = vmatpush3.msra.mxu1 %v19274_v35 }
 0xa88   : > { %16965 = vmatprep.subr.mxu0 %v17490_v24  ;;  %16998 = vmatprep.subr.mxu1 %v17490_v24 }
 0xa89   : > { %16966 = vmatpush3.msra.mxu0 %v19303_v7  ;;  %16999 = vmatpush3.msra.mxu1 %v19283_v36 }
 0xa8a   : > { %16967 = vmatprep.subr.mxu0 %v17490_v24  ;;  %17000 = vmatprep.subr.mxu1 %v17490_v24 }
 0xa8b   : > { %16968 = vmatpush3.msra.mxu0 %v19314_v21  ;;  %17001 = vmatpush3.msra.mxu1 %v19292_v44 }
 0xa8c   : > { %16969 = vmatprep.subr.mxu0 %v17490_v24  ;;  %17002 = vmatprep.subr.mxu1 %v17490_v24 }
 0xa8d   : > { %16970 = vmatpush3.msra.mxu0 %v19324_v13  ;;  %16971 = vmatprep.mubr.msk.f32.mxu0 %vm17491_vm1, %v17490_v24 }
 0xa8e   : > { %17003 = vmatpush3.msra.mxu1 %v19308_v17  ;;  %17004 = vmatprep.mubr.msk.f32.mxu1 %vm17491_vm1, %v17490_v24 }
 0xa8f   : > { %16972 = vmatmul.mubr.f32.vlgmr.msra.gmra.mxu0 %v18480_v23  ;;  %16985 = vmatprep.subr.mxu0 %v17490_v24 }
 0xa90   : > { %17005 = vmatmul.mubr.f32.vlgmr.msra.gmra.mxu1 %v18469_v14  ;;  %16986 = vmatpush3.msra.mxu0 %v9865_v38 }
 0xa91   : > { %16987 = vmatprep.subr.mxu0 %v17490_v24  ;;  %16993 = vmatprep.mubr.msk.f32.mxu0 %vm17491_vm1, %v17490_v24 }
 0xa92   : > { %16988 = vmatpush3.msra.mxu0 %v9872_v22  ;;  %17012 = vmatprep.subr.mxu1 %v17490_v24 }
 0xa93   : > { %16989 = vmatprep.subr.mxu0 %v17490_v24  ;;  %17014 = vmatprep.mubr.msk.f32.mxu1 %vm17491_vm1, %v17490_v24 }
 0xa94   : > { %16990 = vmatpush3.msra.mxu0 %v9879_v27 }
 0xa95   : > { %16991 = vmatprep.subr.mxu0 %v17490_v24 }
 0xa96   : > { %16992 = vmatpush3.msra.mxu0 %v9886_v45 }
 0xa97   : > { %16994 = vmatmul.mubr.f32.vlgmr.msra.gmra.mxu0 %v18469_v14  ;;  %17007 = vmatprep.subr.mxu0 %v17490_v24 }
 0xa98   : > { %17009 = vmatprep.mubr.msk.f32.mxu0 %vm17491_vm1, %v17490_v24 }
 0xae3   : > { %v8003_v6 = vpop.f32.mrf.mxu1 }
 0xae5   : > { %v16758_v32 = vpop.f32.mrf.mxu1 }
 0xae7   : > { %v8151_v34 = vpop.f32.mrf.mxu1 }
 0xae9   : > { %v16768_v37 = vpop.f32.mrf.mxu1 }
 0xaeb   : > { %v7927_v41 = vpop.f32.mrf.mxu0  ;;  %v8297_v12 = vpop.f32.mrf.mxu1 }
 0xaec   : > { %v8004_v42 = vadd.f32 %v8003_v6, %v7927_v41 }
 0xaed   : > { %v16753_v47 = vpop.f32.mrf.mxu0  ;;  %v16778_v49 = vpop.f32.mrf.mxu1 }
 0xaef   : > { %v8077_v4 = vpop.f32.mrf.mxu0  ;;  %v8452_v46 = vpop.f32.mrf.mxu1 }
 0xaf0   : > { %v8078_v9 = vadd.f32 %v8077_v4, %v8004_v42  ;;  %v15186_v4 = vld [vmem:[%s20084_s8 + $0x6] ss:$0 sm:$0xff] }
 0xaf1   : > { %v16763_v15 = vpop.f32.mrf.mxu0  ;;  %v16788_v16 = vpop.f32.mrf.mxu1 }
 0xaf2   : > { %v8152_v51 = vadd.f32 %v8151_v34, %v8078_v9 }
 0xaf3   : > { %v8225_v53 = vpop.f32.mrf.mxu0  ;;  %v8600_v56 = vpop.f32.mrf.mxu1 }
 0xaf4   : > { %v8226_v50 = vadd.f32 %v8225_v53, %v8152_v51 }
 0xaf5   : > { %v16773_v57 = vpop.f32.mrf.mxu0  ;;  %v16798_v58 = vpop.f32.mrf.mxu1 }
 0xaf6   : > { %v8298_v54 = vadd.f32 %v8297_v12, %v8226_v50 }
 0xaf7   : > { %v8376_v55 = vpop.f32.mrf.mxu0  ;;  %v8746_v59 = vpop.f32.mrf.mxu1 }
 0xaf8   : > { %v8377_v61 = vadd.f32 %v8376_v55, %v8298_v54 }
 0xaf9   : > { %v16783_v62 = vpop.f32.mrf.mxu0  ;;  %v16808_v48 = vpop.f32.mrf.mxu1 }
 0xafa   : > { %v8453_v0 = vadd.f32 %v8452_v46, %v8377_v61 }
 0xafb   : > { %v8526_v1 = vpop.f32.mrf.mxu0 }
 0xafc   : > { %v8527_v11 = vadd.f32 %v8526_v1, %v8453_v0 }
 0xafd   : > { %v16793_v35 = vpop.f32.mrf.mxu0 }
 0xafe   : > { %v8601_v33 = vadd.f32 %v8600_v56, %v8527_v11 }
 0xaff   : > { %v8929_v36 = vpop.f32.mrf.mxu1 }
 0xb00   : > { %v8674_v39 = vpop.f32.mrf.mxu0 }
 0xb01   : > { %v8675_v44 = vadd.f32 %v8674_v39, %v8601_v33  ;;  %v16830_v43 = vpop.f32.mrf.mxu1 }
 0xb02   : > { %v16803_v7 = vpop.f32.mrf.mxu0 }
 0xb03   : > { %v19443_v17 = vadd.f32 %v8746_v59, %v8675_v44 }
 0xb09   : > { %v8838_v38 = vpop.f32.mrf.mxu0 }
 0xb0a   : > { %v9086_v21 = vpop.f32.mrf.mxu1  ;;  %v8839_v26 = vadd.f32 %v15180_v25, %v8838_v38 }
 0xb0b   : > { %v16819_v22 = vpop.f32.mrf.mxu0 }
 0xb0c   : > { %v16852_v13 = vpop.f32.mrf.mxu1  ;;  %v8930_v6 = vadd.f32 %v8929_v36, %v8839_v26 }
 0xb0d   : > { %v15192_v13 = vld [vmem:[%s20084_s8 + $0xa] ss:$0 sm:$0xff] }
 0xb13   : > { %v9009_v20 = vpop.f32.mrf.mxu0 }
 0xb14   : > { %v9244_v27 = vpop.f32.mrf.mxu1  ;;  %v9010_v32 = vadd.f32 %v9009_v20, %v8930_v6 }
 0xb15   : > { %v16841_v28 = vpop.f32.mrf.mxu0 }
 0xb16   : > { %v16874_v45 = vpop.f32.mrf.mxu1  ;;  %v9087_v34 = vadd.f32 %v9086_v21, %v9010_v32 }
 0xb1d   : > { %v9169_v29 = vpop.f32.mrf.mxu0 }
 0xb1e   : > { %v9427_v52 = vpop.f32.mrf.mxu1  ;;  %v9170_v12 = vadd.f32 %v9169_v29, %v9087_v34 }
 0xb1f   : > { %v16863_v30 = vpop.f32.mrf.mxu0 }
 0xb20   : > { %v16896_v31 = vpop.f32.mrf.mxu1  ;;  %v9245_v49 = vadd.f32 %v9244_v27, %v9170_v12 }
 0xb22   : > { %v10245_v9 = vsel %vm4528_vm2, %v9245_v49, 0 }
 0xb23   : > { %v10316_v53 = vand.u32 4294901760, %v10245_v9 }
 0xb25   : > { %v10317_v58 = vsub.f32 %v10245_v9, %v10316_v53 }
 0xb27   : > { %v9336_v37 = vpop.f32.mrf.mxu0  ;;  %v10318_v59 = vand.u32 4294901760, %v10317_v58 }
 0xb28   : > { %v9584_v41 = vpop.f32.mrf.mxu1  ;;  %v9337_v46 = vadd.f32 %v15186_v4, %v9336_v37 }
 0xb29   : > { %v16885_v42 = vpop.f32.mrf.mxu0  ;;  %v10319_v11 = vsub.f32 %v10317_v58, %v10318_v59 }
 0xb2a   : > { %v16918_v47 = vpop.f32.mrf.mxu1  ;;  %v9428_v56 = vadd.f32 %v9427_v52, %v9337_v46 }
 0xb2b   : > { %v10320_v39 = vand.u32 4294901760, %v10319_v11 }
 0xb31   : > { %v9507_v15 = vpop.f32.mrf.mxu0 }
 0xb32   : > { %v9742_v16 = vpop.f32.mrf.mxu1  ;;  %v9508_v57 = vadd.f32 %v9507_v15, %v9428_v56 }
 0xb33   : > { %v16907_v51 = vpop.f32.mrf.mxu0 }
 0xb34   : > { %v16940_v50 = vpop.f32.mrf.mxu1  ;;  %v9585_v54 = vadd.f32 %v9584_v41, %v9508_v57 }
 0xb3b   : > { %v9667_v55 = vpop.f32.mrf.mxu0 }
 0xb3c   : > { %v9668_v61 = vadd.f32 %v9667_v55, %v9585_v54  ;;  %v9925_v62 = vpop.f32.mrf.mxu1 }
 0xb3d   : > { %v16929_v48 = vpop.f32.mrf.mxu0 }
 0xb3e   : > { %v9743_v0 = vadd.f32 %v9742_v16, %v9668_v61  ;;  %v16962_v1 = vpop.f32.mrf.mxu1 }
 0xb40   : > { %v10248_v35 = vsel %vm4528_vm2, %v9743_v0, 0 }
 0xb41   : > { %v10281_v33 = vand.u32 4294901760, %v10248_v35 }
 0xb43   : > { %v10358_v36 = vsub.f32 %v10248_v35, %v10281_v33  ;;  %17008 = vmatpush3.xpose.msra.mxu0 %v10281_v33 }
 0xb44   : > { %17017 = vmatprep.subr.mxu0 %v17490_v24 }
 0xb45   : > { %v9834_v44 = vpop.f32.mrf.mxu0  ;;  %v10359_v43 = vand.u32 4294901760, %v10358_v36 }
 0xb46   : > { %v10082_v7 = vpop.f32.mrf.mxu1  ;;  %17010 = vmatmul.mubr.f32.vlgmr.msra.gmra.mxu0 %v10320_v39  ;;  %v9835_v27 = vadd.f32 %v15192_v13, %v9834_v44 }
 0xb47   : > { %v16951_v38 = vpop.f32.mrf.mxu0  ;;  %17018 = vmatpush3.xpose.msra.mxu0 %v10358_v36  ;;  %17019 = vmatprep.mubr.msk.f32.mxu0 %vm17491_vm1, %v17490_v24  ;;  %v10360_v21 = vsub.f32 %v10358_v36, %v10359_v43 }
 0xb48   : > { %v16984_v22 = vpop.f32.mrf.mxu1  ;;  %17027 = vmatprep.subr.mxu0 %v17490_v24  ;;  %v9926_v45 = vadd.f32 %v9925_v62, %v9835_v27  ;;  %v15193_v27 = vld [vmem:[%s20085_s9 + $0x10] sm:$0xff] }
 0xb49   : > { %v10361_v20 = vand.u32 4294901760, %v10360_v21 }
 0xb4a   : > { %17020 = vmatmul.mubr.f32.vlgmr.msra.gmra.mxu0 %v10317_v58 }
 0xb4b   : > { %17013 = vmatpush3.xpose.msra.mxu1 %v10361_v20  ;;  %17028 = vmatpush3.xpose.msra.mxu0 %v10359_v43 }
 0xb4c   : > { %17029 = vmatprep.mubr.msk.f32.mxu0 %vm17491_vm1, %v17490_v24  ;;  %17022 = vmatprep.subr.mxu1 %v17490_v24 }
 0xb4d   : > { %17037 = vmatprep.subr.mxu0 %v17490_v24 }
 0xb4e   : > { %17015 = vmatmul.mubr.f32.vlgmr.msra.gmra.mxu1 %v10316_v53  ;;  %17030 = vmatmul.mubr.f32.vlgmr.msra.gmra.mxu0 %v10316_v53 }
 0xb4f   : > { %v10005_v28 = vpop.f32.mrf.mxu0  ;;  %17023 = vmatpush3.xpose.msra.mxu1 %v10281_v33  ;;  %17024 = vmatprep.mubr.msk.f32.mxu1 %vm17491_vm1, %v17490_v24 }
 0xb50   : > { %v10240_v25 = vpop.f32.mrf.mxu1  ;;  %17032 = vmatprep.subr.mxu1 %v17490_v24  ;;  %17039 = vmatprep.mubr.msk.f32.mxu0 %vm17491_vm1, %v17490_v24  ;;  %v10006_v29 = vadd.f32 %v10005_v28, %v9926_v45  ;;  %v11193_v28 = vand.u32 4294901760, %v15193_v27 }
 0xb51   : > { %v16973_v26 = vpop.f32.mrf.mxu0 }
 0xb52   : > { %v17006_v52 = vpop.f32.mrf.mxu1  ;;  %17025 = vmatmul.mubr.f32.vlgmr.msra.gmra.mxu1 %v10318_v59  ;;  %v10083_v30 = vadd.f32 %v10082_v7, %v10006_v29  ;;  %v19498_v45 = vsub.f32 %v15193_v27, %v11193_v28 }
 0xb53   : > { %17033 = vmatpush3.xpose.msra.mxu1 %v10281_v33  ;;  %17034 = vmatprep.mubr.msk.f32.mxu1 %vm17491_vm1, %v17490_v24 }
 0xb54   : > { %17042 = vmatprep.subr.mxu1 %v17490_v24 }
 0xb56   : > { %17035 = vmatmul.mubr.f32.vlgmr.msra.gmra.mxu1 %v10316_v53 }
 0xb57   : > { %v10165_v31 = vpop.f32.mrf.mxu0  ;;  %17044 = vmatprep.mubr.msk.f32.mxu1 %vm17491_vm1, %v17490_v24 }
 0xb58   : > { %v10166_v6 = vadd.f32 %v10165_v31, %v10083_v30 }
 0xb59   : > { %v16995_v32 = vpop.f32.mrf.mxu0 }
 0xb5a   : > { %v10241_v34 = vadd.f32 %v10240_v25, %v10166_v6  ;;  %v11271_v25 = vand.u32 4294901760, %v19498_v45 }
 0xb5c   : > { %v10742_v37 = vand.u32 4294901760, %v10241_v34  ;;  %v11272_v26 = vsub.f32 %v19498_v45, %v11271_v25 }
 0xb5e   : > { %v10819_v41 = vsub.f32 %v10241_v34, %v10742_v37  ;;  %17038 = vmatpush3.msra.mxu0 %v10742_v37  ;;  %v11273_v29 = vand.u32 4294901760, %v11272_v26 }
 0xb5f   : > { %17047 = vmatprep.subr.mxu0 %v17490_v24 }
 0xb60   : > { %v10820_v12 = vand.u32 4294901760, %v10819_v41 }
 0xb62   : > { %v10821_v42 = vsub.f32 %v10819_v41, %v10820_v12 }
 0xb64   : > { %v10822_v47 = vand.u32 4294901760, %v10821_v42 }
 0xb66   : > { %17043 = vmatpush3.msra.mxu1 %v10822_v47 }
 0xb67   : > { %17052 = vmatprep.subr.mxu1 %v17490_v24 }
 0xc06   : > { %v10322_v49 = vpop.f32.mrf.mxu0 }
 0xc08   : > { %v17011_v4 = vpop.f32.mrf.mxu0 }
 0xc0a   : > { %v10472_v46 = vpop.f32.mrf.mxu0 }
 0xc0c   : > { %v17021_v9 = vpop.f32.mrf.mxu0 }
 0xc0e   : > { %v10398_v15 = vpop.f32.mrf.mxu1  ;;  %v10620_v16 = vpop.f32.mrf.mxu0 }
 0xc0f   : > { %v10399_v51 = vadd.f32 %v10398_v15, %v10322_v49  ;;  %v15196_v49 = vld [vmem:[%s20083_s7 + $0x70] sm:$0xff]  ;;  %v15195_v15 = vld [vmem:[%s20083_s7 + $0x68] sm:$0xff] }
 0xc10   : > { %v17016_v53 = vpop.f32.mrf.mxu1  ;;  %v17031_v56 = vpop.f32.mrf.mxu0 }
 0xc11   : > { %v10473_v50 = vadd.f32 %v10472_v46, %v10399_v51  ;;  %v19517_v51 = vand.u32 4294901760, %v15196_v49  ;;  %v15194_v56 = vld [vmem:[%s20083_s7 + $0x60] sm:$0xff] }
 0xc12   : > { %v10546_v57 = vpop.f32.mrf.mxu1 }
 0xc13   : > { %v10547_v58 = vadd.f32 %v10546_v57, %v10473_v50 }
 0xc14   : > { %v17026_v54 = vpop.f32.mrf.mxu1 }
 0xc15   : > { %v10621_v55 = vadd.f32 %v10620_v16, %v10547_v58  ;;  %v19525_v58 = vand.u32 4294901760, %v15195_v15 }
 0xc16   : > { %v10692_v59 = vpop.f32.mrf.mxu1 }
 0xc17   : > { %v10693_v61 = vadd.f32 %v10692_v59, %v10621_v55  ;;  %v19528_v59 = vsub.f32 %v15196_v49, %v19517_v51 }
 0xc18   : > { %v17036_v62 = vpop.f32.mrf.mxu1 }
 0xc19   : > { %v10696_v48 = vmul.f32 0.35355338, %v10693_v61  ;;  %v19530_v61 = vand.u32 4294901760, %v15194_v56 }
 0xc1b   : > { %v10697_v0 = vsel %vm4528_vm2, %v10696_v48, -inf }
 0xc1c   : > { %10698 = vmax.xlane.f32.xlu0 %v10697_v0  ;;  %v19535_v0 = vsub.f32 %v15195_v15, %v19525_v58 }
 0xca5   : > { %v10699_v1 = vpop.xlane.xlu0 %10698 }
 0xca6   : > { %v10700_v11 = vsub.f32 %v10696_v48, %v10699_v1 }
 0xca8   : > { %v10701_v35 = vmul.f32 1.442695, %v10700_v11  ;;  %v11735_v11 = vand.u32 4294901760, %v19528_v59 }
 0xcaa   : > { %17471 = vpow2.f32 %v10701_v35  ;;  %v19539_v35 = vsub.f32 %v15194_v56, %v19530_v61  ;;  %v15208_v56 = vld [vmem:[%s20083_s7 + $0x170] sm:$0xff] }
 0xcb7   : > { %v17472_v33 = vpop.eup %17471 }
 0xcb8   : > { %v10703_v36 = vsel %vm4528_vm2, %v17472_v33, 0.0 }
 0xcb9   : > { %10704 = vadd.xlane.f32.xlu1 %v10703_v36 }
 0xd42   : > { %v10705_v39 = vpop.xlane.xlu1 %10704 }
 0xd43   : > { %17473 = vrcp.f32 %v10705_v39  ;;  %v11742_v39 = vand.u32 4294901760, %v19535_v0 }
 0xd50   : > { %v17474_v44 = vpop.eup %17473 }
 0xd51   : > { %v10707_v43 = vmul.f32 %v17474_v44, %v17472_v33 }
 0xd53   : > { %v10709_v7 = vsel %vm4528_vm2, %v10707_v43, 0  ;;  %v11736_v43 = vsub.f32 %v19528_v59, %v11735_v11 }
 0xd54   : > { %v10777_v38 = vand.u32 4294901760, %v10709_v7 }
 0xd56   : > { %v10778_v21 = vsub.f32 %v10709_v7, %v10777_v38  ;;  %17045 = vmatmul.mubr.f32.vlgmr.msra.gmra.mxu1 %v10777_v38  ;;  %v11749_v7 = vand.u32 4294901760, %v19539_v35 }
 0xd57   : > { %17053 = vmatpush3.msra.mxu1 %v10742_v37  ;;  %17054 = vmatprep.mubr.msk.f32.mxu1 %vm17491_vm1, %v17490_v24 }
 0xd58   : > { %17062 = vmatprep.subr.mxu1 %v17490_v24  ;;  %v10779_v22 = vand.u32 4294901760, %v10778_v21  ;;  %v11750_v27 = vsub.f32 %v19539_v35, %v11749_v7 }
 0xd5a   : > { %17055 = vmatmul.mubr.f32.vlgmr.msra.gmra.mxu1 %v10779_v22  ;;  %v10780_v13 = vsub.f32 %v10778_v21, %v10779_v22  ;;  %v11743_v22 = vsub.f32 %v19535_v0, %v11742_v39  ;;  %v11751_v26 = vand.u32 4294901760, %v11750_v27 }
 0xd5b   : > { %17063 = vmatpush3.msra.mxu1 %v10742_v37  ;;  %17064 = vmatprep.mubr.msk.f32.mxu1 %vm17491_vm1, %v17490_v24 }
 0xd5c   : > { %v10781_v20 = vand.u32 4294901760, %v10780_v13  ;;  %17072 = vmatprep.subr.mxu1 %v17490_v24 }
 0xd5e   : > { %17040 = vmatmul.mubr.f32.vlgmr.msra.gmra.mxu0 %v10781_v20  ;;  %17065 = vmatmul.mubr.f32.vlgmr.msra.gmra.mxu1 %v10777_v38  ;;  %v11737_v20 = vand.u32 4294901760, %v11736_v43 }
 0xd5f   : > { %17048 = vmatpush3.msra.mxu0 %v10819_v41  ;;  %17049 = vmatprep.mubr.msk.f32.mxu0 %vm17491_vm1, %v17490_v24 }
 0xd60   : > { %17057 = vmatprep.subr.mxu0 %v17490_v24  ;;  %17074 = vmatprep.mubr.msk.f32.mxu1 %vm17491_vm1, %v17490_v24 }
 0xd61   : > { %17073 = vmatpush3.msra.mxu1 %v11273_v29  ;;  %v15203_v29 = vld [vmem:[%s20083_s7 + $0xf8] sm:$0xff] }
 0xd62   : > { %17050 = vmatmul.mubr.f32.vlgmr.msra.gmra.mxu0 %v10778_v21  ;;  %17082 = vmatprep.subr.mxu1 %v17490_v24 }
 0xd63   : > { %17058 = vmatpush3.msra.mxu0 %v10820_v12  ;;  %17059 = vmatprep.mubr.msk.f32.mxu0 %vm17491_vm1, %v17490_v24  ;;  %v15197_v12 = vld [vmem:[%s20083_s7 + $0x78] sm:$0xff] }
 0xd64   : > { %17067 = vmatprep.subr.mxu0 %v17490_v24  ;;  %v19512_v46 = vand.u32 4294901760, %v15197_v12 }
 0xd66   : > { %17060 = vmatmul.mubr.f32.vlgmr.msra.gmra.mxu0 %v10777_v38  ;;  %v19523_v57 = vsub.f32 %v15197_v12, %v19512_v46 }
 0xd67   : > { %17069 = vmatprep.mubr.msk.f32.mxu0 %vm17491_vm1, %v17490_v24  ;;  %17068 = vmatpush3.msra.mxu0 %v11193_v28 }
 0xd68   : > { %17077 = vmatprep.subr.mxu0 %v17490_v24  ;;  %v11728_v48 = vand.u32 4294901760, %v19523_v57 }
 0xd6a   : > { %v11729_v36 = vsub.f32 %v19523_v57, %v11728_v48 }
 0xd6c   : > { %v11730_v21 = vand.u32 4294901760, %v11729_v36 }
 0xe16   : > { %v10859_v52 = vpop.f32.mrf.mxu1 }
 0xe18   : > { %v17046_v30 = vpop.f32.mrf.mxu1 }
 0xe1a   : > { %v11007_v31 = vpop.f32.mrf.mxu1 }
 0xe1c   : > { %v17056_v6 = vpop.f32.mrf.mxu1 }
 0xe1e   : > { %v10783_v32 = vpop.f32.mrf.mxu0  ;;  %v11153_v34 = vpop.f32.mrf.mxu1 }
 0xe1f   : > { %v10860_v42 = vadd.f32 %v10859_v52, %v10783_v32  ;;  %v15201_v52 = vld [vmem:[%s20083_s7 + $0xe8] sm:$0xff]  ;;  %v15200_v32 = vld [vmem:[%s20083_s7 + $0xe0] sm:$0xff] }
 0xe20   : > { %v17041_v37 = vpop.f32.mrf.mxu0  ;;  %v17066_v41 = vpop.f32.mrf.mxu1  ;;  %v19603_v6 = vand.u32 4294901760, %v15201_v52 }
 0xe21   : > { %v19619_v37 = vand.u32 4294901760, %v15200_v32 }
 0xe22   : > { %v10933_v47 = vpop.f32.mrf.mxu0  ;;  %v19625_v12 = vsub.f32 %v15201_v52, %v19603_v6 }
 0xe23   : > { %v10934_v4 = vadd.f32 %v10933_v47, %v10860_v42 }
 0xe24   : > { %v17051_v9 = vpop.f32.mrf.mxu0  ;;  %v12240_v47 = vand.u32 4294901760, %v19625_v12 }
 0xe25   : > { %v11008_v16 = vadd.f32 %v11007_v31, %v10934_v4 }
 0xe26   : > { %v11081_v53 = vpop.f32.mrf.mxu0  ;;  %v12241_v9 = vsub.f32 %v19625_v12, %v12240_v47 }
 0xe27   : > { %v11082_v50 = vadd.f32 %v11081_v53, %v11008_v16  ;;  %v15209_v53 = vld [vmem:[%s20083_s7 + $0x178] sm:$0xff] }
 0xe28   : > { %v17061_v54 = vpop.f32.mrf.mxu0 }
 0xe29   : > { %v11154_v55 = vadd.f32 %v11153_v34, %v11082_v50  ;;  %v19699_v50 = vand.u32 4294901760, %v15209_v53 }
 0xe2b   : > { %v11160_v62 = vsel %vm4528_vm2, %v11154_v55, 0  ;;  %v15206_v55 = vld [vmem:[%s20083_s7 + $0x160] sm:$0xff] }
 0xe2c   : > { %v11228_v1 = vand.u32 4294901760, %v11160_v62 }
 0xe2e   : > { %v11229_v33 = vsub.f32 %v11160_v62, %v11228_v1  ;;  %17075 = vmatmul.mubr.f32.vlgmr.msra.gmra.mxu1 %v11228_v1 }
 0xe2f   : > { %17083 = vmatpush3.msra.mxu1 %v11193_v28  ;;  %17084 = vmatprep.mubr.msk.f32.mxu1 %vm17491_vm1, %v17490_v24 }
 0xe30   : > { %v11230_v44 = vand.u32 4294901760, %v11229_v33  ;;  %17092 = vmatprep.subr.mxu1 %v17490_v24 }
 0xe32   : > { %v11231_v38 = vsub.f32 %v11229_v33, %v11230_v44  ;;  %17085 = vmatmul.mubr.f32.vlgmr.msra.gmra.mxu1 %v11230_v44 }
 0xe33   : > { %17093 = vmatpush3.msra.mxu1 %v11193_v28  ;;  %17094 = vmatprep.mubr.msk.f32.mxu1 %vm17491_vm1, %v17490_v24  ;;  %v11744_v28 = vand.u32 4294901760, %v11743_v22 }
 0xe34   : > { %v11232_v13 = vand.u32 4294901760, %v11231_v38  ;;  %17108 = vmatprep.subr.mxu1 %v17490_v24 }
 0xe36   : > { %17070 = vmatmul.mubr.f32.vlgmr.msra.gmra.mxu0 %v11232_v13  ;;  %17095 = vmatmul.mubr.f32.vlgmr.msra.gmra.mxu1 %v11228_v1 }
 0xe37   : > { %17109 = vmatpush3.msra.mxu1 %v11730_v21  ;;  %17078 = vmatpush3.msra.mxu0 %v19498_v45  ;;  %v15202_v45 = vld [vmem:[%s20083_s7 + $0xf0] sm:$0xff] }
 0xe38   : > { %17110 = vmatprep.subr.mxu1 %v17490_v24  ;;  %17079 = vmatprep.mubr.msk.f32.mxu0 %vm17491_vm1, %v17490_v24  ;;  %v19594_v30 = vand.u32 4294901760, %v15202_v45 }
 0xe39   : > { %17111 = vmatpush3.msra.mxu1 %v11737_v20  ;;  %17087 = vmatprep.subr.mxu0 %v17490_v24 }
 0xe3a   : > { %17112 = vmatprep.subr.mxu1 %v17490_v24  ;;  %17080 = vmatmul.mubr.f32.vlgmr.msra.gmra.mxu0 %v11229_v33  ;;  %v19614_v34 = vsub.f32 %v15202_v45, %v19594_v30 }
 0xe3b   : > { %17113 = vmatpush3.msra.mxu1 %v11744_v28  ;;  %17088 = vmatpush3.msra.mxu0 %v11271_v25  ;;  %v19585_v25 = vand.u32 4294901760, %v15203_v29 }
 0xe3c   : > { %17114 = vmatprep.subr.mxu1 %v17490_v24  ;;  %17116 = vmatprep.mubr.msk.f32.mxu1 %vm17491_vm1, %v17490_v24  ;;  %v12233_v42 = vand.u32 4294901760, %v19614_v34 }
 0xe3d   : > { %17115 = vmatpush3.msra.mxu1 %v11751_v26  ;;  %17089 = vmatprep.mubr.msk.f32.mxu0 %vm17491_vm1, %v17490_v24  ;;  %v19601_v31 = vsub.f32 %v15203_v29, %v19585_v25 }
 0xe3e   : > { %17097 = vmatprep.subr.mxu0 %v17490_v24  ;;  %17117 = vmatmul.mubr.f32.vlgmr.msra.gmra.mxu1 %v18246_v63  ;;  %v12234_v49 = vsub.f32 %v19614_v34, %v12233_v42 }
 0xe3f   : > { %17130 = vmatprep.subr.mxu1 %v17490_v24  ;;  %17090 = vmatmul.mubr.f32.vlgmr.msra.gmra.mxu0 %v11228_v1  ;;  %v12226_v41 = vand.u32 4294901760, %v19601_v31 }
 0xe40   : > { %17098 = vmatpush3.msra.mxu0 %v19512_v46  ;;  %17131 = vmatpush3.msra.mxu1 %v19512_v46  ;;  %v12235_v15 = vand.u32 4294901760, %v12234_v49 }
 0xe41   : > { %17099 = vmatprep.subr.mxu0 %v17490_v24  ;;  %17132 = vmatprep.subr.mxu1 %v17490_v24 }
 0xe42   : > { %17100 = vmatpush3.msra.mxu0 %v19517_v51  ;;  %17133 = vmatpush3.msra.mxu1 %v19517_v51 }
 0xe43   : > { %17101 = vmatprep.subr.mxu0 %v17490_v24  ;;  %17134 = vmatprep.subr.mxu1 %v17490_v24 }
 0xe44   : > { %17102 = vmatpush3.msra.mxu0 %v19525_v58  ;;  %17135 = vmatpush3.msra.mxu1 %v19525_v58 }
 0xe45   : > { %17103 = vmatprep.subr.mxu0 %v17490_v24  ;;  %17136 = vmatprep.subr.mxu1 %v17490_v24 }
 0xe46   : > { %17104 = vmatpush3.msra.mxu0 %v19530_v61  ;;  %17105 = vmatprep.mubr.msk.f32.mxu0 %vm17491_vm1, %v17490_v24 }
 0xe47   : > { %17137 = vmatpush3.msra.mxu1 %v19530_v61  ;;  %17138 = vmatprep.mubr.msk.f32.mxu1 %vm17491_vm1, %v17490_v24 }
 0xe48   : > { %17106 = vmatmul.mubr.f32.vlgmr.msra.gmra.mxu0 %v18283_v8  ;;  %17119 = vmatprep.subr.mxu0 %v17490_v24  ;;  %v19635_v8 = vsub.f32 %v15200_v32, %v19619_v37 }
 0xe49   : > { %17139 = vmatmul.mubr.f32.vlgmr.msra.gmra.mxu1 %v18265_v40  ;;  %17152 = vmatprep.subr.mxu1 %v17490_v24  ;;  %v12227_v40 = vsub.f32 %v19601_v31, %v12226_v41 }
 0xe4a   : > { %17120 = vmatpush3.msra.mxu0 %v19523_v57  ;;  %17153 = vmatpush3.msra.mxu1 %v19512_v46  ;;  %v12247_v4 = vand.u32 4294901760, %v19635_v8  ;;  %v19708_v57 = vand.u32 4294901760, %v15208_v56 }
 0xe4b   : > { %17121 = vmatprep.subr.mxu0 %v17490_v24  ;;  %17154 = vmatprep.subr.mxu1 %v17490_v24  ;;  %v12228_v46 = vand.u32 4294901760, %v12227_v40  ;;  %v15199_v40 = vld [vmem:[%s20084_s8 + $0x3] ss:$0 sm:$0xff] }
 0xe4c   : > { %17122 = vmatpush3.msra.mxu0 %v19528_v59  ;;  %17155 = vmatpush3.msra.mxu1 %v19517_v51  ;;  %v12248_v16 = vsub.f32 %v19635_v8, %v12247_v4  ;;  %v12242_v51 = vand.u32 4294901760, %v12241_v9  ;;  %v19728_v59 = vsub.f32 %v15208_v56, %v19708_v57 }
 0xe4d   : > { %17123 = vmatprep.subr.mxu0 %v17490_v24  ;;  %17156 = vmatprep.subr.mxu1 %v17490_v24 }
 0xe4e   : > { %17124 = vmatpush3.msra.mxu0 %v19535_v0  ;;  %17157 = vmatpush3.msra.mxu1 %v19525_v58  ;;  %v19715_v58 = vsub.f32 %v15209_v53, %v19699_v50  ;;  %v12731_v0 = vand.u32 4294901760, %v19728_v59 }
 0xe4f   : > { %17125 = vmatprep.subr.mxu0 %v17490_v24  ;;  %17158 = vmatprep.subr.mxu1 %v17490_v24 }
 0xe50   : > { %17126 = vmatpush3.msra.mxu0 %v19539_v35  ;;  %17127 = vmatprep.mubr.msk.f32.mxu0 %vm17491_vm1, %v17490_v24  ;;  %v12724_v62 = vand.u32 4294901760, %v19715_v58 }
 0xe51   : > { %17159 = vmatpush3.msra.mxu1 %v19530_v61  ;;  %17160 = vmatprep.mubr.msk.f32.mxu1 %vm17491_vm1, %v17490_v24  ;;  %v19733_v61 = vand.u32 4294901760, %v15206_v55 }
 0xe52   : > { %17128 = vmatmul.mubr.f32.vlgmr.msra.gmra.mxu0 %v18252_v2  ;;  %17141 = vmatprep.subr.mxu0 %v17490_v24  ;;  %v12249_v2 = vand.u32 4294901760, %v12248_v16 }
 0xe53   : > { %17161 = vmatmul.mubr.f32.vlgmr.msra.gmra.mxu1 %v18246_v63  ;;  %17174 = vmatprep.subr.mxu1 %v17490_v24 }
 0xe54   : > { %17142 = vmatpush3.msra.mxu0 %v11728_v48  ;;  %17175 = vmatpush3.msra.mxu1 %v12228_v46 }
 0xe55   : > { %17143 = vmatprep.subr.mxu0 %v17490_v24  ;;  %17176 = vmatprep.subr.mxu1 %v17490_v24 }
 0xe56   : > { %17144 = vmatpush3.msra.mxu0 %v11735_v11  ;;  %17177 = vmatpush3.msra.mxu1 %v12235_v15  ;;  %v12732_v11 = vsub.f32 %v19728_v59, %v12731_v0 }
 0xe57   : > { %17145 = vmatprep.subr.mxu0 %v17490_v24  ;;  %17178 = vmatprep.subr.mxu1 %v17490_v24 }
 0xe58   : > { %17146 = vmatpush3.msra.mxu0 %v11742_v39  ;;  %17179 = vmatpush3.msra.mxu1 %v12242_v51  ;;  %v12733_v39 = vand.u32 4294901760, %v12732_v11 }
 0xe59   : > { %17147 = vmatprep.subr.mxu0 %v17490_v24  ;;  %17180 = vmatprep.subr.mxu1 %v17490_v24 }
 0xe5a   : > { %17148 = vmatpush3.msra.mxu0 %v11749_v7  ;;  %17149 = vmatprep.mubr.msk.f32.mxu0 %vm17491_vm1, %v17490_v24 }
 0xe5b   : > { %17181 = vmatpush3.msra.mxu1 %v12249_v2  ;;  %17182 = vmatprep.mubr.msk.f32.mxu1 %vm17491_vm1, %v17490_v24 }
 0xe5c   : > { %17150 = vmatmul.mubr.f32.vlgmr.msra.gmra.mxu0 %v18246_v63  ;;  %17163 = vmatprep.subr.mxu0 %v17490_v24  ;;  %v15207_v63 = vld [vmem:[%s20083_s7 + $0x168] sm:$0xff] }
 0xe5d   : > { %17183 = vmatmul.mubr.f32.vlgmr.msra.gmra.mxu1 %v18358_v5  ;;  %17196 = vmatprep.subr.mxu1 %v17490_v24  ;;  %v19717_v54 = vand.u32 4294901760, %v15207_v63 }
 0xe5e   : > { %17164 = vmatpush3.msra.mxu0 %v19585_v25  ;;  %17197 = vmatpush3.msra.mxu1 %v19585_v25 }
 0xe5f   : > { %17165 = vmatprep.subr.mxu0 %v17490_v24  ;;  %17198 = vmatprep.subr.mxu1 %v17490_v24  ;;  %v19739_v48 = vsub.f32 %v15207_v63, %v19717_v54 }
 0xe60   : > { %17166 = vmatpush3.msra.mxu0 %v19594_v30  ;;  %17199 = vmatpush3.msra.mxu1 %v19594_v30 }
 0xe61   : > { %17167 = vmatprep.subr.mxu0 %v17490_v24  ;;  %17200 = vmatprep.subr.mxu1 %v17490_v24  ;;  %v12738_v1 = vand.u32 4294901760, %v19739_v48 }
 0xe62   : > { %17168 = vmatpush3.msra.mxu0 %v19603_v6  ;;  %17201 = vmatpush3.msra.mxu1 %v19603_v6 }
 0xe63   : > { %17169 = vmatprep.subr.mxu0 %v17490_v24  ;;  %17202 = vmatprep.subr.mxu1 %v17490_v24  ;;  %v12739_v36 = vsub.f32 %v19739_v48, %v12738_v1 }
 0xe64   : > { %17170 = vmatpush3.msra.mxu0 %v19619_v37  ;;  %17171 = vmatprep.mubr.msk.f32.mxu0 %vm17491_vm1, %v17490_v24 }
 0xe65   : > { %17203 = vmatpush3.msra.mxu1 %v19619_v37  ;;  %17204 = vmatprep.mubr.msk.f32.mxu1 %vm17491_vm1, %v17490_v24  ;;  %v12740_v43 = vand.u32 4294901760, %v12739_v36 }
 0xe66   : > { %17172 = vmatmul.mubr.f32.vlgmr.msra.gmra.mxu0 %v18408_v60  ;;  %17185 = vmatprep.subr.mxu0 %v17490_v24  ;;  %v19749_v60 = vsub.f32 %v15206_v55, %v19733_v61 }
 0xe67   : > { %17205 = vmatmul.mubr.f32.vlgmr.msra.gmra.mxu1 %v18383_v19  ;;  %17218 = vmatprep.subr.mxu1 %v17490_v24  ;;  %v12725_v19 = vsub.f32 %v19715_v58, %v12724_v62 }
 0xe68   : > { %17186 = vmatpush3.msra.mxu0 %v19601_v31  ;;  %17219 = vmatpush3.msra.mxu1 %v19585_v25  ;;  %v12745_v35 = vand.u32 4294901760, %v19749_v60 }
 0xe69   : > { %17187 = vmatprep.subr.mxu0 %v17490_v24  ;;  %17220 = vmatprep.subr.mxu1 %v17490_v24  ;;  %v12726_v33 = vand.u32 4294901760, %v12725_v19 }
 0xe6a   : > { %17188 = vmatpush3.msra.mxu0 %v19614_v34  ;;  %17221 = vmatpush3.msra.mxu1 %v19594_v30  ;;  %v12746_v44 = vsub.f32 %v19749_v60, %v12745_v35 }
 0xe6b   : > { %17189 = vmatprep.subr.mxu0 %v17490_v24  ;;  %17222 = vmatprep.subr.mxu1 %v17490_v24 }
 0xe6c   : > { %17190 = vmatpush3.msra.mxu0 %v19625_v12  ;;  %17223 = vmatpush3.msra.mxu1 %v19603_v6 }
 0xe6d   : > { %17191 = vmatprep.subr.mxu0 %v17490_v24  ;;  %17224 = vmatprep.subr.mxu1 %v17490_v24 }
 0xe6e   : > { %17192 = vmatpush3.msra.mxu0 %v19635_v8  ;;  %17193 = vmatprep.mubr.msk.f32.mxu0 %vm17491_vm1, %v17490_v24 }
 0xe6f   : > { %17225 = vmatpush3.msra.mxu1 %v19619_v37  ;;  %17226 = vmatprep.mubr.msk.f32.mxu1 %vm17491_vm1, %v17490_v24 }
 0xe70   : > { %17194 = vmatmul.mubr.f32.vlgmr.msra.gmra.mxu0 %v18369_v10  ;;  %17207 = vmatprep.subr.mxu0 %v17490_v24  ;;  %v12747_v10 = vand.u32 4294901760, %v12746_v44 }
 0xe71   : > { %17227 = vmatmul.mubr.f32.vlgmr.msra.gmra.mxu1 %v18358_v5  ;;  %17240 = vmatprep.subr.mxu1 %v17490_v24 }
 0xe72   : > { %17208 = vmatpush3.msra.mxu0 %v12226_v41  ;;  %17241 = vmatpush3.msra.mxu1 %v12726_v33 }
 0xe73   : > { %17209 = vmatprep.subr.mxu0 %v17490_v24  ;;  %17242 = vmatprep.subr.mxu1 %v17490_v24 }
 0xe74   : > { %17210 = vmatpush3.msra.mxu0 %v12233_v42  ;;  %17243 = vmatpush3.msra.mxu1 %v12733_v39 }
 0xe75   : > { %17211 = vmatprep.subr.mxu0 %v17490_v24  ;;  %17244 = vmatprep.subr.mxu1 %v17490_v24 }
 0xe76   : > { %17212 = vmatpush3.msra.mxu0 %v12240_v47  ;;  %17245 = vmatpush3.msra.mxu1 %v12740_v43 }
 0xe77   : > { %17213 = vmatprep.subr.mxu0 %v17490_v24  ;;  %17246 = vmatprep.subr.mxu1 %v17490_v24 }
 0xe78   : > { %17214 = vmatpush3.msra.mxu0 %v12247_v4  ;;  %17215 = vmatprep.mubr.msk.f32.mxu0 %vm17491_vm1, %v17490_v24 }
 0xe79   : > { %17247 = vmatpush3.msra.mxu1 %v12747_v10  ;;  %17248 = vmatprep.mubr.msk.f32.mxu1 %vm17491_vm1, %v17490_v24 }
 0xe7a   : > { %17216 = vmatmul.mubr.f32.vlgmr.msra.gmra.mxu0 %v18358_v5  ;;  %17229 = vmatprep.subr.mxu0 %v17490_v24 }
 0xe7b   : > { %17249 = vmatmul.mubr.f32.vlgmr.msra.gmra.mxu1 %v18469_v14  ;;  %17262 = vmatprep.subr.mxu1 %v17490_v24 }
 0xe7c   : > { %17230 = vmatpush3.msra.mxu0 %v19699_v50  ;;  %17263 = vmatpush3.msra.mxu1 %v19699_v50 }
 0xe7d   : > { %17231 = vmatprep.subr.mxu0 %v17490_v24  ;;  %17264 = vmatprep.subr.mxu1 %v17490_v24 }
 0xe7e   : > { %17232 = vmatpush3.msra.mxu0 %v19708_v57  ;;  %17265 = vmatpush3.msra.mxu1 %v19708_v57 }
 0xe7f   : > { %17233 = vmatprep.subr.mxu0 %v17490_v24  ;;  %17266 = vmatprep.subr.mxu1 %v17490_v24 }
 0xe80   : > { %17234 = vmatpush3.msra.mxu0 %v19717_v54  ;;  %17267 = vmatpush3.msra.mxu1 %v19717_v54 }
 0xe81   : > { %17235 = vmatprep.subr.mxu0 %v17490_v24  ;;  %17268 = vmatprep.subr.mxu1 %v17490_v24 }
 0xe82   : > { %17236 = vmatpush3.msra.mxu0 %v19733_v61  ;;  %17237 = vmatprep.mubr.msk.f32.mxu0 %vm17491_vm1, %v17490_v24 }
 0xe83   : > { %17269 = vmatpush3.msra.mxu1 %v19733_v61  ;;  %17270 = vmatprep.mubr.msk.f32.mxu1 %vm17491_vm1, %v17490_v24 }
 0xe84   : > { %17238 = vmatmul.mubr.f32.vlgmr.msra.gmra.mxu0 %v18515_v18  ;;  %17251 = vmatprep.subr.mxu0 %v17490_v24 }
 0xe85   : > { %17271 = vmatmul.mubr.f32.vlgmr.msra.gmra.mxu1 %v18495_v3  ;;  %17284 = vmatprep.subr.mxu1 %v17490_v24 }
 0xe86   : > { %17252 = vmatpush3.msra.mxu0 %v19715_v58  ;;  %17285 = vmatpush3.msra.mxu1 %v19699_v50 }
 0xe87   : > { %17253 = vmatprep.subr.mxu0 %v17490_v24  ;;  %17286 = vmatprep.subr.mxu1 %v17490_v24 }
 0xe88   : > { %17254 = vmatpush3.msra.mxu0 %v19728_v59  ;;  %17287 = vmatpush3.msra.mxu1 %v19708_v57  ;;  %v15205_v57 = vld [vmem:[%s20084_s8 + $0x7] ss:$0 sm:$0xff] }
 0xe89   : > { %17255 = vmatprep.subr.mxu0 %v17490_v24  ;;  %17288 = vmatprep.subr.mxu1 %v17490_v24 }
 0xe8a   : > { %17256 = vmatpush3.msra.mxu0 %v19739_v48  ;;  %17289 = vmatpush3.msra.mxu1 %v19717_v54 }
 0xe8b   : > { %17257 = vmatprep.subr.mxu0 %v17490_v24  ;;  %17290 = vmatprep.subr.mxu1 %v17490_v24 }
 0xe8c   : > { %17258 = vmatpush3.msra.mxu0 %v19749_v60  ;;  %17259 = vmatprep.mubr.msk.f32.mxu0 %vm17491_vm1, %v17490_v24 }
 0xe8d   : > { %17291 = vmatpush3.msra.mxu1 %v19733_v61  ;;  %17292 = vmatprep.mubr.msk.f32.mxu1 %vm17491_vm1, %v17490_v24 }
 0xe8e   : > { %17260 = vmatmul.mubr.f32.vlgmr.msra.gmra.mxu0 %v18480_v23  ;;  %17273 = vmatprep.subr.mxu0 %v17490_v24 }
 0xe8f   : > { %17293 = vmatmul.mubr.f32.vlgmr.msra.gmra.mxu1 %v18469_v14  ;;  %17274 = vmatpush3.msra.mxu0 %v12724_v62 }
 0xe90   : > { %17275 = vmatprep.subr.mxu0 %v17490_v24  ;;  %17281 = vmatprep.mubr.msk.f32.mxu0 %vm17491_vm1, %v17490_v24 }
 0xe91   : > { %17276 = vmatpush3.msra.mxu0 %v12731_v0  ;;  %17300 = vmatprep.subr.mxu1 %v17490_v24 }
 0xe92   : > { %17277 = vmatprep.subr.mxu0 %v17490_v24  ;;  %17302 = vmatprep.mubr.msk.f32.mxu1 %vm17491_vm1, %v17490_v24 }
 0xe93   : > { %17278 = vmatpush3.msra.mxu0 %v12738_v1 }
 0xe94   : > { %17279 = vmatprep.subr.mxu0 %v17490_v24 }
 0xe95   : > { %17280 = vmatpush3.msra.mxu0 %v12745_v35 }
 0xe96   : > { %17282 = vmatmul.mubr.f32.vlgmr.msra.gmra.mxu0 %v18469_v14  ;;  %17295 = vmatprep.subr.mxu0 %v17490_v24 }
 0xe97   : > { %17297 = vmatprep.mubr.msk.f32.mxu0 %vm17491_vm1, %v17490_v24 }
 0xeee   : > { %v11310_v5 = vpop.f32.mrf.mxu1 }
 0xef0   : > { %v17076_v23 = vpop.f32.mrf.mxu1 }
 0xef2   : > { %v11458_v3 = vpop.f32.mrf.mxu1 }
 0xef4   : > { %v17086_v18 = vpop.f32.mrf.mxu1 }
 0xef6   : > { %v11234_v7 = vpop.f32.mrf.mxu0  ;;  %v11604_v38 = vpop.f32.mrf.mxu1 }
 0xef7   : > { %v11311_v21 = vadd.f32 %v11310_v5, %v11234_v7 }
 0xef8   : > { %v17071_v22 = vpop.f32.mrf.mxu0  ;;  %v17096_v13 = vpop.f32.mrf.mxu1 }
 0xefa   : > { %v11384_v20 = vpop.f32.mrf.mxu0 }
 0xefb   : > { %v11385_v27 = vadd.f32 %v11384_v20, %v11311_v21 }
 0xefc   : > { %v17081_v28 = vpop.f32.mrf.mxu0 }
 0xefd   : > { %v11459_v26 = vadd.f32 %v11458_v3, %v11385_v27  ;;  %v15211_v27 = vld [vmem:[%s20084_s8 + $0xb] ss:$0 sm:$0xff] }
 0xefe   : > { %v11788_v29 = vpop.f32.mrf.mxu1 }
 0xeff   : > { %v11532_v14 = vpop.f32.mrf.mxu0 }
 0xf00   : > { %v11533_v45 = vadd.f32 %v11532_v14, %v11459_v26  ;;  %v17118_v25 = vpop.f32.mrf.mxu1 }
 0xf01   : > { %v17091_v52 = vpop.f32.mrf.mxu0 }
 0xf02   : > { %v11605_v30 = vadd.f32 %v11604_v38, %v11533_v45 }
 0xf04   : > { %v19869_v31 = vadd.f32 %v11605_v30, %v19443_v17 }
 0xf08   : > { %v11697_v6 = vpop.f32.mrf.mxu0 }
 0xf09   : > { %v11945_v32 = vpop.f32.mrf.mxu1  ;;  %v11698_v47 = vadd.f32 %v15199_v40, %v11697_v6 }
 0xf0a   : > { %v17107_v34 = vpop.f32.mrf.mxu0 }
 0xf0b   : > { %v17140_v37 = vpop.f32.mrf.mxu1  ;;  %v11789_v15 = vadd.f32 %v11788_v29, %v11698_v47 }
 0xf12   : > { %v11868_v41 = vpop.f32.mrf.mxu0 }
 0xf13   : > { %v12103_v12 = vpop.f32.mrf.mxu1  ;;  %v11869_v17 = vadd.f32 %v11868_v41, %v11789_v15 }
 0xf14   : > { %v17129_v42 = vpop.f32.mrf.mxu0 }
 0xf15   : > { %v17162_v8 = vpop.f32.mrf.mxu1  ;;  %v11946_v16 = vadd.f32 %v11945_v32, %v11869_v17 }
 0xf1c   : > { %v12028_v49 = vpop.f32.mrf.mxu0 }
 0xf1d   : > { %v12286_v4 = vpop.f32.mrf.mxu1  ;;  %v12029_v53 = vadd.f32 %v12028_v49, %v11946_v16 }
 0xf1e   : > { %v17151_v46 = vpop.f32.mrf.mxu0 }
 0xf1f   : > { %v17184_v9 = vpop.f32.mrf.mxu1  ;;  %v12104_v63 = vadd.f32 %v12103_v12, %v12029_v53 }
 0xf21   : > { %v13104_v54 = vsel %vm4528_vm2, %v12104_v63, 0 }
 0xf22   : > { %v13175_v62 = vand.u32 4294901760, %v13104_v54 }
 0xf24   : > { %v13176_v19 = vsub.f32 %v13104_v54, %v13175_v62 }
 0xf26   : > { %v12195_v51 = vpop.f32.mrf.mxu0  ;;  %v13177_v35 = vand.u32 4294901760, %v13176_v19 }
 0xf27   : > { %v12443_v2 = vpop.f32.mrf.mxu1  ;;  %v12196_v58 = vadd.f32 %v15205_v57, %v12195_v51 }
 0xf28   : > { %v17173_v56 = vpop.f32.mrf.mxu0  ;;  %v13178_v10 = vsub.f32 %v13176_v19, %v13177_v35 }
 0xf29   : > { %v17206_v50 = vpop.f32.mrf.mxu1  ;;  %v12287_v48 = vadd.f32 %v12286_v4, %v12196_v58 }
 0xf2a   : > { %v13179_v18 = vand.u32 4294901760, %v13178_v10 }
 0xf30   : > { %v12366_v55 = vpop.f32.mrf.mxu0 }
 0xf31   : > { %v12601_v59 = vpop.f32.mrf.mxu1  ;;  %v12367_v60 = vadd.f32 %v12366_v55, %v12287_v48 }
 0xf32   : > { %v17195_v61 = vpop.f32.mrf.mxu0 }
 0xf33   : > { %v17228_v0 = vpop.f32.mrf.mxu1  ;;  %v12444_v1 = vadd.f32 %v12443_v2, %v12367_v60 }
 0xf3a   : > { %v12526_v11 = vpop.f32.mrf.mxu0 }
 0xf3b   : > { %v12527_v33 = vadd.f32 %v12526_v11, %v12444_v1  ;;  %v12784_v36 = vpop.f32.mrf.mxu1 }
 0xf3c   : > { %v17217_v39 = vpop.f32.mrf.mxu0 }
 0xf3d   : > { %v12602_v44 = vadd.f32 %v12601_v59, %v12527_v33  ;;  %v17250_v43 = vpop.f32.mrf.mxu1 }
 0xf3f   : > { %v13107_v5 = vsel %vm4528_vm2, %v12602_v44, 0 }
 0xf40   : > { %v13140_v23 = vand.u32 4294901760, %v13107_v5 }
 0xf42   : > { %v13217_v3 = vsub.f32 %v13107_v5, %v13140_v23  ;;  %17296 = vmatpush3.xpose.msra.mxu0 %v13140_v23  ;;  %v15212_v5 = vld [vmem:[%s20085_s9 + $0x18] sm:$0xff] }
 0xf43   : > { %17305 = vmatprep.subr.mxu0 %v17490_v24 }
 0xf44   : > { %v12693_v7 = vpop.f32.mrf.mxu0  ;;  %v13218_v38 = vand.u32 4294901760, %v13217_v3 }
 0xf45   : > { %v12941_v21 = vpop.f32.mrf.mxu1  ;;  %17298 = vmatmul.mubr.f32.vlgmr.msra.gmra.mxu0 %v13179_v18  ;;  %v12694_v26 = vadd.f32 %v15211_v27, %v12693_v7 }
 0xf46   : > { %v17239_v22 = vpop.f32.mrf.mxu0  ;;  %17306 = vmatpush3.xpose.msra.mxu0 %v13217_v3  ;;  %17307 = vmatprep.mubr.msk.f32.mxu0 %vm17491_vm1, %v17490_v24  ;;  %v13219_v13 = vsub.f32 %v13217_v3, %v13218_v38 }
 0xf47   : > { %v17272_v20 = vpop.f32.mrf.mxu1  ;;  %17315 = vmatprep.subr.mxu0 %v17490_v24  ;;  %v12785_v14 = vadd.f32 %v12784_v36, %v12694_v26 }
 0xf48   : > { %v13220_v28 = vand.u32 4294901760, %v13219_v13 }
 0xf49   : > { %17308 = vmatmul.mubr.f32.vlgmr.msra.gmra.mxu0 %v13176_v19 }
 0xf4a   : > { %17301 = vmatpush3.xpose.msra.mxu1 %v13220_v28  ;;  %17316 = vmatpush3.xpose.msra.mxu0 %v13218_v38 }
 0xf4b   : > { %17317 = vmatprep.mubr.msk.f32.mxu0 %vm17491_vm1, %v17490_v24  ;;  %17310 = vmatprep.subr.mxu1 %v17490_v24 }
 0xf4c   : > { %17325 = vmatprep.subr.mxu0 %v17490_v24 }
 0xf4d   : > { %17303 = vmatmul.mubr.f32.vlgmr.msra.gmra.mxu1 %v13175_v62  ;;  %17318 = vmatmul.mubr.f32.vlgmr.msra.gmra.mxu0 %v13175_v62 }
 0xf4e   : > { %v12864_v29 = vpop.f32.mrf.mxu0  ;;  %17311 = vmatpush3.xpose.msra.mxu1 %v13140_v23  ;;  %17312 = vmatprep.mubr.msk.f32.mxu1 %vm17491_vm1, %v17490_v24 }
 0xf4f   : > { %v13099_v45 = vpop.f32.mrf.mxu1  ;;  %17320 = vmatprep.subr.mxu1 %v17490_v24  ;;  %17327 = vmatprep.mubr.msk.f32.mxu0 %vm17491_vm1, %v17490_v24  ;;  %v12865_v52 = vadd.f32 %v12864_v29, %v12785_v14 }
 0xf50   : > { %v17261_v25 = vpop.f32.mrf.mxu0 }
 0xf51   : > { %v17294_v30 = vpop.f32.mrf.mxu1  ;;  %17313 = vmatmul.mubr.f32.vlgmr.msra.gmra.mxu1 %v13177_v35  ;;  %v12942_v6 = vadd.f32 %v12941_v21, %v12865_v52 }
 0xf52   : > { %17321 = vmatpush3.xpose.msra.mxu1 %v13140_v23  ;;  %17322 = vmatprep.mubr.msk.f32.mxu1 %vm17491_vm1, %v17490_v24  ;;  %v14052_v23 = vand.u32 4294901760, %v15212_v5 }
 0xf53   : > { %17330 = vmatprep.subr.mxu1 %v17490_v24 }
 0xf54   : > { %v14129_v3 = vsub.f32 %v15212_v5, %v14052_v23 }
 0xf55   : > { %17323 = vmatmul.mubr.f32.vlgmr.msra.gmra.mxu1 %v13175_v62 }
 0xf56   : > { %v13024_v32 = vpop.f32.mrf.mxu0  ;;  %17332 = vmatprep.mubr.msk.f32.mxu1 %vm17491_vm1, %v17490_v24  ;;  %v14130_v18 = vand.u32 4294901760, %v14129_v3 }
 0xf57   : > { %v13025_v34 = vadd.f32 %v13024_v32, %v12942_v6 }
 0xf58   : > { %v17283_v37 = vpop.f32.mrf.mxu0  ;;  %v14131_v7 = vsub.f32 %v14129_v3, %v14130_v18 }
 0xf59   : > { %v13100_v41 = vadd.f32 %v13099_v45, %v13025_v34 }
 0xf5a   : > { %v14132_v38 = vand.u32 4294901760, %v14131_v7 }
 0xf5b   : > { %v13601_v12 = vand.u32 4294901760, %v13100_v41 }
 0xf5d   : > { %v13678_v42 = vsub.f32 %v13100_v41, %v13601_v12  ;;  %17326 = vmatpush3.msra.mxu0 %v13601_v12 }
 0xf5e   : > { %17335 = vmatprep.subr.mxu0 %v17490_v24 }
 0xf5f   : > { %v13679_v8 = vand.u32 4294901760, %v13678_v42 }
 0xf61   : > { %v13680_v40 = vsub.f32 %v13678_v42, %v13679_v8 }
 0xf63   : > { %v13681_v47 = vand.u32 4294901760, %v13680_v40 }
 0xf65   : > { %17331 = vmatpush3.msra.mxu1 %v13681_v47 }
 0xf66   : > { %17340 = vmatprep.subr.mxu1 %v17490_v24 }
0x1005   : > { %v13181_v49 = vpop.f32.mrf.mxu0 }
0x1007   : > { %v17299_v4 = vpop.f32.mrf.mxu0 }
0x1009   : > { %v13331_v46 = vpop.f32.mrf.mxu0 }
0x100b   : > { %v17309_v9 = vpop.f32.mrf.mxu0 }
0x100d   : > { %v13257_v15 = vpop.f32.mrf.mxu1  ;;  %v13479_v17 = vpop.f32.mrf.mxu0 }
0x100e   : > { %v13258_v16 = vadd.f32 %v13257_v15, %v13181_v49 }
0x100f   : > { %v17304_v51 = vpop.f32.mrf.mxu1  ;;  %v17319_v2 = vpop.f32.mrf.mxu0 }
0x1010   : > { %v13332_v53 = vadd.f32 %v13331_v46, %v13258_v16 }
0x1011   : > { %v13405_v56 = vpop.f32.mrf.mxu1 }
0x1012   : > { %v13406_v50 = vadd.f32 %v13405_v56, %v13332_v53 }
0x1013   : > { %v17314_v63 = vpop.f32.mrf.mxu1 }
0x1014   : > { %v13480_v57 = vadd.f32 %v13479_v17, %v13406_v50 }
0x1015   : > { %v13551_v58 = vpop.f32.mrf.mxu1 }
0x1016   : > { %v13552_v54 = vadd.f32 %v13551_v58, %v13480_v57 }
0x1017   : > { %v17324_v55 = vpop.f32.mrf.mxu1 }
0x1018   : > { %v13555_v59 = vmul.f32 0.35355338, %v13552_v54 }
0x101a   : > { %v13556_v61 = vsel %vm4528_vm2, %v13555_v59, -inf }
0x101b   : > { %13557 = vmax.xlane.f32.xlu0 %v13556_v61 }
0x10a4   : > { %v13558_v62 = vpop.xlane.xlu0 %13557 }
0x10a5   : > { %v13559_v48 = vsub.f32 %v13555_v59, %v13558_v62  ;;  %v15213_v59 = vld [vmem:[%s20086_s10] ss:$0 sm:$0xff] }
0x10a7   : > { %v13560_v0 = vmul.f32 1.442695, %v13559_v48  ;;  %v17481_v48 = vld [vmem:[%s17586_s23] sm:$0xff] }
0x10a9   : > { %17475 = vpow2.f32 %v13560_v0 }
0x10b6   : > { %v17476_v60 = vpop.eup %17475 }
0x10b7   : > { %v13562_v19 = vsel %vm4528_vm2, %v17476_v60, 0.0 }
0x10b8   : > { %13563 = vadd.xlane.f32.xlu1 %v13562_v19 }
0x1141   : > { %v13564_v1 = vpop.xlane.xlu1 %13563 }
0x1142   : > { %17477 = vrcp.f32 %v13564_v1 }
0x114f   : > { %v17478_v11 = vpop.eup %17477 }
0x1150   : > { %v13566_v35 = vmul.f32 %v17478_v11, %v17476_v60 }
0x1152   : > { %v13568_v33 = vsel %vm4528_vm2, %v13566_v35, 0 }
0x1153   : > { %v13636_v36 = vand.u32 4294901760, %v13568_v33 }
0x1155   : > { %v13637_v39 = vsub.f32 %v13568_v33, %v13636_v36  ;;  %17333 = vmatmul.mubr.f32.vlgmr.msra.gmra.mxu1 %v13636_v36 }
0x1156   : > { %17341 = vmatpush3.msra.mxu1 %v13601_v12  ;;  %17342 = vmatprep.mubr.msk.f32.mxu1 %vm17491_vm1, %v17490_v24 }
0x1157   : > { %17350 = vmatprep.subr.mxu1 %v17490_v24  ;;  %v13638_v44 = vand.u32 4294901760, %v13637_v39 }
0x1159   : > { %17343 = vmatmul.mubr.f32.vlgmr.msra.gmra.mxu1 %v13638_v44  ;;  %v13639_v43 = vsub.f32 %v13637_v39, %v13638_v44 }
0x115a   : > { %17351 = vmatpush3.msra.mxu1 %v13601_v12  ;;  %17352 = vmatprep.mubr.msk.f32.mxu1 %vm17491_vm1, %v17490_v24 }
0x115b   : > { %v13640_v10 = vand.u32 4294901760, %v13639_v43  ;;  %17360 = vmatprep.subr.mxu1 %v17490_v24 }
0x115d   : > { %17328 = vmatmul.mubr.f32.vlgmr.msra.gmra.mxu0 %v13640_v10  ;;  %17353 = vmatmul.mubr.f32.vlgmr.msra.gmra.mxu1 %v13636_v36  ;;  %v14510_v10 = vld [vmem:[%s20088_s12 + $0x8] sm:$0xff] }
0x115e   : > { %17336 = vmatpush3.msra.mxu0 %v13678_v42  ;;  %17337 = vmatprep.mubr.msk.f32.mxu0 %vm17491_vm1, %v17490_v24 }
0x115f   : > { %17345 = vmatprep.subr.mxu0 %v17490_v24  ;;  %17362 = vmatprep.mubr.msk.f32.mxu1 %vm17491_vm1, %v17490_v24 }
0x1160   : > { %17361 = vmatpush3.msra.mxu1 %v14132_v38 }
0x1161   : > { %17338 = vmatmul.mubr.f32.vlgmr.msra.gmra.mxu0 %v13637_v39  ;;  %17370 = vmatprep.subr.mxu1 %v17490_v24  ;;  %v14511_v39 = vld [vmem:[%s20088_s12 + $0x10] sm:$0xff] }
0x1162   : > { %17346 = vmatpush3.msra.mxu0 %v13679_v8  ;;  %17347 = vmatprep.mubr.msk.f32.mxu0 %vm17491_vm1, %v17490_v24  ;;  %v19966_v43 = vand.u32 4294901760, %v14511_v39 }
0x1163   : > { %17355 = vmatprep.subr.mxu0 %v17490_v24 }
0x1165   : > { %17348 = vmatmul.mubr.f32.vlgmr.msra.gmra.mxu0 %v13636_v36 }
0x1166   : > { %17357 = vmatprep.mubr.msk.f32.mxu0 %vm17491_vm1, %v17490_v24  ;;  %17356 = vmatpush3.msra.mxu0 %v14052_v23 }
0x1167   : > { %17365 = vmatprep.subr.mxu0 %v17490_v24 }
0x1215   : > { %v13718_v21 = vpop.f32.mrf.mxu1 }
0x1217   : > { %v17334_v22 = vpop.f32.mrf.mxu1 }
0x1219   : > { %v13866_v13 = vpop.f32.mrf.mxu1 }
0x121b   : > { %v17344_v20 = vpop.f32.mrf.mxu1 }
0x121d   : > { %v13642_v27 = vpop.f32.mrf.mxu0  ;;  %v14012_v28 = vpop.f32.mrf.mxu1 }
0x121e   : > { %v13719_v14 = vadd.f32 %v13718_v21, %v13642_v27 }
0x121f   : > { %v17329_v26 = vpop.f32.mrf.mxu0  ;;  %v17354_v29 = vpop.f32.mrf.mxu1 }
0x1221   : > { %v13792_v45 = vpop.f32.mrf.mxu0 }
0x1222   : > { %v13793_v25 = vadd.f32 %v13792_v45, %v13719_v14 }
0x1223   : > { %v17339_v52 = vpop.f32.mrf.mxu0 }
0x1224   : > { %v13867_v30 = vadd.f32 %v13866_v13, %v13793_v25 }
0x1225   : > { %v13940_v6 = vpop.f32.mrf.mxu0 }
0x1226   : > { %v13941_v32 = vadd.f32 %v13940_v6, %v13867_v30 }
0x1227   : > { %v17349_v34 = vpop.f32.mrf.mxu0 }
0x1228   : > { %v14013_v37 = vadd.f32 %v14012_v28, %v13941_v32 }
0x122a   : > { %v14019_v41 = vsel %vm4528_vm2, %v14013_v37, 0  ;;  %v15215_v37 = vld [vmem:[%s20087_s11] ss:$0 sm:$0xff] }
0x122b   : > { %v14087_v12 = vand.u32 4294901760, %v14019_v41 }
0x122d   : > { %v14088_v42 = vsub.f32 %v14019_v41, %v14087_v12  ;;  %17363 = vmatmul.mubr.f32.vlgmr.msra.gmra.mxu1 %v14087_v12 }
0x122e   : > { %17371 = vmatpush3.msra.mxu1 %v14052_v23  ;;  %17372 = vmatprep.mubr.msk.f32.mxu1 %vm17491_vm1, %v17490_v24 }
0x122f   : > { %v14089_v8 = vand.u32 4294901760, %v14088_v42  ;;  %17380 = vmatprep.subr.mxu1 %v17490_v24 }
0x1231   : > { %v14090_v40 = vsub.f32 %v14088_v42, %v14089_v8  ;;  %17373 = vmatmul.mubr.f32.vlgmr.msra.gmra.mxu1 %v14089_v8 }
0x1232   : > { %17381 = vmatpush3.msra.mxu1 %v14052_v23  ;;  %17382 = vmatprep.mubr.msk.f32.mxu1 %vm17491_vm1, %v17490_v24  ;;  %v19975_v23 = vsub.f32 %v14511_v39, %v19966_v43 }
0x1233   : > { %v14091_v47 = vand.u32 4294901760, %v14090_v40  ;;  %17396 = vmatprep.subr.mxu1 %v17490_v24 }
0x1234   : > { %v14629_v38 = vand.u32 4294901760, %v19975_v23 }
0x1235   : > { %17358 = vmatmul.mubr.f32.vlgmr.msra.gmra.mxu0 %v14091_v47  ;;  %17383 = vmatmul.mubr.f32.vlgmr.msra.gmra.mxu1 %v14087_v12 }
0x1236   : > { %17366 = vmatpush3.msra.mxu0 %v14129_v3  ;;  %17367 = vmatprep.mubr.msk.f32.mxu0 %vm17491_vm1, %v17490_v24  ;;  %v19977_v3 = vand.u32 4294901760, %v14510_v10  ;;  %v14630_v20 = vsub.f32 %v19975_v23, %v14629_v38 }
0x1237   : > { %17375 = vmatprep.subr.mxu0 %v17490_v24  ;;  %17404 = vmatprep.mubr.msk.f32.mxu1 %vm17491_vm1, %v17490_v24 }
0x1238   : > { %v19989_v21 = vsub.f32 %v14510_v10, %v19977_v3  ;;  %v14631_v26 = vand.u32 4294901760, %v14630_v20 }
0x1239   : > { %17368 = vmatmul.mubr.f32.vlgmr.msra.gmra.mxu0 %v14088_v42 }
0x123a   : > { %17376 = vmatpush3.msra.mxu0 %v14130_v18  ;;  %17377 = vmatprep.mubr.msk.f32.mxu0 %vm17491_vm1, %v17490_v24  ;;  %v14509_v18 = vld [vmem:[%s20088_s12] sm:$0xff]  ;;  %v14636_v27 = vand.u32 4294901760, %v19989_v21 }
0x123b   : > { %17385 = vmatprep.subr.mxu0 %v17490_v24  ;;  %v19991_v22 = vand.u32 4294901760, %v14509_v18 }
0x123c   : > { %v14637_v29 = vsub.f32 %v19989_v21, %v14636_v27 }
0x123d   : > { %17378 = vmatmul.mubr.f32.vlgmr.msra.gmra.mxu0 %v14087_v12  ;;  %v20000_v28 = vsub.f32 %v14509_v18, %v19991_v22  ;;  %v15216_v12 = vld [vmem:[%s20087_s11 + $0x1] ss:$0 sm:$0xff] }
0x123e   : > { %17393 = vmatprep.mubr.msk.f32.mxu0 %vm17491_vm1, %v17490_v24  ;;  %v14638_v45 = vand.u32 4294901760, %v14637_v29 }
0x123f   : > { %v14643_v14 = vand.u32 4294901760, %v20000_v28 }
0x1241   : > { %v14644_v25 = vsub.f32 %v20000_v28, %v14643_v14 }
0x1243   : > { %v14645_v52 = vand.u32 4294901760, %v14644_v25 }
0x12ed   : > { %v14169_v49 = vpop.f32.mrf.mxu1 }
0x12ef   : > { %v17364_v4 = vpop.f32.mrf.mxu1 }
0x12f1   : > { %v14317_v46 = vpop.f32.mrf.mxu1 }
0x12f3   : > { %v17374_v9 = vpop.f32.mrf.mxu1 }
0x12f5   : > { %v14093_v15 = vpop.f32.mrf.mxu0  ;;  %v14463_v17 = vpop.f32.mrf.mxu1 }
0x12f6   : > { %v14170_v2 = vadd.f32 %v14169_v49, %v14093_v15 }
0x12f7   : > { %v17359_v16 = vpop.f32.mrf.mxu0  ;;  %v17384_v51 = vpop.f32.mrf.mxu1 }
0x12f9   : > { %v14243_v53 = vpop.f32.mrf.mxu0 }
0x12fa   : > { %v14244_v56 = vadd.f32 %v14243_v53, %v14170_v2 }
0x12fb   : > { %v17369_v50 = vpop.f32.mrf.mxu0 }
0x12fc   : > { %v14318_v63 = vadd.f32 %v14317_v46, %v14244_v56 }
0x12fd   : > { %v14391_v57 = vpop.f32.mrf.mxu0 }
0x12fe   : > { %v14392_v58 = vadd.f32 %v14391_v57, %v14318_v63 }
0x12ff   : > { %v17379_v54 = vpop.f32.mrf.mxu0 }
0x1300   : > { %v14464_v55 = vadd.f32 %v14463_v17, %v14392_v58 }
0x1302   : > { %v14467_v61 = vadd.f32 %v14464_v55, %v19869_v31  ;;  %v14512_v31 = vld [vmem:[%s20088_s12 + $0x18] sm:$0xff] }
0x1303   : > { %v19958_v36 = vand.u32 4294901760, %v14512_v31 }
0x1304   : > { %v14475_v62 = vadd.f32 %v15213_v59, %v14467_v61 }
0x1305   : > { %v19964_v44 = vsub.f32 %v14512_v31, %v19958_v36  ;;  %17386 = vmatpush3.msra.mxu0 %v19958_v36 }
0x1306   : > { %v14476_v0 = vadd.f32 %v17481_v48, %v14475_v62  ;;  %17387 = vmatprep.subr.mxu0 %v17490_v24 }
0x1307   : > { %v14622_v5 = vand.u32 4294901760, %v19964_v44  ;;  %17388 = vmatpush3.msra.mxu0 %v19966_v43 }
0x1308   : > { %v14481_v60 = vsel %vm515_vm0, %v14476_v0, 0.0  ;;  %14477 = vst.msk [vmem:[%s502_s21] sm:$0xff] %vm515_vm0, %v14476_v0  ;;  %17389 = vmatprep.subr.mxu0 %v17490_v24 }
0x1309   : > { %14482 = vadd.xlane.f32.xlu0 %v14481_v60  ;;  %v14623_v7 = vsub.f32 %v19964_v44, %v14622_v5  ;;  %17390 = vmatpush3.msra.mxu0 %v19977_v3 }
0x130a   : > { %17391 = vmatprep.subr.mxu0 %v17490_v24 }
0x130b   : > { %v14624_v13 = vand.u32 4294901760, %v14623_v7  ;;  %17392 = vmatpush3.msra.mxu0 %v19991_v22 }
0x130c   : > { %17407 = vmatprep.subr.mxu0 %v17490_v24 }
0x130d   : > { %17397 = vmatpush3.msra.mxu1 %v14624_v13 }
0x130e   : > { %17398 = vmatprep.subr.mxu1 %v17490_v24 }
0x130f   : > { %17399 = vmatpush3.msra.mxu1 %v14631_v26 }
0x1310   : > { %17400 = vmatprep.subr.mxu1 %v17490_v24 }
0x1311   : > { %17401 = vmatpush3.msra.mxu1 %v14638_v45 }
0x1312   : > { %17402 = vmatprep.subr.mxu1 %v17490_v24 }
0x1313   : > { %17403 = vmatpush3.msra.mxu1 %v14645_v52 }
0x1314   : > { %17418 = vmatprep.subr.mxu1 %v17490_v24 }
0x1392   : > { %v14483_v19 = vpop.xlane.xlu0 %14482 }
0x1393   : > { %v14484_v1 = vmul.f32 0.03125, %v14483_v19 }
0x1395   : > { %v14485_v11 = vsub.f32 %v14476_v0, %v14484_v1 }
0x1397   : > { %v14486_v35 = vmul.f32 %v14485_v11, %v14485_v11 }
0x1399   : > { %v14487_v33 = vsel %vm515_vm0, %v14486_v35, 0.0 }
0x139a   : > { %14488 = vadd.xlane.f32.xlu1 %v14487_v33 }
0x1423   : > { %v14489_v30 = vpop.xlane.xlu1 %14488 }
0x1424   : > { %v14490_v6 = vmul.f32 0.03125, %v14489_v30 }
0x1426   : > { %v14491_v32 = vadd.f32 1e-05, %v14490_v6 }
0x1428   : > { %17479 = vrsqrt.f32 %v14491_v32 }
0x1435   : > { %v17480_v34 = vpop.eup %17479 }
0x1436   : > { %v14493_v41 = vmul.f32 %v17480_v34, %v14485_v11 }
0x1438   : > { %v14500_v42 = vmul.f32 %v15215_v37, %v14493_v41 }
0x143a   : > { %v14507_v8 = vadd.f32 %v15216_v12, %v14500_v42 }
0x143c   : > { %14508 = vst.msk [vmem:[%s506_s24] sm:$0xff] %vm515_vm0, %v14507_v8  ;;  %v14514_v40 = vsel %vm515_vm0, %v14507_v8, 0 }
0x143d   : > { %v14585_v47 = vand.u32 4294901760, %v14514_v40 }
0x143f   : > { %v14586_v49 = vsub.f32 %v14514_v40, %v14585_v47  ;;  %17405 = vmatmul.mubr.f32.vlgmr.msra.gmra.mxu1 %v14585_v47 }
0x1440   : > { %17419 = vmatpush3.msra.mxu1 %v19958_v36  ;;  %17426 = vmatprep.mubr.msk.f32.mxu1 %vm17491_vm1, %v17490_v24 }
0x1441   : > { %17420 = vmatprep.subr.mxu1 %v17490_v24  ;;  %v14587_v4 = vand.u32 4294901760, %v14586_v49 }
0x1442   : > { %17421 = vmatpush3.msra.mxu1 %v19966_v43 }
0x1443   : > { %17422 = vmatprep.subr.mxu1 %v17490_v24  ;;  %v14588_v46 = vsub.f32 %v14586_v49, %v14587_v4 }
0x1444   : > { %17423 = vmatpush3.msra.mxu1 %v19977_v3 }
0x1445   : > { %17424 = vmatprep.subr.mxu1 %v17490_v24  ;;  %v14589_v9 = vand.u32 4294901760, %v14588_v46 }
0x1446   : > { %17425 = vmatpush3.msra.mxu1 %v19991_v22 }
0x1447   : > { %17427 = vmatmul.mubr.f32.vlgmr.msra.gmra.mxu1 %v14587_v4  ;;  %17440 = vmatprep.subr.mxu1 %v17490_v24 }
0x1448   : > { %17394 = vmatmul.mubr.f32.vlgmr.msra.gmra.mxu0 %v14589_v9  ;;  %17441 = vmatpush3.msra.mxu1 %v19958_v36 }
0x1449   : > { %17408 = vmatpush3.msra.mxu0 %v19964_v44  ;;  %17442 = vmatprep.subr.mxu1 %v17490_v24 }
0x144a   : > { %17409 = vmatprep.subr.mxu0 %v17490_v24  ;;  %17443 = vmatpush3.msra.mxu1 %v19966_v43 }
0x144b   : > { %17410 = vmatpush3.msra.mxu0 %v19975_v23  ;;  %17444 = vmatprep.subr.mxu1 %v17490_v24 }
0x144c   : > { %17411 = vmatprep.subr.mxu0 %v17490_v24  ;;  %17445 = vmatpush3.msra.mxu1 %v19977_v3 }
0x144d   : > { %17412 = vmatpush3.msra.mxu0 %v19989_v21  ;;  %17446 = vmatprep.subr.mxu1 %v17490_v24 }
0x144e   : > { %17413 = vmatprep.subr.mxu0 %v17490_v24  ;;  %17415 = vmatprep.mubr.msk.f32.mxu0 %vm17491_vm1, %v17490_v24 }
0x144f   : > { %17414 = vmatpush3.msra.mxu0 %v20000_v28  ;;  %17447 = vmatpush3.msra.mxu1 %v19991_v22 }
0x1450   : > { %17448 = vmatprep.mubr.msk.f32.mxu1 %vm17491_vm1, %v17490_v24  ;;  %17416 = vmatmul.mubr.f32.vlgmr.msra.gmra.mxu0 %v14586_v49 }
0x1451   : > { %17429 = vmatprep.subr.mxu0 %v17490_v24  ;;  %17449 = vmatmul.mubr.f32.vlgmr.msra.gmra.mxu1 %v14585_v47 }
0x1452   : > { %17430 = vmatpush3.msra.mxu0 %v14622_v5  ;;  %17437 = vmatprep.mubr.msk.f32.mxu0 %vm17491_vm1, %v17490_v24 }
0x1453   : > { %17431 = vmatprep.subr.mxu0 %v17490_v24 }
0x1454   : > { %17432 = vmatpush3.msra.mxu0 %v14629_v38 }
0x1455   : > { %17433 = vmatprep.subr.mxu0 %v17490_v24 }
0x1456   : > { %17434 = vmatpush3.msra.mxu0 %v14636_v27 }
0x1457   : > { %17435 = vmatprep.subr.mxu0 %v17490_v24 }
0x1458   : > { %17436 = vmatpush3.msra.mxu0 %v14643_v14 }
0x1459   : > { %17438 = vmatmul.mubr.f32.vlgmr.msra.gmra.mxu0 %v14585_v47 }
0x14ff   : > { %v14682_v15 = vpop.f32.mrf.mxu1 }
0x1501   : > { %v17406_v17 = vpop.f32.mrf.mxu1 }
0x1507   : > { %v14839_v16 = vpop.f32.mrf.mxu1 }
0x1508   : > { %v14591_v51 = vpop.f32.mrf.mxu0 }
0x1509   : > { %v17428_v2 = vpop.f32.mrf.mxu1  ;;  %v14683_v63 = vadd.f32 %v14682_v15, %v14591_v51 }
0x150a   : > { %v17395_v53 = vpop.f32.mrf.mxu0 }
0x1510   : > { %v14762_v56 = vpop.f32.mrf.mxu0 }
0x1511   : > { %v14997_v50 = vpop.f32.mrf.mxu1  ;;  %v14763_v54 = vadd.f32 %v14762_v56, %v14683_v63 }
0x1512   : > { %v17417_v57 = vpop.f32.mrf.mxu0 }
0x1513   : > { %v17450_v58 = vpop.f32.mrf.mxu1  ;;  %v14840_v55 = vadd.f32 %v14839_v16, %v14763_v54 }
0x1519   : > { %v14922_v59 = vpop.f32.mrf.mxu0 }
0x151a   : > { %v14923_v24 = vadd.f32 %v14922_v59, %v14840_v55 }
0x151b   : > { %v17439_v61 = vpop.f32.mrf.mxu0 }
0x151c   : > { %v14998_v62 = vadd.f32 %v14997_v50, %v14923_v24 }
0x151e   : > { %15002 = vst.msk [vmem:[%s510_s26] sm:$0xff] %vm15001_vm3, %v14998_v62 }
0x151f PF: > { %s26_s18 = sadd.s32 1, %s17488_s18  }
0x1520   : > { %p23_p4 = scmp.ge.s32.totalorder %s26_s18, 4  }
0x1522   :  { %25 = sbr.rel (!%p23_p4) target bundleno = 1 (0x1), region = 157 }

</bundles_post_ra>
